<compile_context>
chip_gen: v5e
topology: v5e:2x2
jax: 0.10.0
libtpu: 0.0.40
codegen_flags: <defaults>
</compile_context>

<pallas_src>
import functools

import numpy as np
import jax
import jax.numpy as jnp
from jax.experimental import pallas as pl
from jax.experimental.pallas import tpu as pltpu

BN_EPS = 1e-5
K = 9                       # (1, 9) kernels
HALF = (K - 1) // 2         # torch padding 4 -> same-width correlation with flipped taps
UP = 8                      # total width upscaling: three x2 pixel shuffles
C_MID = 10                  # channels after each pixel shuffle (20 -> 10)


# ------------------------------- fused Pallas kernel --------------------------------

def _decoder_kernel(x_ref, w1_ref, w2_ref, w3_ref, g1_ref, bt1_ref,
                    g2_ref, bt2_ref, wpw_ref, bpw_ref, o_ref, *, WF):
    """Fully fused decoder forward on a single lane-dense [C, LF] activation layout.

    x_ref   : [3, LF]  f32    input pre-placed on the final grid (data at lane % 8 == 0)
    w*_ref  : [K, 20, Cin] bf16  per-tap conv matrices (Cout permuted even-first)
    g*_ref, bt*_ref : [20, 1] f32  BatchNorm gamma / beta (same channel permutation)
    wpw_ref : [1, 10] f32, bpw_ref : [1, 1] f32   final 1x1 conv
    o_ref   : [1, LF] f32   lane-dense output row (reshaped to NCHW outside)
    LF = B*H*WF lanes; each image row owns WF consecutive lanes.
    """
    f32, bf16 = jnp.float32, jnp.bfloat16
    _, LF = o_ref.shape

    lane = jax.lax.broadcasted_iota(jnp.int32, (1, LF), 1)
    m = jnp.bitwise_and(lane, WF - 1)             # lane position within its image row

    # stride-s validity masks; these double as the pixel-shuffle even/odd selectors
    mod = {s: jnp.bitwise_and(m, s - 1) == 0 for s in (8, 4, 2)}

    # zero-padding masks for lane-rolled taps, memoised by signed lane offset
    pad_masks = {}

    def pad_ok(off):                              # True where (m + off) stays inside the row
        if off not in pad_masks:
            pad_masks[off] = (m < WF - off) if off > 0 else (m >= -off)
        return pad_masks[off]

    def conv(v, w_ref, stride):
        """Same-width correlation along lanes at the given lane stride.
        9 masked lane-rolled taps, each a tiny bf16 [Cout,Cin]@[Cin,LF] MXU dot,
        accumulated in f32 (no [K*Cin, LF] im2col tensor is ever materialised)."""
        acc = None
        for k in range(K):
            d = k - HALF
            if d == 0:
                tap = v
            else:
                off = d * stride
                rolled = pltpu.roll(v, (-off) % LF, 1)        # out[l] = v[l + off]
                tap = jnp.where(pad_ok(off), rolled, 0.0)     # single select, no multiply
            t = jnp.dot(w_ref[k], tap.astype(bf16), preferred_element_type=f32)
            acc = t if acc is None else acc + t
        return acc                                            # [20, LF] f32

    def bn_relu(acc, g, b, valid, count):
        """Training-mode BatchNorm (biased batch stats over the `valid` lanes) + ReLU.
        Statistics and normalisation kept in f32 (v5e-safe)."""
        accm = jnp.where(valid, acc, 0.0)
        inv_n = 1.0 / count
        mean = jnp.sum(accm, axis=1, keepdims=True) * inv_n
        ex2 = jnp.sum(accm * acc, axis=1, keepdims=True) * inv_n
        var = jnp.maximum(ex2 - mean * mean, 0.0)
        y = (acc - mean) * jax.lax.rsqrt(var + BN_EPS) * g + b
        return jnp.maximum(y, 0.0)

    def shuffle(y, r):
        """pixel_shuffle(1, 2) on the stride-r lane grid -> stride r/2.
        Even (first-half, host-permuted) channels stay put; odd channels move r/2 lanes."""
        even = y[0:C_MID, :]
        odd = pltpu.roll(y[C_MID:2 * C_MID, :], r // 2, 1)
        return jnp.where(mod[r], even, odd)

    # layer 1 (stride 8 on the final grid) -> shuffle to stride 4
    y1 = bn_relu(conv(x_ref[...], w1_ref, 8), g1_ref[...], bt1_ref[...], mod[8], LF // 8)
    u1 = shuffle(y1, 8)
    # layer 2 (stride 4) -> shuffle to stride 2
    y2 = bn_relu(conv(u1, w2_ref, 4), g2_ref[...], bt2_ref[...], mod[4], LF // 4)
    u2 = shuffle(y2, 4)
    # layer 3 (stride 2); bn2 / relu2 are reused exactly as in the PyTorch module
    y3 = bn_relu(conv(u2, w3_ref, 2), g2_ref[...], bt2_ref[...], mod[2], LF // 2)
    u3 = shuffle(y3, 2)                                       # [10, LF], fully dense

    # fused 1x1 conv epilogue: [1,10]@[10,LF] on the (idle) MXU, explicit f32 precision
    out = jnp.dot(wpw_ref[...], u3, precision=jax.lax.Precision.HIGHEST,
                  preferred_element_type=f32) + bpw_ref[...]
    o_ref[...] = out          # [1, LF]; ~4 KB today, lane-dense store


# ----------------------------------- host wrapper ------------------------------------

def _vmem():
    return pl.BlockSpec(memory_space=pltpu.MemorySpace.VMEM)


@jax.jit
def decoder_forward(x_nchw, kp):
    B, Cin, H, W0 = x_nchw.shape
    assert Cin == 3 and W0 & (W0 - 1) == 0, "expects 3 channels and power-of-two width"
    N, WF = B * H, UP * W0
    LF = N * WF

    # Tiny XLA relayout (~12 KB): channels on sublanes, (image-row, width) flattened on
    # lanes, with each width sample pre-placed at lane stride 8 on the final-resolution
    # grid.  This replaces the former in-kernel [L0, LF] one-hot scatter matmul.
    x2d = jnp.transpose(x_nchw, (1, 0, 2, 3)).reshape(Cin, N * W0)
    x_grid = jnp.zeros((Cin, N * W0, UP), x2d.dtype).at[:, :, 0].set(x2d).reshape(Cin, LF)

    out = pl.pallas_call(
        functools.partial(_decoder_kernel, WF=WF),
        out_shape=jax.ShapeDtypeStruct((1, LF), jnp.float32),
        in_specs=[_vmem()] * 10,
        out_specs=_vmem(),
        # Live f32 intermediates are a handful of [20, LF] slabs (~0.5 MB at LF=1024);
        # explicit scoped-VMEM limit leaves ample headroom on v5e/v6e/v7x.
        compiler_params=pltpu.CompilerParams(vmem_limit_bytes=32 * 1024 * 1024),
    )(x_grid, kp["w1"], kp["w2"], kp["w3"], kp["g1"], kp["bt1"],
      kp["g2"], kp["bt2"], kp["w_pw"], kp["b_pw"])
    return out.reshape(B, 1, H, WF)                 # free metadata reshape to NCHW


# ----------------------------- parameter construction --------------------------------

_PERM = np.concatenate([np.arange(0, 20, 2), np.arange(1, 20, 2)])   # even channels first


def make_torch_params(key):
    ks = jax.random.split(key, 12)
    n = lambda k, s, sc: sc * jax.random.normal(k, s, jnp.float32)
    return dict(
        wT1=n(ks[0], (3, 20, 1, 9), 0.2),  b1=n(ks[1], (20,), 0.1),
        g1=1.0 + n(ks[2], (20,), 0.1),     bt1=n(ks[3], (20,), 0.1),
        wT2=n(ks[4], (10, 20, 1, 9), 0.2), b2=n(ks[5], (20,), 0.1),
        g2=1.0 + n(ks[6], (20,), 0.1),     bt2=n(ks[7], (20,), 0.1),
        wT3=n(ks[8], (10, 20, 1, 9), 0.2), b3=n(ks[9], (20,), 0.1),
        wpw=n(ks[10], (1, 10, 1, 1), 0.2), bpw=n(ks[11], (1,), 0.1),
    )


def _tap_weights(wT):
    # ConvTranspose2d weight [Cin, Cout, 1, K] -> per-tap [K, Cout, Cin] matrices of the
    # equivalent same-width correlation (taps flipped, IO->OI); output channels permuted
    # even-first so the in-kernel pixel shuffle is a contiguous half split.  Stored in
    # bf16: these are pure MXU operands (bf16-native on v6e, mandatory on v7x).
    w = jnp.transpose(jnp.flip(wT[:, :, 0, :], axis=-1), (2, 1, 0))   # [K, Cout, Cin]
    return w[:, _PERM, :].astype(jnp.bfloat16)


def to_kernel_params(tp):
    col = lambda v: v[_PERM].reshape(-1, 1).astype(jnp.float32)
    return dict(
        w1=_tap_weights(tp["wT1"]), g1=col(tp["g1"]), bt1=col(tp["bt1"]),
        w2=_tap_weights(tp["wT2"]), g2=col(tp["g2"]), bt2=col(tp["bt2"]),
        w3=_tap_weights(tp["wT3"]),
        # b1/b2/b3 intentionally dropped: a per-channel constant added before a
        # training-mode BatchNorm has no effect on the output.
        w_pw=tp["wpw"][0, :, 0, 0].reshape(1, -1).astype(jnp.float32),   # [1, 10]
        b_pw=tp["bpw"].reshape(1, 1).astype(jnp.float32),
    )


# --------------------------------- numpy reference -----------------------------------

def ref_forward(x, tp):
    x = np.asarray(x, np.float64)
    A = lambda a: np.asarray(a, np.float64)

    def convT(x, wT, b, pad=4):
        B, Cin, H, Win = x.shape
        _, Cout, _, Kk = wT.shape
        y = np.zeros((B, Cout, H, Win + Kk - 1))
        for k in range(Kk):  # scatter form of transposed conv
            y[:, :, :, k:k + Win] += np.einsum('bchw,co->bohw', x, wT[:, :, 0, k])
        return y[:, :, :, pad:pad + Win] + b[None, :, None, None]

    def bn(x, g, bt):
        m = x.mean(axis=(0, 2, 3), keepdims=True)
        v = x.var(axis=(0, 2, 3), keepdims=True)     # biased, like torch training BN
        return (x - m) / np.sqrt(v + BN_EPS) * g[None, :, None, None] + bt[None, :, None, None]

    def ps(x):
        B, C, H, W = x.shape
        C2 = C // 2
        return x.reshape(B, C2, 1, 2, H, W).transpose(0, 1, 4, 2, 5, 3).reshape(B, C2, H, 2 * W)

    relu = lambda z: np.maximum(z, 0.0)
    y = relu(bn(convT(x, A(tp["wT1"]), A(tp["b1"])), A(tp["g1"]), A(tp["bt1"])))
    y = ps(y)
    y = relu(bn(convT(y, A(tp["wT2"]), A(tp["b2"])), A(tp["g2"]), A(tp["bt2"])))
    y = ps(y)
    y = relu(bn(convT(y, A(tp["wT3"]), A(tp["b3"])), A(tp["g2"]), A(tp["bt2"])))  # bn2/relu2 reused
    y = ps(y)
    return np.einsum('bchw,oc->bohw', y, A(tp["wpw"])[:, :, 0, 0]) + A(tp["bpw"])[None, :, None, None]


# ---------------------------------------- main ----------------------------------------

if __name__ == "__main__":
    key = jax.random.PRNGKey(0)
    k_x, k_p = jax.random.split(key)
    x = jax.random.normal(k_x, (2, 3, 4, 16), jnp.float32)   # NCHW, like PyTorch

    torch_params = make_torch_params(k_p)
    params = to_kernel_params(torch_params)

    out = jax.block_until_ready(decoder_forward(x, params))
    assert out.shape == (2, 1, 4, 128), out.shape

    # bf16 MXU operands for the three conv matmuls (v6e/v7x guidance) widen the tolerance
    # vs. the float64 reference; observed error is ~1e-2 max at these shapes.
    ref = ref_forward(x, torch_params)
    np.testing.assert_allclose(np.asarray(out, np.float64), ref, rtol=3e-2, atol=3e-2)

    print("KERNEL_OK")
</pallas_src>

<mosaic_0001>
module attributes {stable_mosaic.version = 11 : i64} {
  func.func @_decoder_kernel(%arg0: memref<3x1024xf32, #tpu.memory_space<vmem>>, %arg1: memref<9x20x3xbf16, #tpu.memory_space<vmem>>, %arg2: memref<9x20x10xbf16, #tpu.memory_space<vmem>>, %arg3: memref<9x20x10xbf16, #tpu.memory_space<vmem>>, %arg4: memref<20x1xf32, #tpu.memory_space<vmem>>, %arg5: memref<20x1xf32, #tpu.memory_space<vmem>>, %arg6: memref<20x1xf32, #tpu.memory_space<vmem>>, %arg7: memref<20x1xf32, #tpu.memory_space<vmem>>, %arg8: memref<1x10xf32, #tpu.memory_space<vmem>>, %arg9: memref<1x1xf32, #tpu.memory_space<vmem>>, %arg10: memref<1x1024xf32, #tpu.memory_space<vmem>>) attributes {dimension_semantics = [], scalar_prefetch = 0 : i64, scratch_operands = 0 : i64, tpu.core_type = #tpu.core_type<tc>} {
    %0 = tpu.iota {dimensions = array<i32: 1>} : vector<1x1024xi32>
    %c127_i32 = arith.constant 127 : i32
    %1 = vector.broadcast %c127_i32 : i32 to vector<1x1024xi32>
    %2 = arith.andi %0, %1 : vector<1x1024xi32>
    %c7_i32 = arith.constant 7 : i32
    %3 = vector.broadcast %c7_i32 : i32 to vector<1x1024xi32>
    %4 = arith.andi %2, %3 : vector<1x1024xi32>
    %c0_i32 = arith.constant 0 : i32
    %5 = vector.broadcast %c0_i32 : i32 to vector<1x1024xi32>
    %6 = arith.cmpi eq, %4, %5 : vector<1x1024xi32>
    %c3_i32 = arith.constant 3 : i32
    %7 = vector.broadcast %c3_i32 : i32 to vector<1x1024xi32>
    %8 = arith.andi %2, %7 : vector<1x1024xi32>
    %c0_i32_0 = arith.constant 0 : i32
    %9 = vector.broadcast %c0_i32_0 : i32 to vector<1x1024xi32>
    %10 = arith.cmpi eq, %8, %9 : vector<1x1024xi32>
    %c1_i32 = arith.constant 1 : i32
    %11 = vector.broadcast %c1_i32 : i32 to vector<1x1024xi32>
    %12 = arith.andi %2, %11 : vector<1x1024xi32>
    %c0_i32_1 = arith.constant 0 : i32
    %13 = vector.broadcast %c0_i32_1 : i32 to vector<1x1024xi32>
    %14 = arith.cmpi eq, %12, %13 : vector<1x1024xi32>
    %c0 = arith.constant 0 : index
    %c0_2 = arith.constant 0 : index
    %15 = vector.load %arg0[%c0, %c0_2] : memref<3x1024xf32, #tpu.memory_space<vmem>>, vector<3x1024xf32>
    %c32_i32 = arith.constant 32 : i32
    %16 = tpu.dynamic_rotate %15 by %c32_i32 dim 1 : vector<3x1024xf32>, i32 -> vector<3x1024xf32>
    %c32_i32_3 = arith.constant 32 : i32
    %17 = vector.broadcast %c32_i32_3 : i32 to vector<1x1024xi32>
    %18 = arith.cmpi sge, %2, %17 : vector<1x1024xi32>
    %cst = arith.constant 0.000000e+00 : f32
    %19 = vector.shape_cast %18 : vector<1x1024xi1> to vector<1x1024xi1>
    %20 = vector.broadcast %19 : vector<1x1024xi1> to vector<3x1024xi1>
    %21 = vector.broadcast %cst : f32 to vector<3x1024xf32>
    %22 = arith.select %20, %16, %21 : vector<3x1024xi1>, vector<3x1024xf32>
    %c0_4 = arith.constant 0 : index
    %c0_5 = arith.constant 0 : index
    %c0_6 = arith.constant 0 : index
    %23 = vector.load %arg1[%c0_4, %c0_5, %c0_6] : memref<9x20x3xbf16, #tpu.memory_space<vmem>>, vector<1x20x3xbf16>
    %24 = vector.shape_cast %23 : vector<1x20x3xbf16> to vector<20x3xbf16>
    %25 = arith.truncf %22 : vector<3x1024xf32> to vector<3x1024xbf16>
    %cst_7 = arith.constant dense<0.000000e+00> : vector<20x1024xf32>
    %26 = tpu.matmul %24, %25, %cst_7 {dimension_numbers = #tpu.dot_dimension_numbers<[1], [0], [0], [1], [0, 0, 1, 1], [], []>} : vector<20x3xbf16>, vector<3x1024xbf16>, vector<20x1024xf32> -> vector<20x1024xf32>
    %c24_i32 = arith.constant 24 : i32
    %27 = tpu.dynamic_rotate %15 by %c24_i32 dim 1 : vector<3x1024xf32>, i32 -> vector<3x1024xf32>
    %c24_i32_8 = arith.constant 24 : i32
    %28 = vector.broadcast %c24_i32_8 : i32 to vector<1x1024xi32>
    %29 = arith.cmpi sge, %2, %28 : vector<1x1024xi32>
    %cst_9 = arith.constant 0.000000e+00 : f32
    %30 = vector.shape_cast %29 : vector<1x1024xi1> to vector<1x1024xi1>
    %31 = vector.broadcast %30 : vector<1x1024xi1> to vector<3x1024xi1>
    %32 = vector.broadcast %cst_9 : f32 to vector<3x1024xf32>
    %33 = arith.select %31, %27, %32 : vector<3x1024xi1>, vector<3x1024xf32>
    %c1 = arith.constant 1 : index
    %c0_10 = arith.constant 0 : index
    %c0_11 = arith.constant 0 : index
    %34 = vector.load %arg1[%c1, %c0_10, %c0_11] : memref<9x20x3xbf16, #tpu.memory_space<vmem>>, vector<1x20x3xbf16>
    %35 = vector.shape_cast %34 : vector<1x20x3xbf16> to vector<20x3xbf16>
    %36 = arith.truncf %33 : vector<3x1024xf32> to vector<3x1024xbf16>
    %cst_12 = arith.constant dense<0.000000e+00> : vector<20x1024xf32>
    %37 = tpu.matmul %35, %36, %cst_12 {dimension_numbers = #tpu.dot_dimension_numbers<[1], [0], [0], [1], [0, 0, 1, 1], [], []>} : vector<20x3xbf16>, vector<3x1024xbf16>, vector<20x1024xf32> -> vector<20x1024xf32>
    %38 = arith.addf %26, %37 : vector<20x1024xf32>
    %c16_i32 = arith.constant 16 : i32
    %39 = tpu.dynamic_rotate %15 by %c16_i32 dim 1 : vector<3x1024xf32>, i32 -> vector<3x1024xf32>
    %c16_i32_13 = arith.constant 16 : i32
    %40 = vector.broadcast %c16_i32_13 : i32 to vector<1x1024xi32>
    %41 = arith.cmpi sge, %2, %40 : vector<1x1024xi32>
    %cst_14 = arith.constant 0.000000e+00 : f32
    %42 = vector.shape_cast %41 : vector<1x1024xi1> to vector<1x1024xi1>
    %43 = vector.broadcast %42 : vector<1x1024xi1> to vector<3x1024xi1>
    %44 = vector.broadcast %cst_14 : f32 to vector<3x1024xf32>
    %45 = arith.select %43, %39, %44 : vector<3x1024xi1>, vector<3x1024xf32>
    %c2 = arith.constant 2 : index
    %c0_15 = arith.constant 0 : index
    %c0_16 = arith.constant 0 : index
    %46 = vector.load %arg1[%c2, %c0_15, %c0_16] : memref<9x20x3xbf16, #tpu.memory_space<vmem>>, vector<1x20x3xbf16>
    %47 = vector.shape_cast %46 : vector<1x20x3xbf16> to vector<20x3xbf16>
    %48 = arith.truncf %45 : vector<3x1024xf32> to vector<3x1024xbf16>
    %cst_17 = arith.constant dense<0.000000e+00> : vector<20x1024xf32>
    %49 = tpu.matmul %47, %48, %cst_17 {dimension_numbers = #tpu.dot_dimension_numbers<[1], [0], [0], [1], [0, 0, 1, 1], [], []>} : vector<20x3xbf16>, vector<3x1024xbf16>, vector<20x1024xf32> -> vector<20x1024xf32>
    %50 = arith.addf %38, %49 : vector<20x1024xf32>
    %c8_i32 = arith.constant 8 : i32
    %51 = tpu.dynamic_rotate %15 by %c8_i32 dim 1 : vector<3x1024xf32>, i32 -> vector<3x1024xf32>
    %c8_i32_18 = arith.constant 8 : i32
    %52 = vector.broadcast %c8_i32_18 : i32 to vector<1x1024xi32>
    %53 = arith.cmpi sge, %2, %52 : vector<1x1024xi32>
    %cst_19 = arith.constant 0.000000e+00 : f32
    %54 = vector.shape_cast %53 : vector<1x1024xi1> to vector<1x1024xi1>
    %55 = vector.broadcast %54 : vector<1x1024xi1> to vector<3x1024xi1>
    %56 = vector.broadcast %cst_19 : f32 to vector<3x1024xf32>
    %57 = arith.select %55, %51, %56 : vector<3x1024xi1>, vector<3x1024xf32>
    %c3 = arith.constant 3 : index
    %c0_20 = arith.constant 0 : index
    %c0_21 = arith.constant 0 : index
    %58 = vector.load %arg1[%c3, %c0_20, %c0_21] : memref<9x20x3xbf16, #tpu.memory_space<vmem>>, vector<1x20x3xbf16>
    %59 = vector.shape_cast %58 : vector<1x20x3xbf16> to vector<20x3xbf16>
    %60 = arith.truncf %57 : vector<3x1024xf32> to vector<3x1024xbf16>
    %cst_22 = arith.constant dense<0.000000e+00> : vector<20x1024xf32>
    %61 = tpu.matmul %59, %60, %cst_22 {dimension_numbers = #tpu.dot_dimension_numbers<[1], [0], [0], [1], [0, 0, 1, 1], [], []>} : vector<20x3xbf16>, vector<3x1024xbf16>, vector<20x1024xf32> -> vector<20x1024xf32>
    %62 = arith.addf %50, %61 : vector<20x1024xf32>
    %c4 = arith.constant 4 : index
    %c0_23 = arith.constant 0 : index
    %c0_24 = arith.constant 0 : index
    %63 = vector.load %arg1[%c4, %c0_23, %c0_24] : memref<9x20x3xbf16, #tpu.memory_space<vmem>>, vector<1x20x3xbf16>
    %64 = vector.shape_cast %63 : vector<1x20x3xbf16> to vector<20x3xbf16>
    %65 = arith.truncf %15 : vector<3x1024xf32> to vector<3x1024xbf16>
    %cst_25 = arith.constant dense<0.000000e+00> : vector<20x1024xf32>
    %66 = tpu.matmul %64, %65, %cst_25 {dimension_numbers = #tpu.dot_dimension_numbers<[1], [0], [0], [1], [0, 0, 1, 1], [], []>} : vector<20x3xbf16>, vector<3x1024xbf16>, vector<20x1024xf32> -> vector<20x1024xf32>
    %67 = arith.addf %62, %66 : vector<20x1024xf32>
    %c1016_i32 = arith.constant 1016 : i32
    %68 = tpu.dynamic_rotate %15 by %c1016_i32 dim 1 : vector<3x1024xf32>, i32 -> vector<3x1024xf32>
    %c120_i32 = arith.constant 120 : i32
    %69 = vector.broadcast %c120_i32 : i32 to vector<1x1024xi32>
    %70 = arith.cmpi slt, %2, %69 : vector<1x1024xi32>
    %cst_26 = arith.constant 0.000000e+00 : f32
    %71 = vector.shape_cast %70 : vector<1x1024xi1> to vector<1x1024xi1>
    %72 = vector.broadcast %71 : vector<1x1024xi1> to vector<3x1024xi1>
    %73 = vector.broadcast %cst_26 : f32 to vector<3x1024xf32>
    %74 = arith.select %72, %68, %73 : vector<3x1024xi1>, vector<3x1024xf32>
    %c5 = arith.constant 5 : index
    %c0_27 = arith.constant 0 : index
    %c0_28 = arith.constant 0 : index
    %75 = vector.load %arg1[%c5, %c0_27, %c0_28] : memref<9x20x3xbf16, #tpu.memory_space<vmem>>, vector<1x20x3xbf16>
    %76 = vector.shape_cast %75 : vector<1x20x3xbf16> to vector<20x3xbf16>
    %77 = arith.truncf %74 : vector<3x1024xf32> to vector<3x1024xbf16>
    %cst_29 = arith.constant dense<0.000000e+00> : vector<20x1024xf32>
    %78 = tpu.matmul %76, %77, %cst_29 {dimension_numbers = #tpu.dot_dimension_numbers<[1], [0], [0], [1], [0, 0, 1, 1], [], []>} : vector<20x3xbf16>, vector<3x1024xbf16>, vector<20x1024xf32> -> vector<20x1024xf32>
    %79 = arith.addf %67, %78 : vector<20x1024xf32>
    %c1008_i32 = arith.constant 1008 : i32
    %80 = tpu.dynamic_rotate %15 by %c1008_i32 dim 1 : vector<3x1024xf32>, i32 -> vector<3x1024xf32>
    %c112_i32 = arith.constant 112 : i32
    %81 = vector.broadcast %c112_i32 : i32 to vector<1x1024xi32>
    %82 = arith.cmpi slt, %2, %81 : vector<1x1024xi32>
    %cst_30 = arith.constant 0.000000e+00 : f32
    %83 = vector.shape_cast %82 : vector<1x1024xi1> to vector<1x1024xi1>
    %84 = vector.broadcast %83 : vector<1x1024xi1> to vector<3x1024xi1>
    %85 = vector.broadcast %cst_30 : f32 to vector<3x1024xf32>
    %86 = arith.select %84, %80, %85 : vector<3x1024xi1>, vector<3x1024xf32>
    %c6 = arith.constant 6 : index
    %c0_31 = arith.constant 0 : index
    %c0_32 = arith.constant 0 : index
    %87 = vector.load %arg1[%c6, %c0_31, %c0_32] : memref<9x20x3xbf16, #tpu.memory_space<vmem>>, vector<1x20x3xbf16>
    %88 = vector.shape_cast %87 : vector<1x20x3xbf16> to vector<20x3xbf16>
    %89 = arith.truncf %86 : vector<3x1024xf32> to vector<3x1024xbf16>
    %cst_33 = arith.constant dense<0.000000e+00> : vector<20x1024xf32>
    %90 = tpu.matmul %88, %89, %cst_33 {dimension_numbers = #tpu.dot_dimension_numbers<[1], [0], [0], [1], [0, 0, 1, 1], [], []>} : vector<20x3xbf16>, vector<3x1024xbf16>, vector<20x1024xf32> -> vector<20x1024xf32>
    %91 = arith.addf %79, %90 : vector<20x1024xf32>
    %c1000_i32 = arith.constant 1000 : i32
    %92 = tpu.dynamic_rotate %15 by %c1000_i32 dim 1 : vector<3x1024xf32>, i32 -> vector<3x1024xf32>
    %c104_i32 = arith.constant 104 : i32
    %93 = vector.broadcast %c104_i32 : i32 to vector<1x1024xi32>
    %94 = arith.cmpi slt, %2, %93 : vector<1x1024xi32>
    %cst_34 = arith.constant 0.000000e+00 : f32
    %95 = vector.shape_cast %94 : vector<1x1024xi1> to vector<1x1024xi1>
    %96 = vector.broadcast %95 : vector<1x1024xi1> to vector<3x1024xi1>
    %97 = vector.broadcast %cst_34 : f32 to vector<3x1024xf32>
    %98 = arith.select %96, %92, %97 : vector<3x1024xi1>, vector<3x1024xf32>
    %c7 = arith.constant 7 : index
    %c0_35 = arith.constant 0 : index
    %c0_36 = arith.constant 0 : index
    %99 = vector.load %arg1[%c7, %c0_35, %c0_36] : memref<9x20x3xbf16, #tpu.memory_space<vmem>>, vector<1x20x3xbf16>
    %100 = vector.shape_cast %99 : vector<1x20x3xbf16> to vector<20x3xbf16>
    %101 = arith.truncf %98 : vector<3x1024xf32> to vector<3x1024xbf16>
    %cst_37 = arith.constant dense<0.000000e+00> : vector<20x1024xf32>
    %102 = tpu.matmul %100, %101, %cst_37 {dimension_numbers = #tpu.dot_dimension_numbers<[1], [0], [0], [1], [0, 0, 1, 1], [], []>} : vector<20x3xbf16>, vector<3x1024xbf16>, vector<20x1024xf32> -> vector<20x1024xf32>
    %103 = arith.addf %91, %102 : vector<20x1024xf32>
    %c992_i32 = arith.constant 992 : i32
    %104 = tpu.dynamic_rotate %15 by %c992_i32 dim 1 : vector<3x1024xf32>, i32 -> vector<3x1024xf32>
    %c96_i32 = arith.constant 96 : i32
    %105 = vector.broadcast %c96_i32 : i32 to vector<1x1024xi32>
    %106 = arith.cmpi slt, %2, %105 : vector<1x1024xi32>
    %cst_38 = arith.constant 0.000000e+00 : f32
    %107 = vector.shape_cast %106 : vector<1x1024xi1> to vector<1x1024xi1>
    %108 = vector.broadcast %107 : vector<1x1024xi1> to vector<3x1024xi1>
    %109 = vector.broadcast %cst_38 : f32 to vector<3x1024xf32>
    %110 = arith.select %108, %104, %109 : vector<3x1024xi1>, vector<3x1024xf32>
    %c8 = arith.constant 8 : index
    %c0_39 = arith.constant 0 : index
    %c0_40 = arith.constant 0 : index
    %111 = vector.load %arg1[%c8, %c0_39, %c0_40] : memref<9x20x3xbf16, #tpu.memory_space<vmem>>, vector<1x20x3xbf16>
    %112 = vector.shape_cast %111 : vector<1x20x3xbf16> to vector<20x3xbf16>
    %113 = arith.truncf %110 : vector<3x1024xf32> to vector<3x1024xbf16>
    %cst_41 = arith.constant dense<0.000000e+00> : vector<20x1024xf32>
    %114 = tpu.matmul %112, %113, %cst_41 {dimension_numbers = #tpu.dot_dimension_numbers<[1], [0], [0], [1], [0, 0, 1, 1], [], []>} : vector<20x3xbf16>, vector<3x1024xbf16>, vector<20x1024xf32> -> vector<20x1024xf32>
    %115 = arith.addf %103, %114 : vector<20x1024xf32>
    %c0_42 = arith.constant 0 : index
    %c0_43 = arith.constant 0 : index
    %116 = vector.load %arg4[%c0_42, %c0_43] : memref<20x1xf32, #tpu.memory_space<vmem>>, vector<20x1xf32>
    %c0_44 = arith.constant 0 : index
    %c0_45 = arith.constant 0 : index
    %117 = vector.load %arg5[%c0_44, %c0_45] : memref<20x1xf32, #tpu.memory_space<vmem>>, vector<20x1xf32>
    %cst_46 = arith.constant 0.000000e+00 : f32
    %118 = vector.shape_cast %6 : vector<1x1024xi1> to vector<1x1024xi1>
    %119 = vector.broadcast %118 : vector<1x1024xi1> to vector<20x1024xi1>
    %120 = vector.broadcast %cst_46 : f32 to vector<20x1024xf32>
    %121 = arith.select %119, %115, %120 : vector<20x1024xi1>, vector<20x1024xf32>
    %cst_47 = arith.constant dense<0.000000e+00> : vector<20xf32>
    %122 = vector.multi_reduction <add>, %121, %cst_47 [1] : vector<20x1024xf32> to vector<20xf32>
    %123 = vector.shape_cast %122 : vector<20xf32> to vector<20x1xf32>
    %cst_48 = arith.constant 7.812500e-03 : f32
    %124 = vector.broadcast %cst_48 : f32 to vector<20x1xf32>
    %125 = arith.mulf %123, %124 : vector<20x1xf32>
    %126 = arith.mulf %121, %115 : vector<20x1024xf32>
    %cst_49 = arith.constant dense<0.000000e+00> : vector<20xf32>
    %127 = vector.multi_reduction <add>, %126, %cst_49 [1] : vector<20x1024xf32> to vector<20xf32>
    %128 = vector.shape_cast %127 : vector<20xf32> to vector<20x1xf32>
    %cst_50 = arith.constant 7.812500e-03 : f32
    %129 = vector.broadcast %cst_50 : f32 to vector<20x1xf32>
    %130 = arith.mulf %128, %129 : vector<20x1xf32>
    %131 = arith.mulf %125, %125 : vector<20x1xf32>
    %132 = arith.subf %130, %131 : vector<20x1xf32>
    %cst_51 = arith.constant 0.000000e+00 : f32
    %133 = vector.broadcast %cst_51 : f32 to vector<20x1xf32>
    %134 = arith.maximumf %132, %133 : vector<20x1xf32>
    %135 = vector.broadcast %125 : vector<20x1xf32> to vector<20x1024xf32>
    %136 = arith.subf %115, %135 : vector<20x1024xf32>
    %cst_52 = arith.constant 9.99999974E-6 : f32
    %137 = vector.broadcast %cst_52 : f32 to vector<20x1xf32>
    %138 = arith.addf %134, %137 : vector<20x1xf32>
    %139 = math.rsqrt %138 : vector<20x1xf32>
    %140 = vector.broadcast %139 : vector<20x1xf32> to vector<20x1024xf32>
    %141 = arith.mulf %136, %140 : vector<20x1024xf32>
    %142 = vector.broadcast %116 : vector<20x1xf32> to vector<20x1024xf32>
    %143 = arith.mulf %141, %142 : vector<20x1024xf32>
    %144 = vector.broadcast %117 : vector<20x1xf32> to vector<20x1024xf32>
    %145 = arith.addf %143, %144 : vector<20x1024xf32>
    %cst_53 = arith.constant 0.000000e+00 : f32
    %146 = vector.broadcast %cst_53 : f32 to vector<20x1024xf32>
    %147 = arith.maximumf %145, %146 : vector<20x1024xf32>
    %148 = vector.extract_strided_slice %147 {offsets = [0, 0], sizes = [10, 1024], strides = [1, 1]} : vector<20x1024xf32> to vector<10x1024xf32>
    %149 = vector.extract_strided_slice %147 {offsets = [10, 0], sizes = [10, 1024], strides = [1, 1]} : vector<20x1024xf32> to vector<10x1024xf32>
    %c4_i32 = arith.constant 4 : i32
    %150 = tpu.dynamic_rotate %149 by %c4_i32 dim 1 : vector<10x1024xf32>, i32 -> vector<10x1024xf32>
    %151 = vector.shape_cast %6 : vector<1x1024xi1> to vector<1x1024xi1>
    %152 = vector.broadcast %151 : vector<1x1024xi1> to vector<10x1024xi1>
    %153 = arith.select %152, %148, %150 : vector<10x1024xi1>, vector<10x1024xf32>
    %c16_i32_54 = arith.constant 16 : i32
    %154 = tpu.dynamic_rotate %153 by %c16_i32_54 dim 1 : vector<10x1024xf32>, i32 -> vector<10x1024xf32>
    %cst_55 = arith.constant 0.000000e+00 : f32
    %155 = vector.shape_cast %41 : vector<1x1024xi1> to vector<1x1024xi1>
    %156 = vector.broadcast %155 : vector<1x1024xi1> to vector<10x1024xi1>
    %157 = vector.broadcast %cst_55 : f32 to vector<10x1024xf32>
    %158 = arith.select %156, %154, %157 : vector<10x1024xi1>, vector<10x1024xf32>
    %c0_56 = arith.constant 0 : index
    %c0_57 = arith.constant 0 : index
    %c0_58 = arith.constant 0 : index
    %159 = vector.load %arg2[%c0_56, %c0_57, %c0_58] : memref<9x20x10xbf16, #tpu.memory_space<vmem>>, vector<1x20x10xbf16>
    %160 = vector.shape_cast %159 : vector<1x20x10xbf16> to vector<20x10xbf16>
    %161 = arith.truncf %158 : vector<10x1024xf32> to vector<10x1024xbf16>
    %cst_59 = arith.constant dense<0.000000e+00> : vector<20x1024xf32>
    %162 = tpu.matmul %160, %161, %cst_59 {dimension_numbers = #tpu.dot_dimension_numbers<[1], [0], [0], [1], [0, 0, 1, 1], [], []>} : vector<20x10xbf16>, vector<10x1024xbf16>, vector<20x1024xf32> -> vector<20x1024xf32>
    %c12_i32 = arith.constant 12 : i32
    %163 = tpu.dynamic_rotate %153 by %c12_i32 dim 1 : vector<10x1024xf32>, i32 -> vector<10x1024xf32>
    %c12_i32_60 = arith.constant 12 : i32
    %164 = vector.broadcast %c12_i32_60 : i32 to vector<1x1024xi32>
    %165 = arith.cmpi sge, %2, %164 : vector<1x1024xi32>
    %cst_61 = arith.constant 0.000000e+00 : f32
    %166 = vector.shape_cast %165 : vector<1x1024xi1> to vector<1x1024xi1>
    %167 = vector.broadcast %166 : vector<1x1024xi1> to vector<10x1024xi1>
    %168 = vector.broadcast %cst_61 : f32 to vector<10x1024xf32>
    %169 = arith.select %167, %163, %168 : vector<10x1024xi1>, vector<10x1024xf32>
    %c1_62 = arith.constant 1 : index
    %c0_63 = arith.constant 0 : index
    %c0_64 = arith.constant 0 : index
    %170 = vector.load %arg2[%c1_62, %c0_63, %c0_64] : memref<9x20x10xbf16, #tpu.memory_space<vmem>>, vector<1x20x10xbf16>
    %171 = vector.shape_cast %170 : vector<1x20x10xbf16> to vector<20x10xbf16>
    %172 = arith.truncf %169 : vector<10x1024xf32> to vector<10x1024xbf16>
    %cst_65 = arith.constant dense<0.000000e+00> : vector<20x1024xf32>
    %173 = tpu.matmul %171, %172, %cst_65 {dimension_numbers = #tpu.dot_dimension_numbers<[1], [0], [0], [1], [0, 0, 1, 1], [], []>} : vector<20x10xbf16>, vector<10x1024xbf16>, vector<20x1024xf32> -> vector<20x1024xf32>
    %174 = arith.addf %162, %173 : vector<20x1024xf32>
    %c8_i32_66 = arith.constant 8 : i32
    %175 = tpu.dynamic_rotate %153 by %c8_i32_66 dim 1 : vector<10x1024xf32>, i32 -> vector<10x1024xf32>
    %cst_67 = arith.constant 0.000000e+00 : f32
    %176 = vector.shape_cast %53 : vector<1x1024xi1> to vector<1x1024xi1>
    %177 = vector.broadcast %176 : vector<1x1024xi1> to vector<10x1024xi1>
    %178 = vector.broadcast %cst_67 : f32 to vector<10x1024xf32>
    %179 = arith.select %177, %175, %178 : vector<10x1024xi1>, vector<10x1024xf32>
    %c2_68 = arith.constant 2 : index
    %c0_69 = arith.constant 0 : index
    %c0_70 = arith.constant 0 : index
    %180 = vector.load %arg2[%c2_68, %c0_69, %c0_70] : memref<9x20x10xbf16, #tpu.memory_space<vmem>>, vector<1x20x10xbf16>
    %181 = vector.shape_cast %180 : vector<1x20x10xbf16> to vector<20x10xbf16>
    %182 = arith.truncf %179 : vector<10x1024xf32> to vector<10x1024xbf16>
    %cst_71 = arith.constant dense<0.000000e+00> : vector<20x1024xf32>
    %183 = tpu.matmul %181, %182, %cst_71 {dimension_numbers = #tpu.dot_dimension_numbers<[1], [0], [0], [1], [0, 0, 1, 1], [], []>} : vector<20x10xbf16>, vector<10x1024xbf16>, vector<20x1024xf32> -> vector<20x1024xf32>
    %184 = arith.addf %174, %183 : vector<20x1024xf32>
    %c4_i32_72 = arith.constant 4 : i32
    %185 = tpu.dynamic_rotate %153 by %c4_i32_72 dim 1 : vector<10x1024xf32>, i32 -> vector<10x1024xf32>
    %c4_i32_73 = arith.constant 4 : i32
    %186 = vector.broadcast %c4_i32_73 : i32 to vector<1x1024xi32>
    %187 = arith.cmpi sge, %2, %186 : vector<1x1024xi32>
    %cst_74 = arith.constant 0.000000e+00 : f32
    %188 = vector.shape_cast %187 : vector<1x1024xi1> to vector<1x1024xi1>
    %189 = vector.broadcast %188 : vector<1x1024xi1> to vector<10x1024xi1>
    %190 = vector.broadcast %cst_74 : f32 to vector<10x1024xf32>
    %191 = arith.select %189, %185, %190 : vector<10x1024xi1>, vector<10x1024xf32>
    %c3_75 = arith.constant 3 : index
    %c0_76 = arith.constant 0 : index
    %c0_77 = arith.constant 0 : index
    %192 = vector.load %arg2[%c3_75, %c0_76, %c0_77] : memref<9x20x10xbf16, #tpu.memory_space<vmem>>, vector<1x20x10xbf16>
    %193 = vector.shape_cast %192 : vector<1x20x10xbf16> to vector<20x10xbf16>
    %194 = arith.truncf %191 : vector<10x1024xf32> to vector<10x1024xbf16>
    %cst_78 = arith.constant dense<0.000000e+00> : vector<20x1024xf32>
    %195 = tpu.matmul %193, %194, %cst_78 {dimension_numbers = #tpu.dot_dimension_numbers<[1], [0], [0], [1], [0, 0, 1, 1], [], []>} : vector<20x10xbf16>, vector<10x1024xbf16>, vector<20x1024xf32> -> vector<20x1024xf32>
    %196 = arith.addf %184, %195 : vector<20x1024xf32>
    %c4_79 = arith.constant 4 : index
    %c0_80 = arith.constant 0 : index
    %c0_81 = arith.constant 0 : index
    %197 = vector.load %arg2[%c4_79, %c0_80, %c0_81] : memref<9x20x10xbf16, #tpu.memory_space<vmem>>, vector<1x20x10xbf16>
    %198 = vector.shape_cast %197 : vector<1x20x10xbf16> to vector<20x10xbf16>
    %199 = arith.truncf %153 : vector<10x1024xf32> to vector<10x1024xbf16>
    %cst_82 = arith.constant dense<0.000000e+00> : vector<20x1024xf32>
    %200 = tpu.matmul %198, %199, %cst_82 {dimension_numbers = #tpu.dot_dimension_numbers<[1], [0], [0], [1], [0, 0, 1, 1], [], []>} : vector<20x10xbf16>, vector<10x1024xbf16>, vector<20x1024xf32> -> vector<20x1024xf32>
    %201 = arith.addf %196, %200 : vector<20x1024xf32>
    %c1020_i32 = arith.constant 1020 : i32
    %202 = tpu.dynamic_rotate %153 by %c1020_i32 dim 1 : vector<10x1024xf32>, i32 -> vector<10x1024xf32>
    %c124_i32 = arith.constant 124 : i32
    %203 = vector.broadcast %c124_i32 : i32 to vector<1x1024xi32>
    %204 = arith.cmpi slt, %2, %203 : vector<1x1024xi32>
    %cst_83 = arith.constant 0.000000e+00 : f32
    %205 = vector.shape_cast %204 : vector<1x1024xi1> to vector<1x1024xi1>
    %206 = vector.broadcast %205 : vector<1x1024xi1> to vector<10x1024xi1>
    %207 = vector.broadcast %cst_83 : f32 to vector<10x1024xf32>
    %208 = arith.select %206, %202, %207 : vector<10x1024xi1>, vector<10x1024xf32>
    %c5_84 = arith.constant 5 : index
    %c0_85 = arith.constant 0 : index
    %c0_86 = arith.constant 0 : index
    %209 = vector.load %arg2[%c5_84, %c0_85, %c0_86] : memref<9x20x10xbf16, #tpu.memory_space<vmem>>, vector<1x20x10xbf16>
    %210 = vector.shape_cast %209 : vector<1x20x10xbf16> to vector<20x10xbf16>
    %211 = arith.truncf %208 : vector<10x1024xf32> to vector<10x1024xbf16>
    %cst_87 = arith.constant dense<0.000000e+00> : vector<20x1024xf32>
    %212 = tpu.matmul %210, %211, %cst_87 {dimension_numbers = #tpu.dot_dimension_numbers<[1], [0], [0], [1], [0, 0, 1, 1], [], []>} : vector<20x10xbf16>, vector<10x1024xbf16>, vector<20x1024xf32> -> vector<20x1024xf32>
    %213 = arith.addf %201, %212 : vector<20x1024xf32>
    %c1016_i32_88 = arith.constant 1016 : i32
    %214 = tpu.dynamic_rotate %153 by %c1016_i32_88 dim 1 : vector<10x1024xf32>, i32 -> vector<10x1024xf32>
    %cst_89 = arith.constant 0.000000e+00 : f32
    %215 = vector.shape_cast %70 : vector<1x1024xi1> to vector<1x1024xi1>
    %216 = vector.broadcast %215 : vector<1x1024xi1> to vector<10x1024xi1>
    %217 = vector.broadcast %cst_89 : f32 to vector<10x1024xf32>
    %218 = arith.select %216, %214, %217 : vector<10x1024xi1>, vector<10x1024xf32>
    %c6_90 = arith.constant 6 : index
    %c0_91 = arith.constant 0 : index
    %c0_92 = arith.constant 0 : index
    %219 = vector.load %arg2[%c6_90, %c0_91, %c0_92] : memref<9x20x10xbf16, #tpu.memory_space<vmem>>, vector<1x20x10xbf16>
    %220 = vector.shape_cast %219 : vector<1x20x10xbf16> to vector<20x10xbf16>
    %221 = arith.truncf %218 : vector<10x1024xf32> to vector<10x1024xbf16>
    %cst_93 = arith.constant dense<0.000000e+00> : vector<20x1024xf32>
    %222 = tpu.matmul %220, %221, %cst_93 {dimension_numbers = #tpu.dot_dimension_numbers<[1], [0], [0], [1], [0, 0, 1, 1], [], []>} : vector<20x10xbf16>, vector<10x1024xbf16>, vector<20x1024xf32> -> vector<20x1024xf32>
    %223 = arith.addf %213, %222 : vector<20x1024xf32>
    %c1012_i32 = arith.constant 1012 : i32
    %224 = tpu.dynamic_rotate %153 by %c1012_i32 dim 1 : vector<10x1024xf32>, i32 -> vector<10x1024xf32>
    %c116_i32 = arith.constant 116 : i32
    %225 = vector.broadcast %c116_i32 : i32 to vector<1x1024xi32>
    %226 = arith.cmpi slt, %2, %225 : vector<1x1024xi32>
    %cst_94 = arith.constant 0.000000e+00 : f32
    %227 = vector.shape_cast %226 : vector<1x1024xi1> to vector<1x1024xi1>
    %228 = vector.broadcast %227 : vector<1x1024xi1> to vector<10x1024xi1>
    %229 = vector.broadcast %cst_94 : f32 to vector<10x1024xf32>
    %230 = arith.select %228, %224, %229 : vector<10x1024xi1>, vector<10x1024xf32>
    %c7_95 = arith.constant 7 : index
    %c0_96 = arith.constant 0 : index
    %c0_97 = arith.constant 0 : index
    %231 = vector.load %arg2[%c7_95, %c0_96, %c0_97] : memref<9x20x10xbf16, #tpu.memory_space<vmem>>, vector<1x20x10xbf16>
    %232 = vector.shape_cast %231 : vector<1x20x10xbf16> to vector<20x10xbf16>
    %233 = arith.truncf %230 : vector<10x1024xf32> to vector<10x1024xbf16>
    %cst_98 = arith.constant dense<0.000000e+00> : vector<20x1024xf32>
    %234 = tpu.matmul %232, %233, %cst_98 {dimension_numbers = #tpu.dot_dimension_numbers<[1], [0], [0], [1], [0, 0, 1, 1], [], []>} : vector<20x10xbf16>, vector<10x1024xbf16>, vector<20x1024xf32> -> vector<20x1024xf32>
    %235 = arith.addf %223, %234 : vector<20x1024xf32>
    %c1008_i32_99 = arith.constant 1008 : i32
    %236 = tpu.dynamic_rotate %153 by %c1008_i32_99 dim 1 : vector<10x1024xf32>, i32 -> vector<10x1024xf32>
    %cst_100 = arith.constant 0.000000e+00 : f32
    %237 = vector.shape_cast %82 : vector<1x1024xi1> to vector<1x1024xi1>
    %238 = vector.broadcast %237 : vector<1x1024xi1> to vector<10x1024xi1>
    %239 = vector.broadcast %cst_100 : f32 to vector<10x1024xf32>
    %240 = arith.select %238, %236, %239 : vector<10x1024xi1>, vector<10x1024xf32>
    %c8_101 = arith.constant 8 : index
    %c0_102 = arith.constant 0 : index
    %c0_103 = arith.constant 0 : index
    %241 = vector.load %arg2[%c8_101, %c0_102, %c0_103] : memref<9x20x10xbf16, #tpu.memory_space<vmem>>, vector<1x20x10xbf16>
    %242 = vector.shape_cast %241 : vector<1x20x10xbf16> to vector<20x10xbf16>
    %243 = arith.truncf %240 : vector<10x1024xf32> to vector<10x1024xbf16>
    %cst_104 = arith.constant dense<0.000000e+00> : vector<20x1024xf32>
    %244 = tpu.matmul %242, %243, %cst_104 {dimension_numbers = #tpu.dot_dimension_numbers<[1], [0], [0], [1], [0, 0, 1, 1], [], []>} : vector<20x10xbf16>, vector<10x1024xbf16>, vector<20x1024xf32> -> vector<20x1024xf32>
    %245 = arith.addf %235, %244 : vector<20x1024xf32>
    %c0_105 = arith.constant 0 : index
    %c0_106 = arith.constant 0 : index
    %246 = vector.load %arg6[%c0_105, %c0_106] : memref<20x1xf32, #tpu.memory_space<vmem>>, vector<20x1xf32>
    %c0_107 = arith.constant 0 : index
    %c0_108 = arith.constant 0 : index
    %247 = vector.load %arg7[%c0_107, %c0_108] : memref<20x1xf32, #tpu.memory_space<vmem>>, vector<20x1xf32>
    %cst_109 = arith.constant 0.000000e+00 : f32
    %248 = vector.shape_cast %10 : vector<1x1024xi1> to vector<1x1024xi1>
    %249 = vector.broadcast %248 : vector<1x1024xi1> to vector<20x1024xi1>
    %250 = vector.broadcast %cst_109 : f32 to vector<20x1024xf32>
    %251 = arith.select %249, %245, %250 : vector<20x1024xi1>, vector<20x1024xf32>
    %cst_110 = arith.constant dense<0.000000e+00> : vector<20xf32>
    %252 = vector.multi_reduction <add>, %251, %cst_110 [1] : vector<20x1024xf32> to vector<20xf32>
    %253 = vector.shape_cast %252 : vector<20xf32> to vector<20x1xf32>
    %cst_111 = arith.constant 3.906250e-03 : f32
    %254 = vector.broadcast %cst_111 : f32 to vector<20x1xf32>
    %255 = arith.mulf %253, %254 : vector<20x1xf32>
    %256 = arith.mulf %251, %245 : vector<20x1024xf32>
    %cst_112 = arith.constant dense<0.000000e+00> : vector<20xf32>
    %257 = vector.multi_reduction <add>, %256, %cst_112 [1] : vector<20x1024xf32> to vector<20xf32>
    %258 = vector.shape_cast %257 : vector<20xf32> to vector<20x1xf32>
    %cst_113 = arith.constant 3.906250e-03 : f32
    %259 = vector.broadcast %cst_113 : f32 to vector<20x1xf32>
    %260 = arith.mulf %258, %259 : vector<20x1xf32>
    %261 = arith.mulf %255, %255 : vector<20x1xf32>
    %262 = arith.subf %260, %261 : vector<20x1xf32>
    %cst_114 = arith.constant 0.000000e+00 : f32
    %263 = vector.broadcast %cst_114 : f32 to vector<20x1xf32>
    %264 = arith.maximumf %262, %263 : vector<20x1xf32>
    %265 = vector.broadcast %255 : vector<20x1xf32> to vector<20x1024xf32>
    %266 = arith.subf %245, %265 : vector<20x1024xf32>
    %cst_115 = arith.constant 9.99999974E-6 : f32
    %267 = vector.broadcast %cst_115 : f32 to vector<20x1xf32>
    %268 = arith.addf %264, %267 : vector<20x1xf32>
    %269 = math.rsqrt %268 : vector<20x1xf32>
    %270 = vector.broadcast %269 : vector<20x1xf32> to vector<20x1024xf32>
    %271 = arith.mulf %266, %270 : vector<20x1024xf32>
    %272 = vector.broadcast %246 : vector<20x1xf32> to vector<20x1024xf32>
    %273 = arith.mulf %271, %272 : vector<20x1024xf32>
    %274 = vector.broadcast %247 : vector<20x1xf32> to vector<20x1024xf32>
    %275 = arith.addf %273, %274 : vector<20x1024xf32>
    %cst_116 = arith.constant 0.000000e+00 : f32
    %276 = vector.broadcast %cst_116 : f32 to vector<20x1024xf32>
    %277 = arith.maximumf %275, %276 : vector<20x1024xf32>
    %278 = vector.extract_strided_slice %277 {offsets = [0, 0], sizes = [10, 1024], strides = [1, 1]} : vector<20x1024xf32> to vector<10x1024xf32>
    %279 = vector.extract_strided_slice %277 {offsets = [10, 0], sizes = [10, 1024], strides = [1, 1]} : vector<20x1024xf32> to vector<10x1024xf32>
    %c2_i32 = arith.constant 2 : i32
    %280 = tpu.dynamic_rotate %279 by %c2_i32 dim 1 : vector<10x1024xf32>, i32 -> vector<10x1024xf32>
    %281 = vector.shape_cast %10 : vector<1x1024xi1> to vector<1x1024xi1>
    %282 = vector.broadcast %281 : vector<1x1024xi1> to vector<10x1024xi1>
    %283 = arith.select %282, %278, %280 : vector<10x1024xi1>, vector<10x1024xf32>
    %c8_i32_117 = arith.constant 8 : i32
    %284 = tpu.dynamic_rotate %283 by %c8_i32_117 dim 1 : vector<10x1024xf32>, i32 -> vector<10x1024xf32>
    %cst_118 = arith.constant 0.000000e+00 : f32
    %285 = vector.shape_cast %53 : vector<1x1024xi1> to vector<1x1024xi1>
    %286 = vector.broadcast %285 : vector<1x1024xi1> to vector<10x1024xi1>
    %287 = vector.broadcast %cst_118 : f32 to vector<10x1024xf32>
    %288 = arith.select %286, %284, %287 : vector<10x1024xi1>, vector<10x1024xf32>
    %c0_119 = arith.constant 0 : index
    %c0_120 = arith.constant 0 : index
    %c0_121 = arith.constant 0 : index
    %289 = vector.load %arg3[%c0_119, %c0_120, %c0_121] : memref<9x20x10xbf16, #tpu.memory_space<vmem>>, vector<1x20x10xbf16>
    %290 = vector.shape_cast %289 : vector<1x20x10xbf16> to vector<20x10xbf16>
    %291 = arith.truncf %288 : vector<10x1024xf32> to vector<10x1024xbf16>
    %cst_122 = arith.constant dense<0.000000e+00> : vector<20x1024xf32>
    %292 = tpu.matmul %290, %291, %cst_122 {dimension_numbers = #tpu.dot_dimension_numbers<[1], [0], [0], [1], [0, 0, 1, 1], [], []>} : vector<20x10xbf16>, vector<10x1024xbf16>, vector<20x1024xf32> -> vector<20x1024xf32>
    %c6_i32 = arith.constant 6 : i32
    %293 = tpu.dynamic_rotate %283 by %c6_i32 dim 1 : vector<10x1024xf32>, i32 -> vector<10x1024xf32>
    %c6_i32_123 = arith.constant 6 : i32
    %294 = vector.broadcast %c6_i32_123 : i32 to vector<1x1024xi32>
    %295 = arith.cmpi sge, %2, %294 : vector<1x1024xi32>
    %cst_124 = arith.constant 0.000000e+00 : f32
    %296 = vector.shape_cast %295 : vector<1x1024xi1> to vector<1x1024xi1>
    %297 = vector.broadcast %296 : vector<1x1024xi1> to vector<10x1024xi1>
    %298 = vector.broadcast %cst_124 : f32 to vector<10x1024xf32>
    %299 = arith.select %297, %293, %298 : vector<10x1024xi1>, vector<10x1024xf32>
    %c1_125 = arith.constant 1 : index
    %c0_126 = arith.constant 0 : index
    %c0_127 = arith.constant 0 : index
    %300 = vector.load %arg3[%c1_125, %c0_126, %c0_127] : memref<9x20x10xbf16, #tpu.memory_space<vmem>>, vector<1x20x10xbf16>
    %301 = vector.shape_cast %300 : vector<1x20x10xbf16> to vector<20x10xbf16>
    %302 = arith.truncf %299 : vector<10x1024xf32> to vector<10x1024xbf16>
    %cst_128 = arith.constant dense<0.000000e+00> : vector<20x1024xf32>
    %303 = tpu.matmul %301, %302, %cst_128 {dimension_numbers = #tpu.dot_dimension_numbers<[1], [0], [0], [1], [0, 0, 1, 1], [], []>} : vector<20x10xbf16>, vector<10x1024xbf16>, vector<20x1024xf32> -> vector<20x1024xf32>
    %304 = arith.addf %292, %303 : vector<20x1024xf32>
    %c4_i32_129 = arith.constant 4 : i32
    %305 = tpu.dynamic_rotate %283 by %c4_i32_129 dim 1 : vector<10x1024xf32>, i32 -> vector<10x1024xf32>
    %cst_130 = arith.constant 0.000000e+00 : f32
    %306 = vector.shape_cast %187 : vector<1x1024xi1> to vector<1x1024xi1>
    %307 = vector.broadcast %306 : vector<1x1024xi1> to vector<10x1024xi1>
    %308 = vector.broadcast %cst_130 : f32 to vector<10x1024xf32>
    %309 = arith.select %307, %305, %308 : vector<10x1024xi1>, vector<10x1024xf32>
    %c2_131 = arith.constant 2 : index
    %c0_132 = arith.constant 0 : index
    %c0_133 = arith.constant 0 : index
    %310 = vector.load %arg3[%c2_131, %c0_132, %c0_133] : memref<9x20x10xbf16, #tpu.memory_space<vmem>>, vector<1x20x10xbf16>
    %311 = vector.shape_cast %310 : vector<1x20x10xbf16> to vector<20x10xbf16>
    %312 = arith.truncf %309 : vector<10x1024xf32> to vector<10x1024xbf16>
    %cst_134 = arith.constant dense<0.000000e+00> : vector<20x1024xf32>
    %313 = tpu.matmul %311, %312, %cst_134 {dimension_numbers = #tpu.dot_dimension_numbers<[1], [0], [0], [1], [0, 0, 1, 1], [], []>} : vector<20x10xbf16>, vector<10x1024xbf16>, vector<20x1024xf32> -> vector<20x1024xf32>
    %314 = arith.addf %304, %313 : vector<20x1024xf32>
    %c2_i32_135 = arith.constant 2 : i32
    %315 = tpu.dynamic_rotate %283 by %c2_i32_135 dim 1 : vector<10x1024xf32>, i32 -> vector<10x1024xf32>
    %c2_i32_136 = arith.constant 2 : i32
    %316 = vector.broadcast %c2_i32_136 : i32 to vector<1x1024xi32>
    %317 = arith.cmpi sge, %2, %316 : vector<1x1024xi32>
    %cst_137 = arith.constant 0.000000e+00 : f32
    %318 = vector.shape_cast %317 : vector<1x1024xi1> to vector<1x1024xi1>
    %319 = vector.broadcast %318 : vector<1x1024xi1> to vector<10x1024xi1>
    %320 = vector.broadcast %cst_137 : f32 to vector<10x1024xf32>
    %321 = arith.select %319, %315, %320 : vector<10x1024xi1>, vector<10x1024xf32>
    %c3_138 = arith.constant 3 : index
    %c0_139 = arith.constant 0 : index
    %c0_140 = arith.constant 0 : index
    %322 = vector.load %arg3[%c3_138, %c0_139, %c0_140] : memref<9x20x10xbf16, #tpu.memory_space<vmem>>, vector<1x20x10xbf16>
    %323 = vector.shape_cast %322 : vector<1x20x10xbf16> to vector<20x10xbf16>
    %324 = arith.truncf %321 : vector<10x1024xf32> to vector<10x1024xbf16>
    %cst_141 = arith.constant dense<0.000000e+00> : vector<20x1024xf32>
    %325 = tpu.matmul %323, %324, %cst_141 {dimension_numbers = #tpu.dot_dimension_numbers<[1], [0], [0], [1], [0, 0, 1, 1], [], []>} : vector<20x10xbf16>, vector<10x1024xbf16>, vector<20x1024xf32> -> vector<20x1024xf32>
    %326 = arith.addf %314, %325 : vector<20x1024xf32>
    %c4_142 = arith.constant 4 : index
    %c0_143 = arith.constant 0 : index
    %c0_144 = arith.constant 0 : index
    %327 = vector.load %arg3[%c4_142, %c0_143, %c0_144] : memref<9x20x10xbf16, #tpu.memory_space<vmem>>, vector<1x20x10xbf16>
    %328 = vector.shape_cast %327 : vector<1x20x10xbf16> to vector<20x10xbf16>
    %329 = arith.truncf %283 : vector<10x1024xf32> to vector<10x1024xbf16>
    %cst_145 = arith.constant dense<0.000000e+00> : vector<20x1024xf32>
    %330 = tpu.matmul %328, %329, %cst_145 {dimension_numbers = #tpu.dot_dimension_numbers<[1], [0], [0], [1], [0, 0, 1, 1], [], []>} : vector<20x10xbf16>, vector<10x1024xbf16>, vector<20x1024xf32> -> vector<20x1024xf32>
    %331 = arith.addf %326, %330 : vector<20x1024xf32>
    %c1022_i32 = arith.constant 1022 : i32
    %332 = tpu.dynamic_rotate %283 by %c1022_i32 dim 1 : vector<10x1024xf32>, i32 -> vector<10x1024xf32>
    %c126_i32 = arith.constant 126 : i32
    %333 = vector.broadcast %c126_i32 : i32 to vector<1x1024xi32>
    %334 = arith.cmpi slt, %2, %333 : vector<1x1024xi32>
    %cst_146 = arith.constant 0.000000e+00 : f32
    %335 = vector.shape_cast %334 : vector<1x1024xi1> to vector<1x1024xi1>
    %336 = vector.broadcast %335 : vector<1x1024xi1> to vector<10x1024xi1>
    %337 = vector.broadcast %cst_146 : f32 to vector<10x1024xf32>
    %338 = arith.select %336, %332, %337 : vector<10x1024xi1>, vector<10x1024xf32>
    %c5_147 = arith.constant 5 : index
    %c0_148 = arith.constant 0 : index
    %c0_149 = arith.constant 0 : index
    %339 = vector.load %arg3[%c5_147, %c0_148, %c0_149] : memref<9x20x10xbf16, #tpu.memory_space<vmem>>, vector<1x20x10xbf16>
    %340 = vector.shape_cast %339 : vector<1x20x10xbf16> to vector<20x10xbf16>
    %341 = arith.truncf %338 : vector<10x1024xf32> to vector<10x1024xbf16>
    %cst_150 = arith.constant dense<0.000000e+00> : vector<20x1024xf32>
    %342 = tpu.matmul %340, %341, %cst_150 {dimension_numbers = #tpu.dot_dimension_numbers<[1], [0], [0], [1], [0, 0, 1, 1], [], []>} : vector<20x10xbf16>, vector<10x1024xbf16>, vector<20x1024xf32> -> vector<20x1024xf32>
    %343 = arith.addf %331, %342 : vector<20x1024xf32>
    %c1020_i32_151 = arith.constant 1020 : i32
    %344 = tpu.dynamic_rotate %283 by %c1020_i32_151 dim 1 : vector<10x1024xf32>, i32 -> vector<10x1024xf32>
    %cst_152 = arith.constant 0.000000e+00 : f32
    %345 = vector.shape_cast %204 : vector<1x1024xi1> to vector<1x1024xi1>
    %346 = vector.broadcast %345 : vector<1x1024xi1> to vector<10x1024xi1>
    %347 = vector.broadcast %cst_152 : f32 to vector<10x1024xf32>
    %348 = arith.select %346, %344, %347 : vector<10x1024xi1>, vector<10x1024xf32>
    %c6_153 = arith.constant 6 : index
    %c0_154 = arith.constant 0 : index
    %c0_155 = arith.constant 0 : index
    %349 = vector.load %arg3[%c6_153, %c0_154, %c0_155] : memref<9x20x10xbf16, #tpu.memory_space<vmem>>, vector<1x20x10xbf16>
    %350 = vector.shape_cast %349 : vector<1x20x10xbf16> to vector<20x10xbf16>
    %351 = arith.truncf %348 : vector<10x1024xf32> to vector<10x1024xbf16>
    %cst_156 = arith.constant dense<0.000000e+00> : vector<20x1024xf32>
    %352 = tpu.matmul %350, %351, %cst_156 {dimension_numbers = #tpu.dot_dimension_numbers<[1], [0], [0], [1], [0, 0, 1, 1], [], []>} : vector<20x10xbf16>, vector<10x1024xbf16>, vector<20x1024xf32> -> vector<20x1024xf32>
    %353 = arith.addf %343, %352 : vector<20x1024xf32>
    %c1018_i32 = arith.constant 1018 : i32
    %354 = tpu.dynamic_rotate %283 by %c1018_i32 dim 1 : vector<10x1024xf32>, i32 -> vector<10x1024xf32>
    %c122_i32 = arith.constant 122 : i32
    %355 = vector.broadcast %c122_i32 : i32 to vector<1x1024xi32>
    %356 = arith.cmpi slt, %2, %355 : vector<1x1024xi32>
    %cst_157 = arith.constant 0.000000e+00 : f32
    %357 = vector.shape_cast %356 : vector<1x1024xi1> to vector<1x1024xi1>
    %358 = vector.broadcast %357 : vector<1x1024xi1> to vector<10x1024xi1>
    %359 = vector.broadcast %cst_157 : f32 to vector<10x1024xf32>
    %360 = arith.select %358, %354, %359 : vector<10x1024xi1>, vector<10x1024xf32>
    %c7_158 = arith.constant 7 : index
    %c0_159 = arith.constant 0 : index
    %c0_160 = arith.constant 0 : index
    %361 = vector.load %arg3[%c7_158, %c0_159, %c0_160] : memref<9x20x10xbf16, #tpu.memory_space<vmem>>, vector<1x20x10xbf16>
    %362 = vector.shape_cast %361 : vector<1x20x10xbf16> to vector<20x10xbf16>
    %363 = arith.truncf %360 : vector<10x1024xf32> to vector<10x1024xbf16>
    %cst_161 = arith.constant dense<0.000000e+00> : vector<20x1024xf32>
    %364 = tpu.matmul %362, %363, %cst_161 {dimension_numbers = #tpu.dot_dimension_numbers<[1], [0], [0], [1], [0, 0, 1, 1], [], []>} : vector<20x10xbf16>, vector<10x1024xbf16>, vector<20x1024xf32> -> vector<20x1024xf32>
    %365 = arith.addf %353, %364 : vector<20x1024xf32>
    %c1016_i32_162 = arith.constant 1016 : i32
    %366 = tpu.dynamic_rotate %283 by %c1016_i32_162 dim 1 : vector<10x1024xf32>, i32 -> vector<10x1024xf32>
    %cst_163 = arith.constant 0.000000e+00 : f32
    %367 = vector.shape_cast %70 : vector<1x1024xi1> to vector<1x1024xi1>
    %368 = vector.broadcast %367 : vector<1x1024xi1> to vector<10x1024xi1>
    %369 = vector.broadcast %cst_163 : f32 to vector<10x1024xf32>
    %370 = arith.select %368, %366, %369 : vector<10x1024xi1>, vector<10x1024xf32>
    %c8_164 = arith.constant 8 : index
    %c0_165 = arith.constant 0 : index
    %c0_166 = arith.constant 0 : index
    %371 = vector.load %arg3[%c8_164, %c0_165, %c0_166] : memref<9x20x10xbf16, #tpu.memory_space<vmem>>, vector<1x20x10xbf16>
    %372 = vector.shape_cast %371 : vector<1x20x10xbf16> to vector<20x10xbf16>
    %373 = arith.truncf %370 : vector<10x1024xf32> to vector<10x1024xbf16>
    %cst_167 = arith.constant dense<0.000000e+00> : vector<20x1024xf32>
    %374 = tpu.matmul %372, %373, %cst_167 {dimension_numbers = #tpu.dot_dimension_numbers<[1], [0], [0], [1], [0, 0, 1, 1], [], []>} : vector<20x10xbf16>, vector<10x1024xbf16>, vector<20x1024xf32> -> vector<20x1024xf32>
    %375 = arith.addf %365, %374 : vector<20x1024xf32>
    %c0_168 = arith.constant 0 : index
    %c0_169 = arith.constant 0 : index
    %376 = vector.load %arg6[%c0_168, %c0_169] : memref<20x1xf32, #tpu.memory_space<vmem>>, vector<20x1xf32>
    %c0_170 = arith.constant 0 : index
    %c0_171 = arith.constant 0 : index
    %377 = vector.load %arg7[%c0_170, %c0_171] : memref<20x1xf32, #tpu.memory_space<vmem>>, vector<20x1xf32>
    %cst_172 = arith.constant 0.000000e+00 : f32
    %378 = vector.shape_cast %14 : vector<1x1024xi1> to vector<1x1024xi1>
    %379 = vector.broadcast %378 : vector<1x1024xi1> to vector<20x1024xi1>
    %380 = vector.broadcast %cst_172 : f32 to vector<20x1024xf32>
    %381 = arith.select %379, %375, %380 : vector<20x1024xi1>, vector<20x1024xf32>
    %cst_173 = arith.constant dense<0.000000e+00> : vector<20xf32>
    %382 = vector.multi_reduction <add>, %381, %cst_173 [1] : vector<20x1024xf32> to vector<20xf32>
    %383 = vector.shape_cast %382 : vector<20xf32> to vector<20x1xf32>
    %cst_174 = arith.constant 0.001953125 : f32
    %384 = vector.broadcast %cst_174 : f32 to vector<20x1xf32>
    %385 = arith.mulf %383, %384 : vector<20x1xf32>
    %386 = arith.mulf %381, %375 : vector<20x1024xf32>
    %cst_175 = arith.constant dense<0.000000e+00> : vector<20xf32>
    %387 = vector.multi_reduction <add>, %386, %cst_175 [1] : vector<20x1024xf32> to vector<20xf32>
    %388 = vector.shape_cast %387 : vector<20xf32> to vector<20x1xf32>
    %cst_176 = arith.constant 0.001953125 : f32
    %389 = vector.broadcast %cst_176 : f32 to vector<20x1xf32>
    %390 = arith.mulf %388, %389 : vector<20x1xf32>
    %391 = arith.mulf %385, %385 : vector<20x1xf32>
    %392 = arith.subf %390, %391 : vector<20x1xf32>
    %cst_177 = arith.constant 0.000000e+00 : f32
    %393 = vector.broadcast %cst_177 : f32 to vector<20x1xf32>
    %394 = arith.maximumf %392, %393 : vector<20x1xf32>
    %395 = vector.broadcast %385 : vector<20x1xf32> to vector<20x1024xf32>
    %396 = arith.subf %375, %395 : vector<20x1024xf32>
    %cst_178 = arith.constant 9.99999974E-6 : f32
    %397 = vector.broadcast %cst_178 : f32 to vector<20x1xf32>
    %398 = arith.addf %394, %397 : vector<20x1xf32>
    %399 = math.rsqrt %398 : vector<20x1xf32>
    %400 = vector.broadcast %399 : vector<20x1xf32> to vector<20x1024xf32>
    %401 = arith.mulf %396, %400 : vector<20x1024xf32>
    %402 = vector.broadcast %376 : vector<20x1xf32> to vector<20x1024xf32>
    %403 = arith.mulf %401, %402 : vector<20x1024xf32>
    %404 = vector.broadcast %377 : vector<20x1xf32> to vector<20x1024xf32>
    %405 = arith.addf %403, %404 : vector<20x1024xf32>
    %cst_179 = arith.constant 0.000000e+00 : f32
    %406 = vector.broadcast %cst_179 : f32 to vector<20x1024xf32>
    %407 = arith.maximumf %405, %406 : vector<20x1024xf32>
    %408 = vector.extract_strided_slice %407 {offsets = [0, 0], sizes = [10, 1024], strides = [1, 1]} : vector<20x1024xf32> to vector<10x1024xf32>
    %409 = vector.extract_strided_slice %407 {offsets = [10, 0], sizes = [10, 1024], strides = [1, 1]} : vector<20x1024xf32> to vector<10x1024xf32>
    %c1_i32_180 = arith.constant 1 : i32
    %410 = tpu.dynamic_rotate %409 by %c1_i32_180 dim 1 : vector<10x1024xf32>, i32 -> vector<10x1024xf32>
    %411 = vector.shape_cast %14 : vector<1x1024xi1> to vector<1x1024xi1>
    %412 = vector.broadcast %411 : vector<1x1024xi1> to vector<10x1024xi1>
    %413 = arith.select %412, %408, %410 : vector<10x1024xi1>, vector<10x1024xf32>
    %c0_181 = arith.constant 0 : index
    %c0_182 = arith.constant 0 : index
    %414 = vector.load %arg8[%c0_181, %c0_182] : memref<1x10xf32, #tpu.memory_space<vmem>>, vector<1x10xf32>
    %cst_183 = arith.constant dense<0.000000e+00> : vector<1x1024xf32>
    %415 = tpu.matmul %414, %413, %cst_183 {dimension_numbers = #tpu.dot_dimension_numbers<[1], [0], [0], [1], [0, 0, 1, 1], [], []>, precision = #tpu.contract_precision<fp32>} : vector<1x10xf32>, vector<10x1024xf32>, vector<1x1024xf32> -> vector<1x1024xf32>
    %c0_184 = arith.constant 0 : index
    %c0_185 = arith.constant 0 : index
    %416 = vector.load %arg9[%c0_184, %c0_185] : memref<1x1xf32, #tpu.memory_space<vmem>>, vector<1x1xf32>
    %417 = vector.broadcast %416 : vector<1x1xf32> to vector<1x1024xf32>
    %418 = arith.addf %415, %417 : vector<1x1024xf32>
    %c0_186 = arith.constant 0 : index
    %c0_187 = arith.constant 0 : index
    %419 = vector.load %arg10[%c0_186, %c0_187] : memref<1x1024xf32, #tpu.memory_space<vmem>>, vector<1x1024xf32>
    tpu.vector_store %arg10[%c0_186, %c0_187], %418 {strides = array<i32>} : memref<1x1024xf32, #tpu.memory_space<vmem>>, vector<1x1024xf32>,
    return
  }
}

</mosaic_0001>

<bundles_post_ra>
// kernel: decoder_forward.1
= control target key start
LH: loop header
LB: loop body
LE: loop exit
PB: predicated region body
PF: predicated region fallthrough
CT: control target
= control target key end

     0   :  { %s18889_s0 = inlined_call_operand.vmem [shape: f32[3,1024], index: 0, kind: input, shape index: {}]   ;;  %s18890_s1 = inlined_call_operand.vmem [shape: bf16[9,20,3], index: 1, kind: input, shape index: {}]   ;;  %s18891_s2 = inlined_call_operand.vmem [shape: bf16[9,20,10], index: 2, kind: input, shape index: {}]   ;;  %s18892_s3 = inlined_call_operand.vmem [shape: bf16[9,20,10], index: 3, kind: input, shape index: {}]   ;;  %s18893_s4 = inlined_call_operand.vmem [shape: f32[20,1], index: 4, kind: input, shape index: {}]   ;;  %s18894_s5 = inlined_call_operand.vmem [shape: f32[20,1], index: 5, kind: input, shape index: {}]   ;;  %s18895_s6 = inlined_call_operand.vmem [shape: f32[20,1], index: 6, kind: input, shape index: {}]   ;;  %s18896_s7 = inlined_call_operand.vmem [shape: f32[20,1], index: 7, kind: input, shape index: {}]   ;;  %s18897_s8 = inlined_call_operand.vmem [shape: f32[1,10], index: 8, kind: input, shape index: {}]   ;;  %s18898_s9 = inlined_call_operand.<no memory space> [shape: f32[1,1], index: 9, kind: input, shape index: {}]   ;;  %s18899_s10 = inlined_call_operand.hbm [shape: f32[1,1024], index: 10, kind: output, shape index: {}]  }
   0x1   :  { %v15_v0 = vstv %s18898_s9 }
   0x2   :  { %16 = vst [vmem:[#allocation2] sm:$0x1] %v15_v0 }
   0x3   :  { %v12064_v1 = vld [vmem:[%s18889_s0 + $0x18] sm:$0x77]  ;;  %v12069_v2 = vld [vmem:[%s18889_s0] sm:$0x77]  ;;  %v12075_v3 = vld [vmem:[%s18889_s0 + $0x8] sm:$0x77] }
   0x4   :  { %118 = vst [vmem:[#allocation1 + $0x30] ss:$2 sm:$0xff] %v12064_v1  ;;  %v12080_v4 = vld [vmem:[%s18889_s0 + $0x10] sm:$0x77] }
   0x5   :  { %112 = vst [vmem:[#allocation1] ss:$2 sm:$0xff] %v12069_v2 }
   0x6   :  { %17 = vsyncpa [#allocation4], 0  ;;  %114 = vst [vmem:[#allocation1 + $0x10] ss:$2 sm:$0xff] %v12075_v3  ;;  %s11983_s0 = smov 24   ;;  %s11984_s22 = smov 32   ;;  %v39_v30 = vlaneseq }
   0x7   :  { %116 = vst [vmem:[#allocation1 + $0x20] ss:$2 sm:$0xff] %v12080_v4  ;;  %s11985_s23 = smov 16   ;;  %vm18900_vm0 = vcmask 1040384   ;;  %vm18901_vm1 = vcmask 1041408   ;;  %v11986_v41 = vmov 65535  }
   0x8   :  { %v12094_v33 = vand.u32 127, %v39_v30  ;;  %v312_v42 = vsel %vm18900_vm0, 4294967295, %v11986_v41  ;;  %vm303_vm6 = vcmask 23552   ;;  %v10439_v41 = vld [vmem:[%s18890_s1 + $0x14] sm:$0x3]  ;;  %s11987_s28 = smov 8  }
   0x9   :  { %v12113_v50 = vsel %vm18901_vm1, %v312_v42, 0  ;;  %s11988_s17 = smov 120   ;;  %s11989_s9 = smov 112  }
   0xa   :  { %v42_v36 = vadd.s32 256, %v12094_v33  ;;  %v47_v38 = vadd.s32 896, %v12094_v33  ;;  %v41_v40 = vadd.s32 128, %v12094_v33  ;;  %v43_v43 = vadd.s32 384, %v12094_v33  ;;  %s11990_s26 = smov 104   ;;  %s11991_s12 = smov 96  }
   0xb   :  { %v125_v5 = vld.sshfl [vmem:[#allocation1 + $0x30] sm:$0xff pattern:$0x75316420]  ;;  %v126_v6 = vld.sshfl [vmem:[#allocation1 + $0x38] sm:$0xff pattern:$0x75316420] }
   0xc   :  { %209 = vst [vmem:[#allocation1 + $0x30] ss:$2 sm:$0xff] %v12064_v1  ;;  %v119_v7 = vld.sshfl [vmem:[#allocation1] sm:$0xff pattern:$0x75316420]  ;;  %v12101_v39 = vand.u32 127, %v42_v36 }
   0xd   :  { %v120_v8 = vld.sshfl [vmem:[#allocation1 + $0x8] sm:$0xff pattern:$0x75316420]  ;;  %v121_v9 = vld.sshfl [vmem:[#allocation1 + $0x10] sm:$0xff pattern:$0x75316420] }
   0xe   :  { %v122_v10 = vld.sshfl [vmem:[#allocation1 + $0x18] sm:$0xff pattern:$0x75316420]  ;;  %203 = vst [vmem:[#allocation1] ss:$2 sm:$0xff] %v12069_v2  ;;  %v11111_v24 = vpack.i.bf16 %v121_v9, %v120_v8  ;;  %v44_v44 = vadd.s32 512, %v12094_v33 }
   0xf   :  { %205 = vst [vmem:[#allocation1 + $0x10] ss:$2 sm:$0xff] %v12075_v3  ;;  %v123_v11 = vld.sshfl [vmem:[#allocation1 + $0x20] sm:$0xff pattern:$0x75316420]  ;;  %v11116_v25 = vpack.i.bf16 %v122_v10, %v119_v7  ;;  %v12107_v45 = vand.u32 127, %v47_v38 }
  0x10   :  { %v124_v12 = vld.sshfl [vmem:[#allocation1 + $0x28] sm:$0xff pattern:$0x75316420]  ;;  %18984 = vst [vmem:[#allocation6_spill] sm:$0xff] %v12101_v39  ;;  %vm242_vm2 = vcmp.lt.s32.totalorder %v12094_v33, 24  ;;  %v46_v47 = vadd.s32 768, %v12094_v33 }
  0x11   :  { %207 = vst [vmem:[#allocation1 + $0x20] ss:$2 sm:$0xff] %v12080_v4  ;;  %v11121_v26 = vpack.i.bf16 %v125_v5, %v124_v12  ;;  %vm253_vm3 = vcmp.ge.s32.totalorder %v12101_v39, 24  ;;  %v12115_v51 = vand.u32 127, %v41_v40  ;;  %v12121_v55 = vand.u32 127, %v43_v43  ;;  %v12138_v12 = vld [vmem:[%s18890_s1 + $0xc] sm:$0xff] }
  0x12   :  { %18985 = vst [vmem:[#allocation7_spill] sm:$0xff] %v12107_v45  ;;  %v12117_v52 = vand.u32 127, %v46_v47  ;;  %v12123_v56 = vand.u32 127, %v44_v44  ;;  %vm258_vm4 = vcmp.ge.s32.totalorder %v12107_v45, 24  ;;  %v45_v9 = vadd.s32 640, %v12094_v33  ;;  %s11996_s21 = smov 116  }
  0x13   :  { %v217_v13 = vld.sshfl [vmem:[#allocation1 + $0x38] sm:$0xff pattern:$0x75316420]  ;;  %v216_v14 = vld.sshfl [vmem:[#allocation1 + $0x30] sm:$0xff pattern:$0x75316420]  ;;  %v300_v44 = vunpack.c.l.b16 %v10439_v41 }
  0x14   :  { %240 = vrot.lane.b32.xlu1 %v217_v13, %s11983_s0  ;;  %670 = vst [vmem:[#allocation1 + $0x30] ss:$2 sm:$0xff] %v12064_v1  ;;  %vm257_vm5 = vcmp.ge.s32.totalorder %v12117_v52, 24  ;;  %vm251_vm7 = vcmp.ge.s32.totalorder %v12094_v33, 24  ;;  %vm252_vm8 = vcmp.ge.s32.totalorder %v12115_v51, 24  ;;  %vm254_vm9 = vcmp.ge.s32.totalorder %v12121_v55, 24 }
  0x15   :  { %v211_v15 = vld.sshfl [vmem:[#allocation1 + $0x8] sm:$0xff pattern:$0x75316420]  ;;  %v210_v19 = vld.sshfl [vmem:[#allocation1] sm:$0xff pattern:$0x75316420] }
  0x16   :  { %v212_v16 = vld.sshfl [vmem:[#allocation1 + $0x10] sm:$0xff pattern:$0x75316420]  ;;  %v213_v17 = vld.sshfl [vmem:[#allocation1 + $0x18] sm:$0xff pattern:$0x75316420] }
  0x17   :  { %v11096_v18 = vpack.i.bf16 %v212_v16, %v211_v15  ;;  %666 = vst [vmem:[#allocation1 + $0x10] ss:$2 sm:$0xff] %v12075_v3  ;;  %v11101_v23 = vpack.i.bf16 %v213_v17, %v210_v19  ;;  %vm255_vm10 = vcmp.ge.s32.totalorder %v12123_v56, 24  ;;  %v12148_v19 = vand.u32 127, %v45_v9  ;;  %s11998_s24 = smov 6   ;;  %s10428_s15 = sshll.u32 %s18899_s10, 4  ;;  %s10429_s15 = int_to_ptr.hbm [resolvable:$true] %s10428_s15 }
  0x18   :  { %v215_v20 = vld.sshfl [vmem:[#allocation1 + $0x28] sm:$0xff pattern:$0x75316420]  ;;  %664 = vst [vmem:[#allocation1] ss:$2 sm:$0xff] %v12069_v2  ;;  %vm151_vm12 = vcmp.lt.s32.totalorder %v12094_v33, 32 }
  0x19   :  { %11097 = vrot.lane.b32.xlu0 %v11096_v18, %s11983_s0  ;;  %v11106_v21 = vpack.i.bf16 %v216_v14, %v215_v20  ;;  %v214_v22 = vld.sshfl [vmem:[#allocation1 + $0x20] sm:$0xff pattern:$0x75316420]  ;;  %18986 = vst [vmem:[#allocation8_spill] sm:$0xff] %v12117_v52  ;;  %vm256_vm11 = vcmp.ge.s32.totalorder %v12148_v19, 24  ;;  %vm162_vm13 = vcmp.ge.s32.totalorder %v12101_v39, 32 }
  0x1a   :  { %234 = vrot.lane.b32.xlu2 %v214_v22, %s11983_s0  ;;  %668 = vst [vmem:[#allocation1 + $0x20] ss:$2 sm:$0xff] %v12080_v4  ;;  %vm161_vm14 = vcmp.ge.s32.totalorder %v12115_v51, 32  ;;  %vm163_vm15 = vcmp.ge.s32.totalorder %v12121_v55, 32  ;;  %vm18909_vm0 = vcmp.ge.s32.totalorder %v12094_v33, 8  ;;  %vm18904_vm1 = vcmp.ge.s32.totalorder %v12123_v56, 8 }
  0x1b   :  { %v677_v32 = vld.sshfl [vmem:[#allocation1 + $0x30] sm:$0xff pattern:$0x75316420]  ;;  %v678_v35 = vld.sshfl [vmem:[#allocation1 + $0x38] sm:$0xff pattern:$0x75316420] }
  0x1c   :  { %11107 = vrot.lane.b32.xlu1 %v11106_v21, %s11983_s0  ;;  %968 = vst [vmem:[#allocation1 + $0x30] ss:$2 sm:$0xff] %v12064_v1 }
  0x1d   :  { %18987 = vst [vmem:[#allocation9_spill] sm:$0xff] %v12121_v55 }
  0x1e   :  { %v673_v28 = vld.sshfl [vmem:[#allocation1 + $0x10] sm:$0xff pattern:$0x75316420]  ;;  %18988 = vst [vmem:[#allocation10_spill] sm:$0xff] %v12123_v56 }
  0x1f   :  { %v672_v27 = vld.sshfl [vmem:[#allocation1 + $0x8] sm:$0xff pattern:$0x75316420]  ;;  %v671_v61 = vld.sshfl [vmem:[#allocation1] sm:$0xff pattern:$0x75316420] }
  0x20   :  { %v11126_v29 = vpack.i.bf16 %v673_v28, %v672_v27  ;;  %v674_v62 = vld.sshfl [vmem:[#allocation1 + $0x18] sm:$0xff pattern:$0x75316420]  ;;  %962 = vst [vmem:[#allocation1] ss:$2 sm:$0xff] %v12069_v2 }
  0x21   :  { %11102 = vrot.lane.b32.xlu0 %v11101_v23, %s11983_s0  ;;  %v676_v31 = vld.sshfl [vmem:[#allocation1 + $0x28] sm:$0xff pattern:$0x75316420]  ;;  %964 = vst [vmem:[#allocation1 + $0x10] ss:$2 sm:$0xff] %v12075_v3  ;;  %v11131_v0 = vpack.i.bf16 %v674_v62, %v671_v61 }
  0x22   :  { %11112 = vrot.lane.b32.xlu2 %v11111_v24, %s11984_s22  ;;  %v11136_v34 = vpack.i.bf16 %v677_v32, %v676_v31  ;;  %18989 = vst [vmem:[#allocation11_spill] sm:$0xff] %v12148_v19  ;;  %v675_v32 = vld.sshfl [vmem:[#allocation1 + $0x20] sm:$0xff pattern:$0x75316420] }
  0x23   :  { %966 = vst [vmem:[#allocation1 + $0x20] ss:$2 sm:$0xff] %v12080_v4 }
  0x24   :  { %149 = vrot.lane.b32.xlu1 %v126_v6, %s11984_s22 }
  0x29   :  { %11117 = vrot.lane.b32.xlu0 %v11116_v25, %s11984_s22 }
  0x2a   :  { %11122 = vrot.lane.b32.xlu2 %v11121_v26, %s11984_s22  ;;  %v974_v41 = vld.sshfl [vmem:[#allocation1 + $0x28] sm:$0xff pattern:$0x75316420] }
  0x2c   :  { %11127 = vrot.lane.b32.xlu1 %v11126_v29, %s11985_s23 }
  0x31   :  { %143 = vrot.lane.b32.xlu0 %v123_v11, %s11984_s22 }
  0x32   :  { %11132 = vrot.lane.b32.xlu2 %v11131_v0, %s11985_s23 }
  0x34   :  { %11137 = vrot.lane.b32.xlu1 %v11136_v34, %s11985_s23 }
  0x39   :  { %701 = vrot.lane.b32.xlu0 %v678_v35, %s11985_s23 }
  0x3a   :  { %695 = vrot.lane.b32.xlu2 %v675_v32, %s11985_s23  ;;  %v972_v32 = vld.sshfl [vmem:[#allocation1 + $0x18] sm:$0xff pattern:$0x75316420] }
  0x74   :  { %v235_v11 = vpop.permute.xlu2 %234 }
  0x7c   :  { %v11113_v47 = vpop.permute.xlu2 %11112 }
  0x86   :  { %v241_v37 = vpop.permute.xlu1 %240 }
  0x8b   :  { %v11098_v46 = vpop.permute.xlu0 %11097 }
  0x8c   :  { %v11100_v48 = vunpack.i.h.bf16 %v11098_v46  ;;  %v11099_v49 = vunpack.i.l.bf16 %v11098_v46  ;;  %v12182_v46 = vpack.c.b16 %v300_v44, %v300_v44 }
  0x8e   :  { %v11108_v53 = vpop.permute.xlu1 %11107  ;;  %v248_v54 = vsel %vm242_vm2, %v11099_v49, %v11100_v48 }
  0x8f   :  { %v11110_v57 = vunpack.i.h.bf16 %v11108_v53  ;;  %v11109_v58 = vunpack.i.l.bf16 %v11108_v53  ;;  %v277_v59 = vsel %vm253_vm3, %v248_v54, 0.0  ;;  %v11114_v53 = vunpack.i.l.bf16 %v11113_v47 }
  0x90   :  { %v289_v60 = vpack.c.bf16 %v277_v59, %v277_v59  ;;  %vm167_vm3 = vcmp.ge.s32.totalorder %v12107_v45, 32 }
  0x91   :  { %v243_v63 = vsel %vm242_vm2, %v11110_v57, %v241_v37  ;;  %v244_v5 = vsel %vm242_vm2, %v11109_v58, %v11110_v57  ;;  %v245_v16 = vsel %vm242_vm2, %v235_v11, %v11109_v58 }
  0x92   :  { %v321_v6 = vand.u32 %v12113_v50, %v289_v60  ;;  %v282_v7 = vsel %vm258_vm4, %v243_v63, 0.0  ;;  %v281_v8 = vsel %vm257_vm5, %v244_v5, 0.0  ;;  %v280_v40 = vsel %vm256_vm11, %v245_v16, 0.0 }
  0x93   :  { %v11103_v10 = vpop.permute.xlu0 %11102  ;;  %v293_v13 = vpack.c.bf16 %v281_v8, %v281_v8  ;;  %v294_v17 = vpack.c.bf16 %v282_v7, %v282_v7  ;;  %v292_v42 = vpack.c.bf16 %v280_v40, %v280_v40  ;;  %vm164_vm4 = vcmp.ge.s32.totalorder %v12123_v56, 32 }
  0x94   :  { %v11105_v14 = vunpack.i.h.bf16 %v11103_v10  ;;  %v11104_v15 = vunpack.i.l.bf16 %v11103_v10  ;;  %381 = vmatpush.bf16.msra.mxu2 %v321_v6  ;;  %v12202_v6 = vpop.permute.xlu2 %11122  ;;  %vm165_vm5 = vcmp.ge.s32.totalorder %v12148_v19, 32  ;;  %vm715_vm11 = vcmp.ge.s32.totalorder %v12121_v55, 16 }
  0x95   :  { %v333_v18 = vand.u32 %v12113_v50, %v293_v13  ;;  %v336_v34 = vand.u32 %v12113_v50, %v294_v17  ;;  %v330_v43 = vand.u32 %v12113_v50, %v292_v42  ;;  %v11125_v10 = vunpack.i.h.bf16 %v12202_v6  ;;  %v975_v42 = vld.sshfl [vmem:[#allocation1 + $0x30] sm:$0xff pattern:$0x75316420] }
  0x96   :  { %v246_v20 = vsel %vm242_vm2, %v11105_v14, %v235_v11  ;;  %v250_v21 = vsel %vm242_vm2, %v241_v37, %v11104_v15  ;;  %v249_v22 = vsel %vm242_vm2, %v11104_v15, %v11099_v49  ;;  %v247_v23 = vsel %vm242_vm2, %v11100_v48, %v11105_v14  ;;  %v150_v7 = vpop.permute.xlu1 %149 }
  0x97   :  { %10448 = vmatmul.msk.bf16.vlgmr.msra.gmra.mxu2 %vm303_vm6, %v12138_v12  ;;  %v275_v24 = vsel %vm251_vm7, %v250_v21, 0.0  ;;  %v276_v25 = vsel %vm252_vm8, %v249_v22, 0.0  ;;  %v278_v26 = vsel %vm254_vm9, %v247_v23, 0.0  ;;  %v279_v27 = vsel %vm255_vm10, %v246_v20, 0.0 }
  0x98   :  { %v287_v28 = vpack.c.bf16 %v275_v24, %v275_v24  ;;  %v288_v29 = vpack.c.bf16 %v276_v25, %v276_v25  ;;  %v290_v30 = vpack.c.bf16 %v278_v26, %v278_v26  ;;  %v291_v31 = vpack.c.bf16 %v279_v27, %v279_v27  ;;  %453 = vmatpush.bf16.msrb.mxu2 %v333_v18  ;;  %v970_v25 = vld.sshfl [vmem:[#allocation1 + $0x8] sm:$0xff pattern:$0x75316420]  ;;  %v971_v26 = vld.sshfl [vmem:[#allocation1 + $0x10] sm:$0xff pattern:$0x75316420] }
  0x99   :  { %v11115_v49 = vunpack.i.h.bf16 %v11113_v47  ;;  %vm160_vm2 = vcmp.ge.s32.totalorder %v12094_v33, 32  ;;  %v11124_v11 = vunpack.i.l.bf16 %v12202_v6  ;;  %v152_v17 = vsel %vm151_vm12, %v11125_v10, %v150_v7  ;;  %1266 = vst [vmem:[#allocation1 + $0x10] ss:$2 sm:$0xff] %v12075_v3 }
  0x9a   :  { %v315_v35 = vand.u32 %v12113_v50, %v287_v28  ;;  %v318_v36 = vand.u32 %v12113_v50, %v288_v29  ;;  %v324_v37 = vand.u32 %v12113_v50, %v290_v30  ;;  %v327_v38 = vand.u32 %v12113_v50, %v291_v31  ;;  %v969_v31 = vld.sshfl [vmem:[#allocation1] sm:$0xff pattern:$0x75316420] }
  0x9b   :  { %v11118_v48 = vpop.permute.xlu0 %11117  ;;  %v157_v58 = vsel %vm151_vm12, %v11114_v53, %v11115_v49  ;;  %v191_v23 = vsel %vm167_vm3, %v152_v17, 0.0  ;;  %v11141_v30 = vpack.i.bf16 %v971_v26, %v970_v25  ;;  %1264 = vst [vmem:[#allocation1] ss:$2 sm:$0xff] %v12069_v2  ;;  %v11151_v47 = vpack.i.bf16 %v975_v42, %v974_v41 }
  0x9c   :  { %345 = vmatpush.bf16.msra.mxu0 %v315_v35  ;;  %363 = vmatpush.bf16.msra.mxu1 %v318_v36  ;;  %v11120_v54 = vunpack.i.h.bf16 %v11118_v48  ;;  %v11119_v57 = vunpack.i.l.bf16 %v11118_v48  ;;  %v186_v60 = vsel %vm162_vm13, %v157_v58, 0.0  ;;  %v11146_v36 = vpack.i.bf16 %v972_v32, %v969_v31 }
  0x9d   :  { %399 = vmatpush.bf16.msra.mxu3 %v324_v37  ;;  %v197_v62 = vpack.c.bf16 %v186_v60, %v186_v60  ;;  %11142 = vrot.lane.b32.xlu0 %v11141_v30, %s11987_s28  ;;  %vm166_vm7 = vcmp.ge.s32.totalorder %v12117_v52, 32  ;;  %vm703_vm8 = vcmp.lt.s32.totalorder %v12094_v33, 16  ;;  %vm714_vm9 = vcmp.ge.s32.totalorder %v12101_v39, 16 }
  0x9e   :  { %v158_v59 = vsel %vm151_vm12, %v11119_v57, %v11114_v53  ;;  %v156_v61 = vsel %vm151_vm12, %v11115_v49, %v11120_v54  ;;  %v159_v13 = vsel %vm151_vm12, %v150_v7, %v11119_v57  ;;  %11147 = vrot.lane.b32.xlu1 %v11146_v36, %s11987_s28  ;;  %v973_v53 = vld.sshfl [vmem:[#allocation1 + $0x20] sm:$0xff pattern:$0x75316420]  ;;  %v11128_v7 = vpop.permute.xlu1 %11127  ;;  %vm713_vm10 = vcmp.ge.s32.totalorder %v12115_v51, 16 }
  0x9f   :  { %10444 = vmatmul.msk.bf16.vlgmr.msra.gmra.mxu0 %vm303_vm6, %v12138_v12  ;;  %10446 = vmatmul.msk.bf16.vlgmr.msra.gmra.mxu1 %vm303_vm6, %v12138_v12  ;;  %v185_v63 = vsel %vm161_vm14, %v158_v59, 0.0  ;;  %v187_v0 = vsel %vm163_vm15, %v156_v61, 0.0  ;;  %v503_v8 = vand.u32 %v12113_v50, %v197_v62  ;;  %v184_v15 = vsel %vm160_vm2, %v159_v13, 0.0  ;;  %1268 = vst [vmem:[#allocation1 + $0x20] ss:$2 sm:$0xff] %v12080_v4  ;;  %v12270_v61 = vld [vmem:[%s18890_s1] sm:$0xff] }
  0xa0   :  { %417 = vmatpush.bf16.msrb.mxu0 %v327_v38  ;;  %10450 = vmatmul.msk.bf16.vlgmr.msra.gmra.mxu3 %vm303_vm6, %v12138_v12  ;;  %v196_v5 = vpack.c.bf16 %v185_v63, %v185_v63  ;;  %v198_v9 = vpack.c.bf16 %v187_v0, %v187_v0  ;;  %v195_v18 = vpack.c.bf16 %v184_v15, %v184_v15  ;;  %v12239_v44 = vld.sshfl [vmem:[#allocation1 + $0x18] sm:$0xff pattern:$0x75316420]  ;;  %vm18936_vm13 = vcmp.ge.s32.totalorder %v12107_v45, 16 }
  0xa1   :  { %471 = vmatpush.bf16.msrb.mxu3 %v336_v34  ;;  %435 = vmatpush.bf16.msrb.mxu1 %v330_v43  ;;  %v202_v34 = vpack.c.bf16 %v191_v23, %v191_v23  ;;  %v12237_v43 = vld.sshfl [vmem:[#allocation1 + $0x10] sm:$0xff pattern:$0x75316420]  ;;  %v976_v62 = vld.sshfl [vmem:[#allocation1 + $0x38] sm:$0xff pattern:$0x75316420] }
  0xa2   :  { %563 = vmatpush.bf16.msra.mxu2 %v503_v8  ;;  %v497_v21 = vand.u32 %v12113_v50, %v195_v18  ;;  %v500_v27 = vand.u32 %v12113_v50, %v196_v5  ;;  %v506_v28 = vand.u32 %v12113_v50, %v198_v9  ;;  %v12241_v48 = vld.sshfl [vmem:[#allocation1] sm:$0xff pattern:$0x75316420]  ;;  %v12243_v49 = vld.sshfl [vmem:[#allocation1 + $0x8] sm:$0xff pattern:$0x75316420]  ;;  %999 = vrot.lane.b32.xlu2 %v976_v62, %s11987_s28  ;;  %v11130_v8 = vunpack.i.h.bf16 %v11128_v7 }
  0xa3   :  { %v144_v14 = vpop.permute.xlu0 %143  ;;  %v518_v38 = vand.u32 %v12113_v50, %v202_v34  ;;  %1501 = vst [vmem:[#allocation1] ss:$2 sm:$0xff] %v12069_v2  ;;  %v11129_v9 = vunpack.i.l.bf16 %v11128_v7  ;;  %vm18930_vm14 = vcmp.ge.s32.totalorder %v12123_v56, 16  ;;  %vm18935_vm15 = vcmp.ge.s32.totalorder %v12148_v19, 16  ;;  %v12367_v7 = vld [vmem:[%s18890_s1 + $0x18] sm:$0xff] }
  0xa4   :  { %v155_v16 = vsel %vm151_vm12, %v11120_v54, %v144_v14  ;;  %v154_v20 = vsel %vm151_vm12, %v144_v14, %v11124_v11  ;;  %527 = vmatpush.bf16.msra.mxu0 %v497_v21  ;;  %1503 = vst [vmem:[#allocation1 + $0x10] ss:$2 sm:$0xff] %v12075_v3  ;;  %vm18931_vm2 = vcmp.ge.s32.totalorder %v12117_v52, 16  ;;  %vm18929_vm3 = vcmp.lt.s32.totalorder %v12094_v33, 8 }
  0xa5   :  { %v188_v22 = vsel %vm164_vm4, %v155_v16, 0.0  ;;  %v189_v24 = vsel %vm165_vm5, %v154_v20, 0.0  ;;  %545 = vmatpush.bf16.msra.mxu1 %v500_v27  ;;  %581 = vmatpush.bf16.msra.mxu3 %v506_v28  ;;  %1270 = vst [vmem:[#allocation1 + $0x30] ss:$2 sm:$0xff] %v12064_v1  ;;  %v709_v14 = vsel %vm703_vm8, %v11129_v9, %v11130_v8  ;;  %vm18902_vm4 = vcmp.ge.s32.totalorder %v12101_v39, 8 }
  0xa6   :  { %v199_v29 = vpack.c.bf16 %v188_v22, %v188_v22  ;;  %v200_v35 = vpack.c.bf16 %v189_v24, %v189_v24  ;;  %11152 = vrot.lane.b32.xlu0 %v11151_v47, %s11987_s28  ;;  %993 = vrot.lane.b32.xlu1 %v973_v53, %s11987_s28  ;;  %v12255_v57 = vld.sshfl [vmem:[#allocation1 + $0x20] sm:$0xff pattern:$0x75316420]  ;;  %v12257_v58 = vld.sshfl [vmem:[#allocation1 + $0x28] sm:$0xff pattern:$0x75316420]  ;;  %v11138_v24 = vpop.permute.xlu1 %11137 }
  0xa7   :  { %10449 = vmatmul.msk.bf16.gmra.mxu2 %vm303_vm6, %v12182_v46  ;;  %1505 = vst [vmem:[#allocation1 + $0x20] ss:$2 sm:$0xff] %v12080_v4  ;;  %v738_v15 = vsel %vm714_vm9, %v709_v14, 0.0  ;;  %v11140_v26 = vunpack.i.h.bf16 %v11138_v24  ;;  %v11139_v27 = vunpack.i.l.bf16 %v11138_v24  ;;  %vm18903_vm5 = vcmp.ge.s32.totalorder %v12115_v51, 8 }
  0xa8   :  { %v509_v37 = vand.u32 %v12113_v50, %v199_v29  ;;  %v512_v40 = vand.u32 %v12113_v50, %v200_v35  ;;  %v750_v18 = vpack.c.bf16 %v738_v15, %v738_v15 }
  0xaa   :  { %v777_v23 = vand.u32 %v750_v18, %v12113_v50 }
  0xab   :  { %v702_v22 = vpop.permute.xlu0 %701 }
  0xac   :  { %v12283_v0 = vld.sshfl [vmem:[#allocation1 + $0x30] sm:$0xff pattern:$0x75316420]  ;;  %v12285_v5 = vld.sshfl [vmem:[#allocation1 + $0x38] sm:$0xff pattern:$0x75316420]  ;;  %v704_v35 = vsel %vm703_vm8, %v11140_v26, %v702_v22 }
  0xad   :  { %1507 = vst [vmem:[#allocation1 + $0x30] ss:$2 sm:$0xff] %v12064_v1 }
  0xaf   :  { %10445 = vmatmul.msk.bf16.gmra.mxu0 %vm303_vm6, %v12182_v46  ;;  %10447 = vmatmul.msk.bf16.gmra.mxu1 %vm303_vm6, %v12182_v46 }
  0xb0   :  { %10451 = vmatmul.msk.bf16.gmra.mxu3 %vm303_vm6, %v12182_v46 }
  0xb7   :  { %10456 = vmatmul.msk.bf16.vlgmr.msrb.gmra.mxu2 %vm303_vm6, %v12138_v12 }
  0xbf   :  { %10452 = vmatmul.msk.bf16.vlgmr.msrb.gmra.mxu0 %vm303_vm6, %v12138_v12  ;;  %10454 = vmatmul.msk.bf16.vlgmr.msrb.gmra.mxu1 %vm303_vm6, %v12138_v12 }
  0xc0   :  { %10458 = vmatmul.msk.bf16.vlgmr.msrb.gmra.mxu3 %vm303_vm6, %v12138_v12  ;;  %599 = vmatpush.bf16.msrb.mxu0 %v509_v37  ;;  %v153_v12 = vsel %vm151_vm12, %v11124_v11, %v11125_v10  ;;  %v11133_v10 = vpop.permute.xlu2 %11132  ;;  %vm712_vm12 = vcmp.ge.s32.totalorder %v12094_v33, 16 }
  0xc1   :  { %653 = vmatpush.bf16.msrb.mxu3 %v518_v38  ;;  %617 = vmatpush.bf16.msrb.mxu1 %v512_v40  ;;  %v190_v54 = vsel %vm166_vm7, %v153_v12, 0.0  ;;  %v11135_v11 = vunpack.i.h.bf16 %v11133_v10  ;;  %v11134_v13 = vunpack.i.l.bf16 %v11133_v10  ;;  %v743_v38 = vsel %vm18936_vm13, %v704_v35, 0.0 }
  0xc2   :  { %v201_v59 = vpack.c.bf16 %v190_v54, %v190_v54  ;;  %v755_v42 = vpack.c.bf16 %v743_v38, %v743_v38  ;;  %vm18910_vm7 = vcmp.ge.s32.totalorder %v12121_v55, 8 }
  0xc3   :  { %v708_v16 = vsel %vm703_vm8, %v11130_v8, %v11135_v11  ;;  %v710_v17 = vsel %vm703_vm8, %v11134_v13, %v11129_v9  ;;  %v711_v25 = vsel %vm703_vm8, %v702_v22, %v11134_v13 }
  0xc4   :  { %v515_v60 = vand.u32 %v12113_v50, %v201_v59  ;;  %v737_v20 = vsel %vm713_vm10, %v710_v17, 0.0  ;;  %v739_v21 = vsel %vm715_vm11, %v708_v16, 0.0  ;;  %v736_v28 = vsel %vm712_vm12, %v711_v25, 0.0 }
  0xc5   :  { %v749_v30 = vpack.c.bf16 %v737_v20, %v737_v20  ;;  %v751_v31 = vpack.c.bf16 %v739_v21, %v739_v21  ;;  %v748_v32 = vpack.c.bf16 %v736_v28, %v736_v28 }
  0xc6   :  { %635 = vmatpush.bf16.msrb.mxu2 %v515_v60  ;;  %v792_v60 = vand.u32 %v755_v42, %v12113_v50 }
  0xc7   :  { %10457 = vmatmul.msk.bf16.gmra.mxu2 %vm303_vm6, %v12182_v46  ;;  %v771_v40 = vand.u32 %v748_v32, %v12113_v50  ;;  %v774_v12 = vand.u32 %v749_v30, %v12113_v50  ;;  %v780_v54 = vand.u32 %v751_v31, %v12113_v50 }
  0xc8   :  { %v696_v29 = vpop.permute.xlu2 %695 }
  0xc9   :  { %v707_v34 = vsel %vm703_vm8, %v11135_v11, %v696_v29  ;;  %v706_v36 = vsel %vm703_vm8, %v696_v29, %v11139_v27 }
  0xca   :  { %v740_v37 = vsel %vm18930_vm14, %v707_v34, 0.0  ;;  %v741_v41 = vsel %vm18935_vm15, %v706_v36, 0.0 }
  0xcb   :  { %v752_v47 = vpack.c.bf16 %v740_v37, %v740_v37  ;;  %v753_v53 = vpack.c.bf16 %v741_v41, %v741_v41 }
  0xcd   :  { %v783_v59 = vand.u32 %v752_v47, %v12113_v50  ;;  %v786_v62 = vand.u32 %v753_v53, %v12113_v50 }
  0xcf   :  { %10453 = vmatmul.msk.bf16.gmra.mxu0 %vm303_vm6, %v12182_v46  ;;  %10455 = vmatmul.msk.bf16.gmra.mxu1 %vm303_vm6, %v12182_v46 }
  0xd0   :  { %10459 = vmatmul.msk.bf16.gmra.mxu3 %vm303_vm6, %v12182_v46  ;;  %v194_v46 = vld [vmem:[%s18890_s1 + $0x8] sm:$0x3] }
  0xd1   :  { %v487_v63 = vunpack.c.l.b16 %v194_v46  ;;  %v705_v46 = vsel %vm703_vm8, %v11139_v27, %v11140_v26 }
  0xd3   :  { %v12290_v6 = vpack.c.b16 %v487_v63, %v487_v63  ;;  %v742_v63 = vsel %vm18931_vm2, %v705_v46, 0.0 }
  0xd7   :  { %10468 = vmatmul.msk.bf16.vlgmr.msra.gmra.mxu2 %vm303_vm6, %v12270_v61 }
  0xd8   :  { %837 = vmatpush.bf16.msra.mxu2 %v777_v23 }
  0xdf   :  { %10464 = vmatmul.msk.bf16.vlgmr.msra.gmra.mxu0 %vm303_vm6, %v12270_v61  ;;  %10466 = vmatmul.msk.bf16.vlgmr.msra.gmra.mxu1 %vm303_vm6, %v12270_v61 }
  0xe0   :  { %10470 = vmatmul.msk.bf16.vlgmr.msra.gmra.mxu3 %vm303_vm6, %v12270_v61  ;;  %801 = vmatpush.bf16.msra.mxu0 %v771_v40 }
  0xe1   :  { %819 = vmatpush.bf16.msra.mxu1 %v774_v12  ;;  %855 = vmatpush.bf16.msra.mxu3 %v780_v54 }
  0xe7   :  { %10469 = vmatmul.msk.bf16.gmra.mxu2 %vm303_vm6, %v12290_v6 }
  0xef   :  { %10465 = vmatmul.msk.bf16.gmra.mxu0 %vm303_vm6, %v12290_v6  ;;  %10467 = vmatmul.msk.bf16.gmra.mxu1 %vm303_vm6, %v12290_v6 }
  0xf0   :  { %10471 = vmatmul.msk.bf16.gmra.mxu3 %vm303_vm6, %v12290_v6 }
  0xf7   :  { %10476 = vmatmul.msk.bf16.vlgmr.msrb.gmra.mxu2 %vm303_vm6, %v12270_v61 }
  0xfc   :  { %v1000_v40 = vpop.permute.xlu2 %999 }
  0xff   :  { %10472 = vmatmul.msk.bf16.vlgmr.msrb.gmra.mxu0 %vm303_vm6, %v12270_v61  ;;  %10474 = vmatmul.msk.bf16.vlgmr.msrb.gmra.mxu1 %vm303_vm6, %v12270_v61 }
 0x100   :  { %10478 = vmatmul.msk.bf16.vlgmr.msrb.gmra.mxu3 %vm303_vm6, %v12270_v61  ;;  %873 = vmatpush.bf16.msrb.mxu0 %v783_v59  ;;  %v754_v61 = vpack.c.bf16 %v742_v63, %v742_v63 }
 0x101   :  { %927 = vmatpush.bf16.msrb.mxu3 %v792_v60  ;;  %891 = vmatpush.bf16.msrb.mxu1 %v786_v62 }
 0x102   :  { %v789_v8 = vand.u32 %v754_v61, %v12113_v50 }
 0x104   :  { %909 = vmatpush.bf16.msrb.mxu2 %v789_v8 }
 0x107   :  { %10477 = vmatmul.msk.bf16.gmra.mxu2 %vm303_vm6, %v12290_v6 }
 0x10f   :  { %10473 = vmatmul.msk.bf16.gmra.mxu0 %vm303_vm6, %v12290_v6  ;;  %10475 = vmatmul.msk.bf16.gmra.mxu1 %vm303_vm6, %v12290_v6  ;;  %v11143_v24 = vpop.permute.xlu0 %11142 }
 0x110   :  { %10479 = vmatmul.msk.bf16.gmra.mxu3 %vm303_vm6, %v12290_v6  ;;  %v10482_v6 = vld [vmem:[%s18890_s1 + $0x20] sm:$0x3]  ;;  %v11148_v25 = vpop.permute.xlu1 %11147  ;;  %v11145_v26 = vunpack.i.h.bf16 %v11143_v24  ;;  %v11144_v27 = vunpack.i.l.bf16 %v11143_v24 }
 0x111   :  { %v761_v13 = vunpack.c.l.b16 %v10482_v6  ;;  %v11150_v28 = vunpack.i.h.bf16 %v11148_v25  ;;  %v11149_v29 = vunpack.i.l.bf16 %v11148_v25 }
 0x112   :  { %v1007_v30 = vsel %vm18929_vm3, %v11144_v27, %v11145_v26 }
 0x113   :  { %v12391_v16 = vpack.c.b16 %v761_v13, %v761_v13  ;;  %v1008_v31 = vsel %vm18929_vm3, %v11149_v29, %v11144_v27  ;;  %v1036_v32 = vsel %vm18902_vm4, %v1007_v30, 0.0  ;;  %v1006_v34 = vsel %vm18929_vm3, %v11145_v26, %v11150_v28  ;;  %v1508_v30 = vld.sshfl [vmem:[#allocation1] sm:$0xff pattern:$0x75316420] }
 0x114   :  { %v1048_v36 = vpack.c.bf16 %v1036_v32, %v1036_v32  ;;  %v1035_v37 = vsel %vm18903_vm5, %v1008_v31, 0.0  ;;  %v1037_v47 = vsel %vm18910_vm7, %v1006_v34, 0.0  ;;  %v1009_v53 = vsel %vm18929_vm3, %v1000_v40, %v11149_v29 }
 0x115   :  { %v1047_v54 = vpack.c.bf16 %v1035_v37, %v1035_v37  ;;  %vm18905_vm4 = vcmp.ge.s32.totalorder %v12107_v45, 8  ;;  %v1034_v60 = vsel %vm18909_vm0, %v1009_v53, 0.0  ;;  %vm18907_vm5 = vcmp.ge.s32.totalorder %v12148_v19, 8 }
 0x116   :  { %v1075_v12 = vand.u32 %v1048_v36, %v12113_v50  ;;  %v1046_v61 = vpack.c.bf16 %v1034_v60, %v1034_v60  ;;  %v1049_v6 = vpack.c.bf16 %v1037_v47, %v1037_v47  ;;  %v1509_v36 = vld.sshfl [vmem:[#allocation1 + $0x8] sm:$0xff pattern:$0x75316420]  ;;  %vm18917_vm0 = vcmp.lt.s32.totalorder %v12121_v55, 120 }
 0x117   :  { %10491 = vmatmul.msk.bf16.vlgmr.msra.gmra.mxu2 %vm303_vm6, %v12367_v7  ;;  %1799 = vst [vmem:[#allocation1] ss:$2 sm:$0xff] %v12069_v2  ;;  %vm18915_vm7 = vcmp.lt.s32.totalorder %v12148_v19, 120 }
 0x118   :  { %v11153_v59 = vpop.permute.xlu0 %11152  ;;  %v994_v62 = vpop.permute.xlu1 %993  ;;  %1135 = vmatpush.bf16.msra.mxu2 %v1075_v12  ;;  %v1069_v25 = vand.u32 %v1046_v61, %v12113_v50  ;;  %v1513_v61 = vld.sshfl [vmem:[#allocation1 + $0x28] sm:$0xff pattern:$0x75316420] }
 0x119   :  { %v11155_v46 = vunpack.i.h.bf16 %v11153_v59  ;;  %v11154_v63 = vunpack.i.l.bf16 %v11153_v59  ;;  %v1005_v8 = vsel %vm18929_vm3, %v11150_v28, %v994_v62  ;;  %v1512_v59 = vld.sshfl [vmem:[#allocation1 + $0x20] sm:$0xff pattern:$0x75316420] }
 0x11a   :  { %v12372_v9 = vpop.f32.mrf.mxu2  ;;  %v1038_v13 = vsel %vm18904_vm1, %v1005_v8, 0.0  ;;  %1532 = vrot.lane.b32.xlu1 %v1512_v59, %s11988_s17  ;;  %1803 = vst [vmem:[#allocation1 + $0x20] ss:$2 sm:$0xff] %v12080_v4  ;;  %vm18906_vm1 = vcmp.ge.s32.totalorder %v12117_v52, 8 }
 0x11b   :  { %v1002_v24 = vsel %vm18929_vm3, %v11155_v46, %v1000_v40  ;;  %v1004_v26 = vsel %vm18929_vm3, %v994_v62, %v11154_v63  ;;  %v1050_v29 = vpack.c.bf16 %v1038_v13, %v1038_v13  ;;  %v1078_v40 = vand.u32 %v1049_v6, %v12113_v50 }
 0x11c   :  { %v12374_v10 = vpop.f32.mrf.mxu0  ;;  %v12376_v11 = vpop.f32.mrf.mxu1  ;;  %v1041_v27 = vsel %vm18905_vm4, %v1002_v24, 0.0  ;;  %v1039_v28 = vsel %vm18907_vm5, %v1004_v26, 0.0  ;;  %vm18918_vm4 = vcmp.lt.s32.totalorder %v12094_v33, 120  ;;  %vm18911_vm5 = vcmp.lt.s32.totalorder %v12115_v51, 120 }
 0x11d   :  { %v1053_v32 = vpack.c.bf16 %v1041_v27, %v1041_v27  ;;  %v1051_v34 = vpack.c.bf16 %v1039_v28, %v1039_v28  ;;  %v1081_v53 = vand.u32 %v1050_v29, %v12113_v50  ;;  %v1511_v28 = vld.sshfl [vmem:[#allocation1 + $0x18] sm:$0xff pattern:$0x75316420] }
 0x11f   :  { %10487 = vmatmul.msk.bf16.vlgmr.msra.gmra.mxu0 %vm303_vm6, %v12367_v7  ;;  %10489 = vmatmul.msk.bf16.vlgmr.msra.gmra.mxu1 %vm303_vm6, %v12367_v7  ;;  %v1090_v12 = vand.u32 %v1053_v32, %v12113_v50 }
 0x120   :  { %10493 = vmatmul.msk.bf16.vlgmr.msra.gmra.mxu3 %vm303_vm6, %v12367_v7  ;;  %1099 = vmatpush.bf16.msra.mxu0 %v1069_v25 }
 0x121   :  { %1153 = vmatpush.bf16.msra.mxu3 %v1078_v40  ;;  %v1515_v40 = vld.sshfl [vmem:[#allocation1 + $0x38] sm:$0xff pattern:$0x75316420] }
 0x122   :  { %v12387_v14 = vpop.f32.mrf.mxu2 }
 0x123   :  { %v12389_v15 = vpop.f32.mrf.mxu3 }
 0x124   :  { %v12393_v17 = vpop.f32.mrf.mxu0  ;;  %v12395_v18 = vpop.f32.mrf.mxu1 }
 0x127   :  { %10492 = vmatmul.msk.bf16.gmra.mxu2 %vm303_vm6, %v12391_v16 }
 0x12a   :  { %v12399_v20 = vpop.f32.mrf.mxu2 }
 0x12b   :  { %v12401_v21 = vpop.f32.mrf.mxu3 }
 0x12c   :  { %v12403_v22 = vpop.f32.mrf.mxu0  ;;  %v12405_v23 = vpop.f32.mrf.mxu1 }
 0x12f   :  { %10488 = vmatmul.msk.bf16.gmra.mxu0 %vm303_vm6, %v12391_v16  ;;  %10490 = vmatmul.msk.bf16.gmra.mxu1 %vm303_vm6, %v12391_v16 }
 0x130   :  { %10494 = vmatmul.msk.bf16.gmra.mxu3 %vm303_vm6, %v12391_v16 }
 0x132   :  { %v390_v35 = vpop.f32.mrf.mxu2 }
 0x133   :  { %v12427_v38 = vpop.f32.mrf.mxu3  ;;  %v1072_v35 = vand.u32 %v1047_v54, %v12113_v50  ;;  %v1084_v54 = vand.u32 %v1051_v34, %v12113_v50  ;;  %v12513_v34 = vld [vmem:[%s18890_s1 + $0x24] sm:$0xff] }
 0x134   :  { %v354_v41 = vpop.f32.mrf.mxu0  ;;  %v372_v42 = vpop.f32.mrf.mxu1 }
 0x135   :  { %v11161_v41 = vpack.i.bf16 %v1509_v36, %v1508_v30  ;;  %1117 = vmatpush.bf16.msra.mxu1 %v1072_v35 }
 0x137   :  { %10499 = vmatmul.msk.bf16.vlgmr.msrb.gmra.mxu2 %vm303_vm6, %v12367_v7  ;;  %11162 = vrot.lane.b32.xlu0 %v11161_v41, %s11988_s17 }
 0x13a   :  { %v12455_v31 = vpop.f32.mrf.mxu2 }
 0x13b   :  { %v408_v37 = vpop.f32.mrf.mxu3 }
 0x13c   :  { %v12460_v42 = vpop.f32.mrf.mxu0  ;;  %v12462_v47 = vpop.f32.mrf.mxu1 }
 0x13f   :  { %10495 = vmatmul.msk.bf16.vlgmr.msrb.gmra.mxu0 %vm303_vm6, %v12367_v7  ;;  %10497 = vmatmul.msk.bf16.vlgmr.msrb.gmra.mxu1 %vm303_vm6, %v12367_v7 }
 0x140   :  { %10501 = vmatmul.msk.bf16.vlgmr.msrb.gmra.mxu3 %vm303_vm6, %v12367_v7  ;;  %1171 = vmatpush.bf16.msrb.mxu0 %v1081_v53  ;;  %v1003_v7 = vsel %vm18929_vm3, %v11154_v63, %v11155_v46  ;;  %v1510_v63 = vld.sshfl [vmem:[#allocation1 + $0x10] sm:$0xff pattern:$0x75316420] }
 0x141   :  { %1225 = vmatpush.bf16.msrb.mxu3 %v1090_v12  ;;  %1189 = vmatpush.bf16.msrb.mxu1 %v1084_v54  ;;  %v1040_v27 = vsel %vm18906_vm1, %v1003_v7, 0.0  ;;  %v11156_v29 = vpack.i.bf16 %v1511_v28, %v1510_v63  ;;  %1801 = vst [vmem:[#allocation1 + $0x10] ss:$2 sm:$0xff] %v12075_v3  ;;  %v10505_v7 = vld [vmem:[%s18890_s1 + $0x2c] sm:$0x3]  ;;  %vm18908_vm1 = vcmp.lt.s32.totalorder %v12101_v39, 120 }
 0x142   :  { %v12475_v60 = vpop.f32.mrf.mxu2  ;;  %1534 = vrot.lane.b32.xlu0 %v1513_v61, %s11988_s17  ;;  %v1052_v46 = vpack.c.bf16 %v1040_v27, %v1040_v27 }
 0x143   :  { %v12477_v62 = vpop.f32.mrf.mxu3  ;;  %11157 = vrot.lane.b32.xlu2 %v11156_v29, %s11988_s17 }
 0x144   :  { %v12479_v8 = vpop.f32.mrf.mxu0  ;;  %v12481_v6 = vpop.f32.mrf.mxu1  ;;  %v1087_v35 = vand.u32 %v1052_v46, %v12113_v50 }
 0x146   :  { %1207 = vmatpush.bf16.msrb.mxu2 %v1087_v35 }
 0x147   :  { %10500 = vmatmul.msk.bf16.gmra.mxu2 %vm303_vm6, %v12391_v16 }
 0x14a   :  { %v12490_v13 = vpop.f32.mrf.mxu2 }
 0x14b   :  { %v12492_v24 = vpop.f32.mrf.mxu3 }
 0x14c   :  { %v12494_v25 = vpop.f32.mrf.mxu0  ;;  %v12496_v26 = vpop.f32.mrf.mxu1 }
 0x14f   :  { %10496 = vmatmul.msk.bf16.gmra.mxu0 %vm303_vm6, %v12391_v16  ;;  %10498 = vmatmul.msk.bf16.gmra.mxu1 %vm303_vm6, %v12391_v16 }
 0x150   :  { %10502 = vmatmul.msk.bf16.gmra.mxu3 %vm303_vm6, %v12391_v16  ;;  %v1514_v16 = vld.sshfl [vmem:[#allocation1 + $0x30] sm:$0xff pattern:$0x75316420] }
 0x151   :  { %v11166_v41 = vpack.i.bf16 %v1515_v40, %v1514_v16  ;;  %1805 = vst [vmem:[#allocation1 + $0x30] ss:$2 sm:$0xff] %v12064_v1 }
 0x152   :  { %v462_v30 = vpop.f32.mrf.mxu2 }
 0x153   :  { %v12508_v32 = vpop.f32.mrf.mxu3  ;;  %11167 = vrot.lane.b32.xlu2 %v11166_v41, %s11988_s17 }
 0x154   :  { %v426_v36 = vpop.f32.mrf.mxu0  ;;  %v444_v37 = vpop.f32.mrf.mxu1 }
 0x157   :  { %10514 = vmatmul.msk.bf16.vlgmr.msra.gmra.mxu2 %vm303_vm6, %v12513_v34 }
 0x15a   :  { %v565_v53 = vpop.f32.mrf.mxu2 }
 0x15b   :  { %v480_v12 = vpop.f32.mrf.mxu3  ;;  %v12521_v54 = vadd.f32 %v565_v53, %v12372_v9  ;;  %v1059_v9 = vunpack.c.l.b16 %v10505_v7  ;;  %v1808_v7 = vld.sshfl [vmem:[#allocation1 + $0x10] sm:$0xff pattern:$0x75316420] }
 0x15c   :  { %v529_v59 = vpop.f32.mrf.mxu0  ;;  %v547_v61 = vpop.f32.mrf.mxu1 }
 0x15d   :  { %v12527_v27 = vadd.f32 %v529_v59, %v12374_v10  ;;  %v12530_v46 = vadd.f32 %v547_v61, %v12376_v11  ;;  %v12541_v10 = vpack.c.b16 %v1059_v9, %v1059_v9  ;;  %v1809_v9 = vld.sshfl [vmem:[#allocation1 + $0x18] sm:$0xff pattern:$0x75316420] }
 0x15e   :  { %2099 = vst [vmem:[#allocation1 + $0x10] ss:$2 sm:$0xff] %v12075_v3 }
 0x15f   :  { %10510 = vmatmul.msk.bf16.vlgmr.msra.gmra.mxu0 %vm303_vm6, %v12513_v34  ;;  %10512 = vmatmul.msk.bf16.vlgmr.msra.gmra.mxu1 %vm303_vm6, %v12513_v34 }
 0x160   :  { %10516 = vmatmul.msk.bf16.vlgmr.msra.gmra.mxu3 %vm303_vm6, %v12513_v34 }
 0x162   :  { %v567_v63 = vpop.f32.mrf.mxu2 }
 0x163   :  { %v12539_v28 = vadd.f32 %v567_v63, %v12387_v14  ;;  %v583_v29 = vpop.f32.mrf.mxu3  ;;  %v11171_v63 = vpack.i.bf16 %v1809_v9, %v1808_v7 }
 0x164   :  { %v12544_v11 = vadd.f32 %v583_v29, %v12389_v15  ;;  %v531_v30 = vpop.f32.mrf.mxu0  ;;  %v549_v35 = vpop.f32.mrf.mxu1  ;;  %v1288_v29 = vpack.c.bf16 %v12243_v49, %v12243_v49 }
 0x165   :  { %v12547_v36 = vadd.f32 %v531_v30, %v12393_v17  ;;  %v12550_v37 = vadd.f32 %v549_v35, %v12395_v18  ;;  %v1289_v18 = vpack.c.bf16 %v12237_v43, %v12237_v43  ;;  %v1287_v43 = vpack.c.bf16 %v12241_v48, %v12241_v48  ;;  %11172 = vrot.lane.b32.xlu1 %v11171_v63, %s11989_s9 }
 0x167   :  { %10515 = vmatmul.msk.bf16.gmra.mxu2 %vm303_vm6, %v12541_v10 }
 0x16a   :  { %v570_v16 = vpop.f32.mrf.mxu2 }
 0x16b   :  { %v12555_v14 = vadd.f32 %v570_v16, %v12399_v20  ;;  %v585_v40 = vpop.f32.mrf.mxu3 }
 0x16c   :  { %v12558_v41 = vadd.f32 %v585_v40, %v12401_v21  ;;  %v534_v15 = vpop.f32.mrf.mxu0  ;;  %v552_v53 = vpop.f32.mrf.mxu1  ;;  %v1310_v40 = vand.u32 %v1287_v43, %v12113_v50 }
 0x16d   :  { %v12561_v12 = vadd.f32 %v534_v15, %v12403_v22  ;;  %v12564_v17 = vadd.f32 %v552_v53, %v12405_v23  ;;  %v1316_v22 = vand.u32 %v1289_v18, %v12113_v50  ;;  %v1313_v15 = vand.u32 %v1288_v29, %v12113_v50 }
 0x16e   :  { %1340 = vmatpush.bf16.msra.mxu0 %v1310_v40 }
 0x16f   :  { %10511 = vmatmul.msk.bf16.gmra.mxu0 %vm303_vm6, %v12541_v10  ;;  %10513 = vmatmul.msk.bf16.gmra.mxu1 %vm303_vm6, %v12541_v10 }
 0x170   :  { %10517 = vmatmul.msk.bf16.gmra.mxu3 %vm303_vm6, %v12541_v10  ;;  %1376 = vmatpush.bf16.msra.mxu2 %v1316_v22 }
 0x171   :  { %1358 = vmatpush.bf16.msra.mxu1 %v1313_v15  ;;  %v12647_v15 = vld [vmem:[%s18890_s1 + $0x30] sm:$0xff] }
 0x172   :  { %v572_v20 = vpop.f32.mrf.mxu2 }
 0x173   :  { %v588_v21 = vpop.f32.mrf.mxu3  ;;  %v1813_v20 = vld.sshfl [vmem:[#allocation1 + $0x38] sm:$0xff pattern:$0x75316420] }
 0x174   :  { %v12576_v59 = vadd.f32 %v588_v21, %v12427_v38  ;;  %v536_v23 = vpop.f32.mrf.mxu0  ;;  %v554_v61 = vpop.f32.mrf.mxu1  ;;  %v1290_v38 = vpack.c.bf16 %v12239_v44, %v12239_v44 }
 0x176   :  { %v1319_v48 = vand.u32 %v1290_v38, %v12113_v50 }
 0x177   :  { %10522 = vmatmul.msk.bf16.vlgmr.msrb.gmra.mxu2 %vm303_vm6, %v12513_v34 }
 0x178   :  { %1394 = vmatpush.bf16.msra.mxu3 %v1319_v48 }
 0x17a   :  { %v637_v30 = vpop.f32.mrf.mxu2 }
 0x17b   :  { %v590_v35 = vpop.f32.mrf.mxu3  ;;  %v12589_v16 = vadd.f32 %v637_v30, %v12455_v31  ;;  %v1812_v31 = vld.sshfl [vmem:[#allocation1 + $0x30] sm:$0xff pattern:$0x75316420] }
 0x17c   :  { %v601_v53 = vpop.f32.mrf.mxu0  ;;  %v619_v18 = vpop.f32.mrf.mxu1  ;;  %v11181_v21 = vpack.i.bf16 %v1813_v20, %v1812_v31  ;;  %2103 = vst [vmem:[#allocation1 + $0x30] ss:$2 sm:$0xff] %v12064_v1  ;;  %v1292_v31 = vpack.c.bf16 %v12257_v58, %v12257_v58  ;;  %v1294_v20 = vpack.c.bf16 %v12285_v5, %v12285_v5  ;;  %v10528_v58 = vld [vmem:[%s18890_s1 + $0x38] sm:$0x3] }
 0x17d   :  { %v12595_v49 = vadd.f32 %v601_v53, %v12460_v42  ;;  %v12598_v44 = vadd.f32 %v619_v18, %v12462_v47  ;;  %v1810_v42 = vld.sshfl [vmem:[#allocation1 + $0x20] sm:$0xff pattern:$0x75316420] }
 0x17e   :  { %1830 = vrot.lane.b32.xlu0 %v1810_v42, %s11989_s9  ;;  %11182 = vrot.lane.b32.xlu1 %v11181_v21, %s11989_s9 }
 0x17f   :  { %10518 = vmatmul.msk.bf16.vlgmr.msrb.gmra.mxu0 %vm303_vm6, %v12513_v34  ;;  %10520 = vmatmul.msk.bf16.vlgmr.msrb.gmra.mxu1 %vm303_vm6, %v12513_v34 }
 0x180   :  { %10524 = vmatmul.msk.bf16.vlgmr.msrb.gmra.mxu3 %vm303_vm6, %v12513_v34 }
 0x182   :  { %v639_v47 = vpop.f32.mrf.mxu2 }
 0x183   :  { %v12610_v22 = vadd.f32 %v639_v47, %v12475_v60  ;;  %v655_v23 = vpop.f32.mrf.mxu3  ;;  %v1811_v47 = vld.sshfl [vmem:[#allocation1 + $0x28] sm:$0xff pattern:$0x75316420] }
 0x184   :  { %v12613_v61 = vadd.f32 %v655_v23, %v12477_v62  ;;  %v603_v7 = vpop.f32.mrf.mxu0  ;;  %v621_v9 = vpop.f32.mrf.mxu1  ;;  %2101 = vst [vmem:[#allocation1 + $0x20] ss:$2 sm:$0xff] %v12080_v4 }
 0x185   :  { %v12616_v34 = vadd.f32 %v603_v7, %v12479_v8  ;;  %v12619_v63 = vadd.f32 %v621_v9, %v12481_v6  ;;  %v1806_v6 = vld.sshfl [vmem:[#allocation1] sm:$0xff pattern:$0x75316420]  ;;  %v1325_v7 = vand.u32 %v1292_v31, %v12113_v50  ;;  %v1331_v9 = vand.u32 %v1294_v20, %v12113_v50 }
 0x187   :  { %10523 = vmatmul.msk.bf16.gmra.mxu2 %vm303_vm6, %v12541_v10  ;;  %1430 = vmatpush.bf16.msrb.mxu1 %v1325_v7 }
 0x188   :  { %1466 = vmatpush.bf16.msrb.mxu3 %v1331_v9 }
 0x18a   :  { %v642_v43 = vpop.f32.mrf.mxu2 }
 0x18b   :  { %v12624_v29 = vadd.f32 %v642_v43, %v12490_v13  ;;  %v657_v60 = vpop.f32.mrf.mxu3  ;;  %v1807_v13 = vld.sshfl [vmem:[#allocation1 + $0x8] sm:$0xff pattern:$0x75316420] }
 0x18c   :  { %v12627_v38 = vadd.f32 %v657_v60, %v12492_v24  ;;  %v606_v62 = vpop.f32.mrf.mxu0  ;;  %v624_v30 = vpop.f32.mrf.mxu1  ;;  %v1293_v24 = vpack.c.bf16 %v12283_v0, %v12283_v0  ;;  %2097 = vst [vmem:[#allocation1] ss:$2 sm:$0xff] %v12069_v2  ;;  %v1291_v0 = vpack.c.bf16 %v12255_v57, %v12255_v57  ;;  %v1300_v60 = vunpack.c.l.b16 %v10528_v58 }
 0x18d   :  { %v12630_v35 = vadd.f32 %v606_v62, %v12494_v25  ;;  %v12633_v8 = vadd.f32 %v624_v30, %v12496_v26  ;;  %v11176_v25 = vpack.i.bf16 %v1807_v13, %v1806_v6 }
 0x18e   :  { %v1328_v48 = vand.u32 %v1293_v24, %v12113_v50  ;;  %v1322_v23 = vand.u32 %v1291_v0, %v12113_v50 }
 0x18f   :  { %10519 = vmatmul.msk.bf16.gmra.mxu0 %vm303_vm6, %v12541_v10  ;;  %10521 = vmatmul.msk.bf16.gmra.mxu1 %vm303_vm6, %v12541_v10 }
 0x190   :  { %10525 = vmatmul.msk.bf16.gmra.mxu3 %vm303_vm6, %v12541_v10  ;;  %11177 = vrot.lane.b32.xlu2 %v11176_v25, %s11989_s9 }
 0x191   :  { %1448 = vmatpush.bf16.msrb.mxu2 %v1328_v48  ;;  %1412 = vmatpush.bf16.msrb.mxu0 %v1322_v23 }
 0x192   :  { %v644_v40 = vpop.f32.mrf.mxu2 }
 0x193   :  { %v660_v26 = vpop.f32.mrf.mxu3 }
 0x194   :  { %v12651_v53 = vadd.f32 %v660_v26, %v12508_v32  ;;  %v608_v10 = vpop.f32.mrf.mxu0  ;;  %v626_v18 = vpop.f32.mrf.mxu1 }
 0x197   :  { %10537 = vmatmul.msk.bf16.vlgmr.msra.gmra.mxu2 %vm303_vm6, %v12647_v15 }
 0x198   :  { %1832 = vrot.lane.b32.xlu2 %v1811_v47, %s11989_s9 }
 0x19a   :  { %v839_v21 = vpop.f32.mrf.mxu2 }
 0x19b   :  { %v662_v32 = vpop.f32.mrf.mxu3  ;;  %v12663_v42 = vadd.f32 %v839_v21, %v12521_v54 }
 0x19c   :  { %v803_v43 = vpop.f32.mrf.mxu0  ;;  %v821_v57 = vpop.f32.mrf.mxu1 }
 0x19d   :  { %v12674_v5 = vadd.f32 %v803_v43, %v12527_v27  ;;  %v12677_v54 = vadd.f32 %v821_v57, %v12530_v46  ;;  %v12688_v46 = vpack.c.b16 %v1300_v60, %v1300_v60 }
 0x19f   :  { %10533 = vmatmul.msk.bf16.vlgmr.msra.gmra.mxu0 %vm303_vm6, %v12647_v15  ;;  %10535 = vmatmul.msk.bf16.vlgmr.msra.gmra.mxu1 %vm303_vm6, %v12647_v15 }
 0x1a0   :  { %10539 = vmatmul.msk.bf16.vlgmr.msra.gmra.mxu3 %vm303_vm6, %v12647_v15 }
 0x1a2   :  { %v841_v62 = vpop.f32.mrf.mxu2 }
 0x1a3   :  { %v12686_v27 = vadd.f32 %v841_v62, %v12539_v28  ;;  %v857_v30 = vpop.f32.mrf.mxu3 }
 0x1a4   :  { %v12691_v6 = vadd.f32 %v857_v30, %v12544_v11  ;;  %v805_v13 = vpop.f32.mrf.mxu0  ;;  %v823_v24 = vpop.f32.mrf.mxu1 }
 0x1a5   :  { %v12694_v40 = vadd.f32 %v805_v13, %v12547_v36  ;;  %v12697_v25 = vadd.f32 %v823_v24, %v12550_v37  ;;  %v11158_v37 = vpop.permute.xlu2 %11157  ;;  %v1533_v13 = vpop.permute.xlu1 %1532 }
 0x1a6   :  { %v11160_v31 = vunpack.i.h.bf16 %v11158_v37  ;;  %v11159_v20 = vunpack.i.l.bf16 %v11158_v37 }
 0x1a7   :  { %10538 = vmatmul.msk.bf16.gmra.mxu2 %vm303_vm6, %v12688_v46 }
 0x1aa   :  { %v844_v26 = vpop.f32.mrf.mxu2 }
 0x1ab   :  { %v12702_v28 = vadd.f32 %v844_v26, %v12555_v14  ;;  %v859_v48 = vpop.f32.mrf.mxu3  ;;  %v11163_v14 = vpop.permute.xlu0 %11162 }
 0x1ac   :  { %v12705_v10 = vadd.f32 %v859_v48, %v12558_v41  ;;  %v808_v11 = vpop.f32.mrf.mxu0  ;;  %v826_v18 = vpop.f32.mrf.mxu1  ;;  %v1545_v41 = vsel %vm18918_vm4, %v11159_v20, %v11160_v31  ;;  %v1544_v48 = vsel %vm18918_vm4, %v11160_v31, %v1533_v13 }
 0x1ad   :  { %v12708_v0 = vadd.f32 %v808_v11, %v12561_v12  ;;  %v12711_v36 = vadd.f32 %v826_v18, %v12564_v17  ;;  %v11165_v12 = vunpack.i.h.bf16 %v11163_v14  ;;  %v11164_v17 = vunpack.i.l.bf16 %v11163_v14  ;;  %v12737_v30 = vpop.permute.xlu2 %11167 }
 0x1ae   :  { %v1575_v21 = vsel %vm18908_vm1, %v1545_v41, 0.0  ;;  %vm18913_vm1 = vcmp.lt.s32.totalorder %v12107_v45, 120  ;;  %v11169_v26 = vunpack.i.l.bf16 %v12737_v30  ;;  %v1576_v18 = vsel %vm18917_vm0, %v1544_v48, 0.0 }
 0x1af   :  { %10534 = vmatmul.msk.bf16.gmra.mxu0 %vm303_vm6, %v12688_v46  ;;  %10536 = vmatmul.msk.bf16.gmra.mxu1 %vm303_vm6, %v12688_v46  ;;  %v1587_v47 = vpack.c.bf16 %v1575_v21, %v1575_v21  ;;  %v1546_v23 = vsel %vm18918_vm4, %v11165_v12, %v11159_v20  ;;  %v1547_v7 = vsel %vm18918_vm4, %v11164_v17, %v11165_v12  ;;  %v2106_v12 = vld.sshfl [vmem:[#allocation1 + $0x10] sm:$0xff pattern:$0x75316420]  ;;  %v2107_v21 = vld.sshfl [vmem:[#allocation1 + $0x18] sm:$0xff pattern:$0x75316420] }
 0x1b0   :  { %10540 = vmatmul.msk.bf16.gmra.mxu3 %vm303_vm6, %v12688_v46  ;;  %v1573_v60 = vsel %vm18918_vm4, %v1547_v7, 0.0  ;;  %v1574_v62 = vsel %vm18911_vm5, %v1546_v23, 0.0  ;;  %vm18912_vm5 = vcmp.lt.s32.totalorder %v12123_v56, 120  ;;  %v1588_v41 = vpack.c.bf16 %v1576_v18, %v1576_v18  ;;  %2397 = vst [vmem:[#allocation1 + $0x10] ss:$2 sm:$0xff] %v12075_v3 }
 0x1b1   :  { %v1614_v24 = vand.u32 %v1587_v47, %v12113_v50  ;;  %v1585_v11 = vpack.c.bf16 %v1573_v60, %v1573_v60  ;;  %v1586_v20 = vpack.c.bf16 %v1574_v62, %v1574_v62  ;;  %v2105_v18 = vld.sshfl [vmem:[#allocation1 + $0x8] sm:$0xff pattern:$0x75316420]  ;;  %vm18921_vm0 = vcmp.lt.s32.totalorder %v12107_v45, 112 }
 0x1b2   :  { %v846_v32 = vpop.f32.mrf.mxu2 }
 0x1b3   :  { %v862_v9 = vpop.f32.mrf.mxu3  ;;  %1674 = vmatpush.bf16.msra.mxu2 %v1614_v24  ;;  %v1611_v3 = vand.u32 %v1586_v20, %v12113_v50 }
 0x1b4   :  { %v12731_v43 = vadd.f32 %v862_v9, %v12576_v59  ;;  %v810_v57 = vpop.f32.mrf.mxu0  ;;  %v828_v58 = vpop.f32.mrf.mxu1  ;;  %v11170_v59 = vunpack.i.h.bf16 %v12737_v30  ;;  %v1617_v9 = vand.u32 %v1588_v41, %v12113_v50  ;;  %v1608_v41 = vand.u32 %v1585_v11, %v12113_v50 }
 0x1b5   :  { %v1535_v37 = vpop.permute.xlu0 %1534  ;;  %v2104_v58 = vld.sshfl [vmem:[#allocation1] sm:$0xff pattern:$0x75316420]  ;;  %1656 = vmatpush.bf16.msra.mxu1 %v1611_v3 }
 0x1b6   :  { %v1548_v14 = vsel %vm18918_vm4, %v11170_v59, %v11164_v17  ;;  %v1542_v31 = vsel %vm18918_vm4, %v1535_v37, %v11169_v26  ;;  %v1543_v47 = vsel %vm18918_vm4, %v1533_v13, %v1535_v37  ;;  %v11186_v13 = vpack.i.bf16 %v2107_v21, %v2106_v12  ;;  %1692 = vmatpush.bf16.msra.mxu3 %v1617_v9 }
 0x1b7   :  { %10545 = vmatmul.msk.bf16.vlgmr.msrb.gmra.mxu2 %vm303_vm6, %v12647_v15  ;;  %v1580_v32 = vsel %vm18913_vm1, %v1548_v14, 0.0  ;;  %v1578_v23 = vsel %vm18915_vm7, %v1542_v31, 0.0  ;;  %v1577_v57 = vsel %vm18912_vm5, %v1543_v47, 0.0  ;;  %v11191_v31 = vpack.i.bf16 %v2105_v18, %v2104_v58  ;;  %2395 = vst [vmem:[#allocation1] ss:$2 sm:$0xff] %v12069_v2  ;;  %1638 = vmatpush.bf16.msra.mxu0 %v1608_v41 }
 0x1b8   :  { %v1592_v7 = vpack.c.bf16 %v1580_v32, %v1580_v32  ;;  %v1589_v24 = vpack.c.bf16 %v1577_v57, %v1577_v57  ;;  %v1590_v48 = vpack.c.bf16 %v1578_v23, %v1578_v23  ;;  %11187 = vrot.lane.b32.xlu0 %v11186_v13, %s11990_s26  ;;  %vm18914_vm5 = vcmp.lt.s32.totalorder %v12117_v52, 120 }
 0x1b9   :  { %11192 = vrot.lane.b32.xlu1 %v11191_v31, %s11990_s26  ;;  %vm18925_vm1 = vcmp.lt.s32.totalorder %v12094_v33, 112  ;;  %vm18919_vm7 = vcmp.lt.s32.totalorder %v12115_v51, 112 }
 0x1ba   :  { %v911_v17 = vpop.f32.mrf.mxu2  ;;  %v1620_v47 = vand.u32 %v1589_v24, %v12113_v50  ;;  %v1623_v12 = vand.u32 %v1590_v48, %v12113_v50  ;;  %v1629_v2 = vand.u32 %v1592_v7, %v12113_v50 }
 0x1bb   :  { %v864_v60 = vpop.f32.mrf.mxu3  ;;  %v12771_v62 = vadd.f32 %v911_v17, %v12589_v16  ;;  %v2109_v17 = vld.sshfl [vmem:[#allocation1 + $0x28] sm:$0xff pattern:$0x75316420] }
 0x1bc   :  { %v875_v37 = vpop.f32.mrf.mxu0  ;;  %v893_v14 = vpop.f32.mrf.mxu1 }
 0x1bd   :  { %v12777_v32 = vadd.f32 %v875_v37, %v12595_v49  ;;  %v12780_v16 = vadd.f32 %v893_v14, %v12598_v44  ;;  %v2110_v49 = vld.sshfl [vmem:[#allocation1 + $0x30] sm:$0xff pattern:$0x75316420]  ;;  %v2111_v44 = vld.sshfl [vmem:[#allocation1 + $0x38] sm:$0xff pattern:$0x75316420] }
 0x1be   :  { %2401 = vst [vmem:[#allocation1 + $0x30] ss:$2 sm:$0xff] %v12064_v1  ;;  %v11196_v11 = vpack.i.bf16 %v2111_v44, %v2110_v49  ;;  %v2108_v14 = vld.sshfl [vmem:[#allocation1 + $0x20] sm:$0xff pattern:$0x75316420] }
 0x1bf   :  { %10541 = vmatmul.msk.bf16.vlgmr.msrb.gmra.mxu0 %vm303_vm6, %v12647_v15  ;;  %10543 = vmatmul.msk.bf16.vlgmr.msrb.gmra.mxu1 %vm303_vm6, %v12647_v15  ;;  %2399 = vst [vmem:[#allocation1 + $0x20] ss:$2 sm:$0xff] %v12080_v4 }
 0x1c0   :  { %10547 = vmatmul.msk.bf16.vlgmr.msrb.gmra.mxu3 %vm303_vm6, %v12647_v15  ;;  %1710 = vmatpush.bf16.msrb.mxu0 %v1620_v47 }
 0x1c1   :  { %1764 = vmatpush.bf16.msrb.mxu3 %v1629_v2  ;;  %1728 = vmatpush.bf16.msrb.mxu1 %v1623_v12 }
 0x1c2   :  { %v913_v20 = vpop.f32.mrf.mxu2  ;;  %11197 = vrot.lane.b32.xlu0 %v11196_v11, %s11990_s26  ;;  %2130 = vrot.lane.b32.xlu1 %v2109_v17, %s11990_s26 }
 0x1c3   :  { %v12795_v21 = vadd.f32 %v913_v20, %v12610_v22  ;;  %v929_v23 = vpop.f32.mrf.mxu3  ;;  %v1541_v22 = vsel %vm18918_vm4, %v11169_v26, %v11170_v59  ;;  %2128 = vrot.lane.b32.xlu2 %v2108_v14, %s11990_s26  ;;  %vm18920_vm4 = vcmp.lt.s32.totalorder %v12123_v56, 112  ;;  %s12000_s26 = smov 122  }
 0x1c4   :  { %v12798_v7 = vadd.f32 %v929_v23, %v12613_v61  ;;  %v877_v9 = vpop.f32.mrf.mxu0  ;;  %v895_v57 = vpop.f32.mrf.mxu1  ;;  %v1579_v48 = vsel %vm18914_vm5, %v1541_v22, 0.0  ;;  %vm18916_vm5 = vcmp.lt.s32.totalorder %v12101_v39, 112 }
 0x1c5   :  { %v12801_v15 = vadd.f32 %v877_v9, %v12616_v34  ;;  %v12804_v1 = vadd.f32 %v895_v57, %v12619_v63 }
 0x1c7   :  { %10546 = vmatmul.msk.bf16.gmra.mxu2 %vm303_vm6, %v12688_v46 }
 0x1ca   :  { %v916_v61 = vpop.f32.mrf.mxu2 }
 0x1cb   :  { %v12818_v34 = vadd.f32 %v916_v61, %v12624_v29  ;;  %v931_v63 = vpop.f32.mrf.mxu3  ;;  %v1591_v29 = vpack.c.bf16 %v1579_v48, %v1579_v48 }
 0x1cc   :  { %v12821_v58 = vadd.f32 %v931_v63, %v12627_v38  ;;  %v880_v60 = vpop.f32.mrf.mxu0  ;;  %v898_v24 = vpop.f32.mrf.mxu1 }
 0x1cd   :  { %v12826_v30 = vadd.f32 %v880_v60, %v12630_v35  ;;  %v12829_v59 = vadd.f32 %v898_v24, %v12633_v8  ;;  %v12840_v35 = vld [vmem:[%s18890_s1 + $0x3c] sm:$0xff]  ;;  %v1626_v8 = vand.u32 %v1591_v29, %v12113_v50 }
 0x1cf   :  { %10542 = vmatmul.msk.bf16.gmra.mxu0 %vm303_vm6, %v12688_v46  ;;  %10544 = vmatmul.msk.bf16.gmra.mxu1 %vm303_vm6, %v12688_v46 }
 0x1d0   :  { %10548 = vmatmul.msk.bf16.gmra.mxu3 %vm303_vm6, %v12688_v46  ;;  %1746 = vmatpush.bf16.msrb.mxu2 %v1626_v8 }
 0x1d2   :  { %v918_v38 = vpop.f32.mrf.mxu2 }
 0x1d3   :  { %v934_v26 = vpop.f32.mrf.mxu3 }
 0x1d4   :  { %v12844_v13 = vadd.f32 %v934_v26, %v12651_v53  ;;  %v882_v18 = vpop.f32.mrf.mxu0  ;;  %v900_v37 = vpop.f32.mrf.mxu1  ;;  %v10551_v53 = vld [vmem:[%s18890_s1 + $0x44] sm:$0x3] }
 0x1d5   :  { %v1598_v4 = vunpack.c.l.b16 %v10551_v53 }
 0x1d7   :  { %10560 = vmatmul.msk.bf16.vlgmr.msra.gmra.mxu2 %vm303_vm6, %v12840_v35 }
 0x1da   :  { %v1137_v46 = vpop.f32.mrf.mxu2 }
 0x1db   :  { %v936_v3 = vpop.f32.mrf.mxu3  ;;  %v12851_v31 = vadd.f32 %v1137_v46, %v12663_v42 }
 0x1dc   :  { %v1101_v41 = vpop.f32.mrf.mxu0  ;;  %v1119_v47 = vpop.f32.mrf.mxu1 }
 0x1dd   :  { %v12857_v12 = vadd.f32 %v1101_v41, %v12674_v5  ;;  %v12860_v2 = vadd.f32 %v1119_v47, %v12677_v54  ;;  %v12871_v5 = vpack.c.b16 %v1598_v4, %v1598_v4 }
 0x1df   :  { %10556 = vmatmul.msk.bf16.vlgmr.msra.gmra.mxu0 %vm303_vm6, %v12840_v35  ;;  %10558 = vmatmul.msk.bf16.vlgmr.msra.gmra.mxu1 %vm303_vm6, %v12840_v35 }
 0x1e0   :  { %10562 = vmatmul.msk.bf16.vlgmr.msra.gmra.mxu3 %vm303_vm6, %v12840_v35 }
 0x1e2   :  { %v1139_v42 = vpop.f32.mrf.mxu2 }
 0x1e3   :  { %v12869_v49 = vadd.f32 %v1139_v42, %v12686_v27  ;;  %v1155_v44 = vpop.f32.mrf.mxu3 }
 0x1e4   :  { %v12874_v54 = vadd.f32 %v1155_v44, %v12691_v6  ;;  %v1103_v11 = vpop.f32.mrf.mxu0  ;;  %v1121_v20 = vpop.f32.mrf.mxu1 }
 0x1e5   :  { %v12877_v23 = vadd.f32 %v1103_v11, %v12694_v40  ;;  %v12880_v17 = vadd.f32 %v1121_v20, %v12697_v25  ;;  %v11173_v25 = vpop.permute.xlu1 %11172 }
 0x1e6   :  { %v11175_v60 = vunpack.i.h.bf16 %v11173_v25  ;;  %v11174_v24 = vunpack.i.l.bf16 %v11173_v25 }
 0x1e7   :  { %10561 = vmatmul.msk.bf16.gmra.mxu2 %vm303_vm6, %v12871_v5 }
 0x1ea   :  { %v1142_v9 = vpop.f32.mrf.mxu2 }
 0x1eb   :  { %v12885_v27 = vadd.f32 %v1142_v9, %v12702_v28  ;;  %v1157_v57 = vpop.f32.mrf.mxu3  ;;  %v11178_v28 = vpop.permute.xlu2 %11177 }
 0x1ec   :  { %v12888_v22 = vadd.f32 %v1157_v57, %v12705_v10  ;;  %v1106_v6 = vpop.f32.mrf.mxu0  ;;  %v1124_v61 = vpop.f32.mrf.mxu1  ;;  %v11180_v10 = vunpack.i.h.bf16 %v11178_v28 }
 0x1ed   :  { %v12891_v63 = vadd.f32 %v1106_v6, %v12708_v0  ;;  %v12894_v40 = vadd.f32 %v1124_v61, %v12711_v36  ;;  %v11179_v0 = vunpack.i.l.bf16 %v11178_v28  ;;  %v1843_v36 = vsel %vm18925_vm1, %v11174_v24, %v11175_v60 }
 0x1ee   :  { %v1873_v48 = vsel %vm18916_vm5, %v1843_v36, 0.0  ;;  %v1844_v29 = vsel %vm18925_vm1, %v11180_v10, %v11174_v24  ;;  %vm18924_vm5 = vcmp.lt.s32.totalorder %v12121_v55, 112 }
 0x1ef   :  { %10557 = vmatmul.msk.bf16.gmra.mxu0 %vm303_vm6, %v12871_v5  ;;  %10559 = vmatmul.msk.bf16.gmra.mxu1 %vm303_vm6, %v12871_v5  ;;  %v1885_v26 = vpack.c.bf16 %v1873_v48, %v1873_v48  ;;  %v1845_v8 = vsel %vm18925_vm1, %v11179_v0, %v11180_v10  ;;  %v1872_v3 = vsel %vm18919_vm7, %v1844_v29, 0.0  ;;  %vm18923_vm7 = vcmp.lt.s32.totalorder %v12148_v19, 112 }
 0x1f0   :  { %10563 = vmatmul.msk.bf16.gmra.mxu3 %vm303_vm6, %v12871_v5  ;;  %v1871_v41 = vsel %vm18925_vm1, %v1845_v8, 0.0  ;;  %v12921_v47 = vpop.permute.xlu1 %11182  ;;  %v1831_v53 = vpop.permute.xlu0 %1830  ;;  %v1884_v20 = vpack.c.bf16 %v1872_v3, %v1872_v3 }
 0x1f1   :  { %v1912_v4 = vand.u32 %v1885_v26, %v12113_v50  ;;  %v11184_v42 = vunpack.i.l.bf16 %v12921_v47  ;;  %v1842_v44 = vsel %vm18925_vm1, %v11175_v60, %v1831_v53  ;;  %v1883_v6 = vpack.c.bf16 %v1871_v41, %v1871_v41  ;;  %v2403_v26 = vld.sshfl [vmem:[#allocation1 + $0x8] sm:$0xff pattern:$0x75316420] }
 0x1f2   :  { %v1144_v38 = vpop.f32.mrf.mxu2  ;;  %v1874_v9 = vsel %vm18924_vm5, %v1842_v44, 0.0  ;;  %vm2152_vm5 = vcmp.lt.s32.totalorder %v12107_v45, 104 }
 0x1f3   :  { %v1160_v18 = vpop.f32.mrf.mxu3  ;;  %v1833_v11 = vpop.permute.xlu2 %1832  ;;  %v1886_v25 = vpack.c.bf16 %v1874_v9, %v1874_v9  ;;  %1972 = vmatpush.bf16.msra.mxu2 %v1912_v4  ;;  %v1906_v4 = vand.u32 %v1883_v6, %v12113_v50  ;;  %v2407_v6 = vld.sshfl [vmem:[#allocation1 + $0x28] sm:$0xff pattern:$0x75316420] }
 0x1f4   :  { %v12914_v37 = vadd.f32 %v1160_v18, %v12731_v43  ;;  %v1108_v14 = vpop.f32.mrf.mxu0  ;;  %v1126_v46 = vpop.f32.mrf.mxu1  ;;  %v11185_v43 = vunpack.i.h.bf16 %v12921_v47  ;;  %v1841_v57 = vsel %vm18925_vm1, %v1831_v53, %v1833_v11  ;;  %v1840_v60 = vsel %vm18925_vm1, %v1833_v11, %v11184_v42 }
 0x1f5   :  { %v1875_v28 = vsel %vm18920_vm4, %v1841_v57, 0.0  ;;  %v1876_v10 = vsel %vm18923_vm7, %v1840_v60, 0.0  ;;  %v1915_v29 = vand.u32 %v1886_v25, %v12113_v50  ;;  %v1909_v46 = vand.u32 %v1884_v20, %v12113_v50  ;;  %1936 = vmatpush.bf16.msra.mxu0 %v1906_v4 }
 0x1f6   :  { %v1846_v61 = vsel %vm18925_vm1, %v11185_v43, %v11179_v0  ;;  %v1887_v38 = vpack.c.bf16 %v1875_v28, %v1875_v28  ;;  %v2402_v0 = vld.sshfl [vmem:[#allocation1] sm:$0xff pattern:$0x75316420]  ;;  %v1888_v14 = vpack.c.bf16 %v1876_v10, %v1876_v10  ;;  %vm18922_vm4 = vcmp.lt.s32.totalorder %v12117_v52, 112 }
 0x1f7   :  { %10568 = vmatmul.msk.bf16.vlgmr.msrb.gmra.mxu2 %vm303_vm6, %v12840_v35  ;;  %v1878_v24 = vsel %vm18921_vm0, %v1846_v61, 0.0  ;;  %v11206_v3 = vpack.i.bf16 %v2403_v26, %v2402_v0  ;;  %1990 = vmatpush.bf16.msra.mxu3 %v1915_v29  ;;  %vm2136_vm0 = vcmp.lt.s32.totalorder %v12094_v33, 104  ;;  %vm2146_vm7 = vcmp.lt.s32.totalorder %v12115_v51, 104 }
 0x1f8   :  { %v1890_v48 = vpack.c.bf16 %v1878_v24, %v1878_v24  ;;  %v1918_v53 = vand.u32 %v1887_v38, %v12113_v50  ;;  %1954 = vmatpush.bf16.msra.mxu1 %v1909_v46  ;;  %v1921_v20 = vand.u32 %v1888_v14, %v12113_v50 }
 0x1f9   :  { %11207 = vrot.lane.b32.xlu0 %v11206_v3, %s11991_s12  ;;  %v2409_v3 = vld.sshfl [vmem:[#allocation1 + $0x38] sm:$0xff pattern:$0x75316420] }
 0x1fa   :  { %v1209_v36 = vpop.f32.mrf.mxu2 }
 0x1fb   :  { %v1162_v8 = vpop.f32.mrf.mxu3  ;;  %v12949_v18 = vadd.f32 %v1209_v36, %v12771_v62  ;;  %v1927_v62 = vand.u32 %v1890_v48, %v12113_v50 }
 0x1fc   :  { %v1173_v41 = vpop.f32.mrf.mxu0  ;;  %v1191_v47 = vpop.f32.mrf.mxu1 }
 0x1fd   :  { %v12955_v44 = vadd.f32 %v1173_v41, %v12777_v32  ;;  %v12958_v11 = vadd.f32 %v1191_v47, %v12780_v16  ;;  %v2406_v32 = vld.sshfl [vmem:[#allocation1 + $0x20] sm:$0xff pattern:$0x75316420] }
 0x1fe   :  { %2426 = vrot.lane.b32.xlu1 %v2406_v32, %s11991_s12 }
 0x1ff   :  { %10564 = vmatmul.msk.bf16.vlgmr.msrb.gmra.mxu0 %vm303_vm6, %v12840_v35  ;;  %10566 = vmatmul.msk.bf16.vlgmr.msrb.gmra.mxu1 %vm303_vm6, %v12840_v35 }
 0x200   :  { %10570 = vmatmul.msk.bf16.vlgmr.msrb.gmra.mxu3 %vm303_vm6, %v12840_v35  ;;  %2008 = vmatpush.bf16.msrb.mxu0 %v1918_v53 }
 0x201   :  { %2062 = vmatpush.bf16.msrb.mxu3 %v1927_v62  ;;  %2026 = vmatpush.bf16.msrb.mxu1 %v1921_v20 }
 0x202   :  { %v1211_v16 = vpop.f32.mrf.mxu2  ;;  %2428 = vrot.lane.b32.xlu0 %v2407_v6, %s11991_s12 }
 0x203   :  { %v12971_v9 = vadd.f32 %v1211_v16, %v12795_v21  ;;  %v1227_v57 = vpop.f32.mrf.mxu3  ;;  %v1839_v21 = vsel %vm18925_vm1, %v11184_v42, %v11185_v43  ;;  %v2405_v42 = vld.sshfl [vmem:[#allocation1 + $0x18] sm:$0xff pattern:$0x75316420]  ;;  %vm2150_vm1 = vcmp.lt.s32.totalorder %v12148_v19, 104 }
 0x204   :  { %v12974_v61 = vadd.f32 %v1227_v57, %v12798_v7  ;;  %v1175_v25 = vpop.f32.mrf.mxu0  ;;  %v1193_v60 = vpop.f32.mrf.mxu1  ;;  %v1877_v48 = vsel %vm18922_vm4, %v1839_v21, 0.0  ;;  %vm2147_vm4 = vcmp.lt.s32.totalorder %v12101_v39, 104 }
 0x205   :  { %v12977_v24 = vadd.f32 %v1175_v25, %v12801_v15  ;;  %v12980_v35 = vadd.f32 %v1193_v60, %v12804_v1 }
 0x207   :  { %10569 = vmatmul.msk.bf16.gmra.mxu2 %vm303_vm6, %v12871_v5 }
 0x20a   :  { %v1214_v7 = vpop.f32.mrf.mxu2 }
 0x20b   :  { %v12989_v28 = vadd.f32 %v1214_v7, %v12818_v34  ;;  %v1229_v10 = vpop.f32.mrf.mxu3  ;;  %v1889_v34 = vpack.c.bf16 %v1877_v48, %v1877_v48 }
 0x20c   :  { %v12992_v15 = vadd.f32 %v1229_v10, %v12821_v58  ;;  %v1178_v1 = vpop.f32.mrf.mxu0  ;;  %v1196_v36 = vpop.f32.mrf.mxu1  ;;  %v2404_v58 = vld.sshfl [vmem:[#allocation1 + $0x10] sm:$0xff pattern:$0x75316420] }
 0x20d   :  { %v12997_v29 = vadd.f32 %v1178_v1, %v12826_v30  ;;  %v13000_v43 = vadd.f32 %v1196_v36, %v12829_v59  ;;  %v11201_v38 = vpack.i.bf16 %v2405_v42, %v2404_v58  ;;  %v13012_v59 = vld [vmem:[%s18890_s1 + $0x48] sm:$0xff]  ;;  %v1924_v26 = vand.u32 %v1889_v34, %v12113_v50 }
 0x20f   :  { %10565 = vmatmul.msk.bf16.gmra.mxu0 %vm303_vm6, %v12871_v5  ;;  %10567 = vmatmul.msk.bf16.gmra.mxu1 %vm303_vm6, %v12871_v5 }
 0x210   :  { %10571 = vmatmul.msk.bf16.gmra.mxu3 %vm303_vm6, %v12871_v5  ;;  %11202 = vrot.lane.b32.xlu2 %v11201_v38, %s11991_s12  ;;  %v2408_v5 = vld.sshfl [vmem:[#allocation1 + $0x30] sm:$0xff pattern:$0x75316420] }
 0x211   :  { %2044 = vmatpush.bf16.msrb.mxu2 %v1924_v26  ;;  %v11211_v41 = vpack.i.bf16 %v2409_v3, %v2408_v5 }
 0x212   :  { %v1216_v0 = vpop.f32.mrf.mxu2 }
 0x213   :  { %v1232_v30 = vpop.f32.mrf.mxu3 }
 0x214   :  { %v13016_v8 = vadd.f32 %v1232_v30, %v12844_v13  ;;  %v1180_v14 = vpop.f32.mrf.mxu0  ;;  %v1198_v46 = vpop.f32.mrf.mxu1  ;;  %v10574_v13 = vld [vmem:[%s18890_s1 + $0x50] sm:$0x3] }
 0x217   :  { %10583 = vmatmul.msk.bf16.vlgmr.msra.gmra.mxu2 %vm303_vm6, %v13012_v59 }
 0x218   :  { %11212 = vrot.lane.b32.xlu2 %v11211_v41, %s11991_s12 }
 0x21a   :  { %v1378_v47 = vpop.f32.mrf.mxu2 }
 0x21b   :  { %v1234_v53 = vpop.f32.mrf.mxu3  ;;  %v13022_v4 = vadd.f32 %v1378_v47, %v12851_v31  ;;  %v1896_v31 = vunpack.c.l.b16 %v10574_v13 }
 0x21c   :  { %v1342_v62 = vpop.f32.mrf.mxu0  ;;  %v1360_v20 = vpop.f32.mrf.mxu1 }
 0x21d   :  { %v13028_v32 = vadd.f32 %v1342_v62, %v12857_v12  ;;  %v13031_v16 = vadd.f32 %v1360_v20, %v12860_v2  ;;  %v13042_v12 = vpack.c.b16 %v1896_v31, %v1896_v31  ;;  %v2129_v20 = vpop.permute.xlu2 %2128 }
 0x21f   :  { %10579 = vmatmul.msk.bf16.vlgmr.msra.gmra.mxu0 %vm303_vm6, %v13012_v59  ;;  %10581 = vmatmul.msk.bf16.vlgmr.msra.gmra.mxu1 %vm303_vm6, %v13012_v59 }
 0x220   :  { %10585 = vmatmul.msk.bf16.vlgmr.msra.gmra.mxu3 %vm303_vm6, %v13012_v59 }
 0x222   :  { %v1380_v57 = vpop.f32.mrf.mxu2 }
 0x223   :  { %v13040_v6 = vadd.f32 %v1380_v57, %v12869_v49  ;;  %v1396_v25 = vpop.f32.mrf.mxu3 }
 0x224   :  { %v13045_v2 = vadd.f32 %v1396_v25, %v12874_v54  ;;  %v1344_v60 = vpop.f32.mrf.mxu0  ;;  %v1362_v21 = vpop.f32.mrf.mxu1 }
 0x225   :  { %v13048_v7 = vadd.f32 %v1344_v60, %v12877_v23  ;;  %v13051_v10 = vadd.f32 %v1362_v21, %v12880_v17 }
 0x227   :  { %10584 = vmatmul.msk.bf16.gmra.mxu2 %vm303_vm6, %v13042_v12 }
 0x22a   :  { %v1383_v1 = vpop.f32.mrf.mxu2  ;;  %v11188_v17 = vpop.permute.xlu0 %11187 }
 0x22b   :  { %v13056_v49 = vadd.f32 %v1383_v1, %v12885_v27  ;;  %v1398_v36 = vpop.f32.mrf.mxu3  ;;  %v11190_v27 = vunpack.i.h.bf16 %v11188_v17 }
 0x22c   :  { %v13059_v48 = vadd.f32 %v1398_v36, %v12888_v22  ;;  %v1347_v54 = vpop.f32.mrf.mxu0  ;;  %v1365_v34 = vpop.f32.mrf.mxu1  ;;  %v11189_v22 = vunpack.i.l.bf16 %v11188_v17 }
 0x22d   :  { %v13062_v58 = vadd.f32 %v1347_v54, %v12891_v63  ;;  %v13065_v23 = vadd.f32 %v1365_v34, %v12894_v40  ;;  %v11193_v63 = vpop.permute.xlu1 %11192  ;;  %v2140_v31 = vsel %vm2136_vm0, %v11190_v27, %v2129_v20 }
 0x22e   :  { %v11195_v42 = vunpack.i.h.bf16 %v11193_v63  ;;  %v11194_v40 = vunpack.i.l.bf16 %v11193_v63  ;;  %v2141_v0 = vsel %vm2136_vm0, %v11189_v22, %v11190_v27 }
 0x22f   :  { %10580 = vmatmul.msk.bf16.gmra.mxu0 %vm303_vm6, %v13042_v12  ;;  %10582 = vmatmul.msk.bf16.gmra.mxu1 %vm303_vm6, %v13042_v12  ;;  %v2171_v26 = vsel %vm2147_vm4, %v2141_v0, 0.0  ;;  %vm2148_vm4 = vcmp.lt.s32.totalorder %v12121_v55, 104 }
 0x230   :  { %10586 = vmatmul.msk.bf16.gmra.mxu3 %vm303_vm6, %v13042_v12  ;;  %v2142_v14 = vsel %vm2136_vm0, %v11195_v42, %v11189_v22  ;;  %v2143_v46 = vsel %vm2136_vm0, %v11194_v40, %v11195_v42  ;;  %v2183_v47 = vpack.c.bf16 %v2171_v26, %v2171_v26  ;;  %v2172_v25 = vsel %vm2148_vm4, %v2140_v31, 0.0 }
 0x231   :  { %v2170_v53 = vsel %vm2146_vm7, %v2142_v14, 0.0  ;;  %v2169_v13 = vsel %vm2136_vm0, %v2143_v46, 0.0  ;;  %v2184_v1 = vpack.c.bf16 %v2172_v25, %v2172_v25  ;;  %vm2149_vm7 = vcmp.lt.s32.totalorder %v12123_v56, 104 }
 0x232   :  { %v1385_v38 = vpop.f32.mrf.mxu2  ;;  %v2182_v62 = vpack.c.bf16 %v2170_v53, %v2170_v53  ;;  %v2210_v57 = vand.u32 %v2183_v47, %v12113_v50  ;;  %v2181_v54 = vpack.c.bf16 %v2169_v13, %v2169_v13  ;;  %vm2444_vm4 = vcmp.lt.s32.totalorder %v12115_v51, 96 }
 0x233   :  { %v1401_v30 = vpop.f32.mrf.mxu3  ;;  %v2213_v63 = vand.u32 %v2184_v1, %v12113_v50 }
 0x234   :  { %v13083_v5 = vadd.f32 %v1401_v30, %v12914_v37  ;;  %v1349_v3 = vpop.f32.mrf.mxu0  ;;  %v1367_v41 = vpop.f32.mrf.mxu1  ;;  %2270 = vmatpush.bf16.msra.mxu2 %v2210_v57  ;;  %v2207_v17 = vand.u32 %v2182_v62, %v12113_v50 }
 0x235   :  { %v11198_v37 = vpop.permute.xlu0 %11197  ;;  %v2131_v36 = vpop.permute.xlu1 %2130  ;;  %2288 = vmatpush.bf16.msra.mxu3 %v2213_v63 }
 0x236   :  { %v11200_v60 = vunpack.i.h.bf16 %v11198_v37  ;;  %v11199_v21 = vunpack.i.l.bf16 %v11198_v37  ;;  %v2139_v34 = vsel %vm2136_vm0, %v2129_v20, %v2131_v36  ;;  %2252 = vmatpush.bf16.msra.mxu1 %v2207_v17 }
 0x237   :  { %10591 = vmatmul.msk.bf16.vlgmr.msrb.gmra.mxu2 %vm303_vm6, %v13012_v59  ;;  %v2173_v26 = vsel %vm2149_vm7, %v2139_v34, 0.0  ;;  %vm2450_vm7 = vcmp.lt.s32.totalorder %v12107_v45, 96 }
 0x238   :  { %v2144_v22 = vsel %vm2136_vm0, %v11200_v60, %v11194_v40  ;;  %v2138_v42 = vsel %vm2136_vm0, %v2131_v36, %v11199_v21  ;;  %v2185_v47 = vpack.c.bf16 %v2173_v26, %v2173_v26 }
 0x239   :  { %v2176_v30 = vsel %vm2152_vm5, %v2144_v22, 0.0  ;;  %v2174_v41 = vsel %vm2150_vm1, %v2138_v42, 0.0  ;;  %vm2151_vm1 = vcmp.lt.s32.totalorder %v12117_v52, 104  ;;  %vm2445_vm5 = vcmp.lt.s32.totalorder %v12101_v39, 96 }
 0x23a   :  { %v1450_v27 = vpop.f32.mrf.mxu2  ;;  %v2188_v3 = vpack.c.bf16 %v2176_v30, %v2176_v30  ;;  %v2186_v62 = vpack.c.bf16 %v2174_v41, %v2174_v41  ;;  %v2216_v20 = vand.u32 %v2185_v47, %v12113_v50 }
 0x23b   :  { %v1403_v38 = vpop.f32.mrf.mxu3  ;;  %v13105_v0 = vadd.f32 %v1450_v27, %v12949_v18  ;;  %v2204_v18 = vand.u32 %v2181_v54, %v12113_v50 }
 0x23c   :  { %v1414_v14 = vpop.f32.mrf.mxu0  ;;  %v1432_v46 = vpop.f32.mrf.mxu1  ;;  %v2225_v13 = vand.u32 %v2188_v3, %v12113_v50  ;;  %v2219_v31 = vand.u32 %v2186_v62, %v12113_v50  ;;  %v10597_v3 = vld [vmem:[%s18890_s1 + $0x5c] sm:$0x3] }
 0x23d   :  { %v13110_v40 = vadd.f32 %v1414_v14, %v12955_v44  ;;  %v13113_v53 = vadd.f32 %v1432_v46, %v12958_v11  ;;  %2234 = vmatpush.bf16.msra.mxu0 %v2204_v18 }
 0x23f   :  { %10587 = vmatmul.msk.bf16.vlgmr.msrb.gmra.mxu0 %vm303_vm6, %v13012_v59  ;;  %10589 = vmatmul.msk.bf16.vlgmr.msrb.gmra.mxu1 %vm303_vm6, %v13012_v59 }
 0x240   :  { %10593 = vmatmul.msk.bf16.vlgmr.msrb.gmra.mxu3 %vm303_vm6, %v13012_v59  ;;  %2324 = vmatpush.bf16.msrb.mxu1 %v2219_v31  ;;  %v2137_v59 = vsel %vm2136_vm0, %v11199_v21, %v11200_v60  ;;  %vm2434_vm0 = vcmp.lt.s32.totalorder %v12094_v33, 96 }
 0x241   :  { %2306 = vmatpush.bf16.msrb.mxu0 %v2216_v20  ;;  %2360 = vmatpush.bf16.msrb.mxu3 %v2225_v13 }
 0x242   :  { %v1452_v44 = vpop.f32.mrf.mxu2 }
 0x243   :  { %v13126_v11 = vadd.f32 %v1452_v44, %v12971_v9  ;;  %v1468_v57 = vpop.f32.mrf.mxu3 }
 0x244   :  { %v13129_v37 = vadd.f32 %v1468_v57, %v12974_v61  ;;  %v1416_v25 = vpop.f32.mrf.mxu0  ;;  %v1434_v1 = vpop.f32.mrf.mxu1 }
 0x245   :  { %v13132_v36 = vadd.f32 %v1416_v25, %v12977_v24  ;;  %v13135_v54 = vadd.f32 %v1434_v1, %v12980_v35  ;;  %v2175_v35 = vsel %vm2151_vm1, %v2137_v59, 0.0  ;;  %vm2446_vm1 = vcmp.lt.s32.totalorder %v12121_v55, 96 }
 0x247   :  { %10592 = vmatmul.msk.bf16.gmra.mxu2 %vm303_vm6, %v13042_v12 }
 0x24a   :  { %v1455_v9 = vpop.f32.mrf.mxu2 }
 0x24b   :  { %v13143_v61 = vadd.f32 %v1455_v9, %v12989_v28  ;;  %v1470_v34 = vpop.f32.mrf.mxu3  ;;  %v2187_v28 = vpack.c.bf16 %v2175_v35, %v2175_v35 }
 0x24c   :  { %v13146_v17 = vadd.f32 %v1470_v34, %v12992_v15  ;;  %v1419_v24 = vpop.f32.mrf.mxu0  ;;  %v1437_v27 = vpop.f32.mrf.mxu1 }
 0x24d   :  { %v13149_v22 = vadd.f32 %v1419_v24, %v12997_v29  ;;  %v13152_v63 = vadd.f32 %v1437_v27, %v13000_v43  ;;  %v13163_v29 = vld [vmem:[%s18890_s1 + $0x54] sm:$0xff]  ;;  %v2222_v43 = vand.u32 %v2187_v28, %v12113_v50 }
 0x24f   :  { %10588 = vmatmul.msk.bf16.gmra.mxu0 %vm303_vm6, %v13042_v12  ;;  %10590 = vmatmul.msk.bf16.gmra.mxu1 %vm303_vm6, %v13042_v12 }
 0x250   :  { %10594 = vmatmul.msk.bf16.gmra.mxu3 %vm303_vm6, %v13042_v12  ;;  %2342 = vmatpush.bf16.msrb.mxu2 %v2222_v43 }
 0x252   :  { %v1457_v15 = vpop.f32.mrf.mxu2 }
 0x253   :  { %v1473_v60 = vpop.f32.mrf.mxu3 }
 0x254   :  { %v13167_v21 = vadd.f32 %v1473_v60, %v13016_v8  ;;  %v1421_v42 = vpop.f32.mrf.mxu0  ;;  %v1439_v38 = vpop.f32.mrf.mxu1 }
 0x257   :  { %10606 = vmatmul.msk.bf16.vlgmr.msra.gmra.mxu2 %vm303_vm6, %v13163_v29 }
 0x25a   :  { %v1676_v30 = vpop.f32.mrf.mxu2 }
 0x25b   :  { %v1475_v12 = vpop.f32.mrf.mxu3  ;;  %v13172_v26 = vadd.f32 %v1676_v30, %v13022_v4  ;;  %v2194_v4 = vunpack.c.l.b16 %v10597_v3 }
 0x25c   :  { %v1640_v14 = vpop.f32.mrf.mxu0  ;;  %v1658_v46 = vpop.f32.mrf.mxu1 }
 0x25d   :  { %v13178_v8 = vadd.f32 %v1640_v14, %v13028_v32  ;;  %v13181_v41 = vadd.f32 %v1658_v46, %v13031_v16  ;;  %v13192_v32 = vpack.c.b16 %v2194_v4, %v2194_v4 }
 0x25f   :  { %10602 = vmatmul.msk.bf16.vlgmr.msra.gmra.mxu0 %vm303_vm6, %v13163_v29  ;;  %10604 = vmatmul.msk.bf16.vlgmr.msra.gmra.mxu1 %vm303_vm6, %v13163_v29 }
 0x260   :  { %10608 = vmatmul.msk.bf16.vlgmr.msra.gmra.mxu3 %vm303_vm6, %v13163_v29 }
 0x262   :  { %v1678_v47 = vpop.f32.mrf.mxu2 }
 0x263   :  { %v13190_v62 = vadd.f32 %v1678_v47, %v13040_v6  ;;  %v1694_v18 = vpop.f32.mrf.mxu3 }
 0x264   :  { %v13195_v16 = vadd.f32 %v1694_v18, %v13045_v2  ;;  %v1642_v20 = vpop.f32.mrf.mxu0  ;;  %v1660_v13 = vpop.f32.mrf.mxu1 }
 0x265   :  { %v13198_v31 = vadd.f32 %v1642_v20, %v13048_v7  ;;  %v13201_v44 = vadd.f32 %v1660_v13, %v13051_v10 }
 0x267   :  { %10607 = vmatmul.msk.bf16.gmra.mxu2 %vm303_vm6, %v13192_v32 }
 0x26a   :  { %v1681_v57 = vpop.f32.mrf.mxu2  ;;  %v11203_v10 = vpop.permute.xlu2 %11202 }
 0x26b   :  { %v13206_v6 = vadd.f32 %v1681_v57, %v13056_v49  ;;  %v1696_v25 = vpop.f32.mrf.mxu3  ;;  %v11205_v34 = vunpack.i.h.bf16 %v11203_v10  ;;  %v11204_v24 = vunpack.i.l.bf16 %v11203_v10  ;;  %v11208_v49 = vpop.permute.xlu0 %11207 }
 0x26c   :  { %v13209_v1 = vadd.f32 %v1696_v25, %v13059_v48  ;;  %v1645_v2 = vpop.f32.mrf.mxu0  ;;  %v1663_v59 = vpop.f32.mrf.mxu1 }
 0x26d   :  { %v13212_v9 = vadd.f32 %v1645_v2, %v13062_v58  ;;  %v13215_v7 = vadd.f32 %v1663_v59, %v13065_v23  ;;  %v2439_v48 = vsel %vm2434_vm0, %v11204_v24, %v11205_v34  ;;  %v11210_v58 = vunpack.i.h.bf16 %v11208_v49 }
 0x26e   :  { %v11209_v23 = vunpack.i.l.bf16 %v11208_v49  ;;  %v2469_v27 = vsel %vm2445_vm5, %v2439_v48, 0.0  ;;  %vm2448_vm5 = vcmp.lt.s32.totalorder %v12148_v19, 96 }
 0x26f   :  { %10603 = vmatmul.msk.bf16.gmra.mxu0 %vm303_vm6, %v13192_v32  ;;  %10605 = vmatmul.msk.bf16.gmra.mxu1 %vm303_vm6, %v13192_v32  ;;  %v2481_v28 = vpack.c.bf16 %v2469_v27, %v2469_v27  ;;  %v2440_v15 = vsel %vm2434_vm0, %v11210_v58, %v11204_v24 }
 0x270   :  { %10609 = vmatmul.msk.bf16.gmra.mxu3 %vm303_vm6, %v13192_v32  ;;  %v2441_v60 = vsel %vm2434_vm0, %v11209_v23, %v11210_v58  ;;  %v2468_v12 = vsel %vm2444_vm4, %v2440_v15, 0.0  ;;  %v2427_v3 = vpop.permute.xlu1 %2426  ;;  %vm2447_vm4 = vcmp.lt.s32.totalorder %v12123_v56, 96 }
 0x271   :  { %v2467_v14 = vsel %vm2434_vm0, %v2441_v60, 0.0  ;;  %v2508_v4 = vand.u32 %v2481_v28, %v12113_v50  ;;  %v2480_v20 = vpack.c.bf16 %v2468_v12, %v2468_v12 }
 0x272   :  { %v1683_v35 = vpop.f32.mrf.mxu2  ;;  %v11213_v46 = vpop.permute.xlu2 %11212  ;;  %v2479_v25 = vpack.c.bf16 %v2467_v14, %v2467_v14 }
 0x273   :  { %v1699_v43 = vpop.f32.mrf.mxu3  ;;  %v11215_v47 = vunpack.i.h.bf16 %v11213_v46  ;;  %v11214_v18 = vunpack.i.l.bf16 %v11213_v46  ;;  %2568 = vmatpush.bf16.msra.mxu2 %v2508_v4 }
 0x274   :  { %v13233_v42 = vadd.f32 %v1699_v43, %v13083_v5  ;;  %v1647_v38 = vpop.f32.mrf.mxu0  ;;  %v1665_v30 = vpop.f32.mrf.mxu1  ;;  %v2438_v5 = vsel %vm2434_vm0, %v11205_v34, %v2427_v3  ;;  %v2505_v43 = vand.u32 %v2480_v20, %v12113_v50  ;;  %v2502_v12 = vand.u32 %v2479_v25, %v12113_v50 }
 0x275   :  { %v2470_v13 = vsel %vm2446_vm1, %v2438_v5, 0.0  ;;  %v2429_v57 = vpop.permute.xlu0 %2428  ;;  %v2442_v2 = vsel %vm2434_vm0, %v11215_v47, %v11209_v23 }
 0x276   :  { %v2482_v59 = vpack.c.bf16 %v2470_v13, %v2470_v13  ;;  %v2436_v10 = vsel %vm2434_vm0, %v2429_v57, %v11214_v18  ;;  %v2474_v34 = vsel %vm2450_vm7, %v2442_v2, 0.0  ;;  %v2437_v24 = vsel %vm2434_vm0, %v2427_v3, %v2429_v57  ;;  %2550 = vmatpush.bf16.msra.mxu1 %v2505_v43  ;;  %2532 = vmatpush.bf16.msra.mxu0 %v2502_v12 }
 0x277   :  { %10614 = vmatmul.msk.bf16.vlgmr.msrb.gmra.mxu2 %vm303_vm6, %v13163_v29  ;;  %v2472_v49 = vsel %vm2448_vm5, %v2436_v10, 0.0  ;;  %v2486_v58 = vpack.c.bf16 %v2474_v34, %v2474_v34  ;;  %v2471_v35 = vsel %vm2447_vm4, %v2437_v24, 0.0  ;;  %vm2449_vm7 = vcmp.lt.s32.totalorder %v12117_v52, 96 }
 0x278   :  { %v2511_v27 = vand.u32 %v2482_v59, %v12113_v50  ;;  %v2483_v15 = vpack.c.bf16 %v2471_v35, %v2471_v35  ;;  %v2484_v60 = vpack.c.bf16 %v2472_v49, %v2472_v49  ;;  %vm18934_vm4 = vcmask 1043456  }
 0x279   :  { %v2523_v14 = vand.u32 %v2486_v58, %v12113_v50 }
 0x27a   :  { %v1748_v48 = vpop.f32.mrf.mxu2  ;;  %2586 = vmatpush.bf16.msra.mxu3 %v2511_v27  ;;  %v2517_v4 = vand.u32 %v2484_v60, %v12113_v50  ;;  %v10620_v60 = vld [vmem:[%s18890_s1 + $0x68] sm:$0x3] }
 0x27b   :  { %v1701_v28 = vpop.f32.mrf.mxu3  ;;  %v13256_v23 = vadd.f32 %v1748_v48, %v13105_v0  ;;  %v2514_v0 = vand.u32 %v2483_v15, %v12113_v50  ;;  %v2492_v43 = vunpack.c.l.b16 %v10620_v60 }
 0x27c   :  { %v1712_v38 = vpop.f32.mrf.mxu0  ;;  %v1730_v30 = vpop.f32.mrf.mxu1 }
 0x27d   :  { %v13262_v46 = vadd.f32 %v1712_v38, %v13110_v40  ;;  %v13265_v3 = vadd.f32 %v1730_v30, %v13113_v53  ;;  %v2494_v30 = vpack.c.b16 %v2492_v43, %v2492_v43 }
 0x27f   :  { %10610 = vmatmul.msk.bf16.vlgmr.msrb.gmra.mxu0 %vm303_vm6, %v13163_v29  ;;  %10612 = vmatmul.msk.bf16.vlgmr.msrb.gmra.mxu1 %vm303_vm6, %v13163_v29 }
 0x280   :  { %10616 = vmatmul.msk.bf16.vlgmr.msrb.gmra.mxu3 %vm303_vm6, %v13163_v29  ;;  %2604 = vmatpush.bf16.msrb.mxu0 %v2514_v0  ;;  %v2435_v29 = vsel %vm2434_vm0, %v11214_v18, %v11215_v47 }
 0x281   :  { %2658 = vmatpush.bf16.msrb.mxu3 %v2523_v14  ;;  %2622 = vmatpush.bf16.msrb.mxu1 %v2517_v4 }
 0x282   :  { %v1750_v40 = vpop.f32.mrf.mxu2 }
 0x283   :  { %v13276_v53 = vadd.f32 %v1750_v40, %v13126_v11  ;;  %v1766_v5 = vpop.f32.mrf.mxu3 }
 0x284   :  { %v13279_v20 = vadd.f32 %v1766_v5, %v13129_v37  ;;  %v1714_v13 = vpop.f32.mrf.mxu0  ;;  %v1732_v57 = vpop.f32.mrf.mxu1 }
 0x285   :  { %v13282_v25 = vadd.f32 %v1714_v13, %v13132_v36  ;;  %v13285_v2 = vadd.f32 %v1732_v57, %v13135_v54  ;;  %v2473_v54 = vsel %vm2449_vm7, %v2435_v29, 0.0 }
 0x287   :  { %10615 = vmatmul.msk.bf16.gmra.mxu2 %vm303_vm6, %v13192_v32 }
 0x28a   :  { %v1753_v11 = vpop.f32.mrf.mxu2 }
 0x28b   :  { %v13293_v37 = vadd.f32 %v1753_v11, %v13143_v61  ;;  %v1768_v59 = vpop.f32.mrf.mxu3  ;;  %v2485_v61 = vpack.c.bf16 %v2473_v54, %v2473_v54 }
 0x28c   :  { %v13296_v10 = vadd.f32 %v1768_v59, %v13146_v17  ;;  %v1717_v36 = vpop.f32.mrf.mxu0  ;;  %v1735_v34 = vpop.f32.mrf.mxu1 }
 0x28d   :  { %v13299_v24 = vadd.f32 %v1717_v36, %v13149_v22  ;;  %v13302_v49 = vadd.f32 %v1735_v34, %v13152_v63  ;;  %v11057_v22 = vld [vmem:[%s18890_s1 + $0x60] sm:$0xff]  ;;  %v2520_v18 = vand.u32 %v2485_v61, %v12113_v50 }
 0x28f   :  { %10611 = vmatmul.msk.bf16.gmra.mxu0 %vm303_vm6, %v13192_v32  ;;  %10613 = vmatmul.msk.bf16.gmra.mxu1 %vm303_vm6, %v13192_v32 }
 0x290   :  { %10617 = vmatmul.msk.bf16.gmra.mxu3 %vm303_vm6, %v13192_v32  ;;  %2640 = vmatpush.bf16.msrb.mxu2 %v2520_v18 }
 0x292   :  { %v1755_v17 = vpop.f32.mrf.mxu2 }
 0x293   :  { %v1771_v47 = vpop.f32.mrf.mxu3 }
 0x294   :  { %v13315_v63 = vadd.f32 %v1771_v47, %v13167_v21  ;;  %v1719_v48 = vpop.f32.mrf.mxu0  ;;  %v1737_v58 = vpop.f32.mrf.mxu1 }
 0x297   :  { %10629 = vmatmul.msk.bf16.vlgmr.msra.gmra.mxu2 %vm303_vm6, %v11057_v22 }
 0x29a   :  { %v1974_v27 = vpop.f32.mrf.mxu2 }
 0x29b   :  { %v1773_v35 = vpop.f32.mrf.mxu3  ;;  %v13319_v32 = vadd.f32 %v1974_v27, %v13172_v26 }
 0x29c   :  { %v1938_v28 = vpop.f32.mrf.mxu0  ;;  %v1956_v15 = vpop.f32.mrf.mxu1 }
 0x29d   :  { %v13325_v50 = vadd.f32 %v1938_v28, %v13178_v8  ;;  %v13328_v21 = vadd.f32 %v1956_v15, %v13181_v41 }
 0x29f   :  { %10625 = vmatmul.msk.bf16.vlgmr.msra.gmra.mxu0 %vm303_vm6, %v11057_v22  ;;  %10627 = vmatmul.msk.bf16.vlgmr.msra.gmra.mxu1 %vm303_vm6, %v11057_v22 }
 0x2a0   :  { %10631 = vmatmul.msk.bf16.vlgmr.msra.gmra.mxu3 %vm303_vm6, %v11057_v22 }
 0x2a2   :  { %v13333_v26 = vpop.f32.mrf.mxu2 }
 0x2a3   :  { %v1992_v38 = vpop.f32.mrf.mxu3 }
 0x2a4   :  { %v2076_v12 = vadd.f32 %v1992_v38, %v13195_v16  ;;  %v13336_v14 = vpop.f32.mrf.mxu0  ;;  %v13338_v8 = vpop.f32.mrf.mxu1 }
 0x2a7   :  { %10630 = vmatmul.msk.bf16.gmra.mxu2 %vm303_vm6, %v2494_v30 }
 0x2aa   :  { %v1979_v41 = vpop.f32.mrf.mxu2 }
 0x2ab   :  { %v2091_v0 = vadd.f32 %v1979_v41, %v13206_v6  ;;  %v13342_v4 = vpop.f32.mrf.mxu3 }
 0x2ac   :  { %v1943_v40 = vpop.f32.mrf.mxu0  ;;  %v1961_v5 = vpop.f32.mrf.mxu1 }
 0x2ad   :  { %v2089_v13 = vadd.f32 %v1943_v40, %v13212_v9  ;;  %v2090_v57 = vadd.f32 %v1961_v5, %v13215_v7 }
 0x2af   :  { %10626 = vmatmul.msk.bf16.gmra.mxu0 %vm303_vm6, %v2494_v30  ;;  %10628 = vmatmul.msk.bf16.gmra.mxu1 %vm303_vm6, %v2494_v30 }
 0x2b0   :  { %10632 = vmatmul.msk.bf16.gmra.mxu3 %vm303_vm6, %v2494_v30 }
 0x2b2   :  { %v1981_v16 = vpop.f32.mrf.mxu2 }
 0x2b3   :  { %v1997_v29 = vpop.f32.mrf.mxu3 }
 0x2b4   :  { %v2092_v11 = vadd.f32 %v1997_v29, %v13233_v42  ;;  %v1945_v59 = vpop.f32.mrf.mxu0  ;;  %v1963_v6 = vpop.f32.mrf.mxu1 }
 0x2b7   :  { %10637 = vmatmul.msk.bf16.vlgmr.msrb.gmra.mxu2 %vm303_vm6, %v11057_v22 }
 0x2ba   :  { %v2046_v36 = vpop.f32.mrf.mxu2 }
 0x2bb   :  { %v1999_v34 = vpop.f32.mrf.mxu3  ;;  %v2079_v9 = vadd.f32 %v2046_v36, %v13256_v23 }
 0x2bc   :  { %v2010_v54 = vpop.f32.mrf.mxu0  ;;  %v2028_v7 = vpop.f32.mrf.mxu1 }
 0x2bd   :  { %v2077_v61 = vadd.f32 %v2010_v54, %v13262_v46  ;;  %v2078_v17 = vadd.f32 %v2028_v7, %v13265_v3 }
 0x2bf   :  { %10633 = vmatmul.msk.bf16.vlgmr.msrb.gmra.mxu0 %vm303_vm6, %v11057_v22  ;;  %10635 = vmatmul.msk.bf16.vlgmr.msrb.gmra.mxu1 %vm303_vm6, %v11057_v22 }
 0x2c0   :  { %10639 = vmatmul.msk.bf16.vlgmr.msrb.gmra.mxu3 %vm303_vm6, %v11057_v22 }
 0x2c2   :  { %v13357_v42 = vpop.f32.mrf.mxu2 }
 0x2c3   :  { %v2064_v47 = vpop.f32.mrf.mxu3 }
 0x2c4   :  { %v2080_v18 = vadd.f32 %v2064_v47, %v13279_v20  ;;  %v13360_v48 = vpop.f32.mrf.mxu0  ;;  %v13362_v23 = vpop.f32.mrf.mxu1 }
 0x2c7   :  { %10638 = vmatmul.msk.bf16.gmra.mxu2 %vm303_vm6, %v2494_v30 }
 0x2ca   :  { %v2051_v46 = vpop.f32.mrf.mxu2 }
 0x2cb   :  { %v2095_v3 = vadd.f32 %v2051_v46, %v13293_v37  ;;  %v13366_v58 = vpop.f32.mrf.mxu3 }
 0x2cc   :  { %v2015_v27 = vpop.f32.mrf.mxu0  ;;  %v2033_v35 = vpop.f32.mrf.mxu1 }
 0x2cd   :  { %v13369_v22 = vadd.f32 %v2015_v27, %v13299_v24  ;;  %v2094_v28 = vadd.f32 %v2033_v35, %v13302_v49 }
 0x2cf   :  { %10634 = vmatmul.msk.bf16.gmra.mxu0 %vm303_vm6, %v2494_v30  ;;  %10636 = vmatmul.msk.bf16.gmra.mxu1 %vm303_vm6, %v2494_v30 }
 0x2d0   :  { %10640 = vmatmul.msk.bf16.gmra.mxu3 %vm303_vm6, %v2494_v30 }
 0x2d2   :  { %v2053_v20 = vpop.f32.mrf.mxu2 }
 0x2d3   :  { %v2069_v15 = vpop.f32.mrf.mxu3 }
 0x2d4   :  { %v13376_v60 = vadd.f32 %v2069_v15, %v13315_v63  ;;  %v2017_v37 = vpop.f32.mrf.mxu0  ;;  %v2035_v43 = vpop.f32.mrf.mxu1 }
 0x2d6   :  { %18990 = vst [vmem:[#allocation12_spill] sm:$0xff] %v13376_v60 }
 0x2da   :  { %v2272_v38 = vpop.f32.mrf.mxu2 }
 0x2db   :  { %v2071_v41 = vpop.f32.mrf.mxu3  ;;  %v2373_v24 = vadd.f32 %v2272_v38, %v13319_v32 }
 0x2dc   :  { %v2236_v40 = vpop.f32.mrf.mxu0  ;;  %v2254_v5 = vpop.f32.mrf.mxu1 }
 0x2dd   :  { %v2371_v49 = vadd.f32 %v2236_v40, %v13325_v50  ;;  %v2372_v16 = vadd.f32 %v2254_v5, %v13328_v21 }
 0x2e2   :  { %v13381_v29 = vpop.f32.mrf.mxu2 }
 0x2e3   :  { %v2290_v30 = vpop.f32.mrf.mxu3 }
 0x2e4   :  { %v2374_v59 = vadd.f32 %v2290_v30, %v2076_v12  ;;  %v2238_v6 = vpop.f32.mrf.mxu0  ;;  %v2256_v36 = vpop.f32.mrf.mxu1  ;;  %v11992_v30 = vmov 0  }
 0x2e5   :  { %11216 = vset.pattern.permute.xlu1 %v11992_v30  ;;  %11218 = vset.pattern.permute.xlu0 %v11992_v30 }
 0x2e6   :  { %11217 = vset.pattern.permute.xlu2 %v11992_v30 }
 0x2ea   :  { %v2277_v63 = vpop.f32.mrf.mxu2 }
 0x2eb   :  { %v13383_v34 = vadd.f32 %v2277_v63, %v2091_v0  ;;  %v13385_v54 = vpop.f32.mrf.mxu3 }
 0x2ec   :  { %v2241_v7 = vpop.f32.mrf.mxu0  ;;  %v2259_v47 = vpop.f32.mrf.mxu1 }
 0x2ed   :  { %v13387_v32 = vadd.f32 %v2241_v7, %v2089_v13  ;;  %v13389_v46 = vadd.f32 %v2259_v47, %v2090_v57 }
 0x2f2   :  { %v2279_v50 = vpop.f32.mrf.mxu2 }
 0x2f3   :  { %v2295_v27 = vpop.f32.mrf.mxu3 }
 0x2f4   :  { %v13391_v21 = vadd.f32 %v2295_v27, %v2092_v11  ;;  %v2243_v35 = vpop.f32.mrf.mxu0  ;;  %v2261_v20 = vpop.f32.mrf.mxu1 }
 0x2fa   :  { %v2344_v12 = vpop.f32.mrf.mxu2 }
 0x2fb   :  { %v2297_v15 = vpop.f32.mrf.mxu3  ;;  %v13393_v37 = vadd.f32 %v2344_v12, %v2079_v9  ;;  %v2694_v9 = vld [vmem:[%s18893_s4 + $0x8] sm:$0xff] }
 0x2fc   :  { %v2308_v0 = vpop.f32.mrf.mxu0  ;;  %v2326_v43 = vpop.f32.mrf.mxu1  ;;  %2937 = vperm.xlu1 %11216, %v2694_v9  }
 0x2fd   :  { %v13395_v38 = vadd.f32 %v2308_v0, %v2077_v61  ;;  %v13397_v41 = vadd.f32 %v2326_v43, %v2078_v17 }
 0x302   :  { %v13399_v13 = vpop.f32.mrf.mxu2 }
 0x303   :  { %v2362_v57 = vpop.f32.mrf.mxu3 }
 0x304   :  { %v13401_v40 = vadd.f32 %v2362_v57, %v2080_v18  ;;  %v13403_v5 = vpop.f32.mrf.mxu0  ;;  %v13405_v11 = vpop.f32.mrf.mxu1 }
 0x30a   :  { %v2349_v61 = vpop.f32.mrf.mxu2 }
 0x30b   :  { %v13410_v17 = vadd.f32 %v2349_v61, %v2095_v3  ;;  %v13412_v63 = vpop.f32.mrf.mxu3 }
 0x30c   :  { %v13414_v18 = vpop.f32.mrf.mxu0  ;;  %v2331_v7 = vpop.f32.mrf.mxu1 }
 0x30d   :  { %v13416_v47 = vadd.f32 %v2331_v7, %v2094_v28 }
 0x312   :  { %v2351_v50 = vpop.f32.mrf.mxu2 }
 0x313   :  { %v13418_v27 = vpop.f32.mrf.mxu3 }
 0x314   :  { %18991 = vst [vmem:[#allocation13_spill] sm:$0xff] %v13418_v27  ;;  %v2315_v35 = vpop.f32.mrf.mxu0  ;;  %v2333_v20 = vpop.f32.mrf.mxu1 }
 0x31a   :  { %v2570_v12 = vpop.f32.mrf.mxu2 }
 0x31b   :  { %v2369_v15 = vpop.f32.mrf.mxu3  ;;  %v13420_v0 = vadd.f32 %v2570_v12, %v2373_v24  ;;  %v2081_v24 = vadd.f32 %v13336_v14, %v13198_v31  ;;  %v2082_v12 = vadd.f32 %v13338_v8, %v13201_v44  ;;  %v2083_v31 = vadd.f32 %v13333_v26, %v13190_v62 }
 0x31c   :  { %v2534_v43 = vpop.f32.mrf.mxu0  ;;  %v2552_v57 = vpop.f32.mrf.mxu1  ;;  %v2084_v44 = vadd.f32 %v13342_v4, %v13209_v1  ;;  %v58_v26 = vand.u32 7, %v12101_v39  ;;  %v2087_v4 = vadd.f32 %v13357_v42, %v13276_v53  ;;  %v2086_v53 = vadd.f32 %v13362_v23, %v13285_v2 }
 0x31d   :  { %18992 = vst [vmem:[#allocation14_spill] sm:$0xff] %v13420_v0  ;;  %v13422_v3 = vadd.f32 %v2534_v43, %v2371_v49  ;;  %v13424_v30 = vadd.f32 %v2552_v57, %v2372_v16  ;;  %v2379_v49 = vadd.f32 %v2238_v6, %v2081_v24  ;;  %v2380_v15 = vadd.f32 %v2256_v36, %v2082_v12 }
 0x31e   :  { %v56_v43 = vand.u32 7, %v12094_v33  ;;  %v2381_v6 = vadd.f32 %v13381_v29, %v2083_v31  ;;  %v2382_v1 = vadd.f32 %v13385_v54, %v2084_v44  ;;  %v2085_v54 = vadd.f32 %v13360_v48, %v13282_v25 }
 0x31f   :  { %18993 = vst [vmem:[#allocation15_spill] sm:$0xff] %v13424_v30  ;;  %v2088_v42 = vadd.f32 %v13366_v58, %v13296_v10  ;;  %vm13480_vm1 = vcmp.eq.s32.totalorder %v58_v26, 0  ;;  %v62_v23 = vand.u32 7, %v12117_v52  ;;  %v60_v58 = vand.u32 7, %v12123_v56 }
 0x320   :  { %vm13442_vm6 = vcmp.eq.s32.totalorder %v56_v43, 0  ;;  %v61_v44 = vand.u32 7, %v12148_v19 }
 0x321   :  { %v2386_v43 = vadd.f32 %v13412_v63, %v2088_v42  ;;  %vm13521_vm7 = vcmp.eq.s32.totalorder %v62_v23, 0  ;;  %vm13525_vm3 = vcmp.eq.s32.totalorder %v60_v58, 0 }
 0x322   :  { %v2572_v9 = vpop.f32.mrf.mxu2  ;;  %vm13539_vm14 = vcmp.eq.s32.totalorder %v61_v44, 0 }
 0x323   :  { %v2588_v61 = vpop.f32.mrf.mxu3 }
 0x324   :  { %v13426_v60 = vadd.f32 %v2588_v61, %v2374_v59  ;;  %v2536_v28 = vpop.f32.mrf.mxu0  ;;  %v2554_v7 = vpop.f32.mrf.mxu1  ;;  %v57_v59 = vand.u32 7, %v12115_v51 }
 0x325   :  { %v13434_v61 = vadd.f32 %v2536_v28, %v2379_v49 }
 0x326   :  { %18994 = vst [vmem:[#allocation16_spill] sm:$0xff] %v13426_v60  ;;  %v13436_v60 = vadd.f32 %v2554_v7, %v2380_v15  ;;  %vm13446_vm0 = vcmp.eq.s32.totalorder %v57_v59, 0 }
 0x327   :  { %v2723_v36 = vsel %vm13442_vm6, %v13434_v61, 0.0 }
 0x328   :  { %v2724_v62 = vsel %vm13446_vm0, %v13436_v60, 0.0  ;;  %v2786_v28 = vmul.f32 %v2723_v36, %v13434_v61 }
 0x329   :  { %v2787_v7 = vmul.f32 %v2724_v62, %v13436_v60 }
 0x32a   :  { %v2575_v50 = vpop.f32.mrf.mxu2 }
 0x32b   :  { %v2590_v27 = vpop.f32.mrf.mxu3 }
 0x32c   :  { %v2539_v35 = vpop.f32.mrf.mxu0  ;;  %v2557_v20 = vpop.f32.mrf.mxu1  ;;  %v13466_v24 = vadd.f32 %v2590_v27, %v2382_v1 }
 0x332   :  { %v2577_v16 = vpop.f32.mrf.mxu2 }
 0x333   :  { %v2593_v57 = vpop.f32.mrf.mxu3 }
 0x334   :  { %v2541_v0 = vpop.f32.mrf.mxu0  ;;  %v2559_v30 = vpop.f32.mrf.mxu1 }
 0x335   :  { %v13461_v0 = vadd.f32 %v2572_v9, %v2381_v6  ;;  %v59_v30 = vand.u32 7, %v12121_v55  ;;  %v13478_v9 = vadd.f32 %v2539_v35, %v13387_v32  ;;  %v2385_v32 = vadd.f32 %v13399_v13, %v2087_v4 }
 0x336   :  { %v2383_v35 = vadd.f32 %v13403_v5, %v2085_v54  ;;  %v13518_v6 = vadd.f32 %v2575_v50, %v13383_v34  ;;  %v13531_v4 = vadd.f32 %v2593_v57, %v13391_v21 }
 0x337   :  { %v2725_v10 = vsel %vm13480_vm1, %v13461_v0, 0.0  ;;  %vm13496_vm5 = vcmp.eq.s32.totalorder %v59_v30, 0  ;;  %v2731_v59 = vsel %vm13442_vm6, %v13478_v9, 0.0 }
 0x338   :  { %v2788_v31 = vmul.f32 %v2725_v10, %v13461_v0  ;;  %v2758_v26 = vsel %vm18934_vm4, %v2731_v59, 0.0  ;;  %v2794_v50 = vmul.f32 %v2731_v59, %v13478_v9  ;;  %v2733_v42 = vsel %vm13480_vm1, %v13518_v6, 0.0 }
 0x339   :  { %v2734_v23 = vsel %vm13496_vm5, %v13531_v4, 0.0  ;;  %v2761_v59 = vsel %vm18934_vm4, %v2733_v42, 0.0 }
 0x33a   :  { %v2642_v29 = vpop.f32.mrf.mxu2  ;;  %v2797_v44 = vmul.f32 %v2734_v23, %v13531_v4 }
 0x33b   :  { %v2595_v12 = vpop.f32.mrf.mxu3  ;;  %v13469_v49 = vadd.f32 %v2642_v29, %v13393_v37  ;;  %v13485_v37 = vadd.f32 %v2557_v20, %v13389_v46  ;;  %v2748_v46 = vadd.f32 %v2724_v62, %v2723_v36  ;;  %v2384_v20 = vadd.f32 %v13405_v11, %v2086_v53 }
 0x33c   :  { %v2606_v15 = vpop.f32.mrf.mxu0  ;;  %v2624_v16 = vpop.f32.mrf.mxu1 }
 0x33d   :  { %v13488_v25 = vadd.f32 %v2606_v15, %v13395_v38  ;;  %v13491_v2 = vadd.f32 %v2624_v16, %v13397_v41  ;;  %v2811_v38 = vadd.f32 %v2787_v7, %v2786_v28  ;;  %v2726_v41 = vsel %vm13496_vm5, %v13466_v24, 0.0 }
 0x33e   :  { %v2732_v13 = vsel %vm13446_vm0, %v13485_v37, 0.0  ;;  %v2789_v5 = vmul.f32 %v2726_v41, %v13466_v24  ;;  %v2749_v62 = vadd.f32 %v2748_v46, %v2725_v10  ;;  %v2820_v46 = vsel %vm18934_vm4, %v2794_v50, 0.0 }
 0x33f   :  { %v2812_v1 = vadd.f32 %v2811_v38, %v2788_v31  ;;  %v2759_v30 = vsel %vm18934_vm4, %v2732_v13, 0.0  ;;  %v2795_v29 = vmul.f32 %v2732_v13, %v13485_v37  ;;  %v2796_v31 = vmul.f32 %v2733_v42, %v13518_v6 }
 0x340   :  { %v2750_v15 = vadd.f32 %v2749_v62, %v2726_v41  ;;  %v2760_v10 = vadd.f32 %v2759_v30, %v2758_v26  ;;  %v2763_v50 = vsel %vm18934_vm4, %v2734_v23, 0.0 }
 0x341   :  { %v2813_v16 = vadd.f32 %v2812_v1, %v2789_v5  ;;  %v2821_v38 = vsel %vm18934_vm4, %v2795_v29, 0.0 }
 0x342   :  { %v2644_v36 = vpop.f32.mrf.mxu2  ;;  %v2822_v26 = vadd.f32 %v2821_v38, %v2820_v46 }
 0x343   :  { %v2660_v34 = vpop.f32.mrf.mxu3  ;;  %v13543_v53 = vadd.f32 %v2644_v36, %v2385_v32 }
 0x344   :  { %v13537_v28 = vadd.f32 %v2660_v34, %v13401_v40  ;;  %v2608_v7 = vpop.f32.mrf.mxu0  ;;  %v2626_v12 = vpop.f32.mrf.mxu1  ;;  %v63_v40 = vand.u32 7, %v12107_v45  ;;  %v2762_v34 = vadd.f32 %v2761_v59, %v2760_v10 }
 0x345   :  { %v13545_v21 = vadd.f32 %v2608_v7, %v2383_v35  ;;  %v13547_v57 = vadd.f32 %v2626_v12, %v2384_v20  ;;  %v2391_v20 = vadd.f32 %v13414_v18, %v13369_v22  ;;  %v2729_v13 = vsel %vm13521_vm7, %v13543_v53, 0.0 }
 0x346   :  { %vm13575_vm2 = vcmp.eq.s32.totalorder %v63_v40, 0  ;;  %v2792_v42 = vmul.f32 %v2729_v13, %v13543_v53  ;;  %v2764_v23 = vadd.f32 %v2763_v50, %v2762_v34 }
 0x347   :  { %v2727_v58 = vsel %vm13525_vm3, %v13545_v21, 0.0  ;;  %v2728_v32 = vsel %vm13539_vm14, %v13547_v57, 0.0 }
 0x348   :  { %v2751_v41 = vadd.f32 %v2750_v15, %v2727_v58  ;;  %v2790_v35 = vmul.f32 %v2727_v58, %v13545_v21  ;;  %v2791_v5 = vmul.f32 %v2728_v32, %v13547_v57  ;;  %v2823_v58 = vsel %vm18934_vm4, %v2796_v31, 0.0 }
 0x34a   :  { %v2647_v36 = vpop.f32.mrf.mxu2  ;;  %v2752_v62 = vadd.f32 %v2751_v41, %v2728_v32  ;;  %v2814_v1 = vadd.f32 %v2813_v16, %v2790_v35  ;;  %v2824_v35 = vadd.f32 %v2823_v58, %v2822_v26 }
 0x34b   :  { %v2662_v22 = vpop.f32.mrf.mxu3  ;;  %v13584_v16 = vadd.f32 %v2647_v36, %v13410_v17  ;;  %v19012_v36 = vld [vmem:[#allocation13_spill] sm:$0xff] }
 0x34c   :  { %v13579_v30 = vadd.f32 %v2662_v22, %v2386_v43  ;;  %v2611_v29 = vpop.f32.mrf.mxu0  ;;  %v2629_v7 = vpop.f32.mrf.mxu1  ;;  %v2753_v12 = vadd.f32 %v2752_v62, %v2729_v13  ;;  %v2815_v15 = vadd.f32 %v2814_v1, %v2791_v5  ;;  %v2825_v43 = vsel %vm18934_vm4, %v2797_v44, 0.0  ;;  %v19011_v5 = vld [vmem:[#allocation12_spill] sm:$0xff] }
 0x34d   :  { %v13586_v10 = vadd.f32 %v2611_v29, %v2391_v20  ;;  %v13589_v40 = vadd.f32 %v2629_v7, %v13416_v47  ;;  %v2737_v31 = vsel %vm13521_vm7, %v13584_v16, 0.0  ;;  %v2394_v62 = vadd.f32 %v19012_v36, %v19011_v5  ;;  %v2698_v36 = vld [vmem:[%s18894_s5 + $0x10] sm:$0xf] }
 0x34e   :  { %v2730_v32 = vsel %vm13575_vm2, %v13579_v30, 0.0  ;;  %v2816_v46 = vadd.f32 %v2815_v15, %v2792_v42  ;;  %v2826_v1 = vadd.f32 %v2825_v43, %v2824_v35  ;;  %v2769_v58 = vsel %vm18934_vm4, %v2737_v31, 0.0 }
 0x34f   :  { %v2735_v38 = vsel %vm13525_vm3, %v13586_v10, 0.0  ;;  %v2736_v17 = vsel %vm13539_vm14, %v13589_v40, 0.0  ;;  %v2754_v41 = vadd.f32 %v2753_v12, %v2730_v32  ;;  %v2793_v47 = vmul.f32 %v2730_v32, %v13579_v30 }
 0x350   :  { %v2765_v20 = vsel %vm18934_vm4, %v2735_v38, 0.0  ;;  %v2798_v59 = vmul.f32 %v2735_v38, %v13586_v10  ;;  %v2767_v50 = vsel %vm18934_vm4, %v2736_v17, 0.0  ;;  %v2799_v22 = vmul.f32 %v2736_v17, %v13589_v40 }
 0x351   :  { %v2766_v13 = vadd.f32 %v2765_v20, %v2764_v23  ;;  %2755 = vadd.xlane.f32.xlu1 %v2754_v41  ;;  %v2817_v44 = vadd.f32 %v2816_v46, %v2793_v47  ;;  %v2800_v46 = vmul.f32 %v2737_v31, %v13584_v16  ;;  %v2697_v31 = vld [vmem:[%s18894_s5 + $0x8] sm:$0xff] }
 0x352   :  { %v2827_v34 = vsel %vm18934_vm4, %v2798_v59, 0.0  ;;  %v2649_v26 = vpop.f32.mrf.mxu2  ;;  %v2829_v17 = vsel %vm18934_vm4, %v2799_v22, 0.0  ;;  %v2695_v22 = vld [vmem:[%s18893_s4 + $0x10] sm:$0xf] }
 0x353   :  { %v2665_v29 = vpop.f32.mrf.mxu3  ;;  %2818 = vadd.xlane.f32.xlu0 %v2817_v44  ;;  %v2768_v7 = vadd.f32 %v2767_v50, %v2766_v13  ;;  %v2828_v23 = vadd.f32 %v2827_v34, %v2826_v1  ;;  %v2831_v59 = vsel %vm18934_vm4, %v2800_v46, 0.0  ;;  %v2696_v1 = vld [vmem:[%s18894_s5] sm:$0xff]  ;;  %v2715_v34 = vsel %vm13442_vm6, %v13422_v3, 0.0  ;;  %s11994_s5 = smov 12  }
 0x354   :  { %v13612_v12 = vadd.f32 %v2665_v29, %v2394_v62  ;;  %v2613_v42 = vpop.f32.mrf.mxu0  ;;  %v2631_v15 = vpop.f32.mrf.mxu1  ;;  %v2693_v62 = vld [vmem:[%s18893_s4] sm:$0xff]  ;;  %v2778_v29 = vmul.f32 %v2715_v34, %v13422_v3  ;;  %s11993_s4 = smov 4  }
 0x355   :  { %v2770_v32 = vadd.f32 %v2769_v58, %v2768_v7  ;;  %v2830_v47 = vadd.f32 %v2829_v17, %v2828_v23  ;;  %v19013_v50 = vld [vmem:[#allocation15_spill] sm:$0xff]  ;;  %v19014_v42 = vld [vmem:[#allocation14_spill] sm:$0xff]  ;;  %v19015_v58 = vld [vmem:[#allocation16_spill] sm:$0xff] }
 0x356   :  { %v2738_v43 = vsel %vm13575_vm2, %v13612_v12, 0.0  ;;  %v2716_v26 = vsel %vm13446_vm0, %v19013_v50, 0.0  ;;  %v2717_v15 = vsel %vm13480_vm1, %v19014_v42, 0.0  ;;  %v2718_v23 = vsel %vm13496_vm5, %v19015_v58, 0.0 }
 0x357   :  { %v2771_v38 = vsel %vm18934_vm4, %v2738_v43, 0.0  ;;  %v2801_v35 = vmul.f32 %v2738_v43, %v13612_v12  ;;  %v2832_v13 = vadd.f32 %v2831_v59, %v2830_v47  ;;  %v2779_v7 = vmul.f32 %v2716_v26, %v19013_v50 }
 0x358   :  { %v2772_v41 = vadd.f32 %v2771_v38, %v2770_v32  ;;  %v2719_v43 = vsel %vm13525_vm3, %v13488_v25, 0.0  ;;  %v2780_v46 = vmul.f32 %v2717_v15, %v19014_v42  ;;  %v2781_v38 = vmul.f32 %v2718_v23, %v19015_v58 }
 0x359   :  { %v2833_v44 = vsel %vm18934_vm4, %v2801_v35, 0.0  ;;  %v2802_v32 = vadd.f32 %v2779_v7, %v2778_v29  ;;  %v2720_v35 = vsel %vm13539_vm14, %v13491_v2, 0.0 }
 0x35a   :  { %2773 = vadd.xlane.f32.xlu2 %v2772_v41  ;;  %v2834_v5 = vadd.f32 %v2833_v44, %v2832_v13  ;;  %v2782_v41 = vmul.f32 %v2719_v43, %v13488_v25  ;;  %v2783_v59 = vmul.f32 %v2720_v35, %v13491_v2  ;;  %v2721_v13 = vsel %vm13521_vm7, %v13469_v49, 0.0 }
 0x35b   :  { %v2667_v20 = vpop.f32.mrf.mxu3  ;;  %v2803_v17 = vadd.f32 %v2802_v32, %v2780_v46 }
 0x35d   :  { %v2804_v47 = vadd.f32 %v2803_v17, %v2781_v38 }
 0x35f   :  { %v2805_v20 = vadd.f32 %v2804_v47, %v2782_v41 }
 0x361   :  { %v2806_v44 = vadd.f32 %v2805_v20, %v2783_v59 }
 0x362   :  { %2835 = vadd.xlane.f32.xlu2 %v2834_v5  ;;  %v2722_v5 = vsel %vm13575_vm2, %v13537_v28, 0.0 }
 0x367   :  { %2976 = vperm.xlu0 %11218, %v2697_v31   ;;  %v2784_v31 = vmul.f32 %v2721_v13, %v13469_v49 }
 0x36a   :  { %2981 = vperm.xlu1 %11216, %v2698_v36   ;;  %v2739_v36 = vadd.f32 %v2716_v26, %v2715_v34 }
 0x36e   :  { %v13671_v41 = vpop.permute.xlu1 %2937 }
 0x36f   :  { %2932 = vperm.xlu0 %11218, %v2693_v62   ;;  %v2785_v62 = vmul.f32 %v2722_v5, %v13537_v28 }
 0x377   :  { %2971 = vperm.xlu0 %11218, %v2696_v1   ;;  %v2807_v1 = vadd.f32 %v2806_v44, %v2784_v31 }
 0x379   :  { %v2808_v29 = vadd.f32 %v2807_v1, %v2785_v62 }
 0x37a   :  { %2942 = vperm.xlu2 %11217, %v2695_v22   ;;  %v2740_v22 = vadd.f32 %v2739_v36, %v2717_v15 }
 0x37c   :  { %v2741_v7 = vadd.f32 %v2740_v22, %v2718_v23 }
 0x37e   :  { %v2742_v32 = vadd.f32 %v2741_v7, %v2719_v43 }
 0x380   :  { %v2743_v46 = vadd.f32 %v2742_v32, %v2720_v35 }
 0x382   :  { %v2744_v38 = vadd.f32 %v2743_v46, %v2721_v13 }
 0x384   :  { %v2745_v17 = vadd.f32 %v2744_v38, %v2722_v5 }
 0x394   :  { %2809 = vadd.xlane.f32.xlu1 %v2808_v29 }
 0x3a3   :  { %2746 = vadd.xlane.f32.xlu2 %v2745_v17 }
 0x3c4   :  { %v2756_v47 = vpop.xlane.xlu1 %2755 }
 0x3c5   :  { %v13673_v20 = vmul.f32 0.0078125, %v2756_v47 }
 0x3c6   :  { %v2819_v59 = vpop.xlane.xlu0 %2818 }
 0x3c7   :  { %v2838_v56 = vmul.f32 0.0078125, %v2819_v59  ;;  %v2841_v34 = vmul.f32 %v13673_v20, %v13673_v20  ;;  %v2857_v38 = vsub.f32 %v13434_v61, %v13673_v20  ;;  %v2858_v61 = vsub.f32 %v13436_v60, %v13673_v20 }
 0x3c9   :  { %v2844_v26 = vsub.f32 %v2838_v56, %v2841_v34  ;;  %v2860_v34 = vsub.f32 %v13466_v24, %v13673_v20 }
 0x3cb   :  { %v2847_v15 = vmax.f32 %v2844_v26, 0.0  ;;  %v2859_v26 = vsub.f32 %v13461_v0, %v13673_v20 }
 0x3cd   :  { %v2874_v44 = vadd.f32 1e-05, %v2847_v15  ;;  %v2774_v23 = vpop.xlane.xlu2 %2773 }
 0x3ce   :  { %v13677_v43 = vmul.f32 0.0078125, %v2774_v23 }
 0x3cf   :  { %11939 = vrsqrt.f32 %v2874_v44  ;;  %vm2892_vm15 = vweird.f32 %v2874_v44 }
 0x3d0   :  { %v2842_v31 = vmul.f32 %v13677_v43, %v13677_v43 }
 0x3d5   :  { %v11940_v35 = vpop.eup %11939  ;;  %v2836_v13 = vpop.xlane.xlu2 %2835 }
 0x3d6   :  { %v2887_v5 = vmul.f32 %v11940_v35, %v2874_v44  ;;  %v2839_v36 = vmul.f32 0.0078125, %v2836_v13  ;;  %vm2893_vm4 = vweird.f32 %v11940_v35 }
 0x3d7   :  { %vm2894_vm13 = vmor %vm2892_vm15, %vm2893_vm4 }
 0x3d8   :  { %v2888_v62 = vmul.f32 %v11940_v35, %v2887_v5  ;;  %v2845_v1 = vsub.f32 %v2839_v36, %v2842_v31  ;;  %v2862_v31 = vsub.f32 %v13547_v57, %v13673_v20 }
 0x3d9   :  { %v13693_v5 = vpop.permute.xlu0 %2976 }
 0x3da   :  { %v2889_v22 = vmul.f32 0.5, %v2888_v62  ;;  %v2848_v29 = vmax.f32 %v2845_v1, 0.0  ;;  %v2865_v62 = vsub.f32 %v13478_v9, %v13677_v43  ;;  %v2863_v1 = vsub.f32 %v13543_v53, %v13673_v20 }
 0x3db   :  { %v2866_v9 = vsub.f32 %v13485_v37, %v13677_v43  ;;  %v2870_v53 = vsub.f32 %v13589_v40, %v13677_v43 }
 0x3dc   :  { %v2890_v7 = vsub.f32 1.5, %v2889_v22  ;;  %v2875_v32 = vadd.f32 1e-05, %v2848_v29 }
 0x3de   :  { %v2891_v56 = vmul.f32 %v11940_v35, %v2890_v7  ;;  %11941 = vrsqrt.f32 %v2875_v32  ;;  %vm2902_vm15 = vweird.f32 %v2875_v32  ;;  %v2868_v7 = vsub.f32 %v13531_v4, %v13677_v43 }
 0x3df   :  { %v2871_v4 = vsub.f32 %v13584_v16, %v13677_v43 }
 0x3e0   :  { %v13681_v46 = vsel %vm2894_vm13, %v11940_v35, %v2891_v56 }
 0x3e1   :  { %v2914_v59 = vmul.f32 %v13681_v46, %v2857_v38  ;;  %v2917_v23 = vmul.f32 %v13681_v46, %v2860_v34  ;;  %v2916_v44 = vmul.f32 %v13681_v46, %v2859_v26  ;;  %v2915_v60 = vmul.f32 %v13681_v46, %v2858_v61  ;;  %v13720_v38 = vpop.permute.xlu2 %2942  ;;  %v13742_v61 = vpop.permute.xlu1 %2981 }
 0x3e2   :  { %v2919_v57 = vmul.f32 %v13681_v46, %v2862_v31 }
 0x3e3   :  { %v2953_v13 = vmul.f32 %v13671_v41, %v2914_v59  ;;  %v2956_v0 = vmul.f32 %v13671_v41, %v2917_v23  ;;  %v2955_v36 = vmul.f32 %v13671_v41, %v2916_v44  ;;  %v2954_v26 = vmul.f32 %v13671_v41, %v2915_v60 }
 0x3e4   :  { %v11942_v17 = vpop.eup %11941  ;;  %v2958_v23 = vmul.f32 %v13671_v41, %v2919_v57 }
 0x3e5   :  { %v2897_v47 = vmul.f32 %v11942_v17, %v2875_v32  ;;  %vm2903_vm13 = vweird.f32 %v11942_v17  ;;  %v13706_v29 = vadd.f32 %v13693_v5, %v2953_v13  ;;  %v2867_v32 = vsub.f32 %v13518_v6, %v13677_v43 }
 0x3e6   :  { %vm2904_vm4 = vmor %vm2902_vm15, %vm2903_vm13  ;;  %v13726_v59 = vadd.f32 %v13693_v5, %v2955_v36  ;;  %vm18939_vm13 = vcmask 1045504  }
 0x3e7   :  { %v2898_v15 = vmul.f32 %v11942_v17, %v2897_v47  ;;  %v13723_v47 = vadd.f32 %v13693_v5, %v2956_v0 }
 0x3e9   :  { %v2899_v35 = vmul.f32 0.5, %v2898_v15  ;;  %v3019_v31 = vmax.f32 %v13723_v47, 0.0 }
 0x3eb   :  { %v2900_v24 = vsub.f32 1.5, %v2899_v35 }
 0x3ed   :  { %v2901_v22 = vmul.f32 %v11942_v17, %v2900_v24  ;;  %v18938_v24 = vmax.f32 %v13726_v59, 0.0 }
 0x3ef   :  { %v13718_v56 = vsel %vm2904_vm4, %v11942_v17, %v2901_v22  ;;  %v18937_v17 = vmax.f32 %v13706_v29, 0.0 }
 0x3f0   :  { %v2922_v6 = vmul.f32 %v13718_v56, %v2865_v62  ;;  %v2925_v37 = vmul.f32 %v13718_v56, %v2868_v7  ;;  %v2924_v34 = vmul.f32 %v13718_v56, %v2867_v32  ;;  %v2923_v40 = vmul.f32 %v13718_v56, %v2866_v9 }
 0x3f1   :  { %v2927_v15 = vmul.f32 %v13718_v56, %v2870_v53  ;;  %v2928_v36 = vmul.f32 %v13718_v56, %v2871_v4  ;;  %v13753_v7 = vadd.f32 %v13693_v5, %v2954_v26  ;;  %v2920_v9 = vmul.f32 %v13681_v46, %v2863_v1 }
 0x3f2   :  { %v2961_v44 = vmul.f32 %v13720_v38, %v2922_v6  ;;  %v2964_v16 = vmul.f32 %v13720_v38, %v2925_v37  ;;  %v2963_v35 = vmul.f32 %v13720_v38, %v2924_v34  ;;  %v2962_v13 = vmul.f32 %v13720_v38, %v2923_v40 }
 0x3f3   :  { %v2966_v0 = vmul.f32 %v13720_v38, %v2927_v15  ;;  %v13758_v4 = vadd.f32 %v13693_v5, %v2958_v23  ;;  %v3049_v34 = vrot.slane %v18937_v17, 2  ;;  %v3058_v40 = vrot.slane %v3019_v31, 2 }
 0x3f4   :  { %v3000_v62 = vadd.f32 %v13742_v61, %v2961_v44  ;;  %v3003_v22 = vadd.f32 %v13742_v61, %v2964_v16  ;;  %v3002_v60 = vadd.f32 %v13742_v61, %v2963_v35  ;;  %v3001_v57 = vadd.f32 %v13742_v61, %v2962_v13 }
 0x3f5   :  { %v3005_v32 = vadd.f32 %v13742_v61, %v2966_v0  ;;  %v3055_v26 = vrot.slane %v18938_v24, 2  ;;  %v2967_v15 = vmul.f32 %v13720_v38, %v2928_v36  ;;  %v2959_v0 = vmul.f32 %v13671_v41, %v2920_v9 }
 0x3f6   :  { %v3024_v53 = vmax.f32 %v3000_v62, 0.0  ;;  %v3027_v6 = vmax.f32 %v3003_v22, 0.0  ;;  %v3026_v37 = vmax.f32 %v3002_v60, 0.0  ;;  %v3025_v35 = vmax.f32 %v3001_v57, 0.0 }
 0x3f7   :  { %v3029_v13 = vmax.f32 %v3005_v32, 0.0  ;;  %v2872_v23 = vsub.f32 %v13612_v12, %v13677_v43  ;;  %v3017_v17 = vmax.f32 %v13753_v7, 0.0  ;;  %v3006_v32 = vadd.f32 %v13742_v61, %v2967_v15 }
 0x3f8   :  { %v3050_v44 = vrot.slane %v3024_v53, 2  ;;  %v3059_v16 = vrot.slane %v3027_v6, 2  ;;  %v3056_v1 = vrot.slane %v3026_v37, 2  ;;  %v3021_v6 = vmax.f32 %v13758_v4, 0.0 }
 0x3f9   :  { %v3053_v57 = vrot.slane %v3025_v35, 2  ;;  %v2864_v9 = vsub.f32 %v13579_v30, %v13673_v20  ;;  %v2929_v12 = vmul.f32 %v13718_v56, %v2872_v23  ;;  %v3065_v37 = vrot.slane %v3029_v13, 2 }
 0x3fa   :  { %v3051_v62 = vsel %vm18939_vm13, %v3049_v34, %v3050_v44  ;;  %v3060_v22 = vsel %vm18939_vm13, %v3058_v40, %v3059_v16  ;;  %v3057_v60 = vsel %vm18939_vm13, %v3055_v26, %v3056_v1  ;;  %v3052_v34 = vrot.slane %v3017_v17, 2 }
 0x3fb   :  { %v11219_v24 = vpack.i.bf16 %v3050_v44, %v3051_v62  ;;  %v11234_v36 = vpack.i.bf16 %v3059_v16, %v3060_v22  ;;  %v11229_v53 = vpack.i.bf16 %v3056_v1, %v3057_v60  ;;  %v13785_v40 = vadd.f32 %v13693_v5, %v2959_v0 }
 0x3fc   :  { %v2921_v26 = vmul.f32 %v13681_v46, %v2864_v9  ;;  %v3064_v30 = vrot.slane %v3021_v6, 2  ;;  %v3054_v15 = vsel %vm18939_vm13, %v3052_v34, %v3053_v57  ;;  %v3030_v44 = vmax.f32 %v3006_v32, 0.0 }
 0x3fd   :  { %11220 = vrot.lane.b32.xlu0 %v11219_v24, %s11993_s4  ;;  %11235 = vrot.lane.b32.xlu1 %v11234_v36, %s11993_s4  ;;  %v2968_v24 = vmul.f32 %v13720_v38, %v2929_v12  ;;  %v3022_v1 = vmax.f32 %v13785_v40, 0.0  ;;  %v2869_v13 = vsub.f32 %v13586_v10, %v13677_v43  ;;  %v11224_v0 = vpack.i.bf16 %v3053_v57, %v3054_v15 }
 0x3fe   :  { %11230 = vrot.lane.b32.xlu2 %v11229_v53, %s11993_s4  ;;  %v3066_v16 = vsel %vm18939_vm13, %v3064_v30, %v3065_v37  ;;  %v2960_v35 = vmul.f32 %v13671_v41, %v2921_v26  ;;  %v2861_v23 = vsub.f32 %v13545_v21, %v13673_v20  ;;  %v3068_v22 = vrot.slane %v3030_v44, 2 }
 0x3ff   :  { %v11254_v62 = vpack.i.bf16 %v3065_v37, %v3066_v16  ;;  %v3007_v60 = vadd.f32 %v13742_v61, %v2968_v24  ;;  %v2926_v36 = vmul.f32 %v13718_v56, %v2869_v13  ;;  %v3067_v53 = vrot.slane %v3022_v1, 2 }
 0x400   :  { %v13806_v32 = vadd.f32 %v13693_v5, %v2960_v35  ;;  %v2918_v10 = vmul.f32 %v13681_v46, %v2861_v23 }
 0x401   :  { %v3069_v21 = vsel %vm18939_vm13, %v3067_v53, %v3068_v22  ;;  %v3031_v20 = vmax.f32 %v3007_v60, 0.0  ;;  %v2965_v43 = vmul.f32 %v13720_v38, %v2926_v36 }
 0x402   :  { %v3023_v57 = vmax.f32 %v13806_v32, 0.0  ;;  %v2957_v56 = vmul.f32 %v13671_v41, %v2918_v10  ;;  %v11239_v9 = vpack.i.bf16 %v3068_v22, %v3069_v21 }
 0x403   :  { %v3071_v12 = vrot.slane %v3031_v20, 2  ;;  %v3004_v37 = vadd.f32 %v13742_v61, %v2965_v43  ;;  %v13831_v20 = vpop.permute.xlu0 %2932 }
 0x404   :  { %v3070_v34 = vrot.slane %v3023_v57, 2  ;;  %v13818_v46 = vadd.f32 %v13693_v5, %v2957_v56 }
 0x405   :  { %11225 = vrot.lane.b32.xlu0 %v11224_v0, %s11993_s4  ;;  %v3028_v30 = vmax.f32 %v3004_v37, 0.0 }
 0x406   :  { %11255 = vrot.lane.b32.xlu2 %v11254_v62, %s11993_s4  ;;  %v3072_v26 = vsel %vm18939_vm13, %v3070_v34, %v3071_v12  ;;  %v3020_v38 = vmax.f32 %v13818_v46, 0.0 }
 0x407   :  { %v11244_v15 = vpack.i.bf16 %v3071_v12, %v3072_v26  ;;  %v3062_v44 = vrot.slane %v3028_v30, 2  ;;  %v2810_v35 = vpop.xlane.xlu1 %2809 }
 0x408   :  { %v3061_v41 = vrot.slane %v3020_v38, 2  ;;  %v2837_v0 = vmul.f32 0.0078125, %v2810_v35 }
 0x40a   :  { %v3063_v61 = vsel %vm18939_vm13, %v3061_v41, %v3062_v44 }
 0x40b   :  { %v11249_v24 = vpack.i.bf16 %v3062_v44, %v3063_v61  ;;  %v13838_v37 = vpop.permute.xlu0 %2971 }
 0x40d   :  { %11240 = vrot.lane.b32.xlu0 %v11239_v9, %s11993_s4 }
 0x415   :  { %11245 = vrot.lane.b32.xlu0 %v11244_v15, %s11993_s4 }
 0x416   :  { %v2747_v16 = vpop.xlane.xlu2 %2746 }
 0x417   :  { %v13827_v5 = vmul.f32 0.0078125, %v2747_v16 }
 0x419   :  { %v2840_v13 = vmul.f32 %v13827_v5, %v13827_v5  ;;  %v2852_v9 = vsub.f32 %v19015_v58, %v13827_v5  ;;  %v2850_v26 = vsub.f32 %v19013_v50, %v13827_v5  ;;  %v2851_v30 = vsub.f32 %v19014_v42, %v13827_v5 }
 0x41b   :  { %v2843_v23 = vsub.f32 %v2837_v0, %v2840_v13 }
 0x41d   :  { %11250 = vrot.lane.b32.xlu0 %v11249_v24, %s11993_s4  ;;  %v2846_v62 = vmax.f32 %v2843_v23, 0.0 }
 0x41f   :  { %v2873_v22 = vadd.f32 1e-05, %v2846_v62 }
 0x421   :  { %11943 = vrsqrt.f32 %v2873_v22  ;;  %vm2882_vm4 = vweird.f32 %v2873_v22 }
 0x427   :  { %v11944_v60 = vpop.eup %11943 }
 0x428   :  { %v2877_v36 = vmul.f32 %v11944_v60, %v2873_v22  ;;  %vm2883_vm15 = vweird.f32 %v11944_v60 }
 0x429   :  { %vm2884_vm13 = vmor %vm2882_vm4, %vm2883_vm15  ;;  %vm3285_vm15 = vcmp.ge.s32.totalorder %v12107_v45, 12  ;;  %vm3283_vm4 = vcmp.ge.s32.totalorder %v12148_v19, 12 }
 0x42a   :  { %v2878_v53 = vmul.f32 %v11944_v60, %v2877_v36 }
 0x42c   :  { %v2879_v10 = vmul.f32 0.5, %v2878_v53 }
 0x42e   :  { %v2880_v21 = vsub.f32 1.5, %v2879_v10  ;;  %v2849_v10 = vsub.f32 %v13422_v3, %v13827_v5 }
 0x430   :  { %v2881_v43 = vmul.f32 %v11944_v60, %v2880_v21  ;;  %v2856_v21 = vsub.f32 %v13537_v28, %v13827_v5 }
 0x432   :  { %v13833_v56 = vsel %vm2884_vm13, %v11944_v60, %v2881_v43  ;;  %vm3121_vm13 = vcmp.lt.s32.totalorder %v12094_v33, 4  ;;  %v2855_v60 = vsub.f32 %v13469_v49, %v13827_v5 }
 0x433   :  { %v2909_v12 = vmul.f32 %v13833_v56, %v2852_v9  ;;  %v2907_v15 = vmul.f32 %v13833_v56, %v2850_v26  ;;  %v2908_v44 = vmul.f32 %v13833_v56, %v2851_v30  ;;  %v2913_v3 = vmul.f32 %v13833_v56, %v2856_v21 }
 0x434   :  { %v2912_v9 = vmul.f32 %v13833_v56, %v2855_v60 }
 0x435   :  { %v2948_v34 = vmul.f32 %v13831_v20, %v2909_v12  ;;  %v2946_v16 = vmul.f32 %v13831_v20, %v2907_v15  ;;  %v2947_v50 = vmul.f32 %v13831_v20, %v2908_v44  ;;  %v2952_v8 = vmul.f32 %v13831_v20, %v2913_v3 }
 0x436   :  { %v2853_v3 = vsub.f32 %v13488_v25, %v13827_v5 }
 0x437   :  { %v2987_v61 = vadd.f32 %v13838_v37, %v2948_v34  ;;  %v2985_v43 = vadd.f32 %v13838_v37, %v2946_v16  ;;  %v2986_v49 = vadd.f32 %v13838_v37, %v2947_v50 }
 0x439   :  { %v3011_v23 = vmax.f32 %v2987_v61, 0.0  ;;  %v3009_v15 = vmax.f32 %v2985_v43, 0.0  ;;  %v3010_v44 = vmax.f32 %v2986_v49, 0.0 }
 0x458   :  { %v11231_v41 = vpop.permute.xlu2 %11230 }
 0x459   :  { %v11233_v35 = vunpack.i.h.bf16 %v11231_v41  ;;  %v11232_v13 = vunpack.i.l.bf16 %v11231_v41  ;;  %v2951_v41 = vmul.f32 %v13831_v20, %v2912_v9 }
 0x460   :  { %v13895_v61 = vpop.permute.xlu2 %11255 }
 0x461   :  { %v11257_v27 = vunpack.i.l.bf16 %v13895_v61 }
 0x46f   :  { %v13848_v58 = vpop.permute.xlu0 %11220  ;;  %v13851_v24 = vpop.permute.xlu1 %11235 }
 0x470   :  { %v11238_v42 = vunpack.i.h.bf16 %v13851_v24  ;;  %v11237_v0 = vunpack.i.l.bf16 %v13851_v24  ;;  %v11223_v28 = vunpack.i.h.bf16 %v13848_v58  ;;  %v11222_v34 = vunpack.i.l.bf16 %v13848_v58 }
 0x472   :  { %v3130_v62 = vsel %vm3121_vm13, %v11232_v13, %v11237_v0  ;;  %v3131_v22 = vsel %vm3121_vm13, %v11233_v35, %v11238_v42 }
 0x473   :  { %v13869_v36 = vsel %vm13496_vm5, %v3011_v23, %v3130_v62  ;;  %v13875_v53 = vsel %vm13496_vm5, %v3019_v31, %v3131_v22  ;;  %v2906_v31 = vmul.f32 %v13833_v56, %v2849_v10  ;;  %vm3278_vm5 = vcmp.ge.s32.totalorder %v12094_v33, 12 }
 0x474   :  { %v13886_v12 = vpack.i.bf16 %v13875_v53, %v13869_v36  ;;  %v4291_v48 = vpack.c.bf16 %v13875_v53, %v13869_v36 }
 0x475   :  { %v2945_v7 = vmul.f32 %v13831_v20, %v2906_v31 }
 0x477   :  { %v11226_v47 = vpop.permute.xlu0 %11225 }
 0x478   :  { %v11228_v26 = vunpack.i.h.bf16 %v11226_v47  ;;  %v11227_v30 = vunpack.i.l.bf16 %v11226_v47 }
 0x47a   :  { %v3132_v16 = vsel %vm3121_vm13, %v11227_v30, %v11232_v13  ;;  %v3133_v50 = vsel %vm3121_vm13, %v11228_v26, %v11233_v35  ;;  %v3134_v23 = vsel %vm3121_vm13, %v11222_v34, %v11227_v30  ;;  %v3135_v58 = vsel %vm3121_vm13, %v11223_v28, %v11228_v26 }
 0x47b   :  { %v13907_v62 = vsel %vm13446_vm0, %v3009_v15, %v3134_v23  ;;  %v13911_v22 = vsel %vm13480_vm1, %v3010_v44, %v3132_v16  ;;  %v13917_v13 = vsel %vm13446_vm0, %v3017_v17, %v3135_v58  ;;  %v19016_v35 = vmax.f32 %v13726_v59, 0.0 }
 0x47c   :  { %v13927_v10 = vpack.i.bf16 %v13917_v13, %v13907_v62  ;;  %v11258_v17 = vunpack.i.h.bf16 %v13895_v61  ;;  %v2990_v59 = vadd.f32 %v13838_v37, %v2951_v41  ;;  %v4289_v47 = vpack.c.bf16 %v13917_v13, %v13907_v62  ;;  %v10709_v62 = vld [vmem:[%s18891_s2 + $0x2c] sm:$0x3] }
 0x47d   :  { %v13923_v60 = vsel %vm13480_vm1, %v19016_v35, %v3133_v50  ;;  %v2854_v26 = vsub.f32 %v13491_v2, %v13827_v5  ;;  %v2910_v2 = vmul.f32 %v13833_v56, %v2853_v3  ;;  %v2984_v61 = vadd.f32 %v13838_v37, %v2945_v7 }
 0x47e   :  { %v13931_v21 = vpack.i.bf16 %v13923_v60, %v13911_v22  ;;  %11260 = vrot.lane.b32.xlu1 %v13927_v10, %s11994_s5  ;;  %v3014_v31 = vmax.f32 %v2990_v59, 0.0  ;;  %v4290_v30 = vpack.c.bf16 %v13923_v60, %v13911_v22  ;;  %v2991_v16 = vadd.f32 %v13838_v37, %v2952_v8 }
 0x47f   :  { %v11241_v43 = vpop.permute.xlu0 %11240  ;;  %v2911_v5 = vmul.f32 %v13833_v56, %v2854_v26  ;;  %v2949_v58 = vmul.f32 %v13831_v20, %v2910_v2  ;;  %v3008_v56 = vmax.f32 %v2984_v61, 0.0  ;;  %vm3338_vm0 = vcmask 80896  }
 0x480   :  { %11265 = vrot.lane.b32.xlu0 %v13931_v21, %s11994_s5  ;;  %v11243_v49 = vunpack.i.h.bf16 %v11241_v43  ;;  %v11242_v9 = vunpack.i.l.bf16 %v11241_v43  ;;  %v3015_v35 = vmax.f32 %v2991_v16, 0.0  ;;  %vm3281_vm1 = vcmp.ge.s32.totalorder %v12121_v55, 12 }
 0x481   :  { %v2950_v7 = vmul.f32 %v13831_v20, %v2911_v5  ;;  %v19017_v20 = vmax.f32 %v13706_v29, 0.0  ;;  %v2988_v29 = vadd.f32 %v13838_v37, %v2949_v58  ;;  %v4083_v60 = vunpack.c.l.b16 %v10709_v62 }
 0x482   :  { %v3124_v15 = vsel %vm3121_vm13, %v11257_v27, %v11242_v9  ;;  %v3125_v44 = vsel %vm3121_vm13, %v11258_v17, %v11243_v49 }
 0x483   :  { %v13956_v41 = vsel %vm13521_vm7, %v3014_v31, %v3124_v15  ;;  %v13962_v25 = vsel %vm13521_vm7, %v3022_v1, %v3125_v44  ;;  %v2989_v14 = vadd.f32 %v13838_v37, %v2950_v7  ;;  %v3012_v44 = vmax.f32 %v2988_v29, 0.0 }
 0x484   :  { %v13970_v50 = vpack.i.bf16 %v13962_v25, %v13956_v41  ;;  %vm3284_vm7 = vcmp.ge.s32.totalorder %v12117_v52, 12 }
 0x485   :  { %v3013_v2 = vmax.f32 %v2989_v14, 0.0 }
 0x486   :  { %11275 = vrot.lane.b32.xlu1 %v13886_v12, %s11994_s5 }
 0x487   :  { %v11246_v40 = vpop.permute.xlu0 %11245 }
 0x488   :  { %v11248_v1 = vunpack.i.h.bf16 %v11246_v40  ;;  %v11247_v23 = vunpack.i.l.bf16 %v11246_v40 }
 0x48a   :  { %v3122_v8 = vsel %vm3121_vm13, %v11242_v9, %v11247_v23  ;;  %v3123_v59 = vsel %vm3121_vm13, %v11243_v49, %v11248_v1  ;;  %v3136_v43 = vsel %vm3121_vm13, %v11247_v23, %v11222_v34  ;;  %v3137_v31 = vsel %vm3121_vm13, %v11248_v1, %v11223_v28 }
 0x48b   :  { %v13988_v3 = vsel %vm13442_vm6, %v3008_v56, %v3136_v43  ;;  %v13992_v26 = vsel %vm13575_vm2, %v3015_v35, %v3122_v8  ;;  %v13998_v9 = vsel %vm13442_vm6, %v19017_v20, %v3137_v31  ;;  %v14004_v34 = vsel %vm13575_vm2, %v3023_v57, %v3123_v59 }
 0x48c   :  { %v14008_v28 = vpack.i.bf16 %v13998_v9, %v13988_v3  ;;  %v14012_v49 = vpack.i.bf16 %v14004_v34, %v13992_v26  ;;  %v4288_v15 = vpack.c.bf16 %v13998_v9, %v13988_v3  ;;  %vm3279_vm2 = vcmp.ge.s32.totalorder %v12115_v51, 12 }
 0x48d   :  { %vm3345_vm6 = vcmask 1044480  }
 0x48e   :  { %11270 = vrot.lane.b32.xlu2 %v14008_v28, %s11994_s5  ;;  %11280 = vrot.lane.b32.xlu0 %v14012_v49, %s11994_s5  ;;  %v4320_v22 = vsel %vm3345_vm6, %v4291_v48, 0  ;;  %v4311_v53 = vsel %vm3345_vm6, %v4288_v15, 0 }
 0x48f   :  { %11290 = vrot.lane.b32.xlu1 %v13970_v50, %s11994_s5  ;;  %v11251_v18 = vpop.permute.xlu0 %11250 }
 0x490   :  { %v11253_v32 = vunpack.i.h.bf16 %v11251_v18  ;;  %v11252_v57 = vunpack.i.l.bf16 %v11251_v18 }
 0x492   :  { %v3126_v5 = vsel %vm3121_vm13, %v11252_v57, %v11257_v27  ;;  %v3127_v61 = vsel %vm3121_vm13, %v11253_v32, %v11258_v17  ;;  %v3128_v16 = vsel %vm3121_vm13, %v11237_v0, %v11252_v57  ;;  %v3129_v40 = vsel %vm3121_vm13, %v11238_v42, %v11253_v32 }
 0x493   :  { %v14040_v1 = vsel %vm13525_vm3, %v3012_v44, %v3128_v16  ;;  %v14044_v27 = vsel %vm13539_vm14, %v3013_v2, %v3126_v5  ;;  %v14050_v17 = vsel %vm13525_vm3, %v3020_v38, %v3129_v40  ;;  %v14056_v24 = vsel %vm13539_vm14, %v3021_v6, %v3127_v61  ;;  %v14169_v5 = vld [vmem:[%s18891_s2 + $0xc] sm:$0xff] }
 0x494   :  { %v14060_v42 = vpack.i.bf16 %v14056_v24, %v14044_v27  ;;  %v14064_v0 = vpack.i.bf16 %v14050_v17, %v14040_v1  ;;  %v4293_v63 = vpack.c.bf16 %v14056_v24, %v14044_v27  ;;  %vm3261_vm14 = vcmp.lt.s32.totalorder %v12094_v33, 12 }
 0x495   :  { %vm3280_vm3 = vcmp.ge.s32.totalorder %v12101_v39, 12 }
 0x496   :  { %11285 = vrot.lane.b32.xlu2 %v14060_v42, %s11994_s5  ;;  %11295 = vrot.lane.b32.xlu0 %v14064_v0, %s11994_s5 }
 0x497   :  { %11305 = vrot.lane.b32.xlu1 %v13931_v21, %s11985_s23 }
 0x49e   :  { %11300 = vrot.lane.b32.xlu2 %v13927_v10, %s11985_s23  ;;  %11310 = vrot.lane.b32.xlu0 %v14008_v28, %s11985_s23 }
 0x49f   :  { %11320 = vrot.lane.b32.xlu1 %v14012_v49, %s11985_s23 }
 0x4a6   :  { %11325 = vrot.lane.b32.xlu0 %v14060_v42, %s11985_s23  ;;  %11315 = vrot.lane.b32.xlu2 %v13886_v12, %s11985_s23 }
 0x4a7   :  { %11335 = vrot.lane.b32.xlu1 %v14064_v0, %s11985_s23 }
 0x4ae   :  { %11340 = vrot.lane.b32.xlu0 %v13927_v10, %s11987_s28  ;;  %11330 = vrot.lane.b32.xlu2 %v13970_v50, %s11985_s23  ;;  %s11995_s23 = smov 124  }
 0x4af   :  { %11350 = vrot.lane.b32.xlu1 %v14008_v28, %s11987_s28 }
 0x4b6   :  { %11355 = vrot.lane.b32.xlu0 %v13886_v12, %s11987_s28  ;;  %11345 = vrot.lane.b32.xlu2 %v13931_v21, %s11987_s28 }
 0x4b7   :  { %11365 = vrot.lane.b32.xlu1 %v14060_v42, %s11987_s28 }
 0x4be   :  { %11370 = vrot.lane.b32.xlu0 %v13970_v50, %s11987_s28  ;;  %11360 = vrot.lane.b32.xlu2 %v14012_v49, %s11987_s28 }
 0x4bf   :  { %11380 = vrot.lane.b32.xlu1 %v13927_v10, %s11993_s4 }
 0x4c6   :  { %11385 = vrot.lane.b32.xlu0 %v13931_v21, %s11993_s4  ;;  %11375 = vrot.lane.b32.xlu2 %v14064_v0, %s11987_s28 }
 0x4c7   :  { %11395 = vrot.lane.b32.xlu1 %v13886_v12, %s11993_s4 }
 0x4ce   :  { %11400 = vrot.lane.b32.xlu0 %v14012_v49, %s11993_s4  ;;  %11390 = vrot.lane.b32.xlu2 %v14008_v28, %s11993_s4 }
 0x4cf   :  { %11410 = vrot.lane.b32.xlu1 %v13970_v50, %s11993_s4 }
 0x4d6   :  { %11415 = vrot.lane.b32.xlu0 %v14064_v0, %s11993_s4  ;;  %11405 = vrot.lane.b32.xlu2 %v14060_v42, %s11993_s4 }
 0x4d7   :  { %11425 = vrot.lane.b32.xlu1 %v13886_v12, %s11995_s23 }
 0x4de   :  { %11430 = vrot.lane.b32.xlu0 %v14008_v28, %s11995_s23  ;;  %11420 = vrot.lane.b32.xlu2 %v13931_v21, %s11995_s23 }
 0x4df   :  { %11440 = vrot.lane.b32.xlu1 %v14064_v0, %s11995_s23 }
 0x4e6   :  { %11445 = vrot.lane.b32.xlu0 %v13970_v50, %s11995_s23  ;;  %11435 = vrot.lane.b32.xlu2 %v13927_v10, %s11995_s23 }
 0x4e7   :  { %11455 = vrot.lane.b32.xlu1 %v14060_v42, %s11995_s23 }
 0x4e8   :  { %v14136_v4 = vpop.permute.xlu2 %11270 }
 0x4e9   :  { %v11273_v46 = vunpack.i.h.bf16 %v14136_v4  ;;  %v11272_v38 = vunpack.i.l.bf16 %v14136_v4 }
 0x4ee   :  { %11460 = vrot.lane.b32.xlu0 %v13931_v21, %s11988_s17  ;;  %11450 = vrot.lane.b32.xlu2 %v14012_v49, %s11995_s23 }
 0x4ef   :  { %11470 = vrot.lane.b32.xlu1 %v14008_v28, %s11988_s17 }
 0x4f0   :  { %v11261_v6 = vpop.permute.xlu1 %11260  ;;  %v14149_v8 = vpop.permute.xlu2 %11285 }
 0x4f1   :  { %v11263_v23 = vunpack.i.h.bf16 %v11261_v6  ;;  %v11262_v58 = vunpack.i.l.bf16 %v11261_v6 }
 0x4f2   :  { %v11266_v56 = vpop.permute.xlu0 %11265 }
 0x4f3   :  { %v11268_v35 = vunpack.i.h.bf16 %v11266_v56  ;;  %v11267_v7 = vunpack.i.l.bf16 %v11266_v56  ;;  %v3274_v59 = vsel %vm3261_vm14, %v11272_v38, %v11262_v58  ;;  %v3275_v43 = vsel %vm3261_vm14, %v11273_v46, %v11263_v23 }
 0x4f4   :  { %v3303_v31 = vsel %vm3279_vm2, %v3274_v59, 0.0  ;;  %v3311_v20 = vsel %vm3279_vm2, %v3275_v43, 0.0 }
 0x4f5   :  { %v3272_v29 = vsel %vm3261_vm14, %v11262_v58, %v11267_v7  ;;  %v3273_v14 = vsel %vm3261_vm14, %v11263_v23, %v11268_v35  ;;  %v3323_v18 = vpack.c.bf16 %v3311_v20, %v3303_v31  ;;  %v10643_v31 = vld [vmem:[%s18891_s2 + $0x14] sm:$0x3] }
 0x4f6   :  { %v3304_v32 = vsel %vm3280_vm3, %v3272_v29, 0.0  ;;  %v3312_v57 = vsel %vm3280_vm3, %v3273_v14, 0.0  ;;  %11475 = vrot.lane.b32.xlu0 %v13927_v10, %s11988_s17  ;;  %11465 = vrot.lane.b32.xlu2 %v13886_v12, %s11988_s17 }
 0x4f7   :  { %v3324_v44 = vpack.c.bf16 %v3312_v57, %v3304_v32  ;;  %11485 = vrot.lane.b32.xlu1 %v13970_v50, %s11988_s17  ;;  %v3350_v2 = vsel %vm3345_vm6, %v3323_v18, 0  ;;  %v11288_v18 = vunpack.i.h.bf16 %v14149_v8  ;;  %v11287_v32 = vunpack.i.l.bf16 %v14149_v8 }
 0x4f8   :  { %3395 = vmatpush.bf16.msra.mxu1 %v3350_v2  ;;  %v14172_v16 = vpop.permute.xlu1 %11275  ;;  %v14189_v59 = vpop.permute.xlu2 %11300 }
 0x4f9   :  { %v3353_v61 = vsel %vm3345_vm6, %v3324_v44, 0  ;;  %v11278_v40 = vunpack.i.h.bf16 %v14172_v16  ;;  %v11277_v4 = vunpack.i.l.bf16 %v14172_v16 }
 0x4fa   :  { %3413 = vmatpush.bf16.msra.mxu2 %v3353_v61 }
 0x4fb   :  { %10650 = vmatmul.msk.bf16.vlgmr.msra.gmra.mxu1 %vm3338_vm0, %v14169_v5  ;;  %v3270_v6 = vsel %vm3261_vm14, %v11267_v7, %v11277_v4  ;;  %v3271_v23 = vsel %vm3261_vm14, %v11268_v35, %v11278_v40 }
 0x4fc   :  { %v3305_v58 = vsel %vm3281_vm1, %v3270_v6, 0.0  ;;  %v3313_v56 = vsel %vm3281_vm1, %v3271_v23, 0.0  ;;  %v3335_v6 = vunpack.c.l.b16 %v10643_v31 }
 0x4fd   :  { %10652 = vmatmul.msk.bf16.vlgmr.msra.gmra.mxu2 %vm3338_vm0, %v14169_v5  ;;  %v3325_v43 = vpack.c.bf16 %v3313_v56, %v3305_v58 }
 0x4fe   :  { %11490 = vrot.lane.b32.xlu0 %v14012_v49, %s11988_s17  ;;  %11480 = vrot.lane.b32.xlu2 %v14064_v0, %s11988_s17 }
 0x4ff   :  { %11500 = vrot.lane.b32.xlu1 %v13931_v21, %s11996_s21  ;;  %v3356_v35 = vsel %vm3345_vm6, %v3325_v43, 0 }
 0x500   :  { %v11281_v7 = vpop.permute.xlu0 %11280  ;;  %3431 = vmatpush.bf16.msra.mxu3 %v3356_v35 }
 0x501   :  { %v11283_v20 = vunpack.i.h.bf16 %v11281_v7  ;;  %v11282_v29 = vunpack.i.l.bf16 %v11281_v7  ;;  %v11291_v14 = vpop.permute.xlu1 %11290 }
 0x502   :  { %v11293_v57 = vunpack.i.h.bf16 %v11291_v14  ;;  %v11292_v44 = vunpack.i.l.bf16 %v11291_v14 }
 0x503   :  { %10654 = vmatmul.msk.bf16.vlgmr.msra.gmra.mxu3 %vm3338_vm0, %v14169_v5  ;;  %v3276_v2 = vsel %vm3261_vm14, %v11282_v29, %v11272_v38  ;;  %v3277_v61 = vsel %vm3261_vm14, %v11283_v20, %v11273_v46 }
 0x504   :  { %v3302_v23 = vsel %vm3278_vm5, %v3276_v2, 0.0  ;;  %v3310_v58 = vsel %vm3278_vm5, %v3277_v61, 0.0  ;;  %v3264_v56 = vsel %vm3261_vm14, %v11287_v32, %v11292_v44  ;;  %v3265_v8 = vsel %vm3261_vm14, %v11288_v18, %v11293_v57  ;;  %v14230_v2 = vpop.permute.xlu2 %11315 }
 0x505   :  { %v3322_v43 = vpack.c.bf16 %v3310_v58, %v3302_v23  ;;  %v3308_v35 = vsel %vm3284_vm7, %v3264_v56, 0.0  ;;  %v3316_v38 = vsel %vm3284_vm7, %v3265_v8, 0.0  ;;  %v3262_v46 = vsel %vm3261_vm14, %v11292_v44, %v11282_v29 }
 0x506   :  { %11505 = vrot.lane.b32.xlu0 %v13886_v12, %s11996_s21  ;;  %11495 = vrot.lane.b32.xlu2 %v14060_v42, %s11988_s17  ;;  %v3328_v7 = vpack.c.bf16 %v3316_v38, %v3308_v35  ;;  %v3263_v31 = vsel %vm3261_vm14, %v11293_v57, %v11283_v20  ;;  %v3309_v14 = vsel %vm3285_vm15, %v3262_v46, 0.0  ;;  %v14237_v61 = vpack.c.b16 %v3335_v6, %v3335_v6  ;;  %v19018_v57 = vld [vmem:[#allocation10_spill] sm:$0xff] }
 0x507   :  { %11515 = vrot.lane.b32.xlu1 %v13927_v10, %s11996_s21  ;;  %v3347_v29 = vsel %vm3345_vm6, %v3322_v43, 0  ;;  %v3317_v44 = vsel %vm3285_vm15, %v3263_v31, 0.0  ;;  %vm3282_vm2 = vcmp.ge.s32.totalorder %v19018_v57, 12  ;;  %v11303_v56 = vunpack.i.h.bf16 %v14189_v59 }
 0x508   :  { %v11296_v23 = vpop.permute.xlu0 %11295  ;;  %3377 = vmatpush.bf16.msra.mxu0 %v3347_v29  ;;  %v3365_v58 = vsel %vm3345_vm6, %v3328_v7, 0  ;;  %v3329_v20 = vpack.c.bf16 %v3317_v44, %v3309_v14  ;;  %v11302_v8 = vunpack.i.l.bf16 %v14189_v59  ;;  %v11318_v6 = vunpack.i.h.bf16 %v14230_v2 }
 0x509   :  { %v11298_v35 = vunpack.i.h.bf16 %v11296_v23  ;;  %v11297_v43 = vunpack.i.l.bf16 %v11296_v23  ;;  %v11306_v38 = vpop.permute.xlu1 %11305  ;;  %3485 = vmatpush.bf16.msrb.mxu2 %v3365_v58  ;;  %v11317_v7 = vunpack.i.l.bf16 %v14230_v2  ;;  %vm19025_vm1 = vcmp.ge.s32.totalorder %v19018_v57, 16 }
 0x50a   :  { %v11308_v46 = vunpack.i.h.bf16 %v11306_v38  ;;  %v11307_v31 = vunpack.i.l.bf16 %v11306_v38  ;;  %v3368_v29 = vsel %vm3345_vm6, %v3329_v20, 0  ;;  %vm19026_vm5 = vmmov %vm19025_vm1 }
 0x50b   :  { %3503 = vmatpush.bf16.msrb.mxu3 %v3368_v29  ;;  %10648 = vmatmul.msk.bf16.vlgmr.msra.gmra.mxu0 %vm3338_vm0, %v14169_v5  ;;  %v3266_v14 = vsel %vm3261_vm14, %v11297_v43, %v11287_v32  ;;  %v3267_v59 = vsel %vm3261_vm14, %v11298_v35, %v11288_v18  ;;  %v3268_v44 = vsel %vm3261_vm14, %v11277_v4, %v11297_v43 }
 0x50c   :  { %10651 = vmatmul.msk.bf16.gmra.mxu1 %vm3338_vm0, %v14237_v61  ;;  %v3307_v23 = vsel %vm3283_vm4, %v3266_v14, 0.0  ;;  %v3315_v32 = vsel %vm3283_vm4, %v3267_v59, 0.0  ;;  %v3269_v18 = vsel %vm3261_vm14, %v11278_v40, %v11298_v35  ;;  %v3306_v4 = vsel %vm3282_vm2, %v3268_v44, 0.0 }
 0x50d   :  { %10653 = vmatmul.msk.bf16.gmra.mxu2 %vm3338_vm0, %v14237_v61  ;;  %v3327_v58 = vpack.c.bf16 %v3315_v32, %v3307_v23  ;;  %v3314_v20 = vsel %vm3282_vm2, %v3269_v18, 0.0  ;;  %v3196_v43 = vsel %vm703_vm8, %v11302_v8, %v11307_v31  ;;  %v3197_v38 = vsel %vm703_vm8, %v11303_v56, %v11308_v46 }
 0x50e   :  { %11520 = vrot.lane.b32.xlu0 %v14064_v0, %s11996_s21  ;;  %11510 = vrot.lane.b32.xlu2 %v14008_v28, %s11996_s21  ;;  %v3326_v16 = vpack.c.bf16 %v3314_v20, %v3306_v4  ;;  %v3204_v40 = vsel %vm714_vm9, %v3196_v43, 0.0  ;;  %v3212_v35 = vsel %vm714_vm9, %v3197_v38, 0.0  ;;  %v3194_v29 = vsel %vm703_vm8, %v11307_v31, %v11317_v7 }
 0x50f   :  { %11530 = vrot.lane.b32.xlu1 %v14012_v49, %s11996_s21  ;;  %v3362_v14 = vsel %vm3345_vm6, %v3327_v58, 0  ;;  %v3223_v59 = vpack.c.bf16 %v3212_v35, %v3204_v40  ;;  %v3195_v44 = vsel %vm703_vm8, %v11308_v46, %v11318_v6  ;;  %v3205_v23 = vsel %vm715_vm11, %v3194_v29, 0.0  ;;  %v11331_v29 = vpop.permute.xlu2 %11330 }
 0x510   :  { %v11311_v32 = vpop.permute.xlu0 %11310  ;;  %3467 = vmatpush.bf16.msrb.mxu1 %v3362_v14  ;;  %v3359_v18 = vsel %vm3345_vm6, %v3326_v16, 0  ;;  %v3213_v31 = vsel %vm715_vm11, %v3195_v44, 0.0  ;;  %vm19019_vm9 = vcmp.ge.s32.totalorder %v12107_v45, 16  ;;  %vm19021_vm11 = vcmp.ge.s32.totalorder %v12148_v19, 16 }
 0x511   :  { %v11313_v4 = vunpack.i.h.bf16 %v11311_v32  ;;  %v11312_v20 = vunpack.i.l.bf16 %v11311_v32  ;;  %v11321_v43 = vpop.permute.xlu1 %11320  ;;  %3449 = vmatpush.bf16.msrb.mxu0 %v3359_v18  ;;  %v3535_v40 = vsel %vm3345_vm6, %v3223_v59, 0  ;;  %v3224_v35 = vpack.c.bf16 %v3213_v31, %v3205_v23 }
 0x512   :  { %v11323_v58 = vunpack.i.h.bf16 %v11321_v43  ;;  %v11322_v38 = vunpack.i.l.bf16 %v11321_v43  ;;  %3595 = vmatpush.bf16.msra.mxu2 %v3535_v40  ;;  %v11333_v31 = vunpack.i.h.bf16 %v11331_v29  ;;  %v11332_v43 = vunpack.i.l.bf16 %v11331_v29 }
 0x513   :  { %10655 = vmatmul.msk.bf16.gmra.mxu3 %vm3338_vm0, %v14237_v61  ;;  %v3198_v46 = vsel %vm703_vm8, %v11312_v20, %v11302_v8  ;;  %v3199_v16 = vsel %vm703_vm8, %v11313_v4, %v11303_v56  ;;  %v3538_v14 = vsel %vm3345_vm6, %v3224_v35, 0  ;;  %vm19023_vm14 = vcmp.ge.s32.totalorder %v12117_v52, 16 }
 0x514   :  { %v3203_v44 = vsel %vm713_vm10, %v3198_v46, 0.0  ;;  %v3211_v59 = vsel %vm713_vm10, %v3199_v16, 0.0  ;;  %v3200_v23 = vsel %vm703_vm8, %v11322_v38, %v11312_v20  ;;  %3613 = vmatpush.bf16.msra.mxu3 %v3538_v14  ;;  %v3201_v8 = vsel %vm703_vm8, %v11323_v58, %v11313_v4  ;;  %vm19020_vm10 = vmmov %vm19019_vm9 }
 0x515   :  { %v3222_v32 = vpack.c.bf16 %v3211_v59, %v3203_v44  ;;  %v3202_v56 = vsel %vm712_vm12, %v3200_v23, 0.0  ;;  %v3210_v18 = vsel %vm712_vm12, %v3201_v8, 0.0  ;;  %v3186_v14 = vsel %vm703_vm8, %v11332_v43, %v11322_v38  ;;  %vm19022_vm12 = vmmov %vm19021_vm11 }
 0x516   :  { %11535 = vrot.lane.b32.xlu0 %v14060_v42, %s11996_s21  ;;  %11525 = vrot.lane.b32.xlu2 %v13970_v50, %s11996_s21  ;;  %v3221_v4 = vpack.c.bf16 %v3210_v18, %v3202_v56  ;;  %v3187_v44 = vsel %vm703_vm8, %v11333_v31, %v11323_v58  ;;  %v3209_v58 = vsel %vm19019_vm9, %v3186_v14, 0.0  ;;  %vm19024_vm3 = vmmov %vm19023_vm14  ;;  %vm19031_vm2 = vcmp.ge.s32.totalorder %v12115_v51, 8 }
 0x517   :  { %11545 = vrot.lane.b32.xlu1 %v13886_v12, %s11989_s9  ;;  %v3532_v20 = vsel %vm3345_vm6, %v3222_v32, 0  ;;  %v3217_v56 = vsel %vm19020_vm10, %v3187_v44, 0.0  ;;  %v5681_v44 = vld [vmem:[%s18895_s6 + $0x8] sm:$0xff]  ;;  %vm19032_vm9 = vmmov %vm19031_vm2  ;;  %vm19033_vm10 = vcmp.ge.s32.totalorder %v12101_v39, 8 }
 0x518   :  { %v11326_v40 = vpop.permute.xlu0 %11325  ;;  %3577 = vmatpush.bf16.msra.mxu1 %v3532_v20  ;;  %v3529_v29 = vsel %vm3345_vm6, %v3221_v4, 0 }
 0x519   :  { %v11328_v35 = vunpack.i.h.bf16 %v11326_v40  ;;  %v11327_v46 = vunpack.i.l.bf16 %v11326_v40  ;;  %v11336_v16 = vpop.permute.xlu1 %11335  ;;  %3559 = vmatpush.bf16.msra.mxu0 %v3529_v29 }
 0x51a   :  { %v11338_v59 = vunpack.i.h.bf16 %v11336_v16  ;;  %v11337_v23 = vunpack.i.l.bf16 %v11336_v16 }
 0x51b   :  { %v3188_v12 = vsel %vm703_vm8, %v11327_v46, %v11332_v43  ;;  %v3189_v32 = vsel %vm703_vm8, %v11328_v35, %v11333_v31  ;;  %10649 = vmatmul.msk.bf16.gmra.mxu0 %vm3338_vm0, %v14237_v61 }
 0x51c   :  { %v3191_v8 = vsel %vm703_vm8, %v11338_v59, %v11328_v35  ;;  %v3190_v38 = vsel %vm703_vm8, %v11337_v23, %v11327_v46  ;;  %10658 = vmatmul.msk.bf16.vlgmr.msrb.gmra.mxu1 %vm3338_vm0, %v14169_v5  ;;  %v3208_v43 = vsel %vm19023_vm14, %v3188_v12, 0.0  ;;  %v3216_v20 = vsel %vm19024_vm3, %v3189_v32, 0.0 }
 0x51d   :  { %10660 = vmatmul.msk.bf16.vlgmr.msrb.gmra.mxu2 %vm3338_vm0, %v14169_v5  ;;  %v3207_v18 = vsel %vm19021_vm11, %v3190_v38, 0.0  ;;  %v3215_v31 = vsel %vm19022_vm12, %v3191_v8, 0.0  ;;  %v3227_v40 = vpack.c.bf16 %v3216_v20, %v3208_v43  ;;  %v3228_v35 = vpack.c.bf16 %v3217_v56, %v3209_v58  ;;  %vm19034_vm11 = vmmov %vm19033_vm10 }
 0x51e   :  { %11550 = vrot.lane.b32.xlu0 %v14008_v28, %s11989_s9  ;;  %11540 = vrot.lane.b32.xlu2 %v13931_v21, %s11989_s9  ;;  %v3226_v4 = vpack.c.bf16 %v3215_v31, %v3207_v18  ;;  %v3193_v28 = vsel %vm703_vm8, %v11318_v6, %v11338_v59  ;;  %v3192_v21 = vsel %vm703_vm8, %v11317_v7, %v11337_v23  ;;  %vm19027_vm8 = vcmp.lt.s32.totalorder %v12094_v33, 8 }
 0x51f   :  { %11560 = vrot.lane.b32.xlu1 %v14064_v0, %s11989_s9  ;;  %v3547_v16 = vsel %vm3345_vm6, %v3227_v40, 0  ;;  %v3550_v0 = vsel %vm3345_vm6, %v3228_v35, 0  ;;  %v3206_v6 = vsel %vm19025_vm1, %v3192_v21, 0.0  ;;  %v3214_v2 = vsel %vm19026_vm5, %v3193_v28, 0.0  ;;  %vm19028_vm7 = vmmov %vm19027_vm8 }
 0x520   :  { %v3544_v46 = vsel %vm3345_vm6, %v3226_v4, 0  ;;  %3667 = vmatpush.bf16.msrb.mxu2 %v3547_v16  ;;  %v11341_v7 = vpop.permute.xlu0 %11340  ;;  %v3225_v14 = vpack.c.bf16 %v3214_v2, %v3206_v6  ;;  %vm19029_vm15 = vmmov %vm19028_vm7  ;;  %vm19037_vm3 = vcmp.ge.s32.totalorder %v12121_v55, 8 }
 0x521   :  { %3649 = vmatpush.bf16.msrb.mxu1 %v3544_v46  ;;  %v11351_v59 = vpop.permute.xlu1 %11350  ;;  %v11342_v23 = vunpack.i.l.bf16 %v11341_v7  ;;  %vm19030_vm4 = vmmov %vm19028_vm7  ;;  %v14428_v46 = vld [vmem:[%s18891_s2] sm:$0xff] }
 0x522   :  { %v11353_v29 = vunpack.i.h.bf16 %v11351_v59  ;;  %v11352_v12 = vunpack.i.l.bf16 %v11351_v59  ;;  %vm19035_vm12 = vmmov %vm19030_vm4 }
 0x523   :  { %10662 = vmatmul.msk.bf16.vlgmr.msrb.gmra.mxu3 %vm3338_vm0, %v14169_v5  ;;  %vm19036_vm14 = vmmov %vm19030_vm4 }
 0x524   :  { %3685 = vmatpush.bf16.msrb.mxu3 %v3550_v0  ;;  %v3740_v58 = vsel %vm19028_vm7, %v11352_v12, %v11342_v23  ;;  %vm19038_vm1 = vmmov %vm19037_vm3  ;;  %vm19041_vm7 = vcmp.ge.s32.totalorder %v12094_v33, 8 }
 0x525   :  { %v3745_v20 = vsel %vm19031_vm2, %v3740_v58, 0.0  ;;  %vm19039_vm5 = vmmov %vm19030_vm4 }
 0x526   :  { %11565 = vrot.lane.b32.xlu0 %v13970_v50, %s11989_s9  ;;  %11555 = vrot.lane.b32.xlu2 %v13927_v10, %s11989_s9  ;;  %v3541_v10 = vsel %vm3345_vm6, %v3225_v14, 0  ;;  %v11346_v50 = vpop.permute.xlu2 %11345  ;;  %vm19043_vm2 = vmmov %vm19030_vm4 }
 0x527   :  { %11575 = vrot.lane.b32.xlu1 %v14060_v42, %s11989_s9  ;;  %v11343_v42 = vunpack.i.h.bf16 %v11341_v7  ;;  %v11348_v32 = vunpack.i.h.bf16 %v11346_v50 }
 0x528   :  { %v14400_v8 = vpop.permute.xlu0 %11355 }
 0x529   :  { %v3741_v38 = vsel %vm19027_vm8, %v11353_v29, %v11343_v42  ;;  %v3739_v18 = vsel %vm19030_vm4, %v11343_v42, %v11348_v32  ;;  %v11358_v31 = vunpack.i.h.bf16 %v14400_v8  ;;  %v11357_v43 = vunpack.i.l.bf16 %v14400_v8  ;;  %vm19040_vm8 = vmmov %vm19030_vm4 }
 0x52a   :  { %v3753_v4 = vsel %vm19032_vm9, %v3741_v38, 0.0  ;;  %v3754_v35 = vsel %vm19034_vm11, %v3739_v18, 0.0  ;;  %vm19044_vm9 = vmmov %vm19043_vm2  ;;  %vm19046_vm11 = vcmp.ge.s32.totalorder %v12148_v19, 8 }
 0x52b   :  { %10656 = vmatmul.msk.bf16.vlgmr.msrb.gmra.mxu0 %vm3338_vm0, %v14169_v5  ;;  %v11347_v5 = vunpack.i.l.bf16 %v11346_v50  ;;  %v3765_v16 = vpack.c.bf16 %v3753_v4, %v3745_v20  ;;  %v3737_v0 = vsel %vm19036_vm14, %v11348_v32, %v11358_v31  ;;  %v3220_v50 = vld [vmem:[%s18891_s2 + $0x8] sm:$0x3]  ;;  %vm19048_vm14 = vcmp.ge.s32.totalorder %v12117_v52, 8 }
 0x52c   :  { %10659 = vmatmul.msk.bf16.gmra.mxu1 %vm3338_vm0, %v14237_v61  ;;  %3631 = vmatpush.bf16.msrb.mxu0 %v3541_v10  ;;  %v3755_v2 = vsel %vm19038_vm1, %v3737_v0, 0.0  ;;  %vm19050_vm1 = vmmov %vm19043_vm2 }
 0x52d   :  { %10661 = vmatmul.msk.bf16.gmra.mxu2 %vm3338_vm0, %v14237_v61  ;;  %v3738_v56 = vsel %vm19029_vm15, %v11342_v23, %v11347_v5  ;;  %v3736_v21 = vsel %vm19035_vm12, %v11347_v5, %v11357_v43  ;;  %v3790_v7 = vsel %vm3345_vm6, %v3765_v16, 0  ;;  %v3519_v5 = vunpack.c.l.b16 %v3220_v50  ;;  %vm19042_vm15 = vmmov %vm19041_vm7 }
 0x52e   :  { %5923 = vperm.xlu0 %11218, %v5681_v44   ;;  %11570 = vrot.lane.b32.xlu2 %v14012_v49, %s11989_s9  ;;  %v5684_v49 = vld [vmem:[%s18896_s7 + $0x8] sm:$0xff]  ;;  %v3746_v40 = vsel %vm19033_vm10, %v3738_v56, 0.0  ;;  %v3747_v6 = vsel %vm19037_vm3, %v3736_v21, 0.0  ;;  %v11361_v44 = vpop.permute.xlu2 %11360  ;;  %vm19045_vm10 = vmmov %vm19043_vm2 }
 0x52f   :  { %v3766_v28 = vpack.c.bf16 %v3754_v35, %v3746_v40  ;;  %v11363_v59 = vunpack.i.h.bf16 %v11361_v44  ;;  %v11362_v10 = vunpack.i.l.bf16 %v11361_v44  ;;  %v14464_v56 = vpack.c.b16 %v3519_v5, %v3519_v5  ;;  %vm19047_vm12 = vmmov %vm19046_vm11 }
 0x530   :  { %vm19049_vm3 = vmmov %vm19048_vm14 }
 0x531   :  { %v3793_v14 = vsel %vm3345_vm6, %v3766_v28, 0  ;;  %v3743_v42 = vsel %vm19039_vm5, %v11363_v59, %v11353_v29  ;;  %v3742_v23 = vsel %vm19040_vm8, %v11362_v10, %v11352_v12  ;;  %v11366_v29 = vpop.permute.xlu1 %11365  ;;  %vm19051_vm5 = vmmov %vm19050_vm1  ;;  %vm19052_vm8 = vcmp.ge.s32.totalorder %v12107_v45, 8 }
 0x532   :  { %v3744_v38 = vsel %vm19041_vm7, %v3742_v23, 0.0  ;;  %v3752_v58 = vsel %vm19042_vm15, %v3743_v42, 0.0  ;;  %v11368_v4 = vunpack.i.h.bf16 %v11366_v29  ;;  %v11367_v40 = vunpack.i.l.bf16 %v11366_v29  ;;  %vm19053_vm7 = vmmov %vm19052_vm8 }
 0x533   :  { %10663 = vmatmul.msk.bf16.gmra.mxu3 %vm3338_vm0, %v14237_v61  ;;  %v3764_v18 = vpack.c.bf16 %v3752_v58, %v3744_v38  ;;  %vm19054_vm15 = vmmov %vm19050_vm1 }
 0x535   :  { %v3787_v12 = vsel %vm3345_vm6, %v3764_v18, 0 }
 0x536   :  { %5962 = vperm.xlu2 %11217, %v5684_v49   ;;  %v11371_v49 = vpop.permute.xlu0 %11370  ;;  %v11376_v20 = vpop.permute.xlu2 %11375 }
 0x537   :  { %v11373_v35 = vunpack.i.h.bf16 %v11371_v49  ;;  %v11372_v16 = vunpack.i.l.bf16 %v11371_v49  ;;  %v11378_v28 = vunpack.i.h.bf16 %v11376_v20  ;;  %v11377_v21 = vunpack.i.l.bf16 %v11376_v20 }
 0x539   :  { %v3733_v0 = vsel %vm19030_vm4, %v11378_v28, %v11368_v4  ;;  %v3728_v42 = vsel %vm19050_vm1, %v11372_v16, %v11362_v10  ;;  %v3729_v23 = vsel %vm19051_vm5, %v11373_v35, %v11363_v59  ;;  %v3734_v49 = vsel %vm19054_vm15, %v11357_v43, %v11377_v21  ;;  %vm19055_vm4 = vmmov %vm19050_vm1 }
 0x53a   :  { %v3757_v44 = vsel %vm19047_vm12, %v3733_v0, 0.0  ;;  %v3751_v38 = vsel %vm19052_vm8, %v3728_v42, 0.0  ;;  %v3759_v58 = vsel %vm19053_vm7, %v3729_v23, 0.0  ;;  %vm18955_vm12 = vcmp.ge.s32.totalorder %v12121_v55, 4 }
 0x53b   :  { %10657 = vmatmul.msk.bf16.gmra.mxu0 %vm3338_vm0, %v14237_v61  ;;  %v3767_v61 = vpack.c.bf16 %v3755_v2, %v3747_v6  ;;  %v3732_v6 = vsel %vm19043_vm2, %v11377_v21, %v11367_v40  ;;  %v3730_v2 = vsel %vm19044_vm9, %v11367_v40, %v11372_v16  ;;  %v3771_v18 = vpack.c.bf16 %v3759_v58, %v3751_v38  ;;  %v11381_v40 = vpop.permute.xlu1 %11380 }
 0x53c   :  { %10670 = vmatmul.msk.bf16.vlgmr.msra.gmra.mxu1 %vm3338_vm0, %v14428_v46  ;;  %vm19056_vm2 = vcmp.ge.s32.totalorder %v19018_v57, 8  ;;  %v11383_v43 = vunpack.i.h.bf16 %v11381_v40  ;;  %vm18954_vm1 = vcmp.ge.s32.totalorder %v12117_v52, 4  ;;  %vm18948_vm5 = vcmp.ge.s32.totalorder %v12107_v45, 4 }
 0x53d   :  { %10672 = vmatmul.msk.bf16.vlgmr.msra.gmra.mxu2 %vm3338_vm0, %v14428_v46  ;;  %3835 = vmatpush.bf16.msra.mxu1 %v3790_v7  ;;  %v3796_v32 = vsel %vm3345_vm6, %v3767_v61, 0  ;;  %v3731_v7 = vsel %vm19045_vm10, %v11368_v4, %v11373_v35  ;;  %v3750_v61 = vsel %vm19048_vm14, %v3730_v2, 0.0  ;;  %v3808_v29 = vsel %vm3345_vm6, %v3771_v18, 0  ;;  %vm19057_vm9 = vmmov %vm19056_vm2  ;;  %v14567_v18 = vld [vmem:[%s18891_s2 + $0x18] sm:$0xff] }
 0x53e   :  { %3853 = vmatpush.bf16.msra.mxu2 %v3793_v14  ;;  %v3749_v14 = vsel %vm19046_vm11, %v3732_v6, 0.0  ;;  %v3758_v50 = vsel %vm19049_vm3, %v3731_v7, 0.0  ;;  %v3748_v20 = vsel %vm19056_vm2, %v3734_v49, 0.0  ;;  %v11386_v16 = vpop.permute.xlu0 %11385  ;;  %vm18956_vm10 = vcmp.ge.s32.totalorder %v12115_v51, 4 }
 0x53f   :  { %v3770_v5 = vpack.c.bf16 %v3758_v50, %v3750_v61  ;;  %v11388_v21 = vunpack.i.h.bf16 %v11386_v16  ;;  %v11387_v0 = vunpack.i.l.bf16 %v11386_v16  ;;  %vm18958_vm11 = vcmp.ge.s32.totalorder %v12101_v39, 4 }
 0x540   :  { %vm18957_vm14 = vcmp.ge.s32.totalorder %v12094_v33, 4  ;;  %vm18952_vm3 = vcmp.ge.s32.totalorder %v12148_v19, 4  ;;  %vm18953_vm8 = vcmp.ge.s32.totalorder %v19018_v57, 4  ;;  %vm18947_vm7 = vcmp.lt.s32.totalorder %v12094_v33, 124 }
 0x541   :  { %v3805_v59 = vsel %vm3345_vm6, %v3770_v5, 0  ;;  %v4021_v61 = vsel %vm3121_vm13, %v11383_v43, %v11388_v21  ;;  %vm18945_vm15 = vcmp.lt.s32.totalorder %v12115_v51, 124  ;;  %vm18940_vm2 = vcmp.lt.s32.totalorder %v12121_v55, 124 }
 0x542   :  { %v4060_v38 = vsel %vm18958_vm11, %v4021_v61, 0.0 }
 0x543   :  { %10674 = vmatmul.msk.bf16.vlgmr.msra.gmra.mxu3 %vm3338_vm0, %v14428_v46  ;;  %v14529_v7 = vpop.permute.xlu1 %11395 }
 0x544   :  { %3871 = vmatpush.bf16.msra.mxu3 %v3796_v32  ;;  %v3769_v32 = vpack.c.bf16 %v3757_v44, %v3749_v14  ;;  %v11398_v50 = vunpack.i.h.bf16 %v14529_v7  ;;  %v11397_v42 = vunpack.i.l.bf16 %v14529_v7 }
 0x546   :  { %v3802_v10 = vsel %vm3345_vm6, %v3769_v32, 0 }
 0x54b   :  { %10668 = vmatmul.msk.bf16.vlgmr.msra.gmra.mxu0 %vm3338_vm0, %v14428_v46 }
 0x54c   :  { %10671 = vmatmul.msk.bf16.gmra.mxu1 %vm3338_vm0, %v14464_v56  ;;  %3817 = vmatpush.bf16.msra.mxu0 %v3787_v12  ;;  %v3735_v12 = vsel %vm19055_vm4, %v11358_v31, %v11378_v28  ;;  %v11391_v31 = vpop.permute.xlu2 %11390  ;;  %v11382_v28 = vunpack.i.l.bf16 %v11381_v40  ;;  %vm18946_vm4 = vcmp.lt.s32.totalorder %v12101_v39, 124 }
 0x54d   :  { %10673 = vmatmul.msk.bf16.gmra.mxu2 %vm3338_vm0, %v14464_v56  ;;  %v3756_v4 = vsel %vm19057_vm9, %v3735_v12, 0.0  ;;  %v11393_v6 = vunpack.i.h.bf16 %v11391_v31  ;;  %v11392_v2 = vunpack.i.l.bf16 %v11391_v31  ;;  %v14569_v12 = vpop.permute.xlu0 %11400  ;;  %vm18941_vm9 = vcmp.lt.s32.totalorder %v12148_v19, 124 }
 0x54e   :  { %v3768_v35 = vpack.c.bf16 %v3756_v4, %v3748_v20  ;;  %v4020_v44 = vsel %vm3121_vm13, %v11382_v28, %v11387_v0  ;;  %v11402_v16 = vunpack.i.l.bf16 %v14569_v12 }
 0x54f   :  { %v4022_v14 = vsel %vm3121_vm13, %v11392_v2, %v11382_v28  ;;  %v4052_v5 = vsel %vm18958_vm11, %v4020_v44, 0.0  ;;  %v10686_v28 = vld [vmem:[%s18891_s2 + $0x20] sm:$0x3] }
 0x550   :  { %v3799_v8 = vsel %vm3345_vm6, %v3768_v35, 0  ;;  %v4051_v23 = vsel %vm18956_vm10, %v4022_v14, 0.0  ;;  %v4072_v49 = vpack.c.bf16 %v4060_v38, %v4052_v5  ;;  %v3777_v14 = vunpack.c.l.b16 %v10686_v28 }
 0x552   :  { %v4099_v35 = vsel %vm3345_vm6, %v4072_v49, 0  ;;  %v14612_v5 = vpack.c.b16 %v3777_v14, %v3777_v14 }
 0x553   :  { %10675 = vmatmul.msk.bf16.gmra.mxu3 %vm3338_vm0, %v14464_v56 }
 0x554   :  { %v11406_v49 = vpop.permute.xlu2 %11405 }
 0x55b   :  { %10669 = vmatmul.msk.bf16.gmra.mxu0 %vm3338_vm0, %v14464_v56 }
 0x55c   :  { %10678 = vmatmul.msk.bf16.vlgmr.msrb.gmra.mxu1 %vm3338_vm0, %v14428_v46 }
 0x55d   :  { %10680 = vmatmul.msk.bf16.vlgmr.msrb.gmra.mxu2 %vm3338_vm0, %v14428_v46  ;;  %3907 = vmatpush.bf16.msrb.mxu1 %v3802_v10  ;;  %v4019_v10 = vsel %vm3121_vm13, %v11388_v21, %v11398_v50  ;;  %v4024_v21 = vsel %vm3121_vm13, %v11402_v16, %v11392_v2 }
 0x55e   :  { %3925 = vmatpush.bf16.msrb.mxu2 %v3805_v59  ;;  %v4018_v59 = vsel %vm3121_vm13, %v11387_v0, %v11397_v42  ;;  %v4061_v4 = vsel %vm18955_vm12, %v4019_v10, 0.0  ;;  %v4050_v61 = vsel %vm18957_vm14, %v4024_v21, 0.0  ;;  %v11416_v10 = vpop.permute.xlu0 %11415  ;;  %v11408_v21 = vunpack.i.h.bf16 %v11406_v49 }
 0x55f   :  { %v4053_v20 = vsel %vm18955_vm12, %v4018_v59, 0.0  ;;  %v11411_v59 = vpop.permute.xlu1 %11410 }
 0x560   :  { %v4073_v31 = vpack.c.bf16 %v4061_v4, %v4053_v20  ;;  %v11418_v20 = vunpack.i.h.bf16 %v11416_v10  ;;  %v11417_v4 = vunpack.i.l.bf16 %v11416_v10 }
 0x563   :  { %10682 = vmatmul.msk.bf16.vlgmr.msrb.gmra.mxu3 %vm3338_vm0, %v14428_v46 }
 0x564   :  { %3943 = vmatpush.bf16.msrb.mxu3 %v3808_v29 }
 0x56b   :  { %10676 = vmatmul.msk.bf16.vlgmr.msrb.gmra.mxu0 %vm3338_vm0, %v14428_v46  ;;  %v4023_v46 = vsel %vm3121_vm13, %v11393_v6, %v11383_v43 }
 0x56c   :  { %10679 = vmatmul.msk.bf16.gmra.mxu1 %vm3338_vm0, %v14464_v56  ;;  %3889 = vmatpush.bf16.msrb.mxu0 %v3799_v8  ;;  %v4059_v32 = vsel %vm18956_vm10, %v4023_v46, 0.0  ;;  %v4102_v46 = vsel %vm3345_vm6, %v4073_v31, 0  ;;  %v11412_v31 = vunpack.i.l.bf16 %v11411_v59 }
 0x56d   :  { %10681 = vmatmul.msk.bf16.gmra.mxu2 %vm3338_vm0, %v14464_v56  ;;  %v4071_v29 = vpack.c.bf16 %v4059_v32, %v4051_v23 }
 0x56e   :  { %v4010_v54 = vsel %vm3121_vm13, %v11412_v31, %v11402_v16 }
 0x56f   :  { %v4096_v40 = vsel %vm3345_vm6, %v4071_v29, 0 }
 0x573   :  { %10683 = vmatmul.msk.bf16.gmra.mxu3 %vm3338_vm0, %v14464_v56 }
 0x578   :  { %v14553_v58 = vpop.f32.mrf.mxu1 }
 0x57b   :  { %10677 = vmatmul.msk.bf16.gmra.mxu0 %vm3338_vm0, %v14464_v56  ;;  %v11403_v56 = vunpack.i.h.bf16 %v14569_v12 }
 0x57c   :  { %10693 = vmatmul.msk.bf16.vlgmr.msra.gmra.mxu1 %vm3338_vm0, %v14567_v18 }
 0x57d   :  { %10695 = vmatmul.msk.bf16.vlgmr.msra.gmra.mxu2 %vm3338_vm0, %v14567_v18  ;;  %4141 = vmatpush.bf16.msra.mxu1 %v4096_v40  ;;  %v4025_v0 = vsel %vm3121_vm13, %v11403_v56, %v11393_v6 }
 0x57e   :  { %4159 = vmatpush.bf16.msra.mxu2 %v4099_v35  ;;  %v4058_v2 = vsel %vm18957_vm14, %v4025_v0, 0.0  ;;  %v11413_v35 = vunpack.i.h.bf16 %v11411_v59  ;;  %v11407_v0 = vunpack.i.l.bf16 %v11406_v49 }
 0x57f   :  { %v4070_v38 = vpack.c.bf16 %v4058_v2, %v4050_v61  ;;  %v4015_v61 = vsel %vm3121_vm13, %v11418_v20, %v11408_v21 }
 0x580   :  { %v14585_v8 = vpop.f32.mrf.mxu2  ;;  %v14587_v43 = vpop.f32.mrf.mxu1  ;;  %v4014_v14 = vsel %vm3121_vm13, %v11417_v4, %v11407_v0  ;;  %v4013_v2 = vsel %vm3121_vm13, %v11408_v21, %v11413_v35 }
 0x581   :  { %v4093_v29 = vsel %vm3345_vm6, %v4070_v38, 0  ;;  %v4012_v38 = vsel %vm3121_vm13, %v11407_v0, %v11412_v31  ;;  %v4055_v59 = vsel %vm18952_vm3, %v4014_v14, 0.0  ;;  %v4064_v21 = vsel %vm18954_vm1, %v4013_v2, 0.0 }
 0x582   :  { %v4011_v0 = vsel %vm3121_vm13, %v11413_v35, %v11403_v56  ;;  %v4057_v2 = vsel %vm18948_vm5, %v4010_v54, 0.0 }
 0x583   :  { %10697 = vmatmul.msk.bf16.vlgmr.msra.gmra.mxu3 %vm3338_vm0, %v14567_v18  ;;  %v4065_v56 = vsel %vm18948_vm5, %v4011_v0, 0.0 }
 0x584   :  { %4177 = vmatpush.bf16.msra.mxu3 %v4102_v46 }
 0x586   :  { %v14600_v44 = vpop.f32.mrf.mxu3 }
 0x588   :  { %v14606_v23 = vpop.f32.mrf.mxu2  ;;  %v14608_v6 = vpop.f32.mrf.mxu0 }
 0x589   :  { %v14610_v32 = vpop.f32.mrf.mxu1 }
 0x58b   :  { %10691 = vmatmul.msk.bf16.vlgmr.msra.gmra.mxu0 %vm3338_vm0, %v14567_v18 }
 0x58c   :  { %10694 = vmatmul.msk.bf16.gmra.mxu1 %vm3338_vm0, %v14612_v5  ;;  %4123 = vmatpush.bf16.msra.mxu0 %v4093_v29  ;;  %v4063_v29 = vsel %vm18952_vm3, %v4015_v61, 0.0 }
 0x58d   :  { %10696 = vmatmul.msk.bf16.gmra.mxu2 %vm3338_vm0, %v14612_v5  ;;  %v4075_v11 = vpack.c.bf16 %v4063_v29, %v4055_v59  ;;  %v4016_v29 = vsel %vm3121_vm13, %v11397_v42, %v11417_v4 }
 0x58e   :  { %v14621_v12 = vpop.f32.mrf.mxu3 }
 0x58f   :  { %v4108_v16 = vsel %vm3345_vm6, %v4075_v11, 0  ;;  %v4017_v11 = vsel %vm3121_vm13, %v11398_v50, %v11418_v20 }
 0x590   :  { %v14623_v40 = vpop.f32.mrf.mxu2  ;;  %v14625_v28 = vpop.f32.mrf.mxu0  ;;  %v4062_v42 = vsel %vm18953_vm8, %v4017_v11, 0.0 }
 0x591   :  { %v3404_v46 = vpop.f32.mrf.mxu1 }
 0x592   :  { %v4056_v46 = vsel %vm18954_vm1, %v4012_v38, 0.0  ;;  %v4077_v38 = vpack.c.bf16 %v4065_v56, %v4057_v2 }
 0x593   :  { %10698 = vmatmul.msk.bf16.gmra.mxu3 %vm3338_vm0, %v14612_v5  ;;  %v4076_v61 = vpack.c.bf16 %v4064_v21, %v4056_v46  ;;  %v4054_v21 = vsel %vm18953_vm8, %v4016_v29, 0.0  ;;  %vm19138_vm8 = vcmask 1043456  }
 0x594   :  { %v4114_v46 = vsel %vm3345_vm6, %v4077_v38, 0  ;;  %v4074_v50 = vpack.c.bf16 %v4062_v42, %v4054_v21  ;;  %vm19139_vm1 = vmmov %vm19138_vm8 }
 0x595   :  { %v4111_v35 = vsel %vm3345_vm6, %v4076_v61, 0  ;;  %vm19143_vm12 = vmmov %vm19139_vm1 }
 0x596   :  { %v14639_v10 = vpop.f32.mrf.mxu3  ;;  %v4105_v61 = vsel %vm3345_vm6, %v4074_v50, 0  ;;  %vm19147_vm10 = vmmov %vm19139_vm1 }
 0x597   :  { %vm19149_vm14 = vmmov %vm19139_vm1 }
 0x598   :  { %v3422_v49 = vpop.f32.mrf.mxu2  ;;  %v14653_v37 = vpop.f32.mrf.mxu0  ;;  %vm19153_vm11 = vmmov %vm19139_vm1 }
 0x599   :  { %v14656_v14 = vpop.f32.mrf.mxu1 }
 0x59b   :  { %10692 = vmatmul.msk.bf16.gmra.mxu0 %vm3338_vm0, %v14612_v5 }
 0x59c   :  { %10701 = vmatmul.msk.bf16.vlgmr.msrb.gmra.mxu1 %vm3338_vm0, %v14567_v18 }
 0x59d   :  { %10703 = vmatmul.msk.bf16.vlgmr.msrb.gmra.mxu2 %vm3338_vm0, %v14567_v18  ;;  %4213 = vmatpush.bf16.msrb.mxu1 %v4108_v16 }
 0x59e   :  { %v3440_v31 = vpop.f32.mrf.mxu3  ;;  %4231 = vmatpush.bf16.msrb.mxu2 %v4111_v35 }
 0x5a0   :  { %v14670_v59 = vpop.f32.mrf.mxu2  ;;  %v3386_v54 = vpop.f32.mrf.mxu0 }
 0x5a1   :  { %v14680_v49 = vpop.f32.mrf.mxu1  ;;  %v14720_v54 = vld [vmem:[%s18891_s2 + $0x24] sm:$0xff] }
 0x5a3   :  { %10705 = vmatmul.msk.bf16.vlgmr.msrb.gmra.mxu3 %vm3338_vm0, %v14567_v18 }
 0x5a4   :  { %4249 = vmatpush.bf16.msrb.mxu3 %v4114_v46  ;;  %v4314_v46 = vsel %vm3345_vm6, %v4289_v47, 0 }
 0x5a6   :  { %v14690_v7 = vpop.f32.mrf.mxu3 }
 0x5a8   :  { %v14692_v4 = vpop.f32.mrf.mxu2  ;;  %v14694_v20 = vpop.f32.mrf.mxu0 }
 0x5a9   :  { %v14696_v0 = vpop.f32.mrf.mxu1 }
 0x5ab   :  { %10699 = vmatmul.msk.bf16.vlgmr.msrb.gmra.mxu0 %vm3338_vm0, %v14567_v18 }
 0x5ac   :  { %10702 = vmatmul.msk.bf16.gmra.mxu1 %vm3338_vm0, %v14612_v5  ;;  %4195 = vmatpush.bf16.msrb.mxu0 %v4105_v61 }
 0x5ad   :  { %10704 = vmatmul.msk.bf16.gmra.mxu2 %vm3338_vm0, %v14612_v5 }
 0x5ae   :  { %v14705_v2 = vpop.f32.mrf.mxu3 }
 0x5b0   :  { %v14707_v56 = vpop.f32.mrf.mxu2  ;;  %v14709_v16 = vpop.f32.mrf.mxu0 }
 0x5b1   :  { %v3476_v35 = vpop.f32.mrf.mxu1 }
 0x5b3   :  { %10706 = vmatmul.msk.bf16.gmra.mxu3 %vm3338_vm0, %v14612_v5 }
 0x5b6   :  { %v14713_v18 = vpop.f32.mrf.mxu3 }
 0x5b8   :  { %v3494_v31 = vpop.f32.mrf.mxu2  ;;  %v14715_v38 = vpop.f32.mrf.mxu0 }
 0x5b9   :  { %v3579_v29 = vpop.f32.mrf.mxu1  ;;  %v14760_v31 = vpack.c.b16 %v4083_v60, %v4083_v60  ;;  %v11421_v60 = vpop.permute.xlu2 %11420 }
 0x5ba   :  { %v14723_v11 = vadd.f32 %v3579_v29, %v14553_v58  ;;  %v4317_v58 = vsel %vm3345_vm6, %v4290_v30, 0 }
 0x5bb   :  { %10700 = vmatmul.msk.bf16.gmra.mxu0 %vm3338_vm0, %v14612_v5 }
 0x5bc   :  { %10716 = vmatmul.msk.bf16.vlgmr.msra.gmra.mxu1 %vm3338_vm0, %v14720_v54 }
 0x5bd   :  { %10718 = vmatmul.msk.bf16.vlgmr.msra.gmra.mxu2 %vm3338_vm0, %v14720_v54  ;;  %4359 = vmatpush.bf16.msra.mxu1 %v4314_v46 }
 0x5be   :  { %v3512_v21 = vpop.f32.mrf.mxu3  ;;  %4377 = vmatpush.bf16.msra.mxu2 %v4317_v58 }
 0x5c0   :  { %v3597_v5 = vpop.f32.mrf.mxu2  ;;  %v3458_v50 = vpop.f32.mrf.mxu0 }
 0x5c1   :  { %v14740_v42 = vadd.f32 %v3597_v5, %v14585_v8  ;;  %v3581_v61 = vpop.f32.mrf.mxu1 }
 0x5c2   :  { %v14746_v13 = vadd.f32 %v3581_v61, %v14587_v43 }
 0x5c3   :  { %10720 = vmatmul.msk.bf16.vlgmr.msra.gmra.mxu3 %vm3338_vm0, %v14720_v54 }
 0x5c4   :  { %4395 = vmatpush.bf16.msra.mxu3 %v4320_v22 }
 0x5c6   :  { %v3615_v47 = vpop.f32.mrf.mxu3 }
 0x5c7   :  { %v14755_v30 = vadd.f32 %v3615_v47, %v14600_v44 }
 0x5c8   :  { %v3599_v8 = vpop.f32.mrf.mxu2  ;;  %v3561_v43 = vpop.f32.mrf.mxu0 }
 0x5c9   :  { %v14758_v35 = vadd.f32 %v3599_v8, %v14606_v23  ;;  %v14763_v29 = vadd.f32 %v3561_v43, %v14608_v6  ;;  %v3584_v46 = vpop.f32.mrf.mxu1 }
 0x5ca   :  { %v14766_v36 = vadd.f32 %v3584_v46, %v14610_v32 }
 0x5cb   :  { %10714 = vmatmul.msk.bf16.vlgmr.msra.gmra.mxu0 %vm3338_vm0, %v14720_v54 }
 0x5cc   :  { %10717 = vmatmul.msk.bf16.gmra.mxu1 %vm3338_vm0, %v14760_v31  ;;  %4341 = vmatpush.bf16.msra.mxu0 %v4311_v53 }
 0x5cd   :  { %10719 = vmatmul.msk.bf16.gmra.mxu2 %vm3338_vm0, %v14760_v31 }
 0x5ce   :  { %v3617_v48 = vpop.f32.mrf.mxu3 }
 0x5cf   :  { %v14779_v44 = vadd.f32 %v3617_v48, %v14621_v12 }
 0x5d0   :  { %v3602_v23 = vpop.f32.mrf.mxu2  ;;  %v3563_v32 = vpop.f32.mrf.mxu0 }
 0x5d1   :  { %v14782_v6 = vadd.f32 %v3602_v23, %v14623_v40  ;;  %v14785_v3 = vadd.f32 %v3563_v32, %v14625_v28  ;;  %v3586_v9 = vpop.f32.mrf.mxu1  ;;  %v4326_v28 = vsel %vm3345_vm6, %v4293_v63, 0  ;;  %v11423_v32 = vunpack.i.h.bf16 %v11421_v60 }
 0x5d2   :  { %v11422_v9 = vunpack.i.l.bf16 %v11421_v60 }
 0x5d3   :  { %10721 = vmatmul.msk.bf16.gmra.mxu3 %vm3338_vm0, %v14760_v31 }
 0x5d6   :  { %v3620_v15 = vpop.f32.mrf.mxu3 }
 0x5d7   :  { %v14790_v58 = vadd.f32 %v3620_v15, %v14639_v10 }
 0x5d8   :  { %v3604_v21 = vpop.f32.mrf.mxu2  ;;  %v3566_v5 = vpop.f32.mrf.mxu0 }
 0x5d9   :  { %v14793_v12 = vadd.f32 %v3566_v5, %v14653_v37  ;;  %v3651_v50 = vpop.f32.mrf.mxu1  ;;  %v19058_v37 = vpack.c.bf16 %v13962_v25, %v13956_v41  ;;  %v19059_v41 = vpack.c.bf16 %v14004_v34, %v13992_v26  ;;  %v14836_v26 = vpop.permute.xlu2 %11435  ;;  %v19060_v34 = vpack.c.bf16 %v14050_v17, %v14040_v1 }
 0x5da   :  { %v14796_v40 = vadd.f32 %v3651_v50, %v14656_v14 }
 0x5db   :  { %10715 = vmatmul.msk.bf16.gmra.mxu0 %vm3338_vm0, %v14760_v31  ;;  %v4329_v10 = vsel %vm3345_vm6, %v19058_v37, 0  ;;  %v4332_v25 = vsel %vm3345_vm6, %v19059_v41, 0 }
 0x5dc   :  { %10724 = vmatmul.msk.bf16.vlgmr.msrb.gmra.mxu1 %vm3338_vm0, %v14720_v54 }
 0x5dd   :  { %10726 = vmatmul.msk.bf16.vlgmr.msrb.gmra.mxu2 %vm3338_vm0, %v14720_v54  ;;  %4431 = vmatpush.bf16.msrb.mxu1 %v4326_v28 }
 0x5de   :  { %v3622_v14 = vpop.f32.mrf.mxu3  ;;  %4449 = vmatpush.bf16.msrb.mxu2 %v4329_v10 }
 0x5e0   :  { %v3669_v61 = vpop.f32.mrf.mxu2  ;;  %v3568_v22 = vpop.f32.mrf.mxu0 }
 0x5e1   :  { %v14813_v62 = vadd.f32 %v3669_v61, %v14670_v59  ;;  %v3653_v27 = vpop.f32.mrf.mxu1  ;;  %v11426_v59 = vpop.permute.xlu1 %11425 }
 0x5e2   :  { %v14816_v24 = vadd.f32 %v3653_v27, %v14680_v49  ;;  %v11428_v1 = vunpack.i.h.bf16 %v11426_v59  ;;  %v11427_v17 = vunpack.i.l.bf16 %v11426_v59 }
 0x5e3   :  { %10728 = vmatmul.msk.bf16.vlgmr.msrb.gmra.mxu3 %vm3338_vm0, %v14720_v54 }
 0x5e4   :  { %4467 = vmatpush.bf16.msrb.mxu3 %v4332_v25  ;;  %v4543_v10 = vsel %vm18947_vm7, %v11422_v9, %v11427_v17 }
 0x5e5   :  { %v4577_v41 = vsel %vm18946_vm4, %v4543_v10, 0.0 }
 0x5e6   :  { %v3687_v63 = vpop.f32.mrf.mxu3 }
 0x5e7   :  { %v14825_v47 = vadd.f32 %v3687_v63, %v14690_v7  ;;  %v4323_v7 = vsel %vm3345_vm6, %v19060_v34, 0 }
 0x5e8   :  { %v3671_v8 = vpop.f32.mrf.mxu2  ;;  %v3633_v49 = vpop.f32.mrf.mxu0 }
 0x5e9   :  { %v14828_v43 = vadd.f32 %v3671_v8, %v14692_v4  ;;  %v14831_v46 = vadd.f32 %v3633_v49, %v14694_v20  ;;  %v3656_v53 = vpop.f32.mrf.mxu1  ;;  %v11438_v20 = vunpack.i.h.bf16 %v14836_v26  ;;  %v14857_v5 = vpop.permute.xlu1 %11440 }
 0x5ea   :  { %v14834_v48 = vadd.f32 %v3656_v53, %v14696_v0  ;;  %v11437_v0 = vunpack.i.l.bf16 %v14836_v26  ;;  %v11442_v14 = vunpack.i.l.bf16 %v14857_v5 }
 0x5eb   :  { %10722 = vmatmul.msk.bf16.vlgmr.msrb.gmra.mxu0 %vm3338_vm0, %v14720_v54  ;;  %v4546_v37 = vsel %vm18947_vm7, %v11438_v20, %v11423_v32 }
 0x5ec   :  { %10725 = vmatmul.msk.bf16.gmra.mxu1 %vm3338_vm0, %v14760_v31  ;;  %4413 = vmatpush.bf16.msrb.mxu0 %v4323_v7  ;;  %v4584_v60 = vsel %vm18945_vm15, %v4546_v37, 0.0  ;;  %v4541_v59 = vsel %vm18947_vm7, %v11427_v17, %v11442_v14 }
 0x5ed   :  { %10727 = vmatmul.msk.bf16.gmra.mxu2 %vm3338_vm0, %v14760_v31 }
 0x5ee   :  { %v3689_v4 = vpop.f32.mrf.mxu3 }
 0x5ef   :  { %v14851_v23 = vadd.f32 %v3689_v4, %v14705_v2  ;;  %v4545_v2 = vsel %vm18947_vm7, %v11437_v0, %v11422_v9  ;;  %v14904_v4 = vpop.permute.xlu0 %11430 }
 0x5f0   :  { %v3674_v54 = vpop.f32.mrf.mxu2  ;;  %v3635_v21 = vpop.f32.mrf.mxu0  ;;  %v4576_v22 = vsel %vm18945_vm15, %v4545_v2, 0.0  ;;  %v11432_v9 = vunpack.i.l.bf16 %v14904_v4 }
 0x5f1   :  { %v14855_v15 = vadd.f32 %v3674_v54, %v14707_v56  ;;  %v14860_v50 = vadd.f32 %v3635_v21, %v14709_v16  ;;  %v3658_v28 = vpop.f32.mrf.mxu1  ;;  %v4544_v56 = vsel %vm18947_vm7, %v11423_v32, %v11428_v1  ;;  %v11443_v16 = vunpack.i.h.bf16 %v14857_v5 }
 0x5f2   :  { %v4585_v25 = vsel %vm18946_vm4, %v4544_v56, 0.0  ;;  %v4596_v53 = vpack.c.bf16 %v4584_v60, %v4576_v22  ;;  %v11433_v32 = vunpack.i.h.bf16 %v14904_v4  ;;  %v4547_v56 = vsel %vm18947_vm7, %v11432_v9, %v11437_v0  ;;  %v10732_v22 = vld [vmem:[%s18891_s2 + $0x38] sm:$0x3] }
 0x5f3   :  { %10729 = vmatmul.msk.bf16.gmra.mxu3 %vm3338_vm0, %v14760_v31  ;;  %v4542_v8 = vsel %vm18947_vm7, %v11428_v1, %v11443_v16  ;;  %v4597_v7 = vpack.c.bf16 %v4585_v25, %v4577_v41  ;;  %v4578_v1 = vsel %vm18940_vm2, %v4541_v59, 0.0  ;;  %v4301_v0 = vunpack.c.l.b16 %v10732_v22 }
 0x5f4   :  { %v4586_v54 = vsel %vm18940_vm2, %v4542_v8, 0.0  ;;  %v4548_v10 = vsel %vm18947_vm7, %v11433_v32, %v11438_v20  ;;  %v4575_v41 = vsel %vm18947_vm7, %v4547_v56, 0.0  ;;  %vm18944_vm2 = vcmp.lt.s32.totalorder %v12117_v52, 124 }
 0x5f5   :  { %v4598_v21 = vpack.c.bf16 %v4586_v54, %v4578_v1  ;;  %v4583_v20 = vsel %vm18947_vm7, %v4548_v10, 0.0 }
 0x5f6   :  { %v3692_v61 = vpop.f32.mrf.mxu3 }
 0x5f7   :  { %v14881_v27 = vadd.f32 %v3692_v61, %v14713_v18  ;;  %v14898_v18 = vld [vmem:[%s18891_s2 + $0x30] sm:$0xff]  ;;  %v11446_v1 = vpop.permute.xlu0 %11445 }
 0x5f8   :  { %v3676_v63 = vpop.f32.mrf.mxu2  ;;  %v3638_v49 = vpop.f32.mrf.mxu0 }
 0x5f9   :  { %v14902_v26 = vadd.f32 %v3638_v49, %v14715_v38  ;;  %v3837_v34 = vpop.f32.mrf.mxu1  ;;  %v4621_v38 = vsel %vm3345_vm6, %v4596_v53, 0  ;;  %v14953_v53 = vpack.c.b16 %v4301_v0, %v4301_v0 }
 0x5fa   :  { %v14907_v17 = vadd.f32 %v3837_v34, %v14723_v11  ;;  %v4624_v11 = vsel %vm3345_vm6, %v4597_v7, 0 }
 0x5fb   :  { %10723 = vmatmul.msk.bf16.gmra.mxu0 %vm3338_vm0, %v14760_v31 }
 0x5fc   :  { %10739 = vmatmul.msk.bf16.vlgmr.msra.gmra.mxu1 %vm3338_vm0, %v14898_v18 }
 0x5fd   :  { %10741 = vmatmul.msk.bf16.vlgmr.msra.gmra.mxu2 %vm3338_vm0, %v14898_v18  ;;  %4666 = vmatpush.bf16.msra.mxu1 %v4621_v38  ;;  %v11456_v38 = vpop.permute.xlu1 %11455 }
 0x5fe   :  { %v3694_v31 = vpop.f32.mrf.mxu3  ;;  %4684 = vmatpush.bf16.msra.mxu2 %v4624_v11  ;;  %v11451_v11 = vpop.permute.xlu2 %11450 }
 0x5ff   :  { %v11447_v31 = vunpack.i.l.bf16 %v11446_v1  ;;  %v11452_v22 = vunpack.i.l.bf16 %v11451_v11 }
 0x600   :  { %v3855_v28 = vpop.f32.mrf.mxu2  ;;  %v3640_v37 = vpop.f32.mrf.mxu0 }
 0x601   :  { %v14924_v2 = vadd.f32 %v3855_v28, %v14740_v42  ;;  %v3839_v61 = vpop.f32.mrf.mxu1  ;;  %v4627_v42 = vsel %vm3345_vm6, %v4598_v21, 0  ;;  %v11458_v21 = vunpack.i.h.bf16 %v11456_v38 }
 0x602   :  { %v14938_v60 = vadd.f32 %v3839_v61, %v14746_v13  ;;  %v4595_v13 = vpack.c.bf16 %v4583_v20, %v4575_v41  ;;  %v11453_v61 = vunpack.i.h.bf16 %v11451_v11 }
 0x603   :  { %10743 = vmatmul.msk.bf16.vlgmr.msra.gmra.mxu3 %vm3338_vm0, %v14898_v18 }
 0x604   :  { %4702 = vmatpush.bf16.msra.mxu3 %v4627_v42 }
 0x606   :  { %v3873_v25 = vpop.f32.mrf.mxu3 }
 0x607   :  { %v14948_v63 = vadd.f32 %v3873_v25, %v14755_v30  ;;  %v4618_v30 = vsel %vm3345_vm6, %v4595_v13, 0 }
 0x608   :  { %v3857_v59 = vpop.f32.mrf.mxu2  ;;  %v3819_v49 = vpop.f32.mrf.mxu0 }
 0x609   :  { %v14951_v8 = vadd.f32 %v3857_v59, %v14758_v35  ;;  %v14956_v34 = vadd.f32 %v3819_v49, %v14763_v29  ;;  %v3842_v7 = vpop.f32.mrf.mxu1  ;;  %v11448_v35 = vunpack.i.h.bf16 %v11446_v1 }
 0x60a   :  { %v14959_v54 = vadd.f32 %v3842_v7, %v14766_v36  ;;  %v11457_v36 = vunpack.i.l.bf16 %v11456_v38  ;;  %v4549_v38 = vsel %vm18947_vm7, %v11452_v22, %v11432_v9 }
 0x60b   :  { %10737 = vmatmul.msk.bf16.vlgmr.msra.gmra.mxu0 %vm3338_vm0, %v14898_v18  ;;  %v4538_v41 = vsel %vm18947_vm7, %v11458_v21, %v11448_v35 }
 0x60c   :  { %10740 = vmatmul.msk.bf16.gmra.mxu1 %vm3338_vm0, %v14953_v53  ;;  %4648 = vmatpush.bf16.msra.mxu0 %v4618_v30  ;;  %v4537_v20 = vsel %vm18947_vm7, %v11457_v36, %v11447_v31  ;;  %v4588_v59 = vsel %vm18941_vm9, %v4538_v41, 0.0  ;;  %v4550_v30 = vsel %vm18947_vm7, %v11453_v61, %v11433_v32  ;;  %v4540_v41 = vsel %vm18947_vm7, %v11443_v16, %v11458_v21 }
 0x60d   :  { %10742 = vmatmul.msk.bf16.gmra.mxu2 %vm3338_vm0, %v14953_v53  ;;  %v4580_v25 = vsel %vm18941_vm9, %v4537_v20, 0.0  ;;  %vm18942_vm9 = vcmp.lt.s32.totalorder %v12107_v45, 124  ;;  %v11461_v20 = vpop.permute.xlu0 %11460 }
 0x60e   :  { %v3875_v29 = vpop.f32.mrf.mxu3  ;;  %v4582_v4 = vsel %vm18942_vm9, %v4549_v38, 0.0  ;;  %v4590_v32 = vsel %vm18942_vm9, %v4550_v30, 0.0  ;;  %vm18943_vm9 = vcmp.lt.s32.totalorder %v19018_v57, 124 }
 0x60f   :  { %v14969_v28 = vadd.f32 %v3875_v29, %v14779_v44  ;;  %v4535_v44 = vsel %vm18947_vm7, %v11447_v31, %v11452_v22  ;;  %v4587_v16 = vsel %vm18943_vm9, %v4540_v41, 0.0 }
 0x610   :  { %v3860_v37 = vpop.f32.mrf.mxu2  ;;  %v3821_v10 = vpop.f32.mrf.mxu0  ;;  %v4581_v49 = vsel %vm18944_vm2, %v4535_v44, 0.0 }
 0x611   :  { %v14972_v56 = vadd.f32 %v3860_v37, %v14782_v6  ;;  %v14975_v42 = vadd.f32 %v3821_v10, %v14785_v3  ;;  %v3844_v0 = vpop.f32.mrf.mxu1  ;;  %v4536_v6 = vsel %vm18947_vm7, %v11448_v35, %v11453_v61  ;;  %v4602_v10 = vpack.c.bf16 %v4590_v32, %v4582_v4 }
 0x612   :  { %v4589_v7 = vsel %vm18944_vm2, %v4536_v6, 0.0  ;;  %v4539_v0 = vsel %vm18947_vm7, %v11442_v14, %v11457_v36  ;;  %v11466_v36 = vpop.permute.xlu2 %11465  ;;  %vm19065_vm7 = vcmp.lt.s32.totalorder %v12115_v51, 120 }
 0x613   :  { %10744 = vmatmul.msk.bf16.gmra.mxu3 %vm3338_vm0, %v14953_v53  ;;  %v4601_v31 = vpack.c.bf16 %v4589_v7, %v4581_v49  ;;  %v4639_v14 = vsel %vm3345_vm6, %v4602_v10, 0  ;;  %v4579_v5 = vsel %vm18943_vm9, %v4539_v0, 0.0  ;;  %v11467_v32 = vunpack.i.l.bf16 %v11466_v36 }
 0x614   :  { %vm19061_vm9 = vcmp.lt.s32.totalorder %v12094_v33, 120 }
 0x615   :  { %v11476_v30 = vpop.permute.xlu0 %11475  ;;  %vm19062_vm2 = vmmov %vm19061_vm9 }
 0x616   :  { %v3878_v3 = vpop.f32.mrf.mxu3  ;;  %vm19063_vm15 = vmmov %vm19062_vm2 }
 0x617   :  { %v14994_v13 = vadd.f32 %v3878_v3, %v14790_v58  ;;  %v4600_v58 = vpack.c.bf16 %v4588_v59, %v4580_v25  ;;  %v4599_v25 = vpack.c.bf16 %v4587_v16, %v4579_v5  ;;  %vm19064_vm4 = vmmov %vm19062_vm2 }
 0x618   :  { %v3862_v1 = vpop.f32.mrf.mxu2  ;;  %v3824_v35 = vpop.f32.mrf.mxu0 }
 0x619   :  { %v15010_v29 = vadd.f32 %v3824_v35, %v14793_v12  ;;  %v3909_v11 = vpop.f32.mrf.mxu1  ;;  %v4633_v12 = vsel %vm3345_vm6, %v4600_v58, 0  ;;  %v11477_v35 = vunpack.i.l.bf16 %v11476_v30 }
 0x61a   :  { %v15013_v37 = vadd.f32 %v3909_v11, %v14796_v40  ;;  %v4636_v40 = vsel %vm3345_vm6, %v4601_v31, 0  ;;  %v11462_v11 = vunpack.i.l.bf16 %v11461_v20 }
 0x61b   :  { %10738 = vmatmul.msk.bf16.gmra.mxu0 %vm3338_vm0, %v14953_v53 }
 0x61c   :  { %10747 = vmatmul.msk.bf16.vlgmr.msrb.gmra.mxu1 %vm3338_vm0, %v14898_v18 }
 0x61d   :  { %10749 = vmatmul.msk.bf16.vlgmr.msrb.gmra.mxu2 %vm3338_vm0, %v14898_v18  ;;  %4738 = vmatpush.bf16.msrb.mxu1 %v4633_v12  ;;  %v15071_v12 = vpop.permute.xlu2 %11480 }
 0x61e   :  { %v3880_v9 = vpop.f32.mrf.mxu3  ;;  %4756 = vmatpush.bf16.msrb.mxu2 %v4636_v40  ;;  %v11483_v0 = vunpack.i.h.bf16 %v15071_v12 }
 0x620   :  { %v3927_v61 = vpop.f32.mrf.mxu2  ;;  %v3826_v22 = vpop.f32.mrf.mxu0 }
 0x621   :  { %v15036_v44 = vadd.f32 %v3927_v61, %v14813_v62  ;;  %v3911_v6 = vpop.f32.mrf.mxu1  ;;  %v4851_v61 = vsel %vm19061_vm9, %v11477_v35, %v11462_v11  ;;  %v4849_v22 = vsel %vm19063_vm15, %v11462_v11, %v11467_v32  ;;  %vm19066_vm9 = vmmov %vm19065_vm7 }
 0x622   :  { %v15040_v3 = vadd.f32 %v3911_v6, %v14816_v24 }
 0x623   :  { %10751 = vmatmul.msk.bf16.vlgmr.msrb.gmra.mxu3 %vm3338_vm0, %v14898_v18 }
 0x624   :  { %4774 = vmatpush.bf16.msrb.mxu3 %v4639_v14 }
 0x626   :  { %v3945_v62 = vpop.f32.mrf.mxu3 }
 0x627   :  { %v15050_v21 = vadd.f32 %v3945_v62, %v14825_v47  ;;  %v4630_v47 = vsel %vm3345_vm6, %v4599_v25, 0 }
 0x628   :  { %v3929_v24 = vpop.f32.mrf.mxu2  ;;  %v3891_v59 = vpop.f32.mrf.mxu0 }
 0x629   :  { %v15053_v49 = vadd.f32 %v3929_v24, %v14828_v43  ;;  %v15056_v7 = vadd.f32 %v3891_v59, %v14831_v46  ;;  %v3914_v1 = vpop.f32.mrf.mxu1  ;;  %v11478_v46 = vunpack.i.h.bf16 %v11476_v30 }
 0x62a   :  { %v15059_v38 = vadd.f32 %v3914_v1, %v14834_v48  ;;  %v11463_v48 = vunpack.i.h.bf16 %v11461_v20  ;;  %v4858_v20 = vsel %vm19065_vm7, %v4851_v61, 0.0  ;;  %vm19069_vm7 = vmmov %vm19064_vm4 }
 0x62b   :  { %10745 = vmatmul.msk.bf16.vlgmr.msrb.gmra.mxu0 %vm3338_vm0, %v14898_v18  ;;  %v11468_v18 = vunpack.i.h.bf16 %v11466_v36 }
 0x62c   :  { %10748 = vmatmul.msk.bf16.gmra.mxu1 %vm3338_vm0, %v14953_v53  ;;  %4720 = vmatpush.bf16.msrb.mxu0 %v4630_v47 }
 0x62d   :  { %10750 = vmatmul.msk.bf16.gmra.mxu2 %vm3338_vm0, %v14953_v53  ;;  %v4848_v36 = vsel %vm19069_vm7, %v11468_v18, %v11483_v0  ;;  %vm19073_vm7 = vmmov %vm19064_vm4 }
 0x62e   :  { %v3947_v43 = vpop.f32.mrf.mxu3 }
 0x62f   :  { %v15069_v58 = vadd.f32 %v3947_v43, %v14851_v23  ;;  %v4852_v23 = vsel %vm19062_vm2, %v11478_v46, %v11463_v48  ;;  %vm19067_vm2 = vcmp.lt.s32.totalorder %v12101_v39, 120 }
 0x630   :  { %v3932_v31 = vpop.f32.mrf.mxu2  ;;  %v3893_v4 = vpop.f32.mrf.mxu0  ;;  %v4866_v6 = vsel %vm19066_vm9, %v4852_v23, 0.0  ;;  %v4859_v5 = vsel %vm19067_vm2, %v4849_v22, 0.0  ;;  %vm19068_vm15 = vmmov %vm19067_vm2  ;;  %vm19070_vm9 = vcmp.lt.s32.totalorder %v12121_v55, 120 }
 0x631   :  { %v15074_v40 = vadd.f32 %v3932_v31, %v14855_v15  ;;  %v15077_v9 = vadd.f32 %v3893_v4, %v14860_v50  ;;  %v3916_v10 = vpop.f32.mrf.mxu1  ;;  %v4850_v15 = vsel %vm19064_vm4, %v11463_v48, %v11468_v18  ;;  %v11482_v50 = vunpack.i.l.bf16 %v15071_v12  ;;  %vm19071_vm2 = vmmov %vm19070_vm9  ;;  %v15127_v31 = vpop.permute.xlu1 %11470 }
 0x632   :  { %v4867_v16 = vsel %vm19068_vm15, %v4850_v15, 0.0  ;;  %v4878_v59 = vpack.c.bf16 %v4866_v6, %v4858_v20  ;;  %v4868_v11 = vsel %vm19071_vm2, %v4848_v36, 0.0  ;;  %v11473_v18 = vunpack.i.h.bf16 %v15127_v31  ;;  %vm19072_vm15 = vmmov %vm19064_vm4  ;;  %v10755_v20 = vld [vmem:[%s18891_s2 + $0x44] sm:$0x3] }
 0x633   :  { %10752 = vmatmul.msk.bf16.gmra.mxu3 %vm3338_vm0, %v14953_v53  ;;  %v4847_v62 = vsel %vm19064_vm4, %v11467_v32, %v11482_v50  ;;  %v4879_v47 = vpack.c.bf16 %v4867_v16, %v4859_v5  ;;  %v11472_v32 = vunpack.i.l.bf16 %v15127_v31  ;;  %v11491_v31 = vpop.permute.xlu0 %11490  ;;  %vm19075_vm2 = vmmov %vm19064_vm4 }
 0x634   :  { %v4860_v48 = vsel %vm19070_vm9, %v4847_v62, 0.0  ;;  %v4854_v22 = vsel %vm19064_vm4, %v11473_v18, %v11478_v46  ;;  %vm19074_vm9 = vmmov %vm19064_vm4 }
 0x635   :  { %v4880_v4 = vpack.c.bf16 %v4868_v11, %v4860_v48  ;;  %v4853_v23 = vsel %vm19072_vm15, %v11472_v32, %v11477_v35  ;;  %v4608_v35 = vunpack.c.l.b16 %v10755_v20  ;;  %vm19076_vm15 = vmmov %vm19075_vm2 }
 0x636   :  { %v3950_v41 = vpop.f32.mrf.mxu3  ;;  %v4857_v46 = vsel %vm19073_vm7, %v4853_v23, 0.0  ;;  %vm19077_vm4 = vmmov %vm19075_vm2 }
 0x637   :  { %v15096_v14 = vadd.f32 %v3950_v41, %v14881_v27  ;;  %v15113_v27 = vld [vmem:[%s18891_s2 + $0x3c] sm:$0xff]  ;;  %v4909_v5 = vsel %vm3345_vm6, %v4880_v4, 0  ;;  %v11492_v4 = vunpack.i.l.bf16 %v11491_v31  ;;  %vm19078_vm7 = vmmov %vm19075_vm2 }
 0x638   :  { %v3934_v25 = vpop.f32.mrf.mxu2  ;;  %v3896_v24 = vpop.f32.mrf.mxu0 }
 0x639   :  { %v15116_v1 = vadd.f32 %v3896_v24, %v14902_v26  ;;  %v4143_v30 = vpop.f32.mrf.mxu1  ;;  %v4903_v26 = vsel %vm3345_vm6, %v4878_v59, 0  ;;  %v15160_v24 = vpack.c.b16 %v4608_v35, %v4608_v35  ;;  %v11486_v11 = vpop.permute.xlu1 %11485 }
 0x63a   :  { %v15119_v43 = vadd.f32 %v4143_v30, %v14907_v17  ;;  %v4906_v17 = vsel %vm3345_vm6, %v4879_v47, 0 }
 0x63b   :  { %10746 = vmatmul.msk.bf16.gmra.mxu0 %vm3338_vm0, %v14953_v53 }
 0x63c   :  { %10762 = vmatmul.msk.bf16.vlgmr.msra.gmra.mxu1 %vm3338_vm0, %v15113_v27 }
 0x63d   :  { %10764 = vmatmul.msk.bf16.vlgmr.msra.gmra.mxu2 %vm3338_vm0, %v15113_v27  ;;  %4948 = vmatpush.bf16.msra.mxu1 %v4903_v26  ;;  %v11488_v26 = vunpack.i.h.bf16 %v11486_v11 }
 0x63e   :  { %v3952_v53 = vpop.f32.mrf.mxu3  ;;  %4966 = vmatpush.bf16.msra.mxu2 %v4906_v17  ;;  %v11487_v17 = vunpack.i.l.bf16 %v11486_v11 }
 0x63f   :  { %v11493_v53 = vunpack.i.h.bf16 %v11491_v31 }
 0x640   :  { %v4161_v10 = vpop.f32.mrf.mxu2  ;;  %v3898_v61 = vpop.f32.mrf.mxu0 }
 0x641   :  { %v15142_v15 = vadd.f32 %v4161_v10, %v14924_v2  ;;  %v4145_v41 = vpop.f32.mrf.mxu1  ;;  %v4865_v2 = vsel %vm19074_vm9, %v4854_v22, 0.0  ;;  %vm19079_vm9 = vcmp.lt.s32.totalorder %v12148_v19, 120 }
 0x642   :  { %v15148_v6 = vadd.f32 %v4145_v41, %v14938_v60  ;;  %v4877_v36 = vpack.c.bf16 %v4865_v2, %v4857_v46  ;;  %v4841_v46 = vsel %vm19077_vm4, %v11487_v17, %v11492_v4  ;;  %vm19080_vm5 = vmmov %vm19079_vm9 }
 0x643   :  { %10766 = vmatmul.msk.bf16.vlgmr.msra.gmra.mxu3 %vm3338_vm0, %v15113_v27 }
 0x644   :  { %4984 = vmatpush.bf16.msra.mxu3 %v4909_v5 }
 0x646   :  { %v4179_v16 = vpop.f32.mrf.mxu3 }
 0x647   :  { %v15158_v62 = vadd.f32 %v4179_v16, %v14948_v63  ;;  %v4900_v63 = vsel %vm3345_vm6, %v4877_v36, 0 }
 0x648   :  { %v4163_v60 = vpop.f32.mrf.mxu2  ;;  %v4125_v25 = vpop.f32.mrf.mxu0 }
 0x649   :  { %v15163_v59 = vadd.f32 %v4163_v60, %v14951_v8  ;;  %v15166_v30 = vadd.f32 %v4125_v25, %v14956_v34  ;;  %v4148_v47 = vpop.f32.mrf.mxu1  ;;  %v11496_v8 = vpop.permute.xlu2 %11495 }
 0x64a   :  { %v15169_v48 = vadd.f32 %v4148_v47, %v14959_v54  ;;  %v11498_v10 = vunpack.i.h.bf16 %v11496_v8  ;;  %v11497_v61 = vunpack.i.l.bf16 %v11496_v8  ;;  %v4855_v47 = vsel %vm19077_vm4, %v11492_v4, %v11472_v32 }
 0x64b   :  { %10760 = vmatmul.msk.bf16.vlgmr.msra.gmra.mxu0 %vm3338_vm0, %v15113_v27 }
 0x64c   :  { %10763 = vmatmul.msk.bf16.gmra.mxu1 %vm3338_vm0, %v15160_v24  ;;  %4930 = vmatpush.bf16.msra.mxu0 %v4900_v63  ;;  %v4844_v35 = vsel %vm19075_vm2, %v11498_v10, %v11488_v26  ;;  %vm19081_vm2 = vcmp.lt.s32.totalorder %v12117_v52, 120 }
 0x64d   :  { %10765 = vmatmul.msk.bf16.gmra.mxu2 %vm3338_vm0, %v15160_v24  ;;  %v4870_v16 = vsel %vm19080_vm5, %v4844_v35, 0.0  ;;  %v4863_v60 = vsel %vm19081_vm2, %v4841_v46, 0.0  ;;  %vm19084_vm5 = vcmp.lt.s32.totalorder %v12107_v45, 120 }
 0x64e   :  { %v4181_v34 = vpop.f32.mrf.mxu3  ;;  %v4864_v32 = vsel %vm19084_vm5, %v4855_v47, 0.0 }
 0x64f   :  { %v15179_v54 = vadd.f32 %v4181_v34, %v14969_v28  ;;  %v4843_v28 = vsel %vm19076_vm15, %v11497_v61, %v11487_v17  ;;  %vm19082_vm15 = vmmov %vm19081_vm2 }
 0x650   :  { %v4166_v23 = vpop.f32.mrf.mxu2  ;;  %v4127_v22 = vpop.f32.mrf.mxu0  ;;  %vm19086_vm2 = vmmov %vm19077_vm4 }
 0x651   :  { %v15182_v41 = vadd.f32 %v4166_v23, %v14972_v56  ;;  %v15185_v20 = vadd.f32 %v4127_v22, %v14975_v42  ;;  %v4150_v5 = vpop.f32.mrf.mxu1  ;;  %v4842_v56 = vsel %vm19078_vm7, %v11488_v26, %v11493_v53  ;;  %v4862_v42 = vsel %vm19079_vm9, %v4843_v28, 0.0  ;;  %vm19083_vm7 = vmmov %vm19077_vm4  ;;  %v11501_v28 = vpop.permute.xlu1 %11500 }
 0x652   :  { %v4871_v25 = vsel %vm19082_vm15, %v4842_v56, 0.0  ;;  %v4856_v11 = vsel %vm19083_vm7, %v11493_v53, %v11473_v18  ;;  %v4882_v8 = vpack.c.bf16 %v4870_v16, %v4862_v42  ;;  %vm19085_vm9 = vmmov %vm19084_vm5  ;;  %v4845_v5 = vsel %vm19086_vm2, %v11482_v50, %v11497_v61 }
 0x653   :  { %10767 = vmatmul.msk.bf16.gmra.mxu3 %vm3338_vm0, %v15160_v24  ;;  %v4883_v26 = vpack.c.bf16 %v4871_v25, %v4863_v60  ;;  %v4872_v18 = vsel %vm19085_vm9, %v4856_v11, 0.0  ;;  %vm19087_vm15 = vmmov %vm19086_vm2  ;;  %vm19088_vm4 = vcmp.lt.s32.totalorder %v19018_v57, 120  ;;  %vm5123_vm5 = vcmp.lt.s32.totalorder %v12094_v33, 116 }
 0x654   :  { %v4884_v4 = vpack.c.bf16 %v4872_v18, %v4864_v32  ;;  %v4846_v35 = vsel %vm19087_vm15, %v11483_v0, %v11498_v10  ;;  %v4861_v12 = vsel %vm19088_vm4, %v4845_v5, 0.0  ;;  %vm19089_vm7 = vmmov %vm19088_vm4  ;;  %v11506_v10 = vpop.permute.xlu0 %11505  ;;  %vm5141_vm9 = vcmp.lt.s32.totalorder %v12115_v51, 116 }
 0x655   :  { %v4869_v0 = vsel %vm19089_vm7, %v4846_v35, 0.0  ;;  %vm5142_vm2 = vcmp.lt.s32.totalorder %v12101_v39, 116  ;;  %vm5143_vm15 = vcmp.lt.s32.totalorder %v12121_v55, 116  ;;  %vm5145_vm4 = vcmp.lt.s32.totalorder %v12148_v19, 116 }
 0x656   :  { %v4184_v2 = vpop.f32.mrf.mxu3  ;;  %v4921_v42 = vsel %vm3345_vm6, %v4884_v4, 0  ;;  %v4881_v61 = vpack.c.bf16 %v4869_v0, %v4861_v12  ;;  %vm5146_vm7 = vcmp.lt.s32.totalorder %v12117_v52, 116 }
 0x657   :  { %v15202_v36 = vadd.f32 %v4184_v2, %v14994_v13 }
 0x658   :  { %v4168_v63 = vpop.f32.mrf.mxu2  ;;  %v4130_v31 = vpop.f32.mrf.mxu0 }
 0x659   :  { %v15213_v34 = vadd.f32 %v4130_v31, %v15010_v29  ;;  %v4215_v13 = vpop.f32.mrf.mxu1  ;;  %v4915_v29 = vsel %vm3345_vm6, %v4882_v8, 0  ;;  %v15263_v63 = vpop.permute.xlu1 %11515  ;;  %v11507_v8 = vunpack.i.l.bf16 %v11506_v10 }
 0x65a   :  { %v15216_v17 = vadd.f32 %v4215_v13, %v15013_v37  ;;  %v4918_v37 = vsel %vm3345_vm6, %v4883_v26, 0  ;;  %v11503_v13 = vunpack.i.h.bf16 %v11501_v28  ;;  %v11502_v26 = vunpack.i.l.bf16 %v11501_v28 }
 0x65b   :  { %10761 = vmatmul.msk.bf16.gmra.mxu0 %vm3338_vm0, %v15160_v24 }
 0x65c   :  { %10770 = vmatmul.msk.bf16.vlgmr.msrb.gmra.mxu1 %vm3338_vm0, %v15113_v27 }
 0x65d   :  { %10772 = vmatmul.msk.bf16.vlgmr.msrb.gmra.mxu2 %vm3338_vm0, %v15113_v27  ;;  %5020 = vmatpush.bf16.msrb.mxu1 %v4915_v29  ;;  %v15278_v29 = vpop.permute.xlu0 %11520 }
 0x65e   :  { %v4186_v53 = vpop.f32.mrf.mxu3  ;;  %5038 = vmatpush.bf16.msrb.mxu2 %v4918_v37  ;;  %v11522_v5 = vunpack.i.l.bf16 %v15278_v29 }
 0x660   :  { %v4233_v23 = vpop.f32.mrf.mxu2  ;;  %v4132_v22 = vpop.f32.mrf.mxu0 }
 0x661   :  { %v15239_v46 = vadd.f32 %v4233_v23, %v15036_v44  ;;  %v4217_v56 = vpop.f32.mrf.mxu1  ;;  %v5132_v22 = vsel %vm5123_vm5, %v11502_v26, %v11507_v8 }
 0x662   :  { %v15242_v2 = vadd.f32 %v4217_v56, %v15040_v3  ;;  %v5166_v12 = vsel %vm5142_vm2, %v5132_v22, 0.0 }
 0x663   :  { %10774 = vmatmul.msk.bf16.vlgmr.msrb.gmra.mxu3 %vm3338_vm0, %v15113_v27 }
 0x664   :  { %5056 = vmatpush.bf16.msrb.mxu3 %v4921_v42 }
 0x666   :  { %v4251_v50 = vpop.f32.mrf.mxu3 }
 0x667   :  { %v15252_v44 = vadd.f32 %v4251_v50, %v15050_v21  ;;  %v4912_v21 = vsel %vm3345_vm6, %v4881_v61, 0  ;;  %v5130_v50 = vsel %vm5123_vm5, %v11507_v8, %v11522_v5 }
 0x668   :  { %v4235_v3 = vpop.f32.mrf.mxu2  ;;  %v4197_v16 = vpop.f32.mrf.mxu0 }
 0x669   :  { %v15255_v60 = vadd.f32 %v4235_v3, %v15053_v49  ;;  %v15258_v25 = vadd.f32 %v4197_v16, %v15056_v7  ;;  %v4220_v47 = vpop.f32.mrf.mxu1  ;;  %v11518_v7 = vunpack.i.h.bf16 %v15263_v63  ;;  %v15314_v16 = vld [vmem:[%s18891_s2 + $0x48] sm:$0xff] }
 0x66a   :  { %v15261_v11 = vadd.f32 %v4220_v47, %v15059_v38  ;;  %v11517_v38 = vunpack.i.l.bf16 %v15263_v63 }
 0x66b   :  { %10768 = vmatmul.msk.bf16.vlgmr.msrb.gmra.mxu0 %vm3338_vm0, %v15113_v27  ;;  %v11508_v27 = vunpack.i.h.bf16 %v11506_v10  ;;  %v5135_v23 = vsel %vm5123_vm5, %v11518_v7, %v11503_v13 }
 0x66c   :  { %10771 = vmatmul.msk.bf16.gmra.mxu1 %vm3338_vm0, %v15160_v24  ;;  %5002 = vmatpush.bf16.msrb.mxu0 %v4912_v21  ;;  %v5173_v56 = vsel %vm5141_vm9, %v5135_v23, 0.0 }
 0x66d   :  { %10773 = vmatmul.msk.bf16.gmra.mxu2 %vm3338_vm0, %v15160_v24 }
 0x66e   :  { %v4253_v49 = vpop.f32.mrf.mxu3 }
 0x66f   :  { %v15275_v31 = vadd.f32 %v4253_v49, %v15069_v58  ;;  %v5134_v58 = vsel %vm5123_vm5, %v11517_v38, %v11502_v26 }
 0x670   :  { %v4238_v32 = vpop.f32.mrf.mxu2  ;;  %v4199_v18 = vpop.f32.mrf.mxu0  ;;  %v5165_v28 = vsel %vm5141_vm9, %v5134_v58, 0.0  ;;  %vm5147_vm9 = vcmp.lt.s32.totalorder %v12107_v45, 116 }
 0x671   :  { %v15281_v37 = vadd.f32 %v4238_v32, %v15074_v40  ;;  %v15284_v53 = vadd.f32 %v4199_v18, %v15077_v9  ;;  %v4222_v4 = vpop.f32.mrf.mxu1  ;;  %v5133_v40 = vsel %vm5123_vm5, %v11503_v13, %v11508_v27  ;;  %v11523_v9 = vunpack.i.h.bf16 %v15278_v29  ;;  %v15325_v13 = vpop.permute.xlu2 %11510 }
 0x672   :  { %v5174_v0 = vsel %vm5142_vm2, %v5133_v40, 0.0  ;;  %v11512_v18 = vunpack.i.l.bf16 %v15325_v13  ;;  %vm5144_vm2 = vcmp.lt.s32.totalorder %v19018_v57, 116 }
 0x673   :  { %10775 = vmatmul.msk.bf16.gmra.mxu3 %vm3338_vm0, %v15160_v24  ;;  %v5131_v10 = vsel %vm5123_vm5, %v11508_v27, %v11523_v9  ;;  %v5186_v21 = vpack.c.bf16 %v5174_v0, %v5166_v12  ;;  %v5167_v27 = vsel %vm5143_vm15, %v5130_v50, 0.0 }
 0x674   :  { %v5175_v8 = vsel %vm5143_vm15, %v5131_v10, 0.0  ;;  %v5136_v22 = vsel %vm5123_vm5, %v11512_v18, %v11517_v38 }
 0x675   :  { %v5187_v32 = vpack.c.bf16 %v5175_v8, %v5167_v27  ;;  %v5164_v38 = vsel %vm5123_vm5, %v5136_v22, 0.0  ;;  %v11536_v8 = vpop.permute.xlu0 %11535 }
 0x676   :  { %v4256_v35 = vpop.f32.mrf.mxu3 }
 0x677   :  { %v15301_v42 = vadd.f32 %v4256_v35, %v15096_v14  ;;  %v5185_v14 = vpack.c.bf16 %v5173_v56, %v5165_v28  ;;  %v10778_v28 = vld [vmem:[%s18891_s2 + $0x50] sm:$0x3]  ;;  %v5216_v12 = vsel %vm3345_vm6, %v5187_v32, 0 }
 0x678   :  { %v4240_v61 = vpop.f32.mrf.mxu2  ;;  %v4202_v3 = vpop.f32.mrf.mxu0 }
 0x679   :  { %v15318_v47 = vadd.f32 %v4202_v3, %v15116_v1  ;;  %v4361_v63 = vpop.f32.mrf.mxu1  ;;  %v5210_v26 = vsel %vm3345_vm6, %v5185_v14, 0  ;;  %v5213_v1 = vsel %vm3345_vm6, %v5186_v21, 0 }
 0x67a   :  { %v15321_v49 = vadd.f32 %v4361_v63, %v15119_v43 }
 0x67b   :  { %10769 = vmatmul.msk.bf16.gmra.mxu0 %vm3338_vm0, %v15160_v24  ;;  %v11513_v24 = vunpack.i.h.bf16 %v15325_v13  ;;  %v11531_v13 = vpop.permute.xlu1 %11530 }
 0x67c   :  { %10785 = vmatmul.msk.bf16.vlgmr.msra.gmra.mxu1 %vm3338_vm0, %v15314_v16  ;;  %v11532_v32 = vunpack.i.l.bf16 %v11531_v13 }
 0x67d   :  { %10787 = vmatmul.msk.bf16.vlgmr.msra.gmra.mxu2 %vm3338_vm0, %v15314_v16  ;;  %5255 = vmatpush.bf16.msra.mxu1 %v5210_v26  ;;  %v5137_v23 = vsel %vm5123_vm5, %v11513_v24, %v11518_v7  ;;  %v4890_v7 = vunpack.c.l.b16 %v10778_v28  ;;  %v11538_v26 = vunpack.i.h.bf16 %v11536_v8 }
 0x67e   :  { %v4258_v43 = vpop.f32.mrf.mxu3  ;;  %5273 = vmatpush.bf16.msra.mxu2 %v5213_v1  ;;  %v11537_v1 = vunpack.i.l.bf16 %v11536_v8  ;;  %v5138_v8 = vsel %vm5123_vm5, %v11532_v32, %v11512_v18 }
 0x67f   :  { %v15358_v3 = vpack.c.b16 %v4890_v7, %v4890_v7  ;;  %v11533_v43 = vunpack.i.h.bf16 %v11531_v13 }
 0x680   :  { %v4379_v4 = vpop.f32.mrf.mxu2  ;;  %v4204_v58 = vpop.f32.mrf.mxu0 }
 0x681   :  { %v15340_v40 = vadd.f32 %v4379_v4, %v15142_v15  ;;  %v4363_v35 = vpop.f32.mrf.mxu1  ;;  %v5172_v15 = vsel %vm5123_vm5, %v5137_v23, 0.0 }
 0x682   :  { %v15346_v56 = vadd.f32 %v4363_v35, %v15148_v6  ;;  %v5184_v10 = vpack.c.bf16 %v5172_v15, %v5164_v38 }
 0x683   :  { %10789 = vmatmul.msk.bf16.vlgmr.msra.gmra.mxu3 %vm3338_vm0, %v15314_v16 }
 0x684   :  { %5291 = vmatpush.bf16.msra.mxu3 %v5216_v12 }
 0x686   :  { %v4397_v0 = vpop.f32.mrf.mxu3 }
 0x687   :  { %v15356_v50 = vadd.f32 %v4397_v0, %v15158_v62  ;;  %v5207_v62 = vsel %vm3345_vm6, %v5184_v10, 0 }
 0x688   :  { %v4381_v6 = vpop.f32.mrf.mxu2  ;;  %v4343_v61 = vpop.f32.mrf.mxu0 }
 0x689   :  { %v15361_v14 = vadd.f32 %v4381_v6, %v15163_v59  ;;  %v15364_v63 = vadd.f32 %v4343_v61, %v15166_v30  ;;  %v4366_v21 = vpop.f32.mrf.mxu1  ;;  %v11526_v59 = vpop.permute.xlu2 %11525 }
 0x68a   :  { %v15367_v27 = vadd.f32 %v4366_v21, %v15169_v48  ;;  %v11528_v4 = vunpack.i.h.bf16 %v11526_v59  ;;  %v11527_v58 = vunpack.i.l.bf16 %v11526_v59  ;;  %v5139_v21 = vsel %vm5123_vm5, %v11533_v43, %v11513_v24 }
 0x68b   :  { %10783 = vmatmul.msk.bf16.vlgmr.msra.gmra.mxu0 %vm3338_vm0, %v15314_v16  ;;  %v5171_v24 = vsel %vm5147_vm9, %v5138_v8, 0.0 }
 0x68c   :  { %10786 = vmatmul.msk.bf16.gmra.mxu1 %vm3338_vm0, %v15358_v3  ;;  %5237 = vmatpush.bf16.msra.mxu0 %v5207_v62  ;;  %v5126_v7 = vsel %vm5123_vm5, %v11537_v1, %v11527_v58  ;;  %v5125_v38 = vsel %vm5123_vm5, %v11528_v4, %v11533_v43  ;;  %v5179_v43 = vsel %vm5147_vm9, %v5139_v21, 0.0  ;;  %vm19094_vm9 = vcmp.lt.s32.totalorder %v12115_v51, 112 }
 0x68d   :  { %10788 = vmatmul.msk.bf16.gmra.mxu2 %vm3338_vm0, %v15358_v3  ;;  %v5169_v15 = vsel %vm5145_vm4, %v5126_v7, 0.0  ;;  %v5178_v61 = vsel %vm5146_vm7, %v5125_v38, 0.0  ;;  %v5128_v7 = vsel %vm5123_vm5, %v11522_v5, %v11537_v1 }
 0x68e   :  { %v4399_v30 = vpop.f32.mrf.mxu3  ;;  %v5168_v5 = vsel %vm5144_vm2, %v5128_v7, 0.0 }
 0x68f   :  { %v15377_v48 = vadd.f32 %v4399_v30, %v15179_v54  ;;  %v5127_v54 = vsel %vm5123_vm5, %v11538_v26, %v11528_v4 }
 0x690   :  { %v4384_v23 = vpop.f32.mrf.mxu2  ;;  %v4345_v22 = vpop.f32.mrf.mxu0  ;;  %v5177_v0 = vsel %vm5145_vm4, %v5127_v54, 0.0  ;;  %v5129_v54 = vsel %vm5123_vm5, %v11523_v9, %v11538_v26 }
 0x691   :  { %v15380_v35 = vadd.f32 %v4384_v23, %v15182_v41  ;;  %v15383_v28 = vadd.f32 %v4345_v22, %v15185_v20  ;;  %v4368_v12 = vpop.f32.mrf.mxu1  ;;  %v5124_v41 = vsel %vm5123_vm5, %v11527_v58, %v11532_v32  ;;  %v5189_v59 = vpack.c.bf16 %v5177_v0, %v5169_v15 }
 0x692   :  { %v5170_v6 = vsel %vm5146_vm7, %v5124_v41, 0.0  ;;  %v11541_v12 = vpop.permute.xlu2 %11540  ;;  %v5176_v29 = vsel %vm5144_vm2, %v5129_v54, 0.0  ;;  %vm19090_vm5 = vcmp.lt.s32.totalorder %v12094_v33, 112  ;;  %vm19095_vm2 = vmmov %vm19094_vm9 }
 0x693   :  { %10790 = vmatmul.msk.bf16.gmra.mxu3 %vm3338_vm0, %v15358_v3  ;;  %v5190_v58 = vpack.c.bf16 %v5178_v61, %v5170_v6  ;;  %v5222_v18 = vsel %vm3345_vm6, %v5189_v59, 0  ;;  %v5188_v26 = vpack.c.bf16 %v5176_v29, %v5168_v5  ;;  %vm19091_vm15 = vmmov %vm19090_vm5 }
 0x694   :  { %vm19092_vm4 = vmmov %vm19090_vm5 }
 0x695   :  { %vm19093_vm7 = vmmov %vm19092_vm4 }
 0x696   :  { %v4402_v20 = vpop.f32.mrf.mxu3 }
 0x697   :  { %v15398_v10 = vadd.f32 %v4402_v20, %v15202_v36 }
 0x698   :  { %v4386_v62 = vpop.f32.mrf.mxu2  ;;  %v4348_v13 = vpop.f32.mrf.mxu0 }
 0x699   :  { %v15406_v30 = vadd.f32 %v4348_v13, %v15213_v34  ;;  %v4433_v4 = vpop.f32.mrf.mxu1  ;;  %v5225_v34 = vsel %vm3345_vm6, %v5190_v58, 0  ;;  %v11543_v58 = vunpack.i.h.bf16 %v11541_v12 }
 0x69a   :  { %v15409_v36 = vadd.f32 %v4433_v4, %v15216_v17  ;;  %v5191_v17 = vpack.c.bf16 %v5179_v43, %v5171_v24  ;;  %v11556_v62 = vpop.permute.xlu2 %11555  ;;  %v11542_v24 = vunpack.i.l.bf16 %v11541_v12 }
 0x69b   :  { %10784 = vmatmul.msk.bf16.gmra.mxu0 %vm3338_vm0, %v15358_v3  ;;  %v11557_v13 = vunpack.i.l.bf16 %v11556_v62 }
 0x69c   :  { %10793 = vmatmul.msk.bf16.vlgmr.msrb.gmra.mxu1 %vm3338_vm0, %v15314_v16  ;;  %v5228_v15 = vsel %vm3345_vm6, %v5191_v17, 0 }
 0x69d   :  { %10795 = vmatmul.msk.bf16.vlgmr.msrb.gmra.mxu2 %vm3338_vm0, %v15314_v16  ;;  %5327 = vmatpush.bf16.msrb.mxu1 %v5222_v18 }
 0x69e   :  { %v4404_v32 = vpop.f32.mrf.mxu3  ;;  %5345 = vmatpush.bf16.msrb.mxu2 %v5225_v34 }
 0x6a0   :  { %v4451_v23 = vpop.f32.mrf.mxu2  ;;  %v4350_v22 = vpop.f32.mrf.mxu0 }
 0x6a1   :  { %v15428_v38 = vadd.f32 %v4451_v23, %v15239_v46  ;;  %v4435_v41 = vpop.f32.mrf.mxu1  ;;  %v11546_v46 = vpop.permute.xlu1 %11545  ;;  %v5440_v23 = vsel %vm19090_vm5, %v11557_v13, %v11542_v24  ;;  %vm19096_vm5 = vcmp.lt.s32.totalorder %v12101_v39, 112 }
 0x6a2   :  { %v15432_v20 = vadd.f32 %v4435_v41, %v15242_v2  ;;  %v11547_v4 = vunpack.i.l.bf16 %v11546_v46  ;;  %v5447_v54 = vsel %vm19094_vm9, %v5440_v23, 0.0  ;;  %vm19099_vm9 = vcmp.lt.s32.totalorder %v12121_v55, 112 }
 0x6a3   :  { %10797 = vmatmul.msk.bf16.vlgmr.msrb.gmra.mxu3 %vm3338_vm0, %v15314_v16 }
 0x6a4   :  { %5363 = vmatpush.bf16.msrb.mxu3 %v5228_v15 }
 0x6a6   :  { %v4469_v1 = vpop.f32.mrf.mxu3 }
 0x6a7   :  { %v15438_v9 = vadd.f32 %v4469_v1, %v15252_v44  ;;  %v5219_v44 = vsel %vm3345_vm6, %v5188_v26, 0 }
 0x6a8   :  { %v4453_v0 = vpop.f32.mrf.mxu2  ;;  %v4415_v6 = vpop.f32.mrf.mxu0 }
 0x6a9   :  { %v15441_v61 = vadd.f32 %v4453_v0, %v15255_v60  ;;  %v15444_v2 = vadd.f32 %v4415_v6, %v15258_v25  ;;  %v4438_v21 = vpop.f32.mrf.mxu1  ;;  %v11558_v25 = vunpack.i.h.bf16 %v11556_v62  ;;  %v15459_v18 = vpop.permute.xlu1 %11560 }
 0x6aa   :  { %v15447_v8 = vadd.f32 %v4438_v21, %v15261_v11  ;;  %v11548_v11 = vunpack.i.h.bf16 %v11546_v46  ;;  %v11563_v12 = vunpack.i.h.bf16 %v15459_v18 }
 0x6ab   :  { %10791 = vmatmul.msk.bf16.vlgmr.msrb.gmra.mxu0 %vm3338_vm0, %v15314_v16 }
 0x6ac   :  { %10794 = vmatmul.msk.bf16.gmra.mxu1 %vm3338_vm0, %v15358_v3  ;;  %5309 = vmatpush.bf16.msrb.mxu0 %v5219_v44  ;;  %v5439_v22 = vsel %vm19092_vm4, %v11543_v58, %v11548_v11 }
 0x6ad   :  { %10796 = vmatmul.msk.bf16.gmra.mxu2 %vm3338_vm0, %v15358_v3 }
 0x6ae   :  { %v4471_v60 = vpop.f32.mrf.mxu3 }
 0x6af   :  { %v15457_v59 = vadd.f32 %v4471_v60, %v15275_v31  ;;  %v5441_v31 = vsel %vm19091_vm15, %v11558_v25, %v11543_v58  ;;  %vm19097_vm15 = vmmov %vm19096_vm5  ;;  %v15506_v60 = vpop.permute.xlu0 %11550 }
 0x6b0   :  { %v4456_v16 = vpop.f32.mrf.mxu2  ;;  %v4417_v43 = vpop.f32.mrf.mxu0  ;;  %v5455_v41 = vsel %vm19095_vm2, %v5441_v31, 0.0  ;;  %v5456_v29 = vsel %vm19097_vm15, %v5439_v22, 0.0  ;;  %vm19100_vm2 = vmmov %vm19099_vm9 }
 0x6b1   :  { %v15462_v34 = vadd.f32 %v4456_v16, %v15281_v37  ;;  %v15465_v32 = vadd.f32 %v4417_v43, %v15284_v53  ;;  %v4440_v17 = vpop.f32.mrf.mxu1  ;;  %v5438_v37 = vsel %vm19093_vm7, %v11542_v24, %v11547_v4  ;;  %v11562_v53 = vunpack.i.l.bf16 %v15459_v18  ;;  %vm19098_vm7 = vmmov %vm19092_vm4 }
 0x6b2   :  { %v5448_v5 = vsel %vm19096_vm5, %v5438_v37, 0.0  ;;  %v5437_v46 = vsel %vm19098_vm7, %v11548_v11, %v11563_v12  ;;  %v5467_v6 = vpack.c.bf16 %v5455_v41, %v5447_v54  ;;  %v11553_v24 = vunpack.i.h.bf16 %v15506_v60  ;;  %vm19101_vm5 = vmmov %vm19092_vm4  ;;  %v10801_v54 = vld [vmem:[%s18891_s2 + $0x5c] sm:$0x3] }
 0x6b3   :  { %10798 = vmatmul.msk.bf16.gmra.mxu3 %vm3338_vm0, %v15358_v3  ;;  %v5436_v1 = vsel %vm19092_vm4, %v11547_v4, %v11562_v53  ;;  %v5468_v44 = vpack.c.bf16 %v5456_v29, %v5448_v5  ;;  %v5457_v58 = vsel %vm19100_vm2, %v5437_v46, 0.0  ;;  %v11552_v16 = vunpack.i.l.bf16 %v15506_v60  ;;  %vm19102_vm15 = vmmov %vm19092_vm4 }
 0x6b4   :  { %v5449_v11 = vsel %vm19099_vm9, %v5436_v1, 0.0  ;;  %v5443_v22 = vsel %vm19102_vm15, %v11553_v24, %v11558_v25  ;;  %v5197_v5 = vunpack.c.l.b16 %v10801_v54  ;;  %vm19103_vm7 = vmmov %vm19092_vm4 }
 0x6b5   :  { %v5469_v43 = vpack.c.bf16 %v5457_v58, %v5449_v11  ;;  %v5442_v31 = vsel %vm19101_vm5, %v11552_v16, %v11557_v13  ;;  %vm19104_vm9 = vmmov %vm19092_vm4 }
 0x6b6   :  { %v4474_v7 = vpop.f32.mrf.mxu3  ;;  %v5446_v25 = vsel %vm19092_vm4, %v5442_v31, 0.0  ;;  %vm19105_vm2 = vmmov %vm19092_vm4  ;;  %vm19108_vm4 = vcmp.lt.s32.totalorder %v12148_v19, 112 }
 0x6b7   :  { %v15484_v15 = vadd.f32 %v4474_v7, %v15301_v42  ;;  %v15501_v42 = vld [vmem:[%s18891_s2 + $0x54] sm:$0xff]  ;;  %v5498_v13 = vsel %vm3345_vm6, %v5469_v43, 0  ;;  %v11566_v11 = vpop.permute.xlu0 %11565  ;;  %vm19106_vm5 = vmmov %vm19105_vm2 }
 0x6b8   :  { %v4458_v26 = vpop.f32.mrf.mxu2  ;;  %v4420_v0 = vpop.f32.mrf.mxu0  ;;  %vm19107_vm15 = vmmov %vm19105_vm2 }
 0x6b9   :  { %v15504_v21 = vadd.f32 %v4420_v0, %v15318_v47  ;;  %v4668_v62 = vpop.f32.mrf.mxu1  ;;  %v5492_v47 = vsel %vm3345_vm6, %v5467_v6, 0  ;;  %v15552_v0 = vpack.c.b16 %v5197_v5, %v5197_v5 }
 0x6ba   :  { %v15509_v4 = vadd.f32 %v4668_v62, %v15321_v49  ;;  %v5495_v49 = vsel %vm3345_vm6, %v5468_v44, 0 }
 0x6bb   :  { %10792 = vmatmul.msk.bf16.gmra.mxu0 %vm3338_vm0, %v15358_v3 }
 0x6bc   :  { %10808 = vmatmul.msk.bf16.vlgmr.msra.gmra.mxu1 %vm3338_vm0, %v15501_v42 }
 0x6bd   :  { %10810 = vmatmul.msk.bf16.vlgmr.msra.gmra.mxu2 %vm3338_vm0, %v15501_v42  ;;  %5537 = vmatpush.bf16.msra.mxu1 %v5492_v47  ;;  %v11576_v47 = vpop.permute.xlu1 %11575 }
 0x6be   :  { %v4476_v3 = vpop.f32.mrf.mxu3  ;;  %5555 = vmatpush.bf16.msra.mxu2 %v5495_v49  ;;  %v11571_v49 = vpop.permute.xlu2 %11570  ;;  %v11578_v43 = vunpack.i.h.bf16 %v11576_v47 }
 0x6bf   :  { %v11567_v3 = vunpack.i.l.bf16 %v11566_v11 }
 0x6c0   :  { %v4686_v17 = vpop.f32.mrf.mxu2  ;;  %v4422_v23 = vpop.f32.mrf.mxu0 }
 0x6c1   :  { %v15534_v37 = vadd.f32 %v4686_v17, %v15340_v40  ;;  %v4670_v7 = vpop.f32.mrf.mxu1  ;;  %v5454_v40 = vsel %vm19103_vm7, %v5443_v22, 0.0  ;;  %v11573_v22 = vunpack.i.h.bf16 %v11571_v49  ;;  %vm19109_vm7 = vmmov %vm19108_vm4 }
 0x6c2   :  { %v15540_v41 = vadd.f32 %v4670_v7, %v15346_v56  ;;  %v5466_v46 = vpack.c.bf16 %v5454_v40, %v5446_v25  ;;  %v11572_v7 = vunpack.i.l.bf16 %v11571_v49 }
 0x6c3   :  { %10812 = vmatmul.msk.bf16.vlgmr.msra.gmra.mxu3 %vm3338_vm0, %v15501_v42 }
 0x6c4   :  { %5573 = vmatpush.bf16.msra.mxu3 %v5498_v13 }
 0x6c6   :  { %v4704_v29 = vpop.f32.mrf.mxu3 }
 0x6c7   :  { %v15550_v1 = vadd.f32 %v4704_v29, %v15356_v50  ;;  %v5489_v50 = vsel %vm3345_vm6, %v5466_v46, 0 }
 0x6c8   :  { %v4688_v56 = vpop.f32.mrf.mxu2  ;;  %v4650_v26 = vpop.f32.mrf.mxu0 }
 0x6c9   :  { %v15555_v6 = vadd.f32 %v4688_v56, %v15361_v14  ;;  %v15558_v62 = vadd.f32 %v4650_v26, %v15364_v63  ;;  %v4673_v44 = vpop.f32.mrf.mxu1  ;;  %v11568_v14 = vunpack.i.h.bf16 %v11566_v11  ;;  %v5444_v11 = vsel %vm19106_vm5, %v11572_v7, %v11552_v16 }
 0x6ca   :  { %v15561_v58 = vadd.f32 %v4673_v44, %v15367_v27  ;;  %v11577_v27 = vunpack.i.l.bf16 %v11576_v47 }
 0x6cb   :  { %10806 = vmatmul.msk.bf16.vlgmr.msra.gmra.mxu0 %vm3338_vm0, %v15501_v42  ;;  %v5433_v25 = vsel %vm19104_vm9, %v11578_v43, %v11568_v14  ;;  %vm19110_vm9 = vcmp.lt.s32.totalorder %v12117_v52, 112 }
 0x6cc   :  { %10809 = vmatmul.msk.bf16.gmra.mxu1 %vm3338_vm0, %v15552_v0  ;;  %5519 = vmatpush.bf16.msra.mxu0 %v5489_v50  ;;  %v5432_v40 = vsel %vm19105_vm2, %v11577_v27, %v11567_v3  ;;  %v5459_v46 = vsel %vm19109_vm7, %v5433_v25, 0.0  ;;  %vm19111_vm2 = vmmov %vm19110_vm9 }
 0x6cd   :  { %10811 = vmatmul.msk.bf16.gmra.mxu2 %vm3338_vm0, %v15552_v0 }
 0x6ce   :  { %v4706_v63 = vpop.f32.mrf.mxu3 }
 0x6cf   :  { %v15571_v17 = vadd.f32 %v4706_v63, %v15377_v48  ;;  %v5430_v48 = vsel %vm19106_vm5, %v11567_v3, %v11572_v7 }
 0x6d0   :  { %v4691_v23 = vpop.f32.mrf.mxu2  ;;  %v4652_v31 = vpop.f32.mrf.mxu0  ;;  %v5452_v26 = vsel %vm19110_vm9, %v5430_v48, 0.0  ;;  %vm19115_vm9 = vmmov %vm19106_vm5 }
 0x6d1   :  { %v15574_v54 = vadd.f32 %v4691_v23, %v15380_v35  ;;  %v15577_v13 = vadd.f32 %v4652_v31, %v15383_v28  ;;  %v4675_v5 = vpop.f32.mrf.mxu1  ;;  %v5431_v35 = vsel %vm19107_vm15, %v11568_v14, %v11573_v22  ;;  %v5451_v28 = vsel %vm19108_vm4, %v5432_v40, 0.0  ;;  %vm19112_vm15 = vmmov %vm19106_vm5 }
 0x6d2   :  { %v5460_v44 = vsel %vm19111_vm2, %v5431_v35, 0.0  ;;  %v5445_v47 = vsel %vm19112_vm15, %v11573_v22, %v11553_v24  ;;  %vm19113_vm4 = vcmp.lt.s32.totalorder %v12107_v45, 112  ;;  %v5434_v5 = vsel %vm19115_vm9, %v11562_v53, %v11577_v27  ;;  %vm19116_vm2 = vmmov %vm19106_vm5 }
 0x6d3   :  { %10813 = vmatmul.msk.bf16.gmra.mxu3 %vm3338_vm0, %v15552_v0  ;;  %v5472_v3 = vpack.c.bf16 %v5460_v44, %v5452_v26  ;;  %v5453_v60 = vsel %vm19113_vm4, %v5444_v11, 0.0  ;;  %vm19114_vm7 = vmmov %vm19113_vm4  ;;  %v5435_v25 = vsel %vm19116_vm2, %v11563_v12, %v11578_v43  ;;  %vm19117_vm5 = vcmp.lt.s32.totalorder %v19018_v57, 112 }
 0x6d4   :  { %v5461_v24 = vsel %vm19114_vm7, %v5445_v47, 0.0  ;;  %v5450_v53 = vsel %vm19117_vm5, %v5434_v5, 0.0  ;;  %vm19118_vm15 = vmmov %vm19117_vm5 }
 0x6d5   :  { %v5473_v31 = vpack.c.bf16 %v5461_v24, %v5453_v60  ;;  %v5458_v18 = vsel %vm19118_vm15, %v5435_v25, 0.0 }
 0x6d6   :  { %v4709_v29 = vpop.f32.mrf.mxu3  ;;  %v5470_v43 = vpack.c.bf16 %v5458_v18, %v5450_v53 }
 0x6d7   :  { %v15594_v56 = vadd.f32 %v4709_v29, %v15398_v10  ;;  %v5471_v10 = vpack.c.bf16 %v5459_v46, %v5451_v28  ;;  %v5510_v29 = vsel %vm3345_vm6, %v5473_v31, 0 }
 0x6d8   :  { %v4693_v50 = vpop.f32.mrf.mxu2  ;;  %v4655_v14 = vpop.f32.mrf.mxu0  ;;  %v5501_v11 = vsel %vm3345_vm6, %v5470_v43, 0 }
 0x6d9   :  { %v15609_v63 = vadd.f32 %v4655_v14, %v15406_v30  ;;  %v4740_v49 = vpop.f32.mrf.mxu1  ;;  %v5504_v30 = vsel %vm3345_vm6, %v5471_v10, 0 }
 0x6da   :  { %v15612_v23 = vadd.f32 %v4740_v49, %v15409_v36  ;;  %v5507_v36 = vsel %vm3345_vm6, %v5472_v3, 0 }
 0x6db   :  { %10807 = vmatmul.msk.bf16.gmra.mxu0 %vm3338_vm0, %v15552_v0 }
 0x6dc   :  { %10816 = vmatmul.msk.bf16.vlgmr.msrb.gmra.mxu1 %vm3338_vm0, %v15501_v42 }
 0x6dd   :  { %10818 = vmatmul.msk.bf16.vlgmr.msrb.gmra.mxu2 %vm3338_vm0, %v15501_v42  ;;  %5609 = vmatpush.bf16.msrb.mxu1 %v5504_v30 }
 0x6de   :  { %v4711_v16 = vpop.f32.mrf.mxu3  ;;  %5627 = vmatpush.bf16.msrb.mxu2 %v5507_v36 }
 0x6e0   :  { %v4758_v22 = vpop.f32.mrf.mxu2  ;;  %v4657_v7 = vpop.f32.mrf.mxu0 }
 0x6e1   :  { %v15635_v40 = vadd.f32 %v4758_v22, %v15428_v38  ;;  %v4742_v48 = vpop.f32.mrf.mxu1 }
 0x6e2   :  { %v15638_v35 = vadd.f32 %v4742_v48, %v15432_v20 }
 0x6e3   :  { %10820 = vmatmul.msk.bf16.vlgmr.msrb.gmra.mxu3 %vm3338_vm0, %v15501_v42 }
 0x6e4   :  { %5645 = vmatpush.bf16.msrb.mxu3 %v5510_v29 }
 0x6e6   :  { %v4776_v12 = vpop.f32.mrf.mxu3 }
 0x6e7   :  { %v15648_v38 = vadd.f32 %v4776_v12, %v15438_v9 }
 0x6e8   :  { %v4760_v27 = vpop.f32.mrf.mxu2  ;;  %v4722_v20 = vpop.f32.mrf.mxu0 }
 0x6e9   :  { %v15651_v28 = vadd.f32 %v4760_v27, %v15441_v61  ;;  %v15654_v46 = vadd.f32 %v4722_v20, %v15444_v2  ;;  %v4745_v26 = vpop.f32.mrf.mxu1 }
 0x6ea   :  { %v15657_v44 = vadd.f32 %v4745_v26, %v15447_v8 }
 0x6eb   :  { %10814 = vmatmul.msk.bf16.vlgmr.msrb.gmra.mxu0 %vm3338_vm0, %v15501_v42 }
 0x6ec   :  { %10817 = vmatmul.msk.bf16.gmra.mxu1 %vm3338_vm0, %v15552_v0  ;;  %5591 = vmatpush.bf16.msrb.mxu0 %v5501_v11 }
 0x6ed   :  { %10819 = vmatmul.msk.bf16.gmra.mxu2 %vm3338_vm0, %v15552_v0 }
 0x6ee   :  { %v4778_v9 = vpop.f32.mrf.mxu3 }
 0x6ef   :  { %v15667_v61 = vadd.f32 %v4778_v9, %v15457_v59  ;;  %v11066_v59 = vld [vmem:[%s18891_s2 + $0x60] sm:$0xff] }
 0x6f0   :  { %v4763_v2 = vpop.f32.mrf.mxu2  ;;  %v4724_v47 = vpop.f32.mrf.mxu0 }
 0x6f1   :  { %v15670_v8 = vadd.f32 %v4763_v2, %v15462_v34  ;;  %v15673_v42 = vadd.f32 %v4724_v47, %v15465_v32  ;;  %v4747_v50 = vpop.f32.mrf.mxu1 }
 0x6f3   :  { %10821 = vmatmul.msk.bf16.gmra.mxu3 %vm3338_vm0, %v15552_v0 }
 0x6f6   :  { %v4781_v14 = vpop.f32.mrf.mxu3 }
 0x6f7   :  { %v15678_v10 = vadd.f32 %v4781_v14, %v15484_v15 }
 0x6f8   :  { %v4765_v49 = vpop.f32.mrf.mxu2  ;;  %v4727_v3 = vpop.f32.mrf.mxu0 }
 0x6f9   :  { %v15684_v34 = vadd.f32 %v4727_v3, %v15504_v21  ;;  %v4950_v60 = vpop.f32.mrf.mxu1  ;;  %v10824_v21 = vld [vmem:[%s18891_s2 + $0x68] sm:$0x3] }
 0x6fa   :  { %v15687_v32 = vadd.f32 %v4950_v60, %v15509_v4  ;;  %v5479_v4 = vunpack.c.l.b16 %v10824_v21 }
 0x6fb   :  { %10815 = vmatmul.msk.bf16.gmra.mxu0 %vm3338_vm0, %v15552_v0 }
 0x6fc   :  { %10831 = vmatmul.msk.bf16.vlgmr.msra.gmra.mxu1 %vm3338_vm0, %v11066_v59  ;;  %v5481_v5 = vpack.c.b16 %v5479_v4, %v5479_v4 }
 0x6fd   :  { %10833 = vmatmul.msk.bf16.vlgmr.msra.gmra.mxu2 %vm3338_vm0, %v11066_v59 }
 0x6fe   :  { %v4783_v15 = vpop.f32.mrf.mxu3 }
 0x700   :  { %v4968_v24 = vpop.f32.mrf.mxu2  ;;  %v4729_v30 = vpop.f32.mrf.mxu0 }
 0x701   :  { %v15694_v36 = vadd.f32 %v4968_v24, %v15534_v37  ;;  %v15696_v16 = vpop.f32.mrf.mxu1 }
 0x703   :  { %10835 = vmatmul.msk.bf16.vlgmr.msra.gmra.mxu3 %vm3338_vm0, %v11066_v59 }
 0x706   :  { %v4986_v0 = vpop.f32.mrf.mxu3 }
 0x707   :  { %v5070_v31 = vadd.f32 %v4986_v0, %v15550_v1 }
 0x708   :  { %v15703_v22 = vpop.f32.mrf.mxu2  ;;  %v4932_v7 = vpop.f32.mrf.mxu0 }
 0x709   :  { %v5067_v25 = vadd.f32 %v4932_v7, %v15558_v62  ;;  %v4955_v37 = vpop.f32.mrf.mxu1 }
 0x70a   :  { %v5084_v48 = vadd.f32 %v4955_v37, %v15561_v58 }
 0x70b   :  { %10829 = vmatmul.msk.bf16.vlgmr.msra.gmra.mxu0 %vm3338_vm0, %v11066_v59 }
 0x70c   :  { %10832 = vmatmul.msk.bf16.gmra.mxu1 %vm3338_vm0, %v5481_v5 }
 0x70d   :  { %10834 = vmatmul.msk.bf16.gmra.mxu2 %vm3338_vm0, %v5481_v5 }
 0x70e   :  { %v15710_v29 = vpop.f32.mrf.mxu3 }
 0x710   :  { %v4973_v53 = vpop.f32.mrf.mxu2  ;;  %v15712_v18 = vpop.f32.mrf.mxu0 }
 0x711   :  { %v5085_v1 = vadd.f32 %v4973_v53, %v15574_v54  ;;  %v4957_v12 = vpop.f32.mrf.mxu1 }
 0x713   :  { %10836 = vmatmul.msk.bf16.gmra.mxu3 %vm3338_vm0, %v5481_v5 }
 0x716   :  { %v4991_v62 = vpop.f32.mrf.mxu3 }
 0x717   :  { %v5086_v43 = vadd.f32 %v4991_v62, %v15594_v56 }
 0x718   :  { %v4975_v58 = vpop.f32.mrf.mxu2  ;;  %v4937_v27 = vpop.f32.mrf.mxu0 }
 0x719   :  { %v5083_v20 = vadd.f32 %v4937_v27, %v15609_v63  ;;  %v5022_v26 = vpop.f32.mrf.mxu1 }
 0x71a   :  { %v5072_v11 = vadd.f32 %v5022_v26, %v15612_v23 }
 0x71b   :  { %10830 = vmatmul.msk.bf16.gmra.mxu0 %vm3338_vm0, %v5481_v5 }
 0x71c   :  { %10839 = vmatmul.msk.bf16.vlgmr.msrb.gmra.mxu1 %vm3338_vm0, %v11066_v59 }
 0x71d   :  { %10841 = vmatmul.msk.bf16.vlgmr.msrb.gmra.mxu2 %vm3338_vm0, %v11066_v59 }
 0x71e   :  { %v4993_v54 = vpop.f32.mrf.mxu3 }
 0x720   :  { %v5040_v9 = vpop.f32.mrf.mxu2  ;;  %v4939_v2 = vpop.f32.mrf.mxu0 }
 0x721   :  { %v5073_v47 = vadd.f32 %v5040_v9, %v15635_v40  ;;  %v15723_v50 = vpop.f32.mrf.mxu1 }
 0x723   :  { %10843 = vmatmul.msk.bf16.vlgmr.msrb.gmra.mxu3 %vm3338_vm0, %v11066_v59 }
 0x726   :  { %v5058_v56 = vpop.f32.mrf.mxu3 }
 0x727   :  { %v5074_v63 = vadd.f32 %v5058_v56, %v15648_v38 }
 0x728   :  { %v15727_v14 = vpop.f32.mrf.mxu2  ;;  %v5004_v23 = vpop.f32.mrf.mxu0 }
 0x729   :  { %v5071_v49 = vadd.f32 %v5004_v23, %v15654_v46  ;;  %v5027_v3 = vpop.f32.mrf.mxu1 }
 0x72a   :  { %v5088_v60 = vadd.f32 %v5027_v3, %v15657_v44 }
 0x72b   :  { %10837 = vmatmul.msk.bf16.vlgmr.msrb.gmra.mxu0 %vm3338_vm0, %v11066_v59 }
 0x72c   :  { %10840 = vmatmul.msk.bf16.gmra.mxu1 %vm3338_vm0, %v5481_v5 }
 0x72d   :  { %10842 = vmatmul.msk.bf16.gmra.mxu2 %vm3338_vm0, %v5481_v5 }
 0x72e   :  { %v15734_v40 = vpop.f32.mrf.mxu3 }
 0x730   :  { %v5045_v15 = vpop.f32.mrf.mxu2  ;;  %v15736_v24 = vpop.f32.mrf.mxu0 }
 0x731   :  { %v5089_v38 = vadd.f32 %v5045_v15, %v15670_v8  ;;  %v5029_v30 = vpop.f32.mrf.mxu1 }
 0x733   :  { %10844 = vmatmul.msk.bf16.gmra.mxu3 %vm3338_vm0, %v5481_v5 }
 0x736   :  { %v5063_v46 = vpop.f32.mrf.mxu3 }
 0x737   :  { %v5090_v21 = vadd.f32 %v5063_v46, %v15678_v10 }
 0x738   :  { %v5047_v44 = vpop.f32.mrf.mxu2  ;;  %v5009_v4 = vpop.f32.mrf.mxu0 }
 0x739   :  { %v15742_v59 = vadd.f32 %v5009_v4, %v15684_v34  ;;  %v5257_v0 = vpop.f32.mrf.mxu1 }
 0x73a   :  { %v5375_v7 = vadd.f32 %v5257_v0, %v15687_v32 }
 0x73b   :  { %10838 = vmatmul.msk.bf16.gmra.mxu0 %vm3338_vm0, %v5481_v5 }
 0x73e   :  { %v5065_v37 = vpop.f32.mrf.mxu3 }
 0x740   :  { %v5275_v53 = vpop.f32.mrf.mxu2  ;;  %v5011_v12 = vpop.f32.mrf.mxu0 }
 0x741   :  { %v5376_v8 = vadd.f32 %v5275_v53, %v15694_v36  ;;  %v15747_v62 = vpop.f32.mrf.mxu1 }
 0x746   :  { %v5293_v58 = vpop.f32.mrf.mxu3 }
 0x747   :  { %v5377_v27 = vadd.f32 %v5293_v58, %v5070_v31 }
 0x748   :  { %v15749_v10 = vpop.f32.mrf.mxu2  ;;  %v5239_v26 = vpop.f32.mrf.mxu0 }
 0x749   :  { %v5374_v54 = vadd.f32 %v5239_v26, %v5067_v25  ;;  %v5262_v34 = vpop.f32.mrf.mxu1 }
 0x74a   :  { %v15751_v9 = vadd.f32 %v5262_v34, %v5084_v48 }
 0x74e   :  { %v15753_v2 = vpop.f32.mrf.mxu3 }
 0x750   :  { %v5280_v32 = vpop.f32.mrf.mxu2  ;;  %v5241_v5 = vpop.f32.mrf.mxu0 }
 0x751   :  { %v15755_v56 = vadd.f32 %v5280_v32, %v5085_v1  ;;  %v5264_v23 = vpop.f32.mrf.mxu1 }
 0x756   :  { %v5298_v3 = vpop.f32.mrf.mxu3 }
 0x757   :  { %v15757_v36 = vadd.f32 %v5298_v3, %v5086_v43 }
 0x758   :  { %v5282_v15 = vpop.f32.mrf.mxu2  ;;  %v5244_v30 = vpop.f32.mrf.mxu0 }
 0x759   :  { %v15759_v31 = vadd.f32 %v5244_v30, %v5083_v20  ;;  %v5329_v46 = vpop.f32.mrf.mxu1 }
 0x75a   :  { %v5379_v44 = vadd.f32 %v5329_v46, %v5072_v11 }
 0x75e   :  { %v5300_v25 = vpop.f32.mrf.mxu3 }
 0x760   :  { %v5347_v4 = vpop.f32.mrf.mxu2  ;;  %v5246_v48 = vpop.f32.mrf.mxu0 }
 0x761   :  { %v5380_v0 = vadd.f32 %v5347_v4, %v5073_v47  ;;  %v15761_v37 = vpop.f32.mrf.mxu1 }
 0x766   :  { %v5365_v53 = vpop.f32.mrf.mxu3 }
 0x767   :  { %v5381_v12 = vadd.f32 %v5365_v53, %v5074_v63 }
 0x768   :  { %v15763_v1 = vpop.f32.mrf.mxu2  ;;  %v5311_v58 = vpop.f32.mrf.mxu0 }
 0x769   :  { %v15765_v26 = vadd.f32 %v5311_v58, %v5071_v49  ;;  %v5334_v43 = vpop.f32.mrf.mxu1 }
 0x76a   :  { %v15767_v34 = vadd.f32 %v5334_v43, %v5088_v60 }
 0x76e   :  { %v15769_v20 = vpop.f32.mrf.mxu3 }
 0x770   :  { %v5352_v32 = vpop.f32.mrf.mxu2  ;;  %v15771_v11 = vpop.f32.mrf.mxu0 }
 0x771   :  { %v15773_v23 = vadd.f32 %v5352_v32, %v5089_v38  ;;  %v5336_v47 = vpop.f32.mrf.mxu1 }
 0x773   :  { %19119 = vst [vmem:[#allocation12_spill] sm:$0xff] %v15773_v23 }
 0x776   :  { %v5370_v3 = vpop.f32.mrf.mxu3 }
 0x777   :  { %v15775_v15 = vadd.f32 %v5370_v3, %v5090_v21 }
 0x778   :  { %v5354_v63 = vpop.f32.mrf.mxu2  ;;  %v15777_v30 = vpop.f32.mrf.mxu0 }
 0x779   :  { %19120 = vst [vmem:[#allocation13_spill] sm:$0xff] %v15775_v15  ;;  %v5539_v46 = vpop.f32.mrf.mxu1 }
 0x77a   :  { %v15779_v49 = vadd.f32 %v5539_v46, %v5375_v7 }
 0x77c   :  { %19121 = vst [vmem:[#allocation15_spill] sm:$0xff] %v15779_v49 }
 0x77e   :  { %v5372_v25 = vpop.f32.mrf.mxu3 }
 0x780   :  { %v5557_v60 = vpop.f32.mrf.mxu2  ;;  %v5318_v4 = vpop.f32.mrf.mxu0 }
 0x781   :  { %v15781_v48 = vadd.f32 %v5557_v60, %v5376_v8  ;;  %v5541_v53 = vpop.f32.mrf.mxu1 }
 0x783   :  { %19122 = vst [vmem:[#allocation14_spill] sm:$0xff] %v15781_v48 }
 0x786   :  { %v5575_v58 = vpop.f32.mrf.mxu3 }
 0x787   :  { %v15783_v43 = vadd.f32 %v5575_v58, %v5377_v27  ;;  %v5075_v27 = vadd.f32 %v15712_v18, %v15577_v13  ;;  %v5077_v13 = vadd.f32 %v15703_v22, %v15555_v6 }
 0x788   :  { %v5559_v38 = vpop.f32.mrf.mxu2  ;;  %v5521_v32 = vpop.f32.mrf.mxu0 }
 0x789   :  { %19123 = vst [vmem:[#allocation16_spill] sm:$0xff] %v15783_v43  ;;  %v15785_v47 = vadd.f32 %v5521_v32, %v5374_v54  ;;  %v5544_v21 = vpop.f32.mrf.mxu1  ;;  %v5076_v54 = vadd.f32 %v15696_v16, %v15540_v41  ;;  %v5382_v58 = vadd.f32 %v5241_v5, %v5075_v27  ;;  %v72_v32 = vand.u32 3, %v12094_v33 }
 0x78a   :  { %v74_v41 = vand.u32 3, %v12101_v39  ;;  %v5080_v5 = vadd.f32 %v15723_v50, %v15638_v35  ;;  %v5079_v35 = vadd.f32 %v15736_v24, %v15673_v42 }
 0x78b   :  { %vm15807_vm4 = vcmp.eq.s32.totalorder %v72_v32, 0 }
 0x78c   :  { %vm15840_vm9 = vcmp.eq.s32.totalorder %v74_v41, 0 }
 0x78e   :  { %v5577_v3 = vpop.f32.mrf.mxu3 }
 0x790   :  { %v5562_v63 = vpop.f32.mrf.mxu2  ;;  %v5523_v15 = vpop.f32.mrf.mxu0 }
 0x791   :  { %v5546_v23 = vpop.f32.mrf.mxu1  ;;  %v15797_v49 = vadd.f32 %v5523_v15, %v5382_v58  ;;  %v5081_v15 = vadd.f32 %v15727_v14, %v15651_v28 }
 0x792   :  { %v5383_v23 = vadd.f32 %v15747_v62, %v5076_v54  ;;  %v5078_v62 = vadd.f32 %v15710_v29, %v15571_v17  ;;  %v78_v54 = vand.u32 3, %v12117_v52 }
 0x793   :  { %v5710_v6 = vsel %vm15807_vm4, %v15797_v49, 0.0  ;;  %v5388_v58 = vadd.f32 %v15763_v1, %v5081_v15 }
 0x794   :  { %v15804_v18 = vadd.f32 %v5541_v53, %v5383_v23  ;;  %vm15886_vm15 = vcmp.eq.s32.totalorder %v78_v54, 0 }
 0x796   :  { %v15787_v7 = vpop.f32.mrf.mxu3 }
 0x798   :  { %v5564_v46 = vpop.f32.mrf.mxu2  ;;  %v5526_v25 = vpop.f32.mrf.mxu0 }
 0x799   :  { %v5611_v4 = vpop.f32.mrf.mxu1  ;;  %v15837_v28 = vadd.f32 %v5526_v25, %v15759_v31  ;;  %v77_v31 = vand.u32 3, %v12148_v19 }
 0x79a   :  { %v15789_v8 = vadd.f32 %v5611_v4, %v5379_v44  ;;  %v73_v4 = vand.u32 3, %v12115_v51 }
 0x79b   :  { %vm15880_vm5 = vcmp.eq.s32.totalorder %v77_v31, 0 }
 0x79c   :  { %vm15823_vm7 = vcmp.eq.s32.totalorder %v73_v4, 0 }
 0x79d   :  { %v5711_v29 = vsel %vm15823_vm7, %v15804_v18, 0.0 }
 0x79e   :  { %v5582_v60 = vpop.f32.mrf.mxu3  ;;  %v5773_v25 = vmul.f32 %v5711_v29, %v15804_v18  ;;  %v5735_v27 = vadd.f32 %v5711_v29, %v5710_v6 }
 0x79f   :  { %v76_v60 = vand.u32 3, %v19018_v57 }
 0x7a0   :  { %v5629_v43 = vpop.f32.mrf.mxu2  ;;  %v5528_v48 = vpop.f32.mrf.mxu0 }
 0x7a1   :  { %v15799_v46 = vadd.f32 %v5629_v43, %v5380_v0  ;;  %v5613_v44 = vpop.f32.mrf.mxu1  ;;  %v5384_v0 = vadd.f32 %v15749_v10, %v5077_v13  ;;  %v5082_v48 = vadd.f32 %v15734_v40, %v15667_v61  ;;  %v5385_v61 = vadd.f32 %v15753_v2, %v5078_v62 }
 0x7a2   :  { %v75_v40 = vand.u32 3, %v12121_v55  ;;  %v5772_v10 = vmul.f32 %v5710_v6, %v15797_v49  ;;  %v15848_v43 = vadd.f32 %v5544_v21, %v15751_v9  ;;  %v15861_v9 = vadd.f32 %v5562_v63, %v15755_v56 }
 0x7a3   :  { %v15834_v50 = vadd.f32 %v5559_v38, %v5384_v0  ;;  %v15863_v21 = vadd.f32 %v5577_v3, %v5385_v61  ;;  %v5389_v32 = vadd.f32 %v15769_v20, %v5082_v48  ;;  %v5386_v13 = vadd.f32 %v15771_v11, %v5079_v35 }
 0x7a4   :  { %vm15870_vm2 = vcmp.eq.s32.totalorder %v75_v40, 0  ;;  %v5797_v4 = vadd.f32 %v5773_v25, %v5772_v10  ;;  %v5394_v56 = vadd.f32 %v15777_v30, %v15742_v59  ;;  %v5719_v3 = vsel %vm15823_vm7, %v15848_v43, 0.0 }
 0x7a5   :  { %v5720_v59 = vsel %vm15840_vm9, %v15861_v9, 0.0  ;;  %v5713_v11 = vsel %vm15870_vm2, %v15863_v21, 0.0  ;;  %vm15898_vm3 = vcmp.eq.s32.totalorder %v76_v60, 0  ;;  %v5745_v6 = vsel %vm19138_vm8, %v5719_v3, 0.0  ;;  %vm19140_vm8 = vmmov %vm19139_vm1 }
 0x7a6   :  { %v5647_v22 = vpop.f32.mrf.mxu3  ;;  %v15907_v61 = vadd.f32 %v15787_v7, %v15757_v36  ;;  %v5775_v31 = vmul.f32 %v5713_v11, %v15863_v21 }
 0x7a7   :  { %v15827_v17 = vadd.f32 %v5647_v22, %v5381_v12  ;;  %v5387_v12 = vadd.f32 %v15761_v37, %v5080_v5  ;;  %v5712_v37 = vsel %vm15840_vm9, %v15834_v50, 0.0  ;;  %v5781_v22 = vmul.f32 %v5719_v3, %v15848_v43 }
 0x7a8   :  { %v5631_v42 = vpop.f32.mrf.mxu2  ;;  %v5593_v24 = vpop.f32.mrf.mxu0  ;;  %v5774_v20 = vmul.f32 %v5712_v37, %v15834_v50  ;;  %v5736_v41 = vadd.f32 %v5735_v27, %v5712_v37 }
 0x7a9   :  { %v15852_v38 = vadd.f32 %v5593_v24, %v15765_v26  ;;  %v5616_v2 = vpop.f32.mrf.mxu1  ;;  %v5718_v26 = vsel %vm15807_vm4, %v15837_v28, 0.0  ;;  %v15896_v30 = vadd.f32 %v5613_v44, %v5387_v12  ;;  %v15909_v40 = vadd.f32 %v5631_v42, %v5388_v58 }
 0x7aa   :  { %v5780_v62 = vmul.f32 %v5718_v26, %v15837_v28  ;;  %v5798_v15 = vadd.f32 %v5797_v4, %v5774_v20  ;;  %v5744_v48 = vsel %vm19139_vm1, %v5718_v26, 0.0  ;;  %v79_v24 = vand.u32 3, %v12107_v45 }
 0x7ab   :  { %v5782_v12 = vmul.f32 %v5720_v59, %v15861_v9  ;;  %v5737_v27 = vadd.f32 %v5736_v41, %v5713_v11  ;;  %v5746_v60 = vadd.f32 %v5745_v6, %v5744_v48  ;;  %v5715_v36 = vsel %vm15880_vm5, %v15896_v30, 0.0 }
 0x7ac   :  { %v5806_v25 = vsel %vm19140_vm8, %v5780_v62, 0.0  ;;  %v5807_v54 = vsel %vm19139_vm1, %v5781_v22, 0.0  ;;  %v5799_v58 = vadd.f32 %v5798_v15, %v5775_v31  ;;  %v5721_v4 = vsel %vm15870_vm2, %v15907_v61, 0.0 }
 0x7ad   :  { %vm15930_vm8 = vcmp.eq.s32.totalorder %v79_v24, 0  ;;  %v5777_v41 = vmul.f32 %v5715_v36, %v15896_v30  ;;  %v5809_v6 = vsel %vm19139_vm1, %v5782_v12, 0.0  ;;  %v15941_v15 = vadd.f32 %v5616_v2, %v15767_v34 }
 0x7ae   :  { %v5649_v1 = vpop.f32.mrf.mxu3 }
 0x7af   :  { %v15920_v7 = vadd.f32 %v5649_v1, %v5389_v32  ;;  %v5716_v32 = vsel %vm15886_vm15, %v15909_v40, 0.0  ;;  %v5747_v1 = vsel %vm19143_vm12, %v5720_v59, 0.0  ;;  %vm19145_vm12 = vmmov %vm19139_vm1 }
 0x7b0   :  { %v5634_v35 = vpop.f32.mrf.mxu2  ;;  %v5595_v29 = vpop.f32.mrf.mxu0  ;;  %v5748_v22 = vadd.f32 %v5747_v1, %v5746_v60  ;;  %v5778_v59 = vmul.f32 %v5716_v32, %v15909_v40  ;;  %v5749_v34 = vsel %vm19145_vm12, %v5721_v4, 0.0  ;;  %vm19148_vm12 = vmmov %vm19139_vm1 }
 0x7b1   :  { %v15911_v44 = vadd.f32 %v5595_v29, %v5386_v13  ;;  %v5618_v10 = vpop.f32.mrf.mxu1  ;;  %v5808_v13 = vadd.f32 %v5807_v54, %v5806_v25  ;;  %v5717_v48 = vsel %vm15930_vm8, %v15920_v7, 0.0  ;;  %v5783_v29 = vmul.f32 %v5721_v4, %v15907_v61 }
 0x7b2   :  { %v5779_v60 = vmul.f32 %v5717_v48, %v15920_v7 }
 0x7b3   :  { %v5714_v42 = vsel %vm15898_vm3, %v15911_v44, 0.0 }
 0x7b4   :  { %v5738_v37 = vadd.f32 %v5737_v27, %v5714_v42  ;;  %v5776_v26 = vmul.f32 %v5714_v42, %v15911_v44  ;;  %v5810_v27 = vadd.f32 %v5809_v6, %v5808_v13  ;;  %v5750_v13 = vadd.f32 %v5749_v34, %v5748_v22 }
 0x7b6   :  { %v5652_v3 = vpop.f32.mrf.mxu3  ;;  %v5739_v62 = vadd.f32 %v5738_v37, %v5715_v36  ;;  %v5800_v11 = vadd.f32 %v5799_v58, %v5776_v26  ;;  %v19144_v36 = vld [vmem:[#allocation12_spill] sm:$0xff]  ;;  %v5723_v37 = vsel %vm15880_vm5, %v15941_v15, 0.0  ;;  %v19146_v26 = vld [vmem:[#allocation13_spill] sm:$0xff] }
 0x7b7   :  { %v15949_v42 = vadd.f32 %v5634_v35, %v19144_v36  ;;  %v15959_v58 = vadd.f32 %v5652_v3, %v19146_v26  ;;  %v5753_v6 = vsel %vm19148_vm12, %v5723_v37, 0.0  ;;  %vm19151_vm12 = vmmov %vm19139_vm1 }
 0x7b8   :  { %v5598_v10 = vpop.f32.mrf.mxu0  ;;  %v5636_v24 = vpop.f32.mrf.mxu2  ;;  %v5740_v31 = vadd.f32 %v5739_v62, %v5716_v32  ;;  %v5801_v25 = vadd.f32 %v5800_v11, %v5777_v41 }
 0x7b9   :  { %v15951_v12 = vadd.f32 %v5598_v10, %v5394_v56  ;;  %v5811_v56 = vsel %vm19139_vm1, %v5783_v29, 0.0  ;;  %v5724_v41 = vsel %vm15886_vm15, %v15949_v42, 0.0  ;;  %v5725_v29 = vsel %vm15930_vm8, %v15959_v58, 0.0 }
 0x7ba   :  { %v5741_v2 = vadd.f32 %v5740_v31, %v5717_v48  ;;  %v5802_v54 = vadd.f32 %v5801_v25, %v5778_v59  ;;  %v5812_v11 = vadd.f32 %v5811_v56, %v5810_v27  ;;  %v5785_v48 = vmul.f32 %v5723_v37, %v15941_v15  ;;  %v5685_v56 = vld [vmem:[%s18896_s7 + $0x10] sm:$0xf] }
 0x7bb   :  { %v5722_v35 = vsel %vm15898_vm3, %v15951_v12, 0.0  ;;  %v5786_v36 = vmul.f32 %v5724_v41, %v15949_v42  ;;  %v5757_v27 = vsel %vm19139_vm1, %v5725_v29, 0.0 }
 0x7bc   :  { %v5751_v4 = vsel %vm19147_vm10, %v5722_v35, 0.0  ;;  %v5784_v32 = vmul.f32 %v5722_v35, %v15951_v12  ;;  %5742 = vadd.xlane.f32.xlu0 %v5741_v2  ;;  %v5803_v1 = vadd.f32 %v5802_v54, %v5779_v60  ;;  %vm19150_vm10 = vmmov %vm19139_vm1  ;;  %v5815_v34 = vsel %vm19151_vm12, %v5785_v48, 0.0 }
 0x7bd   :  { %v5752_v62 = vadd.f32 %v5751_v4, %v5750_v13  ;;  %v5755_v59 = vsel %vm19150_vm10, %v5724_v41, 0.0  ;;  %v5787_v54 = vmul.f32 %v5725_v29, %v15959_v58  ;;  %v5682_v4 = vld [vmem:[%s18895_s6 + $0x10] sm:$0xf] }
 0x7be   :  { %v5654_v3 = vpop.f32.mrf.mxu3  ;;  %v5813_v22 = vsel %vm19149_vm14, %v5784_v32, 0.0  ;;  %5804 = vadd.xlane.f32.xlu1 %v5803_v1  ;;  %vm19152_vm14 = vmmov %vm19139_vm1  ;;  %v5702_v32 = vsel %vm15807_vm4, %v15785_v47, 0.0  ;;  %v19154_v1 = vld [vmem:[#allocation15_spill] sm:$0xff] }
 0x7bf   :  { %v5754_v10 = vadd.f32 %v5753_v6, %v5752_v62  ;;  %v5814_v24 = vadd.f32 %v5813_v22, %v5812_v11  ;;  %v5817_v37 = vsel %vm19152_vm14, %v5786_v36, 0.0  ;;  %v5819_v35 = vsel %vm19153_vm11, %v5787_v54, 0.0  ;;  %v5680_v3 = vld [vmem:[%s18895_s6] sm:$0xff]  ;;  %v19155_v11 = vld [vmem:[#allocation14_spill] sm:$0xff] }
 0x7c0   :  { %v5600_v31 = vpop.f32.mrf.mxu0  ;;  %v5703_v41 = vsel %vm15823_vm7, %v19154_v1, 0.0  ;;  %v5704_v6 = vsel %vm15840_vm9, %v19155_v11, 0.0  ;;  %v5764_v48 = vmul.f32 %v5702_v32, %v15785_v47  ;;  %v5683_v36 = vld [vmem:[%s18896_s7] sm:$0xff]  ;;  %v5707_v54 = vsel %vm15880_vm5, %v15789_v8, 0.0  ;;  %s11997_s7 = smov 2  }
 0x7c1   :  { %v5756_v25 = vadd.f32 %v5755_v59, %v5754_v10  ;;  %v5816_v60 = vadd.f32 %v5815_v34, %v5814_v24  ;;  %v5726_v62 = vadd.f32 %v5703_v41, %v5702_v32  ;;  %v5765_v29 = vmul.f32 %v5703_v41, %v19154_v1  ;;  %v19156_v10 = vld [vmem:[#allocation16_spill] sm:$0xff] }
 0x7c2   :  { %v5705_v24 = vsel %vm15870_vm2, %v19156_v10, 0.0  ;;  %v5706_v59 = vsel %vm15898_vm3, %v15852_v38, 0.0  ;;  %v5769_v32 = vmul.f32 %v5707_v54, %v15789_v8  ;;  %v5709_v41 = vsel %vm15930_vm8, %v15827_v17, 0.0 }
 0x7c3   :  { %v5758_v2 = vadd.f32 %v5757_v27, %v5756_v25  ;;  %v5818_v26 = vadd.f32 %v5817_v37, %v5816_v60  ;;  %v5727_v22 = vadd.f32 %v5726_v62, %v5704_v6  ;;  %v5788_v31 = vadd.f32 %v5765_v29, %v5764_v48 }
 0x7c4   :  { %v5766_v27 = vmul.f32 %v5704_v6, %v19155_v11  ;;  %v5767_v60 = vmul.f32 %v5705_v24, %v19156_v10  ;;  %v5768_v37 = vmul.f32 %v5706_v59, %v15852_v38 }
 0x7c5   :  { %5759 = vadd.xlane.f32.xlu2 %v5758_v2  ;;  %v5820_v13 = vadd.f32 %v5819_v35, %v5818_v26  ;;  %v5728_v25 = vadd.f32 %v5727_v22, %v5705_v24  ;;  %v5771_v22 = vmul.f32 %v5709_v41, %v15827_v17  ;;  %v16027_v24 = vpop.permute.xlu0 %5923 }
 0x7c6   :  { %v5789_v2 = vadd.f32 %v5788_v31, %v5766_v27  ;;  %19157 = vst [vmem:[#allocation12_spill] sm:$0xff] %v16027_v24 }
 0x7c7   :  { %v5729_v34 = vadd.f32 %v5728_v25, %v5706_v59  ;;  %v16029_v59 = vpop.permute.xlu2 %5962 }
 0x7c8   :  { %v5790_v35 = vadd.f32 %v5789_v2, %v5767_v60  ;;  %19158 = vst [vmem:[#allocation13_spill] sm:$0xff] %v16029_v59 }
 0x7c9   :  { %v5730_v26 = vadd.f32 %v5729_v34, %v5707_v54 }
 0x7cd   :  { %5821 = vadd.xlane.f32.xlu2 %v5820_v13  ;;  %v5791_v13 = vadd.f32 %v5790_v35, %v5768_v37 }
 0x7cf   :  { %v5792_v62 = vadd.f32 %v5791_v13, %v5769_v32 }
 0x7d0   :  { %5967 = vperm.xlu0 %11218, %v5685_v56   ;;  %v5708_v56 = vsel %vm15886_vm15, %v15799_v46, 0.0 }
 0x7d1   :  { %v5770_v6 = vmul.f32 %v5708_v56, %v15799_v46 }
 0x7d3   :  { %v5793_v48 = vadd.f32 %v5792_v62, %v5770_v6 }
 0x7d5   :  { %v5794_v29 = vadd.f32 %v5793_v48, %v5771_v22 }
 0x7d7   :  { %5928 = vperm.xlu1 %11216, %v5682_v4   ;;  %v5731_v4 = vadd.f32 %v5730_v26, %v5708_v56 }
 0x7e5   :  { %5918 = vperm.xlu2 %11217, %v5680_v3   ;;  %v5732_v3 = vadd.f32 %v5731_v4, %v5709_v41 }
 0x7ed   :  { %5957 = vperm.xlu2 %11217, %v5683_v36  }
 0x7fa   :  { %5733 = vadd.xlane.f32.xlu0 %v5732_v3 }
 0x801   :  { %5795 = vadd.xlane.f32.xlu1 %v5794_v29 }
 0x82f   :  { %v5743_v31 = vpop.xlane.xlu0 %5742 }
 0x830   :  { %v16031_v25 = vmul.f32 0.00390625, %v5743_v31 }
 0x831   :  { %v5805_v36 = vpop.xlane.xlu1 %5804 }
 0x832   :  { %v5824_v27 = vmul.f32 0.00390625, %v5805_v36  ;;  %v5827_v34 = vmul.f32 %v16031_v25, %v16031_v25 }
 0x834   :  { %v5830_v2 = vsub.f32 %v5824_v27, %v5827_v34  ;;  %v5849_v27 = vsub.f32 %v15909_v40, %v16031_v25 }
 0x836   :  { %v5833_v60 = vmax.f32 %v5830_v2, 0.0  ;;  %v5846_v2 = vsub.f32 %v15863_v21, %v16031_v25  ;;  %v5844_v21 = vsub.f32 %v15804_v18, %v16031_v25 }
 0x838   :  { %v5860_v54 = vadd.f32 1e-05, %v5833_v60  ;;  %v5760_v37 = vpop.xlane.xlu2 %5759  ;;  %v5843_v60 = vsub.f32 %v15797_v49, %v16031_v25 }
 0x839   :  { %v16035_v26 = vmul.f32 0.00390625, %v5760_v37 }
 0x83a   :  { %11945 = vrsqrt.f32 %v5860_v54  ;;  %vm5878_vm10 = vweird.f32 %v5860_v54 }
 0x83b   :  { %v5828_v4 = vmul.f32 %v16035_v26, %v16035_v26 }
 0x840   :  { %v11946_v35 = vpop.eup %11945  ;;  %v5822_v13 = vpop.xlane.xlu2 %5821 }
 0x841   :  { %v5873_v56 = vmul.f32 %v11946_v35, %v5860_v54  ;;  %v5825_v32 = vmul.f32 0.00390625, %v5822_v13  ;;  %vm5879_vm11 = vweird.f32 %v11946_v35 }
 0x842   :  { %vm5880_vm1 = vmor %vm5878_vm10, %vm5879_vm11  ;;  %vm19161_vm10 = vcmask 1045504  }
 0x843   :  { %v5874_v41 = vmul.f32 %v11946_v35, %v5873_v56  ;;  %v5831_v62 = vsub.f32 %v5825_v32, %v5828_v4 }
 0x845   :  { %v5875_v3 = vmul.f32 0.5, %v5874_v41  ;;  %v5834_v6 = vmax.f32 %v5831_v62, 0.0  ;;  %v5857_v62 = vsub.f32 %v15949_v42, %v16035_v26 }
 0x847   :  { %v5876_v48 = vsub.f32 1.5, %v5875_v3  ;;  %v5861_v22 = vadd.f32 1e-05, %v5834_v6  ;;  %v5854_v3 = vsub.f32 %v15907_v61, %v16035_v26  ;;  %v5851_v6 = vsub.f32 %v15837_v28, %v16035_v26 }
 0x849   :  { %11947 = vrsqrt.f32 %v5861_v22  ;;  %v5877_v29 = vmul.f32 %v11946_v35, %v5876_v48  ;;  %vm5888_vm14 = vweird.f32 %v5861_v22  ;;  %v5852_v48 = vsub.f32 %v15848_v43, %v16035_v26 }
 0x84b   :  { %v16039_v31 = vsel %vm5880_vm1, %v11946_v35, %v5877_v29  ;;  %vm19162_vm1 = vmmov %vm19161_vm10 }
 0x84c   :  { %v5906_v37 = vmul.f32 %v16039_v31, %v5849_v27  ;;  %v5903_v56 = vmul.f32 %v16039_v31, %v5846_v2  ;;  %v5900_v54 = vmul.f32 %v16039_v31, %v5843_v60  ;;  %v5901_v29 = vmul.f32 %v16039_v31, %v5844_v21  ;;  %v16079_v2 = vpop.permute.xlu1 %5928 }
 0x84d   :  { %19159 = vst [vmem:[#allocation15_spill] sm:$0xff] %v16079_v2 }
 0x84e   :  { %v5945_v4 = vmul.f32 %v16027_v24, %v5906_v37  ;;  %v5942_v40 = vmul.f32 %v16027_v24, %v5903_v56  ;;  %v5939_v41 = vmul.f32 %v16027_v24, %v5900_v54  ;;  %v16087_v54 = vpop.permute.xlu0 %5967 }
 0x84f   :  { %v11948_v36 = vpop.eup %11947  ;;  %19160 = vst [vmem:[#allocation14_spill] sm:$0xff] %v16087_v54 }
 0x850   :  { %v5883_v34 = vmul.f32 %v11948_v36, %v5861_v22  ;;  %vm5889_vm12 = vweird.f32 %v11948_v36  ;;  %v16067_v18 = vadd.f32 %v16029_v59, %v5945_v4  ;;  %v16070_v22 = vadd.f32 %v16029_v59, %v5942_v40 }
 0x851   :  { %vm5890_vm11 = vmor %vm5888_vm14, %vm5889_vm12  ;;  %v16073_v42 = vadd.f32 %v16029_v59, %v5939_v41  ;;  %v5853_v40 = vsub.f32 %v15861_v9, %v16035_v26 }
 0x852   :  { %v5884_v13 = vmul.f32 %v11948_v36, %v5883_v34  ;;  %v6005_v4 = vmax.f32 %v16070_v22, 0.0  ;;  %vm19163_vm12 = vmmov %vm19162_vm1 }
 0x853   :  { %vm19164_vm14 = vmmov %vm19162_vm1 }
 0x854   :  { %v5885_v35 = vmul.f32 0.5, %v5884_v13 }
 0x856   :  { %v5886_v32 = vsub.f32 1.5, %v5885_v35  ;;  %v18959_v35 = vmax.f32 %v16067_v18, 0.0 }
 0x858   :  { %v5887_v49 = vmul.f32 %v11948_v36, %v5886_v32  ;;  %v5940_v32 = vmul.f32 %v16027_v24, %v5901_v29  ;;  %v6052_v9 = vrot.slane %v18959_v35, 2 }
 0x85a   :  { %v16064_v27 = vsel %vm5890_vm11, %v11948_v36, %v5887_v49  ;;  %v5845_v36 = vsub.f32 %v15834_v50, %v16031_v25  ;;  %v18960_v49 = vmax.f32 %v16073_v42, 0.0  ;;  %vm19165_vm11 = vmmov %vm19162_vm1 }
 0x85b   :  { %v5914_v61 = vmul.f32 %v16064_v27, %v5857_v62  ;;  %v5911_v28 = vmul.f32 %v16064_v27, %v5854_v3  ;;  %v5908_v34 = vmul.f32 %v16064_v27, %v5851_v6  ;;  %v5909_v43 = vmul.f32 %v16064_v27, %v5852_v48 }
 0x85c   :  { %v5910_v3 = vmul.f32 %v16064_v27, %v5853_v40  ;;  %v5902_v29 = vmul.f32 %v16039_v31, %v5845_v36  ;;  %v5858_v36 = vsub.f32 %v15959_v58, %v16035_v26 }
 0x85d   :  { %v5953_v60 = vmul.f32 %v16079_v2, %v5914_v61  ;;  %v5950_v37 = vmul.f32 %v16079_v2, %v5911_v28  ;;  %v5947_v13 = vmul.f32 %v16079_v2, %v5908_v34  ;;  %v5948_v56 = vmul.f32 %v16079_v2, %v5909_v43 }
 0x85e   :  { %v6043_v28 = vrot.slane %v6005_v4, 2  ;;  %v16106_v34 = vadd.f32 %v16029_v59, %v5940_v32  ;;  %v5949_v40 = vmul.f32 %v16079_v2, %v5910_v3  ;;  %v5941_v32 = vmul.f32 %v16027_v24, %v5902_v29 }
 0x85f   :  { %v5992_v50 = vadd.f32 %v16087_v54, %v5953_v60  ;;  %v5989_v41 = vadd.f32 %v16087_v54, %v5950_v37  ;;  %v5986_v21 = vadd.f32 %v16087_v54, %v5947_v13  ;;  %v5987_v62 = vadd.f32 %v16087_v54, %v5948_v56 }
 0x860   :  { %v6034_v37 = vrot.slane %v18960_v49, 2  ;;  %v6003_v49 = vmax.f32 %v16106_v34, 0.0  ;;  %v5988_v58 = vadd.f32 %v16087_v54, %v5949_v40  ;;  %v5850_v3 = vsub.f32 %v15920_v7, %v16031_v25 }
 0x861   :  { %v6016_v6 = vmax.f32 %v5992_v50, 0.0  ;;  %v6013_v48 = vmax.f32 %v5989_v41, 0.0  ;;  %v6010_v61 = vmax.f32 %v5986_v21, 0.0  ;;  %v6011_v56 = vmax.f32 %v5987_v62, 0.0 }
 0x862   :  { %v6037_v29 = vrot.slane %v6003_v49, 2 }
 0x863   :  { %v6053_v43 = vrot.slane %v6016_v6, 2  ;;  %v6044_v60 = vrot.slane %v6013_v48, 2  ;;  %v6035_v13 = vrot.slane %v6010_v61, 2  ;;  %v6038_v62 = vrot.slane %v6011_v56, 2 }
 0x864   :  { %v5915_v61 = vmul.f32 %v16064_v27, %v5858_v36 }
 0x865   :  { %v6054_v50 = vsel %vm19161_vm10, %v6052_v9, %v6053_v43  ;;  %v6045_v41 = vsel %vm19162_vm1, %v6043_v28, %v6044_v60  ;;  %v6036_v21 = vsel %vm19163_vm12, %v6034_v37, %v6035_v13  ;;  %v16128_v9 = vadd.f32 %v16029_v59, %v5941_v32  ;;  %vm19166_vm10 = vmmov %vm19162_vm1 }
 0x866   :  { %v11599_v6 = vpack.i.bf16 %v6053_v43, %v6054_v50  ;;  %v11594_v48 = vpack.i.bf16 %v6044_v60, %v6045_v41  ;;  %v11579_v35 = vpack.i.bf16 %v6035_v13, %v6036_v21  ;;  %v5907_v28 = vmul.f32 %v16039_v31, %v5850_v3  ;;  %vm19167_vm12 = vmmov %vm19162_vm1 }
 0x867   :  { %v6039_v43 = vsel %vm19164_vm14, %v6037_v29, %v6038_v62  ;;  %v6012_v60 = vmax.f32 %v5988_v58, 0.0  ;;  %v5954_v37 = vmul.f32 %v16079_v2, %v5915_v61  ;;  %v6004_v13 = vmax.f32 %v16128_v9, 0.0 }
 0x868   :  { %11600 = vrot.lane.b32.xlu1 %v11599_v6, %s11997_s7  ;;  %11595 = vrot.lane.b32.xlu0 %v11594_v48, %s11997_s7  ;;  %v5946_v7 = vmul.f32 %v16027_v24, %v5907_v28  ;;  %v11584_v56 = vpack.i.bf16 %v6038_v62, %v6039_v43  ;;  %v5847_v50 = vsub.f32 %v15911_v44, %v16031_v25 }
 0x869   :  { %11580 = vrot.lane.b32.xlu2 %v11579_v35, %s11997_s7  ;;  %v5855_v35 = vsub.f32 %v15951_v12, %v16035_v26  ;;  %v6041_v40 = vrot.slane %v6012_v60, 2  ;;  %v5993_v36 = vadd.f32 %v16087_v54, %v5954_v37  ;;  %v6040_v21 = vrot.slane %v6004_v13, 2 }
 0x86a   :  { %v16145_v32 = vadd.f32 %v16029_v59, %v5946_v7  ;;  %v5904_v6 = vmul.f32 %v16039_v31, %v5847_v50  ;;  %v5856_v3 = vsub.f32 %v15941_v15, %v16035_v26  ;;  %v5848_v43 = vsub.f32 %v15896_v30, %v16031_v25 }
 0x86b   :  { %v5912_v41 = vmul.f32 %v16064_v27, %v5855_v35  ;;  %v6042_v12 = vsel %vm19165_vm11, %v6040_v21, %v6041_v40  ;;  %v6017_v48 = vmax.f32 %v5993_v36, 0.0 }
 0x86c   :  { %v6009_v58 = vmax.f32 %v16145_v32, 0.0  ;;  %v5943_v44 = vmul.f32 %v16027_v24, %v5904_v6  ;;  %v11589_v61 = vpack.i.bf16 %v6041_v40, %v6042_v12  ;;  %v5913_v60 = vmul.f32 %v16064_v27, %v5856_v3 }
 0x86d   :  { %v5951_v62 = vmul.f32 %v16079_v2, %v5912_v41  ;;  %v6056_v29 = vrot.slane %v6017_v48, 2  ;;  %v5905_v35 = vmul.f32 %v16039_v31, %v5848_v43 }
 0x86e   :  { %v6055_v37 = vrot.slane %v6009_v58, 2  ;;  %v16162_v7 = vadd.f32 %v16029_v59, %v5943_v44  ;;  %v5734_v44 = vpop.xlane.xlu0 %5733 }
 0x86f   :  { %v5990_v28 = vadd.f32 %v16087_v54, %v5951_v62  ;;  %v5944_v30 = vmul.f32 %v16027_v24, %v5905_v35 }
 0x870   :  { %v6057_v15 = vsel %vm19166_vm10, %v6055_v37, %v6056_v29  ;;  %v6006_v40 = vmax.f32 %v16162_v7, 0.0 }
 0x871   :  { %11585 = vrot.lane.b32.xlu2 %v11584_v56, %s11997_s7  ;;  %v6014_v26 = vmax.f32 %v5990_v28, 0.0  ;;  %v5952_v56 = vmul.f32 %v16079_v2, %v5913_v60  ;;  %v11604_v25 = vpack.i.bf16 %v6056_v29, %v6057_v15  ;;  %v16174_v31 = vadd.f32 %v16029_v59, %v5944_v30 }
 0x872   :  { %v6046_v50 = vrot.slane %v6006_v40, 2  ;;  %v16182_v29 = vmul.f32 0.00390625, %v5734_v44 }
 0x873   :  { %v6047_v27 = vrot.slane %v6014_v26, 2  ;;  %v5991_v36 = vadd.f32 %v16087_v54, %v5952_v56  ;;  %v6007_v6 = vmax.f32 %v16174_v31, 0.0 }
 0x874   :  { %v5826_v60 = vmul.f32 %v16182_v29, %v16182_v29 }
 0x875   :  { %v6048_v41 = vsel %vm19162_vm1, %v6046_v50, %v6047_v27  ;;  %v6015_v21 = vmax.f32 %v5991_v36, 0.0  ;;  %v6049_v62 = vrot.slane %v6007_v6, 2  ;;  %vm6106_vm1 = vcmp.lt.s32.totalorder %v12094_v33, 2 }
 0x876   :  { %v11609_v12 = vpack.i.bf16 %v6047_v27, %v6048_v41 }
 0x877   :  { %v6050_v48 = vrot.slane %v6015_v21, 2 }
 0x879   :  { %11590 = vrot.lane.b32.xlu2 %v11589_v61, %s11997_s7  ;;  %v6051_v3 = vsel %vm19167_vm12, %v6049_v62, %v6050_v48  ;;  %v5796_v61 = vpop.xlane.xlu1 %5795  ;;  %vm6270_vm12 = vcmp.ge.s32.totalorder %v12107_v45, 6 }
 0x87a   :  { %v11614_v28 = vpack.i.bf16 %v6050_v48, %v6051_v3  ;;  %v5823_v43 = vmul.f32 0.00390625, %v5796_v61  ;;  %v5837_v3 = vsub.f32 %v19155_v11, %v16182_v29  ;;  %v5835_v11 = vsub.f32 %v15785_v47, %v16182_v29 }
 0x87c   :  { %v5829_v37 = vsub.f32 %v5823_v43, %v5826_v60 }
 0x87e   :  { %v5832_v35 = vmax.f32 %v5829_v37, 0.0 }
 0x880   :  { %v5859_v15 = vadd.f32 1e-05, %v5832_v35 }
 0x881   :  { %11605 = vrot.lane.b32.xlu2 %v11604_v25, %s11997_s7  ;;  %v16187_v25 = vpop.permute.xlu2 %5918 }
 0x882   :  { %11949 = vrsqrt.f32 %v5859_v15  ;;  %19168 = vst [vmem:[#allocation16_spill] sm:$0xff] %v16187_v25  ;;  %vm5868_vm11 = vweird.f32 %v5859_v15 }
 0x888   :  { %v11950_v26 = vpop.eup %11949 }
 0x889   :  { %11610 = vrot.lane.b32.xlu2 %v11609_v12, %s11997_s7  ;;  %v5863_v56 = vmul.f32 %v11950_v26, %v5859_v15  ;;  %vm5869_vm14 = vweird.f32 %v11950_v26  ;;  %v16189_v41 = vpop.permute.xlu2 %5957  ;;  %v5836_v12 = vsub.f32 %v19154_v1, %v16182_v29 }
 0x88a   :  { %19169 = vst [vmem:[#allocation17_spill] sm:$0xff] %v16189_v41  ;;  %vm5870_vm10 = vmor %vm5868_vm11, %vm5869_vm14  ;;  %vm19172_vm14 = vcmp.lt.s32.totalorder %v12094_v33, 8 }
 0x88b   :  { %v5864_v30 = vmul.f32 %v11950_v26, %v5863_v56  ;;  %v5838_v56 = vsub.f32 %v19156_v10, %v16182_v29  ;;  %vm19173_vm11 = vmmov %vm19172_vm14 }
 0x88d   :  { %v5865_v27 = vmul.f32 0.5, %v5864_v30 }
 0x88f   :  { %v5866_v36 = vsub.f32 1.5, %v5865_v27 }
 0x891   :  { %11615 = vrot.lane.b32.xlu2 %v11614_v28, %s11997_s7  ;;  %v5867_v50 = vmul.f32 %v11950_v26, %v5866_v36  ;;  %v5842_v36 = vsub.f32 %v15827_v17, %v16182_v29 }
 0x893   :  { %v5871_v21 = vsel %vm5870_vm10, %v11950_v26, %v5867_v50  ;;  %v5839_v50 = vsub.f32 %v15852_v38, %v16182_v29  ;;  %vm19174_vm10 = vmmov %vm19173_vm11 }
 0x894   :  { %v5893_v48 = vmul.f32 %v5871_v21, %v5836_v12  ;;  %v5894_v61 = vmul.f32 %v5871_v21, %v5837_v3  ;;  %v5895_v12 = vmul.f32 %v5871_v21, %v5838_v56  ;;  %v5899_v3 = vmul.f32 %v5871_v21, %v5842_v36 }
 0x896   :  { %v5932_v44 = vmul.f32 %v16187_v25, %v5893_v48  ;;  %v5933_v60 = vmul.f32 %v16187_v25, %v5894_v61  ;;  %v5892_v48 = vmul.f32 %v5871_v21, %v5835_v11  ;;  %v5934_v53 = vmul.f32 %v16187_v25, %v5895_v12 }
 0x898   :  { %v5971_v28 = vadd.f32 %v16189_v41, %v5932_v44  ;;  %v5972_v17 = vadd.f32 %v16189_v41, %v5933_v60 }
 0x89a   :  { %v5995_v26 = vmax.f32 %v5971_v28, 0.0  ;;  %v5996_v56 = vmax.f32 %v5972_v17, 0.0 }
 0x8c3   :  { %v16193_v62 = vpop.permute.xlu2 %11580 }
 0x8c4   :  { %v11583_v37 = vunpack.i.h.bf16 %v16193_v62  ;;  %v11582_v1 = vunpack.i.l.bf16 %v16193_v62 }
 0x8cb   :  { %v11586_v43 = vpop.permute.xlu2 %11585 }
 0x8cc   :  { %v11588_v35 = vunpack.i.h.bf16 %v11586_v43  ;;  %v11587_v15 = vunpack.i.l.bf16 %v11586_v43  ;;  %v5931_v43 = vmul.f32 %v16187_v25, %v5892_v48 }
 0x8ce   :  { %v6119_v30 = vsel %vm6106_vm1, %v11582_v1, %v11587_v15  ;;  %v6120_v27 = vsel %vm6106_vm1, %v11583_v37, %v11588_v35 }
 0x8cf   :  { %v16221_v10 = vsel %vm15823_vm7, %v5995_v26, %v6119_v30  ;;  %v16227_v47 = vsel %vm15823_vm7, %v6003_v49, %v6120_v27  ;;  %v5896_v49 = vmul.f32 %v5871_v21, %v5839_v50  ;;  %v5938_v26 = vmul.f32 %v16187_v25, %v5899_v3 }
 0x8d0   :  { %v16231_v44 = vpack.i.bf16 %v16227_v47, %v16221_v10  ;;  %v5840_v30 = vsub.f32 %v15789_v8, %v16182_v29  ;;  %v5841_v27 = vsub.f32 %v15799_v46, %v16182_v29  ;;  %v5970_v46 = vadd.f32 %v16189_v41, %v5931_v43 }
 0x8d1   :  { %v5977_v29 = vadd.f32 %v16189_v41, %v5938_v26  ;;  %vm6263_vm7 = vcmp.ge.s32.totalorder %v12094_v33, 6 }
 0x8d2   :  { %11620 = vrot.lane.b32.xlu0 %v16231_v44, %s11998_s24  ;;  %v5897_v14 = vmul.f32 %v5871_v21, %v5840_v30 }
 0x8d3   :  { %v11591_v34 = vpop.permute.xlu2 %11590 }
 0x8d4   :  { %v11593_v61 = vunpack.i.h.bf16 %v11591_v34  ;;  %v11592_v28 = vunpack.i.l.bf16 %v11591_v34 }
 0x8d6   :  { %v6117_v60 = vsel %vm6106_vm1, %v11587_v15, %v11592_v28  ;;  %v6118_v11 = vsel %vm6106_vm1, %v11588_v35, %v11593_v61  ;;  %v5973_v15 = vadd.f32 %v16189_v41, %v5934_v53  ;;  %v5935_v35 = vmul.f32 %v16187_v25, %v5896_v49 }
 0x8d7   :  { %v16251_v36 = vsel %vm15840_vm9, %v5996_v56, %v6117_v60  ;;  %v16257_v50 = vsel %vm15840_vm9, %v6004_v13, %v6118_v11  ;;  %v5898_v13 = vmul.f32 %v5871_v21, %v5841_v27  ;;  %v5994_v21 = vmax.f32 %v5970_v46, 0.0 }
 0x8d8   :  { %v16263_v8 = vpack.i.bf16 %v16257_v50, %v16251_v36  ;;  %v5997_v56 = vmax.f32 %v5973_v15, 0.0  ;;  %v5974_v26 = vadd.f32 %v16189_v41, %v5935_v35  ;;  %v6001_v27 = vmax.f32 %v5977_v29, 0.0 }
 0x8d9   :  { %vm6264_vm9 = vcmp.ge.s32.totalorder %v12115_v51, 6 }
 0x8da   :  { %11625 = vrot.lane.b32.xlu2 %v16263_v8, %s11998_s24  ;;  %v11601_v9 = vpop.permute.xlu1 %11600  ;;  %v11596_v12 = vpop.permute.xlu0 %11595  ;;  %v5998_v16 = vmax.f32 %v5974_v26, 0.0 }
 0x8db   :  { %v11603_v17 = vunpack.i.h.bf16 %v11601_v9  ;;  %v11602_v3 = vunpack.i.l.bf16 %v11601_v9  ;;  %v11598_v34 = vunpack.i.h.bf16 %v11596_v12  ;;  %v11597_v53 = vunpack.i.l.bf16 %v11596_v12  ;;  %v11606_v49 = vpop.permute.xlu2 %11605 }
 0x8dc   :  { %v11608_v60 = vunpack.i.h.bf16 %v11606_v49  ;;  %v11607_v43 = vunpack.i.l.bf16 %v11606_v49 }
 0x8dd   :  { %v6115_v11 = vsel %vm6106_vm1, %v11592_v28, %v11597_v53  ;;  %v6116_v30 = vsel %vm6106_vm1, %v11593_v61, %v11598_v34 }
 0x8de   :  { %v16278_v38 = vsel %vm15870_vm2, %v5997_v56, %v6115_v11  ;;  %v16284_v15 = vsel %vm15870_vm2, %v6005_v4, %v6116_v30  ;;  %v6108_v35 = vsel %vm6106_vm1, %v11603_v17, %v11608_v60  ;;  %v6107_v28 = vsel %vm6106_vm1, %v11602_v3, %v11607_v43 }
 0x8df   :  { %v16294_v61 = vsel %vm15930_vm8, %v6009_v58, %v6108_v35  ;;  %v6121_v22 = vsel %vm6106_vm1, %v11607_v43, %v11582_v1  ;;  %v6122_v23 = vsel %vm6106_vm1, %v11608_v60, %v11583_v37  ;;  %v16306_v4 = vsel %vm15930_vm8, %v6001_v27, %v6107_v28 }
 0x8e0   :  { %v16310_v32 = vsel %vm15807_vm4, %v5994_v21, %v6121_v22  ;;  %v19170_v58 = vmax.f32 %v16073_v42, 0.0  ;;  %v16320_v62 = vpack.i.bf16 %v16294_v61, %v16306_v4  ;;  %v16324_v37 = vpack.i.bf16 %v16284_v15, %v16278_v38 }
 0x8e1   :  { %v5936_v42 = vmul.f32 %v16187_v25, %v5897_v14  ;;  %v5937_v1 = vmul.f32 %v16187_v25, %v5898_v13  ;;  %vm6266_vm2 = vcmp.ge.s32.totalorder %v12121_v55, 6  ;;  %vm6269_vm8 = vcmp.ge.s32.totalorder %v12117_v52, 6 }
 0x8e2   :  { %v16316_v46 = vsel %vm15807_vm4, %v19170_v58, %v6122_v23  ;;  %11640 = vrot.lane.b32.xlu2 %v16320_v62, %s11998_s24  ;;  %11635 = vrot.lane.b32.xlu0 %v16324_v37, %s11998_s24  ;;  %v19171_v58 = vmax.f32 %v16067_v18, 0.0  ;;  %vm6265_vm4 = vcmp.ge.s32.totalorder %v12101_v39, 6 }
 0x8e3   :  { %v16328_v20 = vpack.i.bf16 %v16316_v46, %v16310_v32  ;;  %v11611_v29 = vpop.permute.xlu2 %11610  ;;  %v5975_v43 = vadd.f32 %v16189_v41, %v5936_v42 }
 0x8e4   :  { %v11613_v9 = vunpack.i.h.bf16 %v11611_v29  ;;  %v11612_v12 = vunpack.i.l.bf16 %v11611_v29 }
 0x8e5   :  { %11630 = vrot.lane.b32.xlu1 %v16328_v20, %s11998_s24  ;;  %v5999_v21 = vmax.f32 %v5975_v43, 0.0 }
 0x8e6   :  { %v6114_v49 = vsel %vm6106_vm1, %v11598_v34, %v11613_v9  ;;  %v6113_v56 = vsel %vm6106_vm1, %v11597_v53, %v11612_v12  ;;  %v5976_v34 = vadd.f32 %v16189_v41, %v5937_v1 }
 0x8e7   :  { %v16346_v60 = vsel %vm15898_vm3, %v6006_v40, %v6114_v49  ;;  %v16350_v14 = vsel %vm15898_vm3, %v5998_v16, %v6113_v56  ;;  %vm6246_vm3 = vcmp.lt.s32.totalorder %v12094_v33, 6 }
 0x8e8   :  { %v16354_v13 = vpack.i.bf16 %v16346_v60, %v16350_v14  ;;  %v6000_v27 = vmax.f32 %v5976_v34, 0.0 }
 0x8ea   :  { %11655 = vrot.lane.b32.xlu2 %v16354_v13, %s11998_s24 }
 0x8eb   :  { %v11616_v53 = vpop.permute.xlu2 %11615 }
 0x8ec   :  { %v11618_v11 = vunpack.i.h.bf16 %v11616_v53  ;;  %v11617_v30 = vunpack.i.l.bf16 %v11616_v53 }
 0x8ee   :  { %v6110_v35 = vsel %vm6106_vm1, %v11618_v11, %v11603_v17  ;;  %v6109_v28 = vsel %vm6106_vm1, %v11617_v30, %v11602_v3  ;;  %v6111_v22 = vsel %vm6106_vm1, %v11612_v12, %v11617_v30  ;;  %v6112_v23 = vsel %vm6106_vm1, %v11613_v9, %v11618_v11 }
 0x8ef   :  { %v16380_v16 = vsel %vm15886_vm15, %v19171_v58, %v6110_v35  ;;  %v16384_v42 = vsel %vm15880_vm5, %v5999_v21, %v6111_v22  ;;  %v16388_v17 = vsel %vm15886_vm15, %v6000_v27, %v6109_v28  ;;  %v16394_v3 = vsel %vm15880_vm5, %v6007_v6, %v6112_v23  ;;  %v16484_v27 = vld [vmem:[%s18892_s3 + $0xc] sm:$0xff]  ;;  %v10847_v28 = vld [vmem:[%s18892_s3 + $0x14] sm:$0x3] }
 0x8f0   :  { %v16398_v18 = vpack.i.bf16 %v16394_v3, %v16384_v42  ;;  %v16402_v1 = vpack.i.bf16 %v16380_v16, %v16388_v17  ;;  %vm6267_vm5 = vcmp.ge.s32.totalorder %v19018_v57, 6  ;;  %vm6268_vm15 = vcmp.ge.s32.totalorder %v12148_v19, 6 }
 0x8f2   :  { %11670 = vrot.lane.b32.xlu2 %v16328_v20, %s11987_s28  ;;  %11645 = vrot.lane.b32.xlu1 %v16398_v18, %s11998_s24 }
 0x8f3   :  { %11650 = vrot.lane.b32.xlu0 %v16402_v1, %s11998_s24 }
 0x8fa   :  { %11685 = vrot.lane.b32.xlu2 %v16398_v18, %s11987_s28  ;;  %11660 = vrot.lane.b32.xlu1 %v16231_v44, %s11987_s28 }
 0x8fb   :  { %11665 = vrot.lane.b32.xlu0 %v16263_v8, %s11987_s28 }
 0x902   :  { %11700 = vrot.lane.b32.xlu2 %v16231_v44, %s11993_s4  ;;  %11675 = vrot.lane.b32.xlu1 %v16324_v37, %s11987_s28 }
 0x903   :  { %11680 = vrot.lane.b32.xlu0 %v16320_v62, %s11987_s28 }
 0x90a   :  { %11715 = vrot.lane.b32.xlu2 %v16324_v37, %s11993_s4  ;;  %11690 = vrot.lane.b32.xlu1 %v16402_v1, %s11987_s28 }
 0x90b   :  { %11695 = vrot.lane.b32.xlu0 %v16354_v13, %s11987_s28  ;;  %s11999_s28 = smov 126  }
 0x912   :  { %11730 = vrot.lane.b32.xlu2 %v16402_v1, %s11993_s4  ;;  %11705 = vrot.lane.b32.xlu1 %v16263_v8, %s11993_s4 }
 0x913   :  { %11710 = vrot.lane.b32.xlu0 %v16328_v20, %s11993_s4 }
 0x91a   :  { %11745 = vrot.lane.b32.xlu2 %v16263_v8, %s11997_s7  ;;  %11720 = vrot.lane.b32.xlu1 %v16320_v62, %s11993_s4 }
 0x91b   :  { %11725 = vrot.lane.b32.xlu0 %v16398_v18, %s11993_s4 }
 0x922   :  { %11760 = vrot.lane.b32.xlu2 %v16320_v62, %s11997_s7  ;;  %11735 = vrot.lane.b32.xlu1 %v16354_v13, %s11993_s4 }
 0x923   :  { %11740 = vrot.lane.b32.xlu0 %v16231_v44, %s11997_s7 }
 0x92a   :  { %11775 = vrot.lane.b32.xlu2 %v16354_v13, %s11997_s7  ;;  %11750 = vrot.lane.b32.xlu1 %v16328_v20, %s11997_s7 }
 0x92b   :  { %11755 = vrot.lane.b32.xlu0 %v16324_v37, %s11997_s7 }
 0x932   :  { %11790 = vrot.lane.b32.xlu2 %v16328_v20, %s11999_s28  ;;  %11765 = vrot.lane.b32.xlu1 %v16398_v18, %s11997_s7 }
 0x933   :  { %11770 = vrot.lane.b32.xlu0 %v16402_v1, %s11997_s7 }
 0x934   :  { %v11626_v31 = vpop.permute.xlu2 %11625 }
 0x935   :  { %v11628_v29 = vunpack.i.h.bf16 %v11626_v31  ;;  %v11627_v9 = vunpack.i.l.bf16 %v11626_v31 }
 0x93a   :  { %11805 = vrot.lane.b32.xlu2 %v16402_v1, %s11999_s28  ;;  %11780 = vrot.lane.b32.xlu1 %v16263_v8, %s11999_s28 }
 0x93b   :  { %11785 = vrot.lane.b32.xlu0 %v16324_v37, %s11999_s28 }
 0x93c   :  { %v16474_v34 = vpop.permute.xlu2 %11640 }
 0x93d   :  { %v11643_v22 = vunpack.i.h.bf16 %v16474_v34  ;;  %v11642_v23 = vunpack.i.l.bf16 %v16474_v34 }
 0x942   :  { %11820 = vrot.lane.b32.xlu2 %v16263_v8, %s11995_s23  ;;  %11795 = vrot.lane.b32.xlu1 %v16231_v44, %s11999_s28 }
 0x943   :  { %11800 = vrot.lane.b32.xlu0 %v16354_v13, %s11999_s28 }
 0x944   :  { %v11621_v6 = vpop.permute.xlu0 %11620  ;;  %v16488_v35 = vpop.permute.xlu2 %11655 }
 0x945   :  { %v11623_v12 = vunpack.i.h.bf16 %v11621_v6  ;;  %v11622_v49 = vunpack.i.l.bf16 %v11621_v6  ;;  %v11658_v31 = vunpack.i.h.bf16 %v16488_v35  ;;  %v11657_v6 = vunpack.i.l.bf16 %v16488_v35 }
 0x947   :  { %v6258_v56 = vsel %vm6246_vm3, %v11623_v12, %v11628_v29  ;;  %v6257_v43 = vsel %vm6246_vm3, %v11622_v49, %v11627_v9 }
 0x948   :  { %v6289_v53 = vsel %vm6265_vm4, %v6257_v43, 0.0  ;;  %v6297_v11 = vsel %vm6265_vm4, %v6258_v56, 0.0  ;;  %vm19176_vm4 = vcmp.ge.s32.totalorder %v12115_v51, 8 }
 0x949   :  { %v6309_v30 = vpack.c.bf16 %v6297_v11, %v6289_v53 }
 0x94a   :  { %11835 = vrot.lane.b32.xlu2 %v16231_v44, %s11995_s23  ;;  %11810 = vrot.lane.b32.xlu1 %v16320_v62, %s11999_s28 }
 0x94b   :  { %11815 = vrot.lane.b32.xlu0 %v16398_v18, %s11999_s28  ;;  %v6336_v21 = vsel %vm3345_vm6, %v6309_v30, 0 }
 0x94c   :  { %6396 = vmatpush.bf16.msra.mxu2 %v6336_v21  ;;  %v6320_v21 = vunpack.c.l.b16 %v10847_v28 }
 0x94e   :  { %v16549_v63 = vpack.c.b16 %v6320_v21, %v6320_v21 }
 0x94f   :  { %10856 = vmatmul.msk.bf16.vlgmr.msra.gmra.mxu2 %vm3338_vm0, %v16484_v27 }
 0x952   :  { %11850 = vrot.lane.b32.xlu2 %v16320_v62, %s11995_s23  ;;  %11825 = vrot.lane.b32.xlu1 %v16324_v37, %s11995_s23 }
 0x953   :  { %11830 = vrot.lane.b32.xlu0 %v16328_v20, %s11995_s23 }
 0x954   :  { %v11636_v58 = vpop.permute.xlu0 %11635 }
 0x955   :  { %v11638_v43 = vunpack.i.h.bf16 %v11636_v58  ;;  %v11637_v53 = vunpack.i.l.bf16 %v11636_v58 }
 0x957   :  { %v11631_v56 = vpop.permute.xlu1 %11630  ;;  %v6254_v26 = vsel %vm6246_vm3, %v11638_v43, %v11658_v31  ;;  %v6256_v5 = vsel %vm6246_vm3, %v11628_v29, %v11638_v43  ;;  %v6253_v0 = vsel %vm6246_vm3, %v11637_v53, %v11657_v6  ;;  %v6255_v35 = vsel %vm6246_vm3, %v11627_v9, %v11637_v53 }
 0x958   :  { %v11633_v11 = vunpack.i.h.bf16 %v11631_v56  ;;  %v11632_v30 = vunpack.i.l.bf16 %v11631_v56 }
 0x95a   :  { %v6262_v58 = vsel %vm6246_vm3, %v11643_v22, %v11633_v11  ;;  %v6259_v28 = vsel %vm6246_vm3, %v11632_v30, %v11622_v49  ;;  %v6260_v56 = vsel %vm6246_vm3, %v11633_v11, %v11623_v12  ;;  %v6261_v29 = vsel %vm6246_vm3, %v11642_v23, %v11632_v30  ;;  %11865 = vrot.lane.b32.xlu2 %v16324_v37, %s12000_s26 }
 0x95b   :  { %v6287_v43 = vsel %vm6263_vm7, %v6261_v29, 0.0  ;;  %v6295_v9 = vsel %vm6263_vm7, %v6262_v58, 0.0  ;;  %v6288_v53 = vsel %vm6264_vm9, %v6259_v28, 0.0  ;;  %v6296_v49 = vsel %vm6264_vm9, %v6260_v56, 0.0  ;;  %11840 = vrot.lane.b32.xlu1 %v16354_v13, %s11995_s23  ;;  %11845 = vrot.lane.b32.xlu0 %v16402_v1, %s11995_s23  ;;  %vm19177_vm7 = vmmov %vm19176_vm4 }
 0x95c   :  { %v6307_v12 = vpack.c.bf16 %v6295_v9, %v6287_v43  ;;  %v6308_v11 = vpack.c.bf16 %v6296_v49, %v6288_v53  ;;  %v6290_v30 = vsel %vm6266_vm2, %v6255_v35, 0.0  ;;  %v6298_v58 = vsel %vm6266_vm2, %v6256_v5, 0.0 }
 0x95d   :  { %v6310_v28 = vpack.c.bf16 %v6298_v58, %v6290_v30  ;;  %v6291_v56 = vsel %vm6267_vm5, %v6253_v0, 0.0  ;;  %v6299_v29 = vsel %vm6267_vm5, %v6254_v26, 0.0  ;;  %vm19178_vm9 = vcmp.ge.s32.totalorder %v12101_v39, 8 }
 0x95e   :  { %v6330_v43 = vsel %vm3345_vm6, %v6307_v12, 0  ;;  %v6333_v9 = vsel %vm3345_vm6, %v6308_v11, 0  ;;  %v6311_v35 = vpack.c.bf16 %v6299_v29, %v6291_v56  ;;  %vm19179_vm2 = vmmov %vm19178_vm9 }
 0x95f   :  { %6360 = vmatpush.bf16.msra.mxu0 %v6330_v43  ;;  %6378 = vmatpush.bf16.msra.mxu1 %v6333_v9  ;;  %v6339_v5 = vsel %vm3345_vm6, %v6310_v28, 0 }
 0x960   :  { %6414 = vmatpush.bf16.msra.mxu3 %v6339_v5  ;;  %v6342_v53 = vsel %vm3345_vm6, %v6311_v35, 0  ;;  %10857 = vmatmul.msk.bf16.gmra.mxu2 %vm3338_vm0, %v16549_v63  ;;  %v11671_v5 = vpop.permute.xlu2 %11670 }
 0x962   :  { %10852 = vmatmul.msk.bf16.vlgmr.msra.gmra.mxu0 %vm3338_vm0, %v16484_v27  ;;  %10854 = vmatmul.msk.bf16.vlgmr.msra.gmra.mxu1 %vm3338_vm0, %v16484_v27 }
 0x963   :  { %6432 = vmatpush.bf16.msrb.mxu0 %v6342_v53  ;;  %10858 = vmatmul.msk.bf16.vlgmr.msra.gmra.mxu3 %vm3338_vm0, %v16484_v27 }
 0x964   :  { %11880 = vrot.lane.b32.xlu2 %v16354_v13, %s12000_s26  ;;  %11855 = vrot.lane.b32.xlu1 %v16398_v18, %s11995_s23  ;;  %v11646_v0 = vpop.permute.xlu1 %11645 }
 0x965   :  { %11860 = vrot.lane.b32.xlu0 %v16263_v8, %s12000_s26  ;;  %v11648_v26 = vunpack.i.h.bf16 %v11646_v0  ;;  %v11647_v21 = vunpack.i.l.bf16 %v11646_v0  ;;  %v11651_v49 = vpop.permute.xlu0 %11650 }
 0x966   :  { %v11653_v12 = vunpack.i.h.bf16 %v11651_v49  ;;  %v11652_v11 = vunpack.i.l.bf16 %v11651_v49 }
 0x967   :  { %v6252_v30 = vsel %vm6246_vm3, %v11658_v31, %v11648_v26  ;;  %v6251_v58 = vsel %vm6246_vm3, %v11657_v6, %v11647_v21 }
 0x968   :  { %v6248_v28 = vsel %vm6246_vm3, %v11653_v12, %v11643_v22  ;;  %v6250_v56 = vsel %vm6246_vm3, %v11648_v26, %v11653_v12  ;;  %v6247_v29 = vsel %vm6246_vm3, %v11652_v11, %v11642_v23  ;;  %v6249_v31 = vsel %vm6246_vm3, %v11647_v21, %v11652_v11  ;;  %vm19175_vm3 = vmmov %vm19174_vm10 }
 0x969   :  { %v6292_v43 = vsel %vm6268_vm15, %v6251_v58, 0.0  ;;  %v6300_v6 = vsel %vm6268_vm15, %v6252_v30, 0.0  ;;  %v6293_v9 = vsel %vm6269_vm8, %v6249_v31, 0.0  ;;  %v6301_v35 = vsel %vm6269_vm8, %v6250_v56, 0.0  ;;  %vm19180_vm5 = vmmov %vm19175_vm3 }
 0x96a   :  { %v6312_v22 = vpack.c.bf16 %v6300_v6, %v6292_v43  ;;  %v6313_v53 = vpack.c.bf16 %v6301_v35, %v6293_v9  ;;  %v6294_v34 = vsel %vm6270_vm12, %v6247_v29, 0.0  ;;  %v6302_v0 = vsel %vm6270_vm12, %v6248_v28, 0.0  ;;  %vm19181_vm15 = vmmov %vm19175_vm3 }
 0x96b   :  { %v6314_v23 = vpack.c.bf16 %v6302_v0, %v6294_v34  ;;  %v11673_v12 = vunpack.i.h.bf16 %v11671_v5  ;;  %v11672_v11 = vunpack.i.l.bf16 %v11671_v5  ;;  %vm19182_vm8 = vmmov %vm19175_vm3 }
 0x96c   :  { %11895 = vrot.lane.b32.xlu2 %v16398_v18, %s12000_s26  ;;  %11870 = vrot.lane.b32.xlu1 %v16328_v20, %s12000_s26  ;;  %v11661_v26 = vpop.permute.xlu1 %11660  ;;  %v6345_v21 = vsel %vm3345_vm6, %v6312_v22, 0  ;;  %v6348_v49 = vsel %vm3345_vm6, %v6313_v53, 0  ;;  %vm19183_vm12 = vmmov %vm19175_vm3 }
 0x96d   :  { %11875 = vrot.lane.b32.xlu0 %v16231_v44, %s12000_s26  ;;  %v11663_v30 = vunpack.i.h.bf16 %v11661_v26  ;;  %v11662_v58 = vunpack.i.l.bf16 %v11661_v26  ;;  %v11666_v56 = vpop.permute.xlu0 %11665  ;;  %6450 = vmatpush.bf16.msrb.mxu1 %v6345_v21  ;;  %v6351_v28 = vsel %vm3345_vm6, %v6314_v23, 0 }
 0x96e   :  { %6468 = vmatpush.bf16.msrb.mxu2 %v6348_v49  ;;  %v11668_v31 = vunpack.i.h.bf16 %v11666_v56  ;;  %v11667_v43 = vunpack.i.l.bf16 %v11666_v56  ;;  %6486 = vmatpush.bf16.msrb.mxu3 %v6351_v28 }
 0x96f   :  { %v6184_v29 = vsel %vm19172_vm14, %v11673_v12, %v11663_v30  ;;  %v6183_v6 = vsel %vm19173_vm11, %v11672_v11, %v11662_v58  ;;  %vm19184_vm14 = vcmp.ge.s32.totalorder %v12121_v55, 8 }
 0x970   :  { %v6182_v9 = vsel %vm19174_vm10, %v11663_v30, %v11668_v31  ;;  %v6181_v35 = vsel %vm19175_vm3, %v11662_v58, %v11667_v43  ;;  %v6188_v5 = vsel %vm19176_vm4, %v6183_v6, 0.0  ;;  %v6196_v22 = vsel %vm19177_vm7, %v6184_v29, 0.0  ;;  %vm19185_vm11 = vmmov %vm19184_vm14 }
 0x971   :  { %10864 = vmatmul.msk.bf16.vlgmr.msrb.gmra.mxu2 %vm3338_vm0, %v16484_v27  ;;  %v6207_v53 = vpack.c.bf16 %v6196_v22, %v6188_v5  ;;  %v6189_v34 = vsel %vm19178_vm9, %v6181_v35, 0.0  ;;  %v6197_v0 = vsel %vm19179_vm2, %v6182_v9, 0.0  ;;  %v11686_v9 = vpop.permute.xlu2 %11685  ;;  %vm19186_vm10 = vcmp.ge.s32.totalorder %v12094_v33, 8  ;;  %vm19188_vm4 = vmmov %vm19180_vm5 }
 0x972   :  { %10853 = vmatmul.msk.bf16.gmra.mxu0 %vm3338_vm0, %v16549_v63  ;;  %10855 = vmatmul.msk.bf16.gmra.mxu1 %vm3338_vm0, %v16549_v63  ;;  %v6208_v23 = vpack.c.bf16 %v6197_v0, %v6189_v34  ;;  %vm19187_vm3 = vmmov %vm19186_vm10 }
 0x973   :  { %10859 = vmatmul.msk.bf16.gmra.mxu3 %vm3338_vm0, %v16549_v63  ;;  %v6515_v26 = vsel %vm3345_vm6, %v6207_v53, 0  ;;  %vm19189_vm7 = vmmov %vm19188_vm4 }
 0x974   :  { %11910 = vrot.lane.b32.xlu2 %v16328_v20, %s11988_s17  ;;  %11885 = vrot.lane.b32.xlu1 %v16402_v1, %s12000_s26  ;;  %v11676_v21 = vpop.permute.xlu1 %11675  ;;  %v6518_v49 = vsel %vm3345_vm6, %v6208_v23, 0  ;;  %vm19190_vm9 = vmmov %vm19188_vm4 }
 0x975   :  { %11890 = vrot.lane.b32.xlu0 %v16320_v62, %s12000_s26  ;;  %6560 = vmatpush.bf16.msra.mxu1 %v6515_v26  ;;  %v11678_v30 = vunpack.i.h.bf16 %v11676_v21  ;;  %v11677_v58 = vunpack.i.l.bf16 %v11676_v21  ;;  %v11681_v56 = vpop.permute.xlu0 %11680  ;;  %v11688_v26 = vunpack.i.h.bf16 %v11686_v9  ;;  %v11687_v21 = vunpack.i.l.bf16 %v11686_v9  ;;  %vm19191_vm2 = vmmov %vm19188_vm4 }
 0x976   :  { %6578 = vmatpush.bf16.msra.mxu2 %v6518_v49  ;;  %v11683_v28 = vunpack.i.h.bf16 %v11681_v56  ;;  %v11682_v29 = vunpack.i.l.bf16 %v11681_v56 }
 0x977   :  { %v6179_v20 = vsel %vm19180_vm5, %v11667_v43, %v11677_v58  ;;  %v6180_v6 = vsel %vm19181_vm15, %v11668_v31, %v11678_v30  ;;  %vm19192_vm5 = vmmov %vm19191_vm2 }
 0x978   :  { %v6186_v35 = vsel %vm19182_vm8, %v11683_v28, %v11673_v12  ;;  %v6185_v5 = vsel %vm19183_vm12, %v11682_v29, %v11672_v11  ;;  %v6190_v22 = vsel %vm19184_vm14, %v6179_v20, 0.0  ;;  %v6198_v53 = vsel %vm19185_vm11, %v6180_v6, 0.0  ;;  %vm19193_vm15 = vmmov %vm19191_vm2 }
 0x979   :  { %v6187_v34 = vsel %vm19186_vm10, %v6185_v5, 0.0  ;;  %v6195_v43 = vsel %vm19187_vm3, %v6186_v35, 0.0  ;;  %v6209_v31 = vpack.c.bf16 %v6198_v53, %v6190_v22  ;;  %vm19194_vm8 = vmmov %vm19191_vm2  ;;  %vm19196_vm14 = vcmp.ge.s32.totalorder %v19018_v57, 8 }
 0x97a   :  { %v6206_v12 = vpack.c.bf16 %v6195_v43, %v6187_v34  ;;  %vm19195_vm12 = vmmov %vm19191_vm2  ;;  %vm19198_vm10 = vcmp.ge.s32.totalorder %v12148_v19, 8  ;;  %v11701_v43 = vpop.permute.xlu2 %11700 }
 0x97b   :  { %v6521_v11 = vsel %vm3345_vm6, %v6209_v31, 0  ;;  %vm19197_vm11 = vmmov %vm19196_vm14 }
 0x97c   :  { %11925 = vrot.lane.b32.xlu2 %v16402_v1, %s11988_s17  ;;  %11900 = vrot.lane.b32.xlu1 %v16263_v8, %s11988_s17  ;;  %v11691_v0 = vpop.permute.xlu1 %11690  ;;  %v6512_v23 = vsel %vm3345_vm6, %v6206_v12, 0  ;;  %vm19199_vm3 = vmmov %vm19198_vm10 }
 0x97d   :  { %11905 = vrot.lane.b32.xlu0 %v16324_v37, %s11988_s17  ;;  %6596 = vmatpush.bf16.msra.mxu3 %v6521_v11  ;;  %v11693_v49 = vunpack.i.h.bf16 %v11691_v0  ;;  %v11692_v56 = vunpack.i.l.bf16 %v11691_v0  ;;  %v11696_v20 = vpop.permute.xlu0 %11695 }
 0x97e   :  { %6542 = vmatpush.bf16.msra.mxu0 %v6512_v23  ;;  %v11698_v1 = vunpack.i.h.bf16 %v11696_v20  ;;  %v11697_v6 = vunpack.i.l.bf16 %v11696_v20  ;;  %v11703_v20 = vunpack.i.h.bf16 %v11701_v43 }
 0x97f   :  { %v6174_v8 = vsel %vm19188_vm4, %v11688_v26, %v11693_v49  ;;  %v6171_v37 = vsel %vm19189_vm7, %v11692_v56, %v11682_v29  ;;  %v6172_v35 = vsel %vm19190_vm9, %v11693_v49, %v11683_v28  ;;  %v6173_v5 = vsel %vm19191_vm2, %v11687_v21, %v11692_v56 }
 0x980   :  { %v6176_v9 = vsel %vm19192_vm5, %v11698_v1, %v11688_v26  ;;  %v6178_v22 = vsel %vm19193_vm15, %v11678_v30, %v11698_v1  ;;  %v6175_v53 = vsel %vm19194_vm8, %v11697_v6, %v11687_v21  ;;  %v6177_v34 = vsel %vm19195_vm12, %v11677_v58, %v11697_v6 }
 0x981   :  { %10865 = vmatmul.msk.bf16.gmra.mxu2 %vm3338_vm0, %v16549_v63  ;;  %v6191_v28 = vsel %vm19196_vm14, %v6177_v34, 0.0  ;;  %v6199_v30 = vsel %vm19197_vm11, %v6178_v22, 0.0  ;;  %v6192_v29 = vsel %vm19198_vm10, %v6175_v53, 0.0  ;;  %v6200_v58 = vsel %vm19199_vm3, %v6176_v9, 0.0  ;;  %v16716_v53 = vld [vmem:[%s18892_s3] sm:$0xff] }
 0x982   :  { %10860 = vmatmul.msk.bf16.vlgmr.msrb.gmra.mxu0 %vm3338_vm0, %v16484_v27  ;;  %10862 = vmatmul.msk.bf16.vlgmr.msrb.gmra.mxu1 %vm3338_vm0, %v16484_v27  ;;  %v6210_v31 = vpack.c.bf16 %v6199_v30, %v6191_v28  ;;  %v6211_v12 = vpack.c.bf16 %v6200_v58, %v6192_v29  ;;  %vm19200_vm4 = vcmp.ge.s32.totalorder %v12117_v52, 8  ;;  %vm19202_vm9 = vcmp.ge.s32.totalorder %v12107_v45, 8  ;;  %v11716_v30 = vpop.permute.xlu2 %11715 }
 0x983   :  { %10866 = vmatmul.msk.bf16.vlgmr.msrb.gmra.mxu3 %vm3338_vm0, %v16484_v27  ;;  %v6193_v11 = vsel %vm19200_vm4, %v6173_v5, 0.0  ;;  %vm19201_vm7 = vmmov %vm19200_vm4  ;;  %v6194_v26 = vsel %vm19202_vm9, %v6171_v37, 0.0  ;;  %v11702_v1 = vunpack.i.l.bf16 %v11701_v43  ;;  %vm19204_vm5 = vcmp.ge.s32.totalorder %v12101_v39, 4 }
 0x984   :  { %11915 = vrot.lane.b32.xlu1 %v16231_v44, %s11988_s17  ;;  %v6201_v0 = vsel %vm19201_vm7, %v6174_v8, 0.0  ;;  %vm19203_vm2 = vmmov %vm19202_vm9  ;;  %v11706_v21 = vpop.permute.xlu1 %11705  ;;  %v6524_v44 = vsel %vm3345_vm6, %v6210_v31, 0  ;;  %v6527_v49 = vsel %vm3345_vm6, %v6211_v12, 0  ;;  %v11718_v12 = vunpack.i.h.bf16 %v11716_v30 }
 0x985   :  { %11920 = vrot.lane.b32.xlu0 %v16354_v13, %s11988_s17  ;;  %v6212_v23 = vpack.c.bf16 %v6201_v0, %v6193_v11  ;;  %v6202_v27 = vsel %vm19203_vm2, %v6172_v35, 0.0  ;;  %v11708_v6 = vunpack.i.h.bf16 %v11706_v21  ;;  %v11707_v8 = vunpack.i.l.bf16 %v11706_v21  ;;  %6614 = vmatpush.bf16.msrb.mxu0 %v6524_v44  ;;  %vm19205_vm15 = vmmov %vm19204_vm5  ;;  %v6205_v0 = vld [vmem:[%s18892_s3 + $0x8] sm:$0x3] }
 0x986   :  { %v6213_v56 = vpack.c.bf16 %v6202_v27, %v6194_v26  ;;  %6632 = vmatpush.bf16.msrb.mxu1 %v6527_v49  ;;  %v11717_v11 = vunpack.i.l.bf16 %v11716_v30  ;;  %v6502_v49 = vunpack.c.l.b16 %v6205_v0  ;;  %vm19206_vm8 = vcmp.ge.s32.totalorder %v12094_v33, 4 }
 0x987   :  { %v6530_v13 = vsel %vm3345_vm6, %v6212_v23, 0  ;;  %v6722_v37 = vsel %vm3121_vm13, %v11703_v20, %v11708_v6  ;;  %v6721_v35 = vsel %vm3121_vm13, %v11702_v1, %v11707_v8  ;;  %v6720_v26 = vsel %vm3121_vm13, %v11708_v6, %v11718_v12  ;;  %vm19207_vm12 = vmmov %vm19206_vm8 }
 0x988   :  { %v6533_v5 = vsel %vm3345_vm6, %v6213_v56, 0  ;;  %6650 = vmatpush.bf16.msrb.mxu2 %v6530_v13  ;;  %v6729_v9 = vsel %vm19204_vm5, %v6721_v35, 0.0  ;;  %v6737_v22 = vsel %vm19205_vm15, %v6722_v37, 0.0  ;;  %v6719_v27 = vsel %vm3121_vm13, %v11707_v8, %v11717_v11 }
 0x989   :  { %6668 = vmatpush.bf16.msrb.mxu3 %v6533_v5  ;;  %v6749_v34 = vpack.c.bf16 %v6737_v22, %v6729_v9  ;;  %vm19208_vm14 = vcmp.ge.s32.totalorder %v12115_v51, 4  ;;  %vm19210_vm10 = vcmp.ge.s32.totalorder %v12121_v55, 4  ;;  %vm19212_vm4 = vcmp.ge.s32.totalorder %v12117_v52, 4 }
 0x98a   :  { %vm19209_vm11 = vmmov %vm19208_vm14  ;;  %v6730_v8 = vsel %vm19210_vm10, %v6719_v27, 0.0  ;;  %vm19214_vm9 = vcmp.ge.s32.totalorder %v19018_v57, 4  ;;  %vm19216_vm5 = vcmp.ge.s32.totalorder %v12148_v19, 4 }
 0x98b   :  { %vm19211_vm3 = vmmov %vm19210_vm10  ;;  %vm7012_vm10 = vcmp.ge.s32.totalorder %v12121_v55, 2 }
 0x98c   :  { %11930 = vrot.lane.b32.xlu1 %v16320_v62, %s11988_s17  ;;  %v16718_v28 = vpop.permute.xlu1 %11720  ;;  %v11711_v62 = vpop.permute.xlu0 %11710  ;;  %vm19213_vm7 = vmmov %vm19212_vm4 }
 0x98d   :  { %11935 = vrot.lane.b32.xlu0 %v16398_v18, %s11988_s17  ;;  %v6776_v18 = vsel %vm3345_vm6, %v6749_v34, 0  ;;  %v11723_v29 = vunpack.i.h.bf16 %v16718_v28  ;;  %v11722_v58 = vunpack.i.l.bf16 %v16718_v28  ;;  %v11713_v43 = vunpack.i.h.bf16 %v11711_v62  ;;  %v11731_v28 = vpop.permute.xlu2 %11730  ;;  %vm19215_vm2 = vmmov %vm19214_vm9 }
 0x98e   :  { %v11712_v31 = vunpack.i.l.bf16 %v11711_v62  ;;  %v11732_v0 = vunpack.i.l.bf16 %v11731_v28  ;;  %vm19217_vm15 = vmmov %vm19216_vm5 }
 0x98f   :  { %v6724_v21 = vsel %vm3121_vm13, %v11713_v43, %v11703_v20  ;;  %v6738_v20 = vsel %vm19211_vm3, %v6720_v26, 0.0  ;;  %vm7015_vm3 = vcmp.ge.s32.totalorder %v12117_v52, 2 }
 0x990   :  { %v6725_v23 = vsel %vm3121_vm13, %v11722_v58, %v11712_v31  ;;  %v6723_v44 = vsel %vm3121_vm13, %v11712_v31, %v11702_v1  ;;  %v6736_v6 = vsel %vm19209_vm11, %v6724_v21, 0.0  ;;  %v16758_v1 = vpack.c.b16 %v6502_v49, %v6502_v49 }
 0x991   :  { %10876 = vmatmul.msk.bf16.vlgmr.msra.gmra.mxu2 %vm3338_vm0, %v16716_v53  ;;  %v6727_v56 = vsel %vm19206_vm8, %v6725_v23, 0.0  ;;  %v6728_v5 = vsel %vm19208_vm14, %v6723_v44, 0.0  ;;  %v6750_v9 = vpack.c.bf16 %v6738_v20, %v6730_v8  ;;  %v11733_v31 = vunpack.i.h.bf16 %v11731_v28 }
 0x992   :  { %10861 = vmatmul.msk.bf16.gmra.mxu0 %vm3338_vm0, %v16549_v63  ;;  %10863 = vmatmul.msk.bf16.gmra.mxu1 %vm3338_vm0, %v16549_v63  ;;  %v6748_v35 = vpack.c.bf16 %v6736_v6, %v6728_v5  ;;  %v6711_v20 = vsel %vm3121_vm13, %v11732_v0, %v11722_v58  ;;  %vm19218_vm8 = vcmp.ge.s32.totalorder %v12107_v45, 4  ;;  %vm7009_vm14 = vcmp.ge.s32.totalorder %v12094_v33, 2 }
 0x993   :  { %10867 = vmatmul.msk.bf16.gmra.mxu3 %vm3338_vm0, %v16549_v63  ;;  %6836 = vmatpush.bf16.msra.mxu2 %v6776_v18  ;;  %v6726_v63 = vsel %vm3121_vm13, %v11723_v29, %v11713_v43  ;;  %v6779_v18 = vsel %vm3345_vm6, %v6750_v9, 0  ;;  %v6712_v8 = vsel %vm3121_vm13, %v11733_v31, %v11723_v29  ;;  %v6734_v58 = vsel %vm19218_vm8, %v6711_v20, 0.0 }
 0x994   :  { %v6735_v13 = vsel %vm19207_vm12, %v6726_v63, 0.0  ;;  %v11726_v22 = vpop.permute.xlu0 %11725  ;;  %v6773_v62 = vsel %vm3345_vm6, %v6748_v35, 0  ;;  %v11736_v44 = vpop.permute.xlu1 %11735  ;;  %vm19219_vm12 = vmmov %vm19218_vm8  ;;  %vm7010_vm11 = vcmp.ge.s32.totalorder %v12115_v51, 2  ;;  %vm7540_vm8 = vcmp.lt.s32.totalorder %v12117_v52, 126 }
 0x995   :  { %v6747_v37 = vpack.c.bf16 %v6735_v13, %v6727_v56  ;;  %v11728_v30 = vunpack.i.h.bf16 %v11726_v22  ;;  %v11727_v43 = vunpack.i.l.bf16 %v11726_v22  ;;  %v11738_v56 = vunpack.i.h.bf16 %v11736_v44 }
 0x996   :  { %v11737_v13 = vunpack.i.l.bf16 %v11736_v44  ;;  %v6742_v22 = vsel %vm19219_vm12, %v6712_v8, 0.0  ;;  %vm7538_vm12 = vcmp.lt.s32.totalorder %v19018_v57, 126 }
 0x997   :  { %v6770_v34 = vsel %vm3345_vm6, %v6747_v37, 0  ;;  %v6714_v23 = vsel %vm3121_vm13, %v11728_v30, %v11733_v31  ;;  %v6713_v63 = vsel %vm3121_vm13, %v11727_v43, %v11732_v0  ;;  %v6718_v5 = vsel %vm3121_vm13, %v11718_v12, %v11738_v56 }
 0x998   :  { %v6733_v26 = vsel %vm19212_vm4, %v6713_v63, 0.0  ;;  %v6741_v27 = vsel %vm19213_vm7, %v6714_v23, 0.0  ;;  %v6717_v6 = vsel %vm3121_vm13, %v11717_v11, %v11737_v13  ;;  %v6715_v37 = vsel %vm3121_vm13, %v11737_v13, %v11727_v43  ;;  %v11746_v43 = vpop.permute.xlu2 %11745 }
 0x999   :  { %v6753_v21 = vpack.c.bf16 %v6741_v27, %v6733_v26  ;;  %v6716_v35 = vsel %vm3121_vm13, %v11738_v56, %v11728_v30  ;;  %v6731_v9 = vsel %vm19214_vm9, %v6717_v6, 0.0  ;;  %v6739_v12 = vsel %vm19215_vm2, %v6718_v5, 0.0  ;;  %v16831_v56 = vld [vmem:[%s18892_s3 + $0x18] sm:$0xff] }
 0x99a   :  { %v6732_v11 = vsel %vm19216_vm5, %v6715_v37, 0.0  ;;  %v6740_v29 = vsel %vm19217_vm15, %v6716_v35, 0.0  ;;  %v11748_v26 = vunpack.i.h.bf16 %v11746_v43  ;;  %v11747_v27 = vunpack.i.l.bf16 %v11746_v43 }
 0x99b   :  { %v6788_v49 = vsel %vm3345_vm6, %v6753_v21, 0  ;;  %v6752_v28 = vpack.c.bf16 %v6740_v29, %v6732_v11  ;;  %vm7011_vm13 = vcmp.ge.s32.totalorder %v12101_v39, 2  ;;  %vm7013_vm4 = vcmp.ge.s32.totalorder %v19018_v57, 2 }
 0x99c   :  { %v11751_v5 = vpop.permute.xlu1 %11750  ;;  %vm7014_vm7 = vcmp.ge.s32.totalorder %v12148_v19, 2  ;;  %vm7016_vm9 = vcmp.ge.s32.totalorder %v12107_v45, 2  ;;  %vm7536_vm2 = vcmp.lt.s32.totalorder %v12101_v39, 126  ;;  %vm7535_vm5 = vcmp.lt.s32.totalorder %v12115_v51, 126 }
 0x99d   :  { %v6785_v31 = vsel %vm3345_vm6, %v6752_v28, 0  ;;  %v11753_v35 = vunpack.i.h.bf16 %v11751_v5  ;;  %vm7537_vm15 = vcmp.lt.s32.totalorder %v12121_v55, 126 }
 0x9a0   :  { %v16842_v20 = vpop.permute.xlu2 %11760 }
 0x9a1   :  { %10877 = vmatmul.msk.bf16.gmra.mxu2 %vm3338_vm0, %v16758_v1  ;;  %v11763_v29 = vunpack.i.h.bf16 %v16842_v20 }
 0x9a2   :  { %10872 = vmatmul.msk.bf16.vlgmr.msra.gmra.mxu0 %vm3338_vm0, %v16716_v53  ;;  %10874 = vmatmul.msk.bf16.vlgmr.msra.gmra.mxu1 %vm3338_vm0, %v16716_v53 }
 0x9a3   :  { %10878 = vmatmul.msk.bf16.vlgmr.msra.gmra.mxu3 %vm3338_vm0, %v16716_v53  ;;  %6800 = vmatpush.bf16.msra.mxu0 %v6770_v34  ;;  %v6751_v34 = vpack.c.bf16 %v6739_v12, %v6731_v9  ;;  %v11752_v9 = vunpack.i.l.bf16 %v11751_v5 }
 0x9a4   :  { %6818 = vmatpush.bf16.msra.mxu1 %v6773_v62  ;;  %6854 = vmatpush.bf16.msra.mxu3 %v6779_v18  ;;  %v6754_v62 = vpack.c.bf16 %v6742_v22, %v6734_v58  ;;  %v11741_v18 = vpop.permute.xlu0 %11740  ;;  %v11762_v58 = vunpack.i.l.bf16 %v16842_v20  ;;  %v10890_v22 = vld [vmem:[%s18892_s3 + $0x20] sm:$0x3] }
 0x9a5   :  { %v6782_v30 = vsel %vm3345_vm6, %v6751_v34, 0  ;;  %v11743_v23 = vunpack.i.h.bf16 %v11741_v18  ;;  %v11742_v63 = vunpack.i.l.bf16 %v11741_v18  ;;  %v6760_v43 = vunpack.c.l.b16 %v10890_v22 }
 0x9a6   :  { %v6791_v0 = vsel %vm3345_vm6, %v6754_v62, 0  ;;  %v7007_v34 = vsel %vm6106_vm1, %v11762_v58, %v11752_v9 }
 0x9a7   :  { %v7004_v21 = vsel %vm6106_vm1, %v11743_v23, %v11748_v26  ;;  %v7003_v44 = vsel %vm6106_vm1, %v11742_v63, %v11747_v27  ;;  %v7005_v28 = vsel %vm6106_vm1, %v11752_v9, %v11742_v63  ;;  %v7006_v62 = vsel %vm6106_vm1, %v11753_v35, %v11743_v23  ;;  %v11766_v9 = vpop.permute.xlu1 %11765 }
 0x9a8   :  { %v7042_v63 = vsel %vm7010_vm11, %v7006_v62, 0.0  ;;  %v11768_v62 = vunpack.i.h.bf16 %v11766_v9 }
 0x9ac   :  { %v16835_v6 = vpop.permute.xlu0 %11755 }
 0x9ad   :  { %v11758_v12 = vunpack.i.h.bf16 %v16835_v6  ;;  %v11757_v11 = vunpack.i.l.bf16 %v16835_v6 }
 0x9af   :  { %v7002_v18 = vsel %vm6106_vm1, %v11748_v26, %v11758_v12 }
 0x9b1   :  { %10884 = vmatmul.msk.bf16.vlgmr.msrb.gmra.mxu2 %vm3338_vm0, %v16716_v53 }
 0x9b2   :  { %10873 = vmatmul.msk.bf16.gmra.mxu0 %vm3338_vm0, %v16758_v1  ;;  %10875 = vmatmul.msk.bf16.gmra.mxu1 %vm3338_vm0, %v16758_v1 }
 0x9b3   :  { %10879 = vmatmul.msk.bf16.gmra.mxu3 %vm3338_vm0, %v16758_v1  ;;  %6908 = vmatpush.bf16.msrb.mxu2 %v6788_v49  ;;  %v7043_v49 = vsel %vm7011_vm13, %v7004_v21, 0.0 }
 0x9c1   :  { %10885 = vmatmul.msk.bf16.gmra.mxu2 %vm3338_vm0, %v16758_v1 }
 0x9c2   :  { %10880 = vmatmul.msk.bf16.vlgmr.msrb.gmra.mxu0 %vm3338_vm0, %v16716_v53  ;;  %10882 = vmatmul.msk.bf16.vlgmr.msrb.gmra.mxu1 %vm3338_vm0, %v16716_v53 }
 0x9c3   :  { %10886 = vmatmul.msk.bf16.vlgmr.msrb.gmra.mxu3 %vm3338_vm0, %v16716_v53  ;;  %6872 = vmatpush.bf16.msrb.mxu0 %v6782_v30  ;;  %v7035_v53 = vsel %vm7011_vm13, %v7003_v44, 0.0  ;;  %v7001_v30 = vsel %vm6106_vm1, %v11747_v27, %v11757_v11  ;;  %v7034_v44 = vsel %vm7010_vm11, %v7005_v28, 0.0  ;;  %v11771_v27 = vpop.permute.xlu0 %11770  ;;  %vm7539_vm13 = vcmp.lt.s32.totalorder %v12148_v19, 126 }
 0x9c4   :  { %6890 = vmatpush.bf16.msrb.mxu1 %v6785_v31  ;;  %6926 = vmatpush.bf16.msrb.mxu3 %v6791_v0  ;;  %v7055_v13 = vpack.c.bf16 %v7043_v49, %v7035_v53  ;;  %v7033_v0 = vsel %vm7009_vm14, %v7007_v34, 0.0  ;;  %v7036_v53 = vsel %vm7012_vm10, %v7001_v30, 0.0  ;;  %v7044_v49 = vsel %vm7012_vm10, %v7002_v18, 0.0 }
 0x9c5   :  { %v11767_v18 = vunpack.i.l.bf16 %v11766_v9  ;;  %v11773_v30 = vunpack.i.h.bf16 %v11771_v27  ;;  %vm19229_vm11 = vcmp.lt.s32.totalorder %v12094_v33, 124 }
 0x9c6   :  { %v7082_v8 = vsel %vm3345_vm6, %v7055_v13, 0  ;;  %v16882_v13 = vpack.c.b16 %v6760_v43, %v6760_v43  ;;  %v11772_v43 = vunpack.i.l.bf16 %v11771_v27  ;;  %vm19230_vm10 = vmmov %vm19229_vm11 }
 0x9d1   :  { %10899 = vmatmul.msk.bf16.vlgmr.msra.gmra.mxu2 %vm3338_vm0, %v16831_v56 }
 0x9d2   :  { %10881 = vmatmul.msk.bf16.gmra.mxu0 %vm3338_vm0, %v16758_v1  ;;  %10883 = vmatmul.msk.bf16.gmra.mxu1 %vm3338_vm0, %v16758_v1  ;;  %v16846_v37 = vpop.f32.mrf.mxu2 }
 0x9d3   :  { %10887 = vmatmul.msk.bf16.gmra.mxu3 %vm3338_vm0, %v16758_v1  ;;  %7142 = vmatpush.bf16.msra.mxu2 %v7082_v8  ;;  %v7008_v1 = vsel %vm6106_vm1, %v11763_v29, %v11753_v35  ;;  %v7054_v8 = vpack.c.bf16 %v7042_v63, %v7034_v44  ;;  %v7056_v35 = vpack.c.bf16 %v7044_v49, %v7036_v53 }
 0x9d4   :  { %v7041_v21 = vsel %vm7009_vm14, %v7008_v1, 0.0  ;;  %v6996_v63 = vsel %vm6106_vm1, %v11768_v62, %v11773_v30  ;;  %v6995_v53 = vsel %vm6106_vm1, %v11767_v18, %v11772_v43  ;;  %vm7541_vm14 = vcmp.lt.s32.totalorder %v12107_v45, 126 }
 0x9d5   :  { %v7053_v5 = vpack.c.bf16 %v7041_v21, %v7033_v0  ;;  %v7079_v1 = vsel %vm3345_vm6, %v7054_v8, 0  ;;  %v7085_v34 = vsel %vm3345_vm6, %v7056_v35, 0  ;;  %v7047_v8 = vsel %vm7015_vm3, %v6996_v63, 0.0 }
 0x9d7   :  { %v7076_v22 = vsel %vm3345_vm6, %v7053_v5, 0  ;;  %v7039_v5 = vsel %vm7015_vm3, %v6995_v53, 0.0  ;;  %vm19231_vm3 = vcmp.lt.s32.totalorder %v12101_v39, 124 }
 0x9d8   :  { %v7059_v27 = vpack.c.bf16 %v7047_v8, %v7039_v5 }
 0x9da   :  { %v16878_v31 = vpop.f32.mrf.mxu2 }
 0x9df   :  { %v16880_v23 = vpop.f32.mrf.mxu0  ;;  %v16884_v26 = vpop.f32.mrf.mxu1 }
 0x9e1   :  { %10900 = vmatmul.msk.bf16.gmra.mxu2 %vm3338_vm0, %v16882_v13 }
 0x9e2   :  { %10895 = vmatmul.msk.bf16.vlgmr.msra.gmra.mxu0 %vm3338_vm0, %v16831_v56  ;;  %10897 = vmatmul.msk.bf16.vlgmr.msra.gmra.mxu1 %vm3338_vm0, %v16831_v56 }
 0x9e3   :  { %10901 = vmatmul.msk.bf16.vlgmr.msra.gmra.mxu3 %vm3338_vm0, %v16831_v56  ;;  %7106 = vmatpush.bf16.msra.mxu0 %v7076_v22  ;;  %v16897_v28 = vpop.f32.mrf.mxu2 }
 0x9e4   :  { %7124 = vmatpush.bf16.msra.mxu1 %v7079_v1  ;;  %7160 = vmatpush.bf16.msra.mxu3 %v7085_v34  ;;  %v7094_v1 = vsel %vm3345_vm6, %v7059_v27, 0  ;;  %v11776_v34 = vpop.permute.xlu2 %11775 }
 0x9e5   :  { %v11778_v5 = vunpack.i.h.bf16 %v11776_v34  ;;  %v11777_v8 = vunpack.i.l.bf16 %v11776_v34  ;;  %v6994_v34 = vsel %vm6106_vm1, %v11773_v30, %v11763_v29 }
 0x9e6   :  { %v16899_v0 = vpop.f32.mrf.mxu3 }
 0x9e7   :  { %v16901_v21 = vpop.f32.mrf.mxu0  ;;  %v16903_v44 = vpop.f32.mrf.mxu1  ;;  %v7000_v27 = vsel %vm6106_vm1, %v11758_v12, %v11778_v5  ;;  %v6993_v12 = vsel %vm6106_vm1, %v11772_v43, %v11762_v58 }
 0x9eb   :  { %v6405_v49 = vpop.f32.mrf.mxu2 }
 0x9ee   :  { %v16910_v35 = vpop.f32.mrf.mxu3 }
 0x9ef   :  { %v16912_v9 = vpop.f32.mrf.mxu0  ;;  %v16914_v22 = vpop.f32.mrf.mxu1 }
 0x9f1   :  { %10907 = vmatmul.msk.bf16.vlgmr.msrb.gmra.mxu2 %vm3338_vm0, %v16831_v56 }
 0x9f2   :  { %10896 = vmatmul.msk.bf16.gmra.mxu0 %vm3338_vm0, %v16882_v13  ;;  %10898 = vmatmul.msk.bf16.gmra.mxu1 %vm3338_vm0, %v16882_v13 }
 0x9f3   :  { %10902 = vmatmul.msk.bf16.gmra.mxu3 %vm3338_vm0, %v16882_v13  ;;  %7214 = vmatpush.bf16.msrb.mxu2 %v7094_v1  ;;  %v6999_v1 = vsel %vm6106_vm1, %v11757_v11, %v11777_v8  ;;  %v7045_v11 = vsel %vm7013_vm4, %v7000_v27, 0.0 }
 0x9f4   :  { %v16927_v53 = vpop.f32.mrf.mxu2  ;;  %v7037_v6 = vsel %vm7013_vm4, %v6999_v1, 0.0  ;;  %vm19232_vm4 = vmmov %vm19231_vm3 }
 0x9f5   :  { %v7057_v29 = vpack.c.bf16 %v7045_v11, %v7037_v6  ;;  %v16986_v6 = vld [vmem:[%s18892_s3 + $0x24] sm:$0xff]  ;;  %v19220_v11 = vpack.c.bf16 %v16257_v50, %v16251_v36 }
 0x9f6   :  { %v16925_v63 = vpop.f32.mrf.mxu3 }
 0x9f7   :  { %v6369_v49 = vpop.f32.mrf.mxu0  ;;  %v6387_v40 = vpop.f32.mrf.mxu1  ;;  %v7088_v58 = vsel %vm3345_vm6, %v7057_v29, 0 }
 0x9f8   :  { %v6998_v49 = vsel %vm6106_vm1, %v11778_v5, %v11768_v62  ;;  %v6997_v40 = vsel %vm6106_vm1, %v11777_v8, %v11767_v18  ;;  %v7040_v18 = vsel %vm7016_vm9, %v6993_v12, 0.0  ;;  %v7048_v8 = vsel %vm7016_vm9, %v6994_v34, 0.0 }
 0x9f9   :  { %v7038_v7 = vsel %vm7014_vm7, %v6997_v40, 0.0  ;;  %v7046_v48 = vsel %vm7014_vm7, %v6998_v49, 0.0  ;;  %v7060_v30 = vpack.c.bf16 %v7048_v8, %v7040_v18  ;;  %vm7517_vm1 = vcmp.lt.s32.totalorder %v12094_v33, 126  ;;  %vm19233_vm7 = vmmov %vm19230_vm10 }
 0x9fa   :  { %v7058_v20 = vpack.c.bf16 %v7046_v48, %v7038_v7  ;;  %vm19234_vm9 = vmmov %vm19233_vm7 }
 0x9fb   :  { %v7097_v48 = vsel %vm3345_vm6, %v7060_v30, 0 }
 0x9fc   :  { %v16952_v5 = vpop.f32.mrf.mxu2  ;;  %v7091_v43 = vsel %vm3345_vm6, %v7058_v20, 0 }
 0x9fe   :  { %v6423_v62 = vpop.f32.mrf.mxu3 }
 0x9ff   :  { %v16954_v41 = vpop.f32.mrf.mxu0  ;;  %v16956_v25 = vpop.f32.mrf.mxu1  ;;  %v7300_v62 = vsel %vm3345_vm6, %v19220_v11, 0 }
 0xa01   :  { %10908 = vmatmul.msk.bf16.gmra.mxu2 %vm3338_vm0, %v16882_v13 }
 0xa02   :  { %10903 = vmatmul.msk.bf16.vlgmr.msrb.gmra.mxu0 %vm3338_vm0, %v16831_v56  ;;  %10905 = vmatmul.msk.bf16.vlgmr.msrb.gmra.mxu1 %vm3338_vm0, %v16831_v56 }
 0xa03   :  { %10909 = vmatmul.msk.bf16.vlgmr.msrb.gmra.mxu3 %vm3338_vm0, %v16831_v56  ;;  %7178 = vmatpush.bf16.msrb.mxu0 %v7088_v58 }
 0xa04   :  { %7196 = vmatpush.bf16.msrb.mxu1 %v7091_v43  ;;  %7232 = vmatpush.bf16.msrb.mxu3 %v7097_v48  ;;  %v16969_v7 = vpop.f32.mrf.mxu2 }
 0xa06   :  { %v16971_v27 = vpop.f32.mrf.mxu3 }
 0xa07   :  { %v16973_v1 = vpop.f32.mrf.mxu0  ;;  %v16975_v49 = vpop.f32.mrf.mxu1 }
 0xa0c   :  { %v6477_v40 = vpop.f32.mrf.mxu2 }
 0xa0e   :  { %v16977_v34 = vpop.f32.mrf.mxu3 }
 0xa0f   :  { %v16979_v56 = vpop.f32.mrf.mxu0  ;;  %v16981_v12 = vpop.f32.mrf.mxu1 }
 0xa11   :  { %10922 = vmatmul.msk.bf16.vlgmr.msra.gmra.mxu2 %vm3338_vm0, %v16986_v6 }
 0xa12   :  { %10904 = vmatmul.msk.bf16.gmra.mxu0 %vm3338_vm0, %v16882_v13  ;;  %10906 = vmatmul.msk.bf16.gmra.mxu1 %vm3338_vm0, %v16882_v13 }
 0xa13   :  { %10910 = vmatmul.msk.bf16.gmra.mxu3 %vm3338_vm0, %v16882_v13  ;;  %7360 = vmatpush.bf16.msra.mxu2 %v7300_v62  ;;  %v10913_v13 = vld [vmem:[%s18892_s3 + $0x2c] sm:$0x3] }
 0xa14   :  { %v6580_v18 = vpop.f32.mrf.mxu2  ;;  %v7066_v58 = vunpack.c.l.b16 %v10913_v13 }
 0xa15   :  { %v17003_v29 = vadd.f32 %v6580_v18, %v16846_v37  ;;  %v19221_v18 = vpack.c.bf16 %v16316_v46, %v16310_v32  ;;  %v19223_v32 = vpack.c.bf16 %v16284_v15, %v16278_v38 }
 0xa16   :  { %v17000_v8 = vpop.f32.mrf.mxu3  ;;  %v17014_v62 = vpack.c.b16 %v7066_v58, %v7066_v58 }
 0xa17   :  { %v6441_v20 = vpop.f32.mrf.mxu0  ;;  %v6459_v30 = vpop.f32.mrf.mxu1  ;;  %v7303_v46 = vsel %vm3345_vm6, %v19223_v32, 0 }
 0xa18   :  { %v7294_v20 = vsel %vm3345_vm6, %v19221_v18, 0 }
 0xa1c   :  { %v6582_v43 = vpop.f32.mrf.mxu2 }
 0xa1d   :  { %v17009_v36 = vadd.f32 %v6582_v43, %v16878_v31  ;;  %v19222_v31 = vpack.c.bf16 %v16227_v47, %v16221_v10 }
 0xa1e   :  { %v6495_v48 = vpop.f32.mrf.mxu3 }
 0xa1f   :  { %v6544_v50 = vpop.f32.mrf.mxu0  ;;  %v6562_v11 = vpop.f32.mrf.mxu1 }
 0xa20   :  { %v17012_v40 = vadd.f32 %v6544_v50, %v16880_v23  ;;  %v17017_v37 = vadd.f32 %v6562_v11, %v16884_v26  ;;  %v7297_v23 = vsel %vm3345_vm6, %v19222_v31, 0 }
 0xa21   :  { %10923 = vmatmul.msk.bf16.gmra.mxu2 %vm3338_vm0, %v17014_v62 }
 0xa22   :  { %10918 = vmatmul.msk.bf16.vlgmr.msra.gmra.mxu0 %vm3338_vm0, %v16986_v6  ;;  %10920 = vmatmul.msk.bf16.vlgmr.msra.gmra.mxu1 %vm3338_vm0, %v16986_v6 }
 0xa23   :  { %7324 = vmatpush.bf16.msra.mxu0 %v7294_v20  ;;  %10924 = vmatmul.msk.bf16.vlgmr.msra.gmra.mxu3 %vm3338_vm0, %v16986_v6 }
 0xa24   :  { %7342 = vmatpush.bf16.msra.mxu1 %v7297_v23  ;;  %7378 = vmatpush.bf16.msra.mxu3 %v7303_v46  ;;  %v6585_v26 = vpop.f32.mrf.mxu2 }
 0xa25   :  { %v17040_v30 = vadd.f32 %v6585_v26, %v16897_v28 }
 0xa26   :  { %v6598_v13 = vpop.f32.mrf.mxu3 }
 0xa27   :  { %v6546_v58 = vpop.f32.mrf.mxu0  ;;  %v17043_v43 = vadd.f32 %v6598_v13, %v16899_v0  ;;  %v6564_v47 = vpop.f32.mrf.mxu1 }
 0xa28   :  { %v17046_v10 = vadd.f32 %v6546_v58, %v16901_v21  ;;  %v17049_v48 = vadd.f32 %v6564_v47, %v16903_v44  ;;  %v19224_v21 = vpack.c.bf16 %v16380_v16, %v16388_v17  ;;  %v17093_v47 = vpop.permute.xlu1 %11780 }
 0xa2a   :  { %v7312_v44 = vsel %vm3345_vm6, %v19224_v21, 0 }
 0xa2c   :  { %v6587_v38 = vpop.f32.mrf.mxu2 }
 0xa2d   :  { %v11783_v38 = vunpack.i.h.bf16 %v17093_v47 }
 0xa2e   :  { %v6600_v15 = vpop.f32.mrf.mxu3 }
 0xa2f   :  { %v6549_v50 = vpop.f32.mrf.mxu0  ;;  %v17052_v11 = vadd.f32 %v6600_v15, %v16910_v35  ;;  %v6567_v18 = vpop.f32.mrf.mxu1  ;;  %v11782_v15 = vunpack.i.l.bf16 %v17093_v47 }
 0xa30   :  { %v17055_v28 = vadd.f32 %v6549_v50, %v16912_v9  ;;  %v17058_v0 = vadd.f32 %v6567_v18, %v16914_v22 }
 0xa31   :  { %10930 = vmatmul.msk.bf16.vlgmr.msrb.gmra.mxu2 %vm3338_vm0, %v16986_v6 }
 0xa32   :  { %10919 = vmatmul.msk.bf16.gmra.mxu0 %vm3338_vm0, %v17014_v62  ;;  %10921 = vmatmul.msk.bf16.gmra.mxu1 %vm3338_vm0, %v17014_v62 }
 0xa33   :  { %10925 = vmatmul.msk.bf16.gmra.mxu3 %vm3338_vm0, %v17014_v62  ;;  %7432 = vmatpush.bf16.msrb.mxu2 %v7312_v44 }
 0xa34   :  { %v6652_v35 = vpop.f32.mrf.mxu2 }
 0xa35   :  { %v17073_v22 = vadd.f32 %v6652_v35, %v16927_v53 }
 0xa36   :  { %v6603_v9 = vpop.f32.mrf.mxu3 }
 0xa37   :  { %v6551_v20 = vpop.f32.mrf.mxu0  ;;  %v17076_v31 = vadd.f32 %v6603_v9, %v16925_v63  ;;  %v6569_v23 = vpop.f32.mrf.mxu1  ;;  %v19225_v63 = vpack.c.bf16 %v16346_v60, %v16350_v14  ;;  %v19227_v60 = vpack.c.bf16 %v16294_v61, %v16306_v4 }
 0xa39   :  { %v7306_v53 = vsel %vm3345_vm6, %v19225_v63, 0  ;;  %v7315_v14 = vsel %vm3345_vm6, %v19227_v60, 0 }
 0xa3c   :  { %v6654_v32 = vpop.f32.mrf.mxu2 }
 0xa3d   :  { %v17079_v26 = vadd.f32 %v6654_v32, %v16952_v5  ;;  %v17095_v5 = vpop.permute.xlu0 %11785 }
 0xa3e   :  { %v6605_v46 = vpop.f32.mrf.mxu3  ;;  %v11788_v50 = vunpack.i.h.bf16 %v17095_v5 }
 0xa3f   :  { %v6616_v13 = vpop.f32.mrf.mxu0  ;;  %v6634_v17 = vpop.f32.mrf.mxu1 }
 0xa40   :  { %v17082_v16 = vadd.f32 %v6616_v13, %v16954_v41  ;;  %v17085_v58 = vadd.f32 %v6634_v17, %v16956_v25  ;;  %v19226_v25 = vpack.c.bf16 %v16394_v3, %v16384_v42  ;;  %v7527_v9 = vsel %vm7517_vm1, %v11783_v38, %v11788_v50  ;;  %v17142_v17 = vld [vmem:[%s18892_s3 + $0x30] sm:$0xff] }
 0xa41   :  { %10931 = vmatmul.msk.bf16.gmra.mxu2 %vm3338_vm0, %v17014_v62  ;;  %v7568_v23 = vsel %vm7536_vm2, %v7527_v9, 0.0 }
 0xa42   :  { %10926 = vmatmul.msk.bf16.vlgmr.msrb.gmra.mxu0 %vm3338_vm0, %v16986_v6  ;;  %10928 = vmatmul.msk.bf16.vlgmr.msrb.gmra.mxu1 %vm3338_vm0, %v16986_v6  ;;  %v7309_v41 = vsel %vm3345_vm6, %v19226_v25, 0 }
 0xa43   :  { %7396 = vmatpush.bf16.msrb.mxu0 %v7306_v53  ;;  %10932 = vmatmul.msk.bf16.vlgmr.msrb.gmra.mxu3 %vm3338_vm0, %v16986_v6  ;;  %v11787_v6 = vunpack.i.l.bf16 %v17095_v5  ;;  %v11796_v53 = vpop.permute.xlu1 %11795  ;;  %v17149_v5 = vpop.permute.xlu2 %11790 }
 0xa44   :  { %7414 = vmatpush.bf16.msrb.mxu1 %v7309_v41  ;;  %7450 = vmatpush.bf16.msrb.mxu3 %v7315_v14  ;;  %v6657_v18 = vpop.f32.mrf.mxu2  ;;  %v11797_v25 = vunpack.i.l.bf16 %v11796_v53  ;;  %v11793_v41 = vunpack.i.h.bf16 %v17149_v5  ;;  %v18965_v60 = vunpack.i.l.bf16 %v17149_v5 }
 0xa45   :  { %v17117_v42 = vadd.f32 %v6657_v18, %v16969_v7  ;;  %v7526_v20 = vsel %vm7517_vm1, %v11782_v15, %v11787_v6 }
 0xa46   :  { %v6670_v3 = vpop.f32.mrf.mxu3  ;;  %v7560_v7 = vsel %vm7536_vm2, %v7526_v20, 0.0  ;;  %v7530_v20 = vsel %vm7517_vm1, %v18965_v60, %v11797_v25 }
 0xa47   :  { %v6618_v61 = vpop.f32.mrf.mxu0  ;;  %v17120_v4 = vadd.f32 %v6670_v3, %v16971_v27  ;;  %v6636_v44 = vpop.f32.mrf.mxu1  ;;  %v7580_v63 = vpack.c.bf16 %v7568_v23, %v7560_v7 }
 0xa48   :  { %v17123_v21 = vadd.f32 %v6618_v61, %v16973_v1  ;;  %v17126_v35 = vadd.f32 %v6636_v44, %v16975_v49 }
 0xa4c   :  { %v6659_v32 = vpop.f32.mrf.mxu2 }
 0xa4d   :  { %v7528_v32 = vsel %vm7517_vm1, %v11797_v25, %v11782_v15 }
 0xa4e   :  { %v6672_v27 = vpop.f32.mrf.mxu3 }
 0xa4f   :  { %v6621_v46 = vpop.f32.mrf.mxu0  ;;  %v17134_v1 = vadd.f32 %v6672_v27, %v16977_v34  ;;  %v6639_v49 = vpop.f32.mrf.mxu1 }
 0xa50   :  { %v17137_v13 = vadd.f32 %v6621_v46, %v16979_v56  ;;  %v17145_v47 = vadd.f32 %v6639_v49, %v16981_v12  ;;  %v17151_v34 = vpop.permute.xlu0 %11800  ;;  %v11798_v56 = vunpack.i.h.bf16 %v11796_v53  ;;  %v7607_v12 = vsel %vm3345_vm6, %v7580_v63, 0 }
 0xa51   :  { %10945 = vmatmul.msk.bf16.vlgmr.msra.gmra.mxu2 %vm3338_vm0, %v17142_v17  ;;  %v11803_v14 = vunpack.i.h.bf16 %v17151_v34  ;;  %v11802_v18 = vunpack.i.l.bf16 %v17151_v34  ;;  %v7558_v49 = vsel %vm7517_vm1, %v7530_v20, 0.0  ;;  %v7559_v53 = vsel %vm7535_vm5, %v7528_v32, 0.0 }
 0xa52   :  { %10927 = vmatmul.msk.bf16.gmra.mxu0 %vm3338_vm0, %v17014_v62  ;;  %10929 = vmatmul.msk.bf16.gmra.mxu1 %vm3338_vm0, %v17014_v62  ;;  %v7531_v9 = vsel %vm7517_vm1, %v11793_v41, %v11798_v56  ;;  %v7529_v27 = vsel %vm7517_vm1, %v11798_v56, %v11783_v38  ;;  %v19228_v34 = vunpack.i.l.bf16 %v17149_v5 }
 0xa53   :  { %10933 = vmatmul.msk.bf16.gmra.mxu3 %vm3338_vm0, %v17014_v62  ;;  %7667 = vmatpush.bf16.msra.mxu2 %v7607_v12  ;;  %v7525_v46 = vsel %vm7517_vm1, %v11788_v50, %v11803_v14  ;;  %v7566_v63 = vsel %vm7517_vm1, %v7531_v9, 0.0  ;;  %v7567_v25 = vsel %vm7535_vm5, %v7529_v27, 0.0  ;;  %v11811_v27 = vpop.permute.xlu1 %11810 }
 0xa54   :  { %v6838_v3 = vpop.f32.mrf.mxu2  ;;  %v7569_v56 = vsel %vm7537_vm15, %v7525_v46, 0.0  ;;  %v7579_v60 = vpack.c.bf16 %v7567_v25, %v7559_v53  ;;  %v11812_v46 = vunpack.i.l.bf16 %v11811_v27 }
 0xa55   :  { %v17165_v44 = vadd.f32 %v6838_v3, %v17003_v29  ;;  %v10936_v29 = vld [vmem:[%s18892_s3 + $0x38] sm:$0x3]  ;;  %v7578_v3 = vpack.c.bf16 %v7566_v63, %v7558_v49 }
 0xa56   :  { %v6675_v61 = vpop.f32.mrf.mxu3  ;;  %v7284_v15 = vunpack.c.l.b16 %v10936_v29 }
 0xa57   :  { %v6623_v62 = vpop.f32.mrf.mxu0  ;;  %v17176_v7 = vadd.f32 %v6675_v61, %v17000_v8  ;;  %v6641_v23 = vpop.f32.mrf.mxu1  ;;  %v7524_v8 = vsel %vm7517_vm1, %v11787_v6, %v11802_v18  ;;  %v7601_v32 = vsel %vm3345_vm6, %v7578_v3, 0 }
 0xa58   :  { %v7561_v38 = vsel %vm7537_vm15, %v7524_v8, 0.0  ;;  %v17205_v20 = vpack.c.b16 %v7284_v15, %v7284_v15  ;;  %v11813_v8 = vunpack.i.h.bf16 %v11811_v27 }
 0xa59   :  { %v7581_v9 = vpack.c.bf16 %v7569_v56, %v7561_v38 }
 0xa5c   :  { %v6840_v12 = vpop.f32.mrf.mxu2 }
 0xa5d   :  { %v17200_v6 = vadd.f32 %v6840_v12, %v17009_v36  ;;  %v7604_v36 = vsel %vm3345_vm6, %v7579_v60, 0 }
 0xa5e   :  { %v6677_v61 = vpop.f32.mrf.mxu3 }
 0xa5f   :  { %v6802_v62 = vpop.f32.mrf.mxu0  ;;  %v6820_v23 = vpop.f32.mrf.mxu1 }
 0xa60   :  { %v17203_v50 = vadd.f32 %v6802_v62, %v17012_v40  ;;  %v17208_v29 = vadd.f32 %v6820_v23, %v17017_v37  ;;  %v7610_v40 = vsel %vm3345_vm6, %v7581_v9, 0  ;;  %v11806_v37 = vpop.permute.xlu2 %11805 }
 0xa61   :  { %10946 = vmatmul.msk.bf16.gmra.mxu2 %vm3338_vm0, %v17205_v20  ;;  %v11808_v25 = vunpack.i.h.bf16 %v11806_v37  ;;  %v11807_v38 = vunpack.i.l.bf16 %v11806_v37 }
 0xa62   :  { %10941 = vmatmul.msk.bf16.vlgmr.msra.gmra.mxu0 %vm3338_vm0, %v17142_v17  ;;  %10943 = vmatmul.msk.bf16.vlgmr.msra.gmra.mxu1 %vm3338_vm0, %v17142_v17 }
 0xa63   :  { %7631 = vmatpush.bf16.msra.mxu0 %v7601_v32  ;;  %10947 = vmatmul.msk.bf16.vlgmr.msra.gmra.mxu3 %vm3338_vm0, %v17142_v17  ;;  %v7519_v61 = vsel %vm7517_vm1, %v11808_v25, %v11813_v8 }
 0xa64   :  { %7649 = vmatpush.bf16.msra.mxu1 %v7604_v36  ;;  %7685 = vmatpush.bf16.msra.mxu3 %v7610_v40  ;;  %v6843_v49 = vpop.f32.mrf.mxu2  ;;  %v7572_v23 = vsel %vm7540_vm8, %v7519_v61, 0.0  ;;  %v11816_v40 = vpop.permute.xlu0 %11815 }
 0xa65   :  { %v17222_v63 = vadd.f32 %v6843_v49, %v17040_v30  ;;  %v7518_v30 = vsel %vm7517_vm1, %v11807_v38, %v11812_v46  ;;  %v11818_v49 = vunpack.i.h.bf16 %v11816_v40 }
 0xa66   :  { %v6856_v15 = vpop.f32.mrf.mxu3  ;;  %v7564_v62 = vsel %vm7540_vm8, %v7518_v30, 0.0 }
 0xa67   :  { %v6804_v53 = vpop.f32.mrf.mxu0  ;;  %v17225_v56 = vadd.f32 %v6856_v15, %v17043_v43  ;;  %v6822_v12 = vpop.f32.mrf.mxu1  ;;  %v7584_v36 = vpack.c.bf16 %v7572_v23, %v7564_v62  ;;  %v11817_v15 = vunpack.i.l.bf16 %v11816_v40  ;;  %v7523_v30 = vsel %vm7517_vm1, %v11803_v14, %v11818_v49 }
 0xa68   :  { %v17228_v60 = vadd.f32 %v6804_v53, %v17046_v10  ;;  %v17231_v3 = vadd.f32 %v6822_v12, %v17049_v48  ;;  %v7532_v14 = vsel %vm7517_vm1, %v11812_v46, %v19228_v34 }
 0xa69   :  { %v7522_v61 = vsel %vm7517_vm1, %v11802_v18, %v11817_v15  ;;  %v7520_v18 = vsel %vm7517_vm1, %v11817_v15, %v11807_v38 }
 0xa6c   :  { %v6845_v9 = vpop.f32.mrf.mxu2 }
 0xa6d   :  { %v7562_v9 = vsel %vm7538_vm12, %v7522_v61, 0.0 }
 0xa6e   :  { %v6858_v43 = vpop.f32.mrf.mxu3 }
 0xa6f   :  { %v6807_v32 = vpop.f32.mrf.mxu0  ;;  %v17239_v10 = vadd.f32 %v6858_v43, %v17052_v11  ;;  %v6825_v48 = vpop.f32.mrf.mxu1  ;;  %v7619_v11 = vsel %vm3345_vm6, %v7584_v36, 0  ;;  %v7570_v43 = vsel %vm7538_vm12, %v7523_v30, 0.0  ;;  %v7565_v36 = vsel %vm7541_vm14, %v7532_v14, 0.0 }
 0xa70   :  { %v17242_v27 = vadd.f32 %v6807_v32, %v17055_v28  ;;  %v17245_v37 = vadd.f32 %v6825_v48, %v17058_v0  ;;  %v7563_v32 = vsel %vm7539_vm13, %v7520_v18, 0.0 }
 0xa71   :  { %10953 = vmatmul.msk.bf16.vlgmr.msrb.gmra.mxu2 %vm3338_vm0, %v17142_v17 }
 0xa72   :  { %10942 = vmatmul.msk.bf16.gmra.mxu0 %vm3338_vm0, %v17205_v20  ;;  %10944 = vmatmul.msk.bf16.gmra.mxu1 %vm3338_vm0, %v17205_v20 }
 0xa73   :  { %10948 = vmatmul.msk.bf16.gmra.mxu3 %vm3338_vm0, %v17205_v20  ;;  %7739 = vmatpush.bf16.msrb.mxu2 %v7619_v11 }
 0xa74   :  { %v6910_v28 = vpop.f32.mrf.mxu2 }
 0xa75   :  { %v17257_v53 = vadd.f32 %v6910_v28, %v17073_v22  ;;  %v7533_v22 = vsel %vm7517_vm1, %v11813_v8, %v11793_v41  ;;  %v7582_v28 = vpack.c.bf16 %v7570_v43, %v7562_v9 }
 0xa76   :  { %v6861_v0 = vpop.f32.mrf.mxu3  ;;  %v7573_v40 = vsel %vm7541_vm14, %v7533_v22, 0.0 }
 0xa77   :  { %v6809_v12 = vpop.f32.mrf.mxu0  ;;  %v17268_v62 = vadd.f32 %v6861_v0, %v17076_v31  ;;  %v6827_v23 = vpop.f32.mrf.mxu1  ;;  %v7521_v31 = vsel %vm7517_vm1, %v11818_v49, %v11808_v25  ;;  %v7585_v0 = vpack.c.bf16 %v7573_v40, %v7565_v36  ;;  %v7613_v15 = vsel %vm3345_vm6, %v7582_v28, 0  ;;  %vm19235_vm1 = vmmov %vm19233_vm7 }
 0xa78   :  { %v7571_v48 = vsel %vm7539_vm13, %v7521_v31, 0.0  ;;  %v17297_v12 = vpop.permute.xlu1 %11825  ;;  %vm19236_vm2 = vmmov %vm19235_vm1  ;;  %vm19241_vm13 = vcmp.lt.s32.totalorder %v12115_v51, 124 }
 0xa79   :  { %v7583_v49 = vpack.c.bf16 %v7571_v48, %v7563_v32  ;;  %v11828_v61 = vunpack.i.h.bf16 %v17297_v12  ;;  %v11827_v30 = vunpack.i.l.bf16 %v17297_v12  ;;  %vm19237_vm5 = vmmov %vm19235_vm1 }
 0xa7a   :  { %vm19238_vm15 = vmmov %vm19235_vm1 }
 0xa7b   :  { %vm19239_vm8 = vmmov %vm19235_vm1 }
 0xa7c   :  { %v6912_v11 = vpop.f32.mrf.mxu2  ;;  %vm19240_vm12 = vmmov %vm19235_vm1 }
 0xa7d   :  { %v17286_v5 = vadd.f32 %v6912_v11, %v17079_v26  ;;  %v7616_v26 = vsel %vm3345_vm6, %v7583_v49, 0  ;;  %vm19242_vm14 = vmmov %vm19241_vm13 }
 0xa7e   :  { %v6863_v41 = vpop.f32.mrf.mxu3 }
 0xa7f   :  { %v6874_v8 = vpop.f32.mrf.mxu0  ;;  %v6892_v25 = vpop.f32.mrf.mxu1  ;;  %v17335_v41 = vld [vmem:[%s18892_s3 + $0x3c] sm:$0xff] }
 0xa80   :  { %v17289_v46 = vadd.f32 %v6874_v8, %v17082_v16  ;;  %v17292_v38 = vadd.f32 %v6892_v25, %v17085_v58  ;;  %v7622_v16 = vsel %vm3345_vm6, %v7585_v0, 0  ;;  %v11821_v58 = vpop.permute.xlu2 %11820  ;;  %v17337_v25 = vpop.permute.xlu0 %11830 }
 0xa81   :  { %10954 = vmatmul.msk.bf16.gmra.mxu2 %vm3338_vm0, %v17205_v20  ;;  %v11823_v34 = vunpack.i.h.bf16 %v11821_v58  ;;  %v11822_v14 = vunpack.i.l.bf16 %v11821_v58  ;;  %v11833_v12 = vunpack.i.h.bf16 %v17337_v25 }
 0xa82   :  { %10949 = vmatmul.msk.bf16.vlgmr.msrb.gmra.mxu0 %vm3338_vm0, %v17142_v17  ;;  %10951 = vmatmul.msk.bf16.vlgmr.msrb.gmra.mxu1 %vm3338_vm0, %v17142_v17 }
 0xa83   :  { %7703 = vmatpush.bf16.msrb.mxu0 %v7613_v15  ;;  %10955 = vmatmul.msk.bf16.vlgmr.msrb.gmra.mxu3 %vm3338_vm0, %v17142_v17  ;;  %v7833_v48 = vsel %vm19229_vm11, %v11823_v34, %v11828_v61  ;;  %v7832_v36 = vsel %vm19230_vm10, %v11822_v14, %v11827_v30  ;;  %v17347_v15 = vpop.permute.xlu1 %11840  ;;  %vm19243_vm11 = vcmp.lt.s32.totalorder %v12121_v55, 124 }
 0xa84   :  { %7721 = vmatpush.bf16.msrb.mxu1 %v7616_v26  ;;  %7757 = vmatpush.bf16.msrb.mxu3 %v7622_v16  ;;  %v6915_v23 = vpop.f32.mrf.mxu2  ;;  %v11832_v26 = vunpack.i.l.bf16 %v17337_v25  ;;  %v11843_v58 = vunpack.i.h.bf16 %v17347_v15  ;;  %vm19244_vm10 = vmmov %vm19243_vm11 }
 0xa85   :  { %v17310_v31 = vadd.f32 %v6915_v23, %v17117_v42  ;;  %v7842_v42 = vsel %vm19231_vm3, %v7832_v36, 0.0  ;;  %v11842_v23 = vunpack.i.l.bf16 %v17347_v15  ;;  %vm19245_vm3 = vmmov %vm19235_vm1 }
 0xa86   :  { %v6928_v22 = vpop.f32.mrf.mxu3 }
 0xa87   :  { %v17313_v17 = vadd.f32 %v6928_v22, %v17120_v4  ;;  %v6876_v18 = vpop.f32.mrf.mxu0  ;;  %v6894_v9 = vpop.f32.mrf.mxu1  ;;  %v7850_v4 = vsel %vm19232_vm4, %v7833_v48, 0.0  ;;  %vm19246_vm4 = vmmov %vm19235_vm1 }
 0xa88   :  { %v17316_v43 = vadd.f32 %v6876_v18, %v17123_v21  ;;  %v17319_v32 = vadd.f32 %v6894_v9, %v17126_v35  ;;  %v7862_v8 = vpack.c.bf16 %v7850_v4, %v7842_v42 }
 0xa8c   :  { %v6917_v40 = vpop.f32.mrf.mxu2 }
 0xa8d   :  { %v10959_v40 = vld [vmem:[%s18892_s3 + $0x44] sm:$0x3] }
 0xa8e   :  { %v6930_v11 = vpop.f32.mrf.mxu3 }
 0xa8f   :  { %v17330_v21 = vadd.f32 %v6930_v11, %v17134_v1  ;;  %v6879_v28 = vpop.f32.mrf.mxu0  ;;  %v6897_v35 = vpop.f32.mrf.mxu1 }
 0xa90   :  { %v17340_v49 = vadd.f32 %v6879_v28, %v17137_v13  ;;  %v17343_v0 = vadd.f32 %v6897_v35, %v17145_v47  ;;  %v11836_v1 = vpop.permute.xlu2 %11835  ;;  %v7889_v13 = vsel %vm3345_vm6, %v7862_v8, 0 }
 0xa91   :  { %10968 = vmatmul.msk.bf16.vlgmr.msra.gmra.mxu2 %vm3338_vm0, %v17335_v41  ;;  %v11838_v47 = vunpack.i.h.bf16 %v11836_v1  ;;  %v11837_v16 = vunpack.i.l.bf16 %v11836_v1 }
 0xa92   :  { %10950 = vmatmul.msk.bf16.gmra.mxu0 %vm3338_vm0, %v17205_v20  ;;  %10952 = vmatmul.msk.bf16.gmra.mxu1 %vm3338_vm0, %v17205_v20 }
 0xa93   :  { %10956 = vmatmul.msk.bf16.gmra.mxu3 %vm3338_vm0, %v17205_v20  ;;  %7949 = vmatpush.bf16.msra.mxu2 %v7889_v13  ;;  %v7837_v9 = vsel %vm19233_vm7, %v11833_v12, %v11838_v47  ;;  %v7836_v20 = vsel %vm19234_vm9, %v11832_v26, %v11837_v16  ;;  %v7834_v11 = vsel %vm19235_vm1, %v11837_v16, %v11822_v14  ;;  %v7591_v14 = vunpack.c.l.b16 %v10959_v40 }
 0xa94   :  { %v7144_v18 = vpop.f32.mrf.mxu2  ;;  %v7835_v28 = vsel %vm19236_vm2, %v11838_v47, %v11823_v34  ;;  %v7840_v35 = vsel %vm19239_vm8, %v7836_v20, 0.0  ;;  %v7848_v8 = vsel %vm19240_vm12, %v7837_v9, 0.0  ;;  %v7841_v34 = vsel %vm19241_vm13, %v7834_v11, 0.0  ;;  %vm19249_vm2 = vmmov %vm19235_vm1 }
 0xa95   :  { %v17372_v36 = vadd.f32 %v7144_v18, %v17165_v44  ;;  %v7831_v44 = vsel %vm19238_vm15, %v11828_v61, %v11843_v58  ;;  %v7849_v1 = vsel %vm19242_vm14, %v7835_v28, 0.0  ;;  %v7860_v61 = vpack.c.bf16 %v7848_v8, %v7840_v35  ;;  %vm19251_vm15 = vmmov %vm19235_vm1 }
 0xa96   :  { %v6933_v22 = vpop.f32.mrf.mxu3  ;;  %v7851_v13 = vsel %vm19244_vm10, %v7831_v44, 0.0  ;;  %v17404_v20 = vpack.c.b16 %v7591_v14, %v7591_v14  ;;  %vm19247_vm7 = vcmp.lt.s32.totalorder %v12117_v52, 124  ;;  %vm19252_vm8 = vmmov %vm19235_vm1  ;;  %vm19254_vm13 = vcmp.lt.s32.totalorder %v19018_v57, 124 }
 0xa97   :  { %v17369_v48 = vadd.f32 %v6933_v22, %v17176_v7  ;;  %v6881_v42 = vpop.f32.mrf.mxu0  ;;  %v6899_v4 = vpop.f32.mrf.mxu1  ;;  %v7830_v7 = vsel %vm19237_vm5, %v11827_v30, %v11842_v23  ;;  %v7883_v28 = vsel %vm3345_vm6, %v7860_v61, 0  ;;  %vm19248_vm9 = vmmov %vm19247_vm7 }
 0xa98   :  { %v7843_v30 = vsel %vm19243_vm11, %v7830_v7, 0.0  ;;  %v7861_v42 = vpack.c.bf16 %v7849_v1, %v7841_v34  ;;  %v11846_v7 = vpop.permute.xlu0 %11845  ;;  %vm19250_vm5 = vmmov %vm19235_vm1  ;;  %vm19256_vm11 = vcmp.lt.s32.totalorder %v12148_v19, 124 }
 0xa99   :  { %v7863_v4 = vpack.c.bf16 %v7851_v13, %v7843_v30  ;;  %v11848_v44 = vunpack.i.h.bf16 %v11846_v7  ;;  %v11847_v35 = vunpack.i.l.bf16 %v11846_v7  ;;  %vm19253_vm12 = vmmov %vm19235_vm1 }
 0xa9a   :  { %vm19255_vm14 = vmmov %vm19254_vm13 }
 0xa9b   :  { %vm19257_vm10 = vmmov %vm19256_vm11 }
 0xa9c   :  { %v7146_v16 = vpop.f32.mrf.mxu2 }
 0xa9d   :  { %v17402_v22 = vadd.f32 %v7146_v16, %v17200_v6  ;;  %v7886_v6 = vsel %vm3345_vm6, %v7861_v42, 0 }
 0xa9e   :  { %v6935_v47 = vpop.f32.mrf.mxu3 }
 0xa9f   :  { %v7108_v18 = vpop.f32.mrf.mxu0  ;;  %v7126_v9 = vpop.f32.mrf.mxu1 }
 0xaa0   :  { %v17407_v40 = vadd.f32 %v7108_v18, %v17203_v50  ;;  %v17410_v11 = vadd.f32 %v7126_v9, %v17208_v29  ;;  %v7892_v50 = vsel %vm3345_vm6, %v7863_v4, 0  ;;  %v11851_v29 = vpop.permute.xlu2 %11850 }
 0xaa1   :  { %10969 = vmatmul.msk.bf16.gmra.mxu2 %vm3338_vm0, %v17404_v20  ;;  %v11853_v34 = vunpack.i.h.bf16 %v11851_v29  ;;  %v11852_v1 = vunpack.i.l.bf16 %v11851_v29 }
 0xaa2   :  { %10964 = vmatmul.msk.bf16.vlgmr.msra.gmra.mxu0 %vm3338_vm0, %v17335_v41  ;;  %10966 = vmatmul.msk.bf16.vlgmr.msra.gmra.mxu1 %vm3338_vm0, %v17335_v41 }
 0xaa3   :  { %7913 = vmatpush.bf16.msra.mxu0 %v7883_v28  ;;  %10970 = vmatmul.msk.bf16.vlgmr.msra.gmra.mxu3 %vm3338_vm0, %v17335_v41  ;;  %v7825_v9 = vsel %vm19245_vm3, %v11848_v44, %v11853_v34  ;;  %v7824_v42 = vsel %vm19246_vm4, %v11847_v35, %v11852_v1  ;;  %v7838_v15 = vsel %vm19251_vm15, %v11852_v1, %v11832_v26  ;;  %vm19258_vm3 = vcmp.lt.s32.totalorder %v12107_v45, 124 }
 0xaa4   :  { %7931 = vmatpush.bf16.msra.mxu1 %v7886_v6  ;;  %7967 = vmatpush.bf16.msra.mxu3 %v7892_v50  ;;  %v7149_v8 = vpop.f32.mrf.mxu2  ;;  %v11856_v50 = vpop.permute.xlu1 %11855  ;;  %v7847_v26 = vsel %vm19258_vm3, %v7838_v15, 0.0  ;;  %vm19259_vm4 = vmmov %vm19258_vm3  ;;  %vm8127_vm15 = vcmp.lt.s32.totalorder %v19018_v57, 122 }
 0xaa5   :  { %v17424_v30 = vadd.f32 %v7149_v8, %v17222_v63  ;;  %v7846_v63 = vsel %vm19247_vm7, %v7824_v42, 0.0  ;;  %vm8106_vm7 = vcmp.lt.s32.totalorder %v12094_v33, 122 }
 0xaa6   :  { %v7162_v14 = vpop.f32.mrf.mxu3 }
 0xaa7   :  { %v17427_v13 = vadd.f32 %v7162_v14, %v17225_v56  ;;  %v7110_v61 = vpop.f32.mrf.mxu0  ;;  %v7128_v47 = vpop.f32.mrf.mxu1  ;;  %v7854_v56 = vsel %vm19248_vm9, %v7825_v9, 0.0  ;;  %v11858_v14 = vunpack.i.h.bf16 %v11856_v50  ;;  %vm8125_vm9 = vcmp.lt.s32.totalorder %v12101_v39, 122 }
 0xaa8   :  { %v17430_v16 = vadd.f32 %v7110_v61, %v17228_v60  ;;  %v17433_v18 = vadd.f32 %v7128_v47, %v17231_v3  ;;  %v7866_v6 = vpack.c.bf16 %v7854_v56, %v7846_v63  ;;  %v11857_v61 = vunpack.i.l.bf16 %v11856_v50 }
 0xaa9   :  { %v7829_v9 = vsel %vm19249_vm2, %v11843_v58, %v11858_v14  ;;  %vm8124_vm2 = vcmp.lt.s32.totalorder %v12115_v51, 122 }
 0xaaa   :  { %v7828_v47 = vsel %vm19235_vm1, %v11842_v23, %v11857_v61  ;;  %v7826_v58 = vsel %vm19252_vm8, %v11857_v61, %v11847_v35  ;;  %v7852_v23 = vsel %vm19255_vm14, %v7829_v9, 0.0  ;;  %vm8126_vm1 = vcmp.lt.s32.totalorder %v12121_v55, 122 }
 0xaab   :  { %vm8128_vm8 = vcmp.lt.s32.totalorder %v12148_v19, 122 }
 0xaac   :  { %v7151_v4 = vpop.f32.mrf.mxu2 }
 0xaae   :  { %v7164_v28 = vpop.f32.mrf.mxu3 }
 0xaaf   :  { %v17444_v60 = vadd.f32 %v7164_v28, %v17239_v10  ;;  %v7113_v7 = vpop.f32.mrf.mxu0  ;;  %v7131_v3 = vpop.f32.mrf.mxu1  ;;  %v7901_v10 = vsel %vm3345_vm6, %v7866_v6, 0  ;;  %v7839_v28 = vsel %vm19250_vm5, %v11853_v34, %v11833_v12  ;;  %v7845_v12 = vsel %vm19256_vm11, %v7826_v58, 0.0 }
 0xab0   :  { %v17447_v29 = vadd.f32 %v7113_v7, %v17242_v27  ;;  %v17450_v8 = vadd.f32 %v7131_v3, %v17245_v37  ;;  %v7855_v35 = vsel %vm19259_vm4, %v7839_v28, 0.0  ;;  %vm8129_vm5 = vcmp.lt.s32.totalorder %v12117_v52, 122 }
 0xab1   :  { %10976 = vmatmul.msk.bf16.vlgmr.msrb.gmra.mxu2 %vm3338_vm0, %v17335_v41  ;;  %vm19264_vm11 = vcmp.lt.s32.totalorder %v12101_v39, 120 }
 0xab2   :  { %10965 = vmatmul.msk.bf16.gmra.mxu0 %vm3338_vm0, %v17404_v20  ;;  %10967 = vmatmul.msk.bf16.gmra.mxu1 %vm3338_vm0, %v17404_v20 }
 0xab3   :  { %10971 = vmatmul.msk.bf16.gmra.mxu3 %vm3338_vm0, %v17404_v20  ;;  %8021 = vmatpush.bf16.msrb.mxu2 %v7901_v10 }
 0xab4   :  { %v7216_v37 = vpop.f32.mrf.mxu2 }
 0xab5   :  { %v17473_v63 = vadd.f32 %v7216_v37, %v17257_v53  ;;  %v7844_v53 = vsel %vm19254_vm13, %v7828_v47, 0.0  ;;  %v17511_v37 = vpop.permute.xlu0 %11860  ;;  %vm19262_vm13 = vcmp.lt.s32.totalorder %v12094_v33, 120 }
 0xab6   :  { %v7167_v27 = vpop.f32.mrf.mxu3  ;;  %v7864_v34 = vpack.c.bf16 %v7852_v23, %v7844_v53  ;;  %v11863_v47 = vunpack.i.h.bf16 %v17511_v37  ;;  %v11862_v9 = vunpack.i.l.bf16 %v17511_v37  ;;  %vm19263_vm14 = vmmov %vm19262_vm13 }
 0xab7   :  { %v17470_v42 = vadd.f32 %v7167_v27, %v17268_v62  ;;  %v7115_v56 = vpop.f32.mrf.mxu0  ;;  %v7133_v4 = vpop.f32.mrf.mxu1  ;;  %v7827_v62 = vsel %vm19253_vm12, %v11858_v14, %v11848_v44  ;;  %v7867_v14 = vpack.c.bf16 %v7855_v35, %v7847_v26  ;;  %vm8130_vm12 = vcmp.lt.s32.totalorder %v12107_v45, 122  ;;  %vm19266_vm3 = vmmov %vm19262_vm13 }
 0xab8   :  { %v7853_v25 = vsel %vm19257_vm10, %v7827_v62, 0.0  ;;  %v7895_v27 = vsel %vm3345_vm6, %v7864_v34, 0  ;;  %v17541_v35 = vpop.permute.xlu1 %11870  ;;  %vm19265_vm10 = vmmov %vm19264_vm11 }
 0xab9   :  { %v7865_v50 = vpack.c.bf16 %v7853_v25, %v7845_v12  ;;  %vm19267_vm4 = vmmov %vm19266_vm3 }
 0xabc   :  { %v7218_v1 = vpop.f32.mrf.mxu2 }
 0xabd   :  { %v17500_v7 = vadd.f32 %v7218_v1, %v17286_v5  ;;  %v7898_v5 = vsel %vm3345_vm6, %v7865_v50, 0  ;;  %v11876_v50 = vpop.permute.xlu0 %11875 }
 0xabe   :  { %v7169_v44 = vpop.f32.mrf.mxu3 }
 0xabf   :  { %v7180_v3 = vpop.f32.mrf.mxu0  ;;  %v7198_v6 = vpop.f32.mrf.mxu1 }
 0xac0   :  { %v17503_v61 = vadd.f32 %v7180_v3, %v17289_v46  ;;  %v17506_v10 = vadd.f32 %v7198_v6, %v17292_v38  ;;  %v7904_v46 = vsel %vm3345_vm6, %v7867_v14, 0  ;;  %v11866_v38 = vpop.permute.xlu2 %11865  ;;  %v17549_v3 = vld [vmem:[%s18892_s3 + $0x48] sm:$0xff] }
 0xac1   :  { %10977 = vmatmul.msk.bf16.gmra.mxu2 %vm3338_vm0, %v17404_v20  ;;  %v11868_v28 = vunpack.i.h.bf16 %v11866_v38  ;;  %v11867_v15 = vunpack.i.l.bf16 %v11866_v38  ;;  %v11877_v38 = vunpack.i.l.bf16 %v11876_v50 }
 0xac2   :  { %10972 = vmatmul.msk.bf16.vlgmr.msrb.gmra.mxu0 %vm3338_vm0, %v17335_v41  ;;  %10974 = vmatmul.msk.bf16.vlgmr.msrb.gmra.mxu1 %vm3338_vm0, %v17335_v41 }
 0xac3   :  { %7985 = vmatpush.bf16.msrb.mxu0 %v7895_v27  ;;  %10978 = vmatmul.msk.bf16.vlgmr.msrb.gmra.mxu3 %vm3338_vm0, %v17335_v41  ;;  %v8116_v25 = vsel %vm8106_vm7, %v11863_v47, %v11868_v28 }
 0xac4   :  { %8003 = vmatpush.bf16.msrb.mxu1 %v7898_v5  ;;  %8039 = vmatpush.bf16.msrb.mxu3 %v7904_v46  ;;  %v7221_v56 = vpop.f32.mrf.mxu2  ;;  %v8157_v26 = vsel %vm8125_vm9, %v8116_v25, 0.0  ;;  %v18966_v5 = vunpack.i.l.bf16 %v17541_v35  ;;  %v11878_v46 = vunpack.i.h.bf16 %v11876_v50 }
 0xac5   :  { %v17524_v58 = vadd.f32 %v7221_v56, %v17310_v31  ;;  %v8115_v31 = vsel %vm8106_vm7, %v11862_v9, %v11867_v15 }
 0xac6   :  { %v7234_v4 = vpop.f32.mrf.mxu3 }
 0xac7   :  { %v17527_v41 = vadd.f32 %v7234_v4, %v17313_v17  ;;  %v7182_v62 = vpop.f32.mrf.mxu0  ;;  %v7200_v53 = vpop.f32.mrf.mxu1  ;;  %v8149_v17 = vsel %vm8125_vm9, %v8115_v31, 0.0  ;;  %vm19269_vm9 = vmmov %vm19266_vm3 }
 0xac8   :  { %v17531_v23 = vadd.f32 %v7182_v62, %v17316_v43  ;;  %v17534_v12 = vadd.f32 %v7200_v53, %v17319_v32  ;;  %v8169_v6 = vpack.c.bf16 %v8157_v26, %v8149_v17  ;;  %v17557_v37 = vpop.permute.xlu2 %11880 }
 0xac9   :  { %v11883_v56 = vunpack.i.h.bf16 %v17557_v37 }
 0xacc   :  { %v7223_v34 = vpop.f32.mrf.mxu2 }
 0xace   :  { %v7236_v44 = vpop.f32.mrf.mxu3 }
 0xacf   :  { %v17544_v43 = vadd.f32 %v7236_v44, %v17330_v21  ;;  %v7185_v1 = vpop.f32.mrf.mxu0  ;;  %v7203_v32 = vpop.f32.mrf.mxu1  ;;  %v18967_v21 = vunpack.i.h.bf16 %v17541_v35  ;;  %v10982_v44 = vld [vmem:[%s18892_s3 + $0x50] sm:$0x3] }
 0xad0   :  { %v17552_v14 = vadd.f32 %v7185_v1, %v17340_v49  ;;  %v17555_v27 = vadd.f32 %v7203_v32, %v17343_v0  ;;  %v8196_v49 = vsel %vm3345_vm6, %v8169_v6, 0  ;;  %v11882_v0 = vunpack.i.l.bf16 %v17557_v37 }
 0xad1   :  { %10991 = vmatmul.msk.bf16.vlgmr.msra.gmra.mxu2 %vm3338_vm0, %v17549_v3  ;;  %v8120_v53 = vsel %vm8106_vm7, %v18967_v21, %v11878_v46  ;;  %v8118_v1 = vsel %vm8106_vm7, %v11878_v46, %v11863_v47  ;;  %v7873_v6 = vunpack.c.l.b16 %v10982_v44  ;;  %v11886_v44 = vpop.permute.xlu1 %11885 }
 0xad2   :  { %10973 = vmatmul.msk.bf16.gmra.mxu0 %vm3338_vm0, %v17404_v20  ;;  %10975 = vmatmul.msk.bf16.gmra.mxu1 %vm3338_vm0, %v17404_v20  ;;  %v8113_v34 = vsel %vm8106_vm7, %v11867_v15, %v11882_v0  ;;  %v8155_v32 = vsel %vm8106_vm7, %v8120_v53, 0.0 }
 0xad3   :  { %10979 = vmatmul.msk.bf16.gmra.mxu3 %vm3338_vm0, %v17404_v20  ;;  %8256 = vmatpush.bf16.msra.mxu2 %v8196_v49  ;;  %v8119_v20 = vsel %vm8106_vm7, %v18966_v5, %v11877_v38  ;;  %v8156_v49 = vsel %vm8124_vm2, %v8118_v1, 0.0 }
 0xad4   :  { %v7362_v62 = vpop.f32.mrf.mxu2  ;;  %v8147_v15 = vsel %vm8106_vm7, %v8119_v20, 0.0 }
 0xad5   :  { %v17584_v31 = vadd.f32 %v7362_v62, %v17372_v36  ;;  %v8117_v36 = vsel %vm8106_vm7, %v11877_v38, %v11862_v9  ;;  %v17610_v38 = vpack.c.b16 %v7873_v6, %v7873_v6 }
 0xad6   :  { %v7239_v4 = vpop.f32.mrf.mxu3  ;;  %v8148_v50 = vsel %vm8124_vm2, %v8117_v36, 0.0  ;;  %v11887_v36 = vunpack.i.l.bf16 %v11886_v44 }
 0xad7   :  { %v17581_v25 = vadd.f32 %v7239_v4, %v17369_v48  ;;  %v7187_v17 = vpop.f32.mrf.mxu0  ;;  %v7205_v26 = vpop.f32.mrf.mxu1  ;;  %v8114_v48 = vsel %vm8106_vm7, %v11868_v28, %v11883_v56  ;;  %v8150_v4 = vsel %vm8126_vm1, %v8113_v34, 0.0  ;;  %v8167_v28 = vpack.c.bf16 %v8155_v32, %v8147_v15 }
 0xad8   :  { %v8158_v62 = vsel %vm8126_vm1, %v8114_v48, 0.0  ;;  %v8168_v5 = vpack.c.bf16 %v8156_v49, %v8148_v50  ;;  %v11888_v48 = vunpack.i.h.bf16 %v11886_v44  ;;  %vm19270_vm1 = vmmov %vm19266_vm3 }
 0xad9   :  { %v8170_v20 = vpack.c.bf16 %v8158_v62, %v8150_v4  ;;  %v8190_v34 = vsel %vm3345_vm6, %v8167_v28, 0  ;;  %vm19271_vm2 = vmmov %vm19270_vm1 }
 0xadc   :  { %v7364_v26 = vpop.f32.mrf.mxu2 }
 0xadd   :  { %v17608_v9 = vadd.f32 %v7364_v26, %v17402_v22  ;;  %v11891_v22 = vpop.permute.xlu0 %11890 }
 0xade   :  { %v7241_v17 = vpop.f32.mrf.mxu3  ;;  %v11893_v1 = vunpack.i.h.bf16 %v11891_v22  ;;  %v11892_v15 = vunpack.i.l.bf16 %v11891_v22 }
 0xadf   :  { %v7326_v47 = vpop.f32.mrf.mxu0  ;;  %v7344_v46 = vpop.f32.mrf.mxu1 }
 0xae0   :  { %v17613_v21 = vadd.f32 %v7326_v47, %v17407_v40  ;;  %v17616_v53 = vadd.f32 %v7344_v46, %v17410_v11  ;;  %v8193_v40 = vsel %vm3345_vm6, %v8168_v5, 0  ;;  %v8199_v11 = vsel %vm3345_vm6, %v8170_v20, 0 }
 0xae1   :  { %10992 = vmatmul.msk.bf16.gmra.mxu2 %vm3338_vm0, %v17610_v38  ;;  %v8108_v17 = vsel %vm8106_vm7, %v11888_v48, %v11893_v1  ;;  %v8107_v26 = vsel %vm8106_vm7, %v11887_v36, %v11892_v15 }
 0xae2   :  { %10987 = vmatmul.msk.bf16.vlgmr.msra.gmra.mxu0 %vm3338_vm0, %v17549_v3  ;;  %10989 = vmatmul.msk.bf16.vlgmr.msra.gmra.mxu1 %vm3338_vm0, %v17549_v3  ;;  %v8161_v47 = vsel %vm8129_vm5, %v8108_v17, 0.0 }
 0xae3   :  { %8220 = vmatpush.bf16.msra.mxu0 %v8190_v34  ;;  %10993 = vmatmul.msk.bf16.vlgmr.msra.gmra.mxu3 %vm3338_vm0, %v17549_v3 }
 0xae4   :  { %8238 = vmatpush.bf16.msra.mxu1 %v8193_v40  ;;  %8274 = vmatpush.bf16.msra.mxu3 %v8199_v11  ;;  %v7367_v32 = vpop.f32.mrf.mxu2 }
 0xae5   :  { %v17630_v50 = vadd.f32 %v7367_v32, %v17424_v30  ;;  %v8153_v30 = vsel %vm8129_vm5, %v8107_v26, 0.0  ;;  %vm19272_vm5 = vmmov %vm19270_vm1 }
 0xae6   :  { %v7380_v6 = vpop.f32.mrf.mxu3  ;;  %v8173_v44 = vpack.c.bf16 %v8161_v47, %v8153_v30 }
 0xae7   :  { %v17633_v49 = vadd.f32 %v7380_v6, %v17427_v13  ;;  %v7328_v4 = vpop.f32.mrf.mxu0  ;;  %v7346_v62 = vpop.f32.mrf.mxu1 }
 0xae8   :  { %v17636_v5 = vadd.f32 %v7328_v4, %v17430_v16  ;;  %v17639_v28 = vadd.f32 %v7346_v62, %v17433_v18  ;;  %v11896_v18 = vpop.permute.xlu2 %11895 }
 0xae9   :  { %v11898_v11 = vunpack.i.h.bf16 %v11896_v18  ;;  %v11897_v32 = vunpack.i.l.bf16 %v11896_v18 }
 0xaeb   :  { %v8111_v6 = vsel %vm8106_vm7, %v11882_v0, %v11897_v32  ;;  %v8112_v4 = vsel %vm8106_vm7, %v11883_v56, %v11898_v11  ;;  %v8110_v0 = vsel %vm8106_vm7, %v11898_v11, %v11888_v48  ;;  %v8109_v37 = vsel %vm8106_vm7, %v11897_v32, %v11887_v36 }
 0xaec   :  { %v7369_v13 = vpop.f32.mrf.mxu2  ;;  %v19260_v56 = vunpack.i.h.bf16 %v17541_v35 }
 0xaed   :  { %v8151_v13 = vsel %vm8127_vm15, %v8111_v6, 0.0 }
 0xaee   :  { %v7382_v46 = vpop.f32.mrf.mxu3 }
 0xaef   :  { %v17647_v20 = vadd.f32 %v7382_v46, %v17444_v60  ;;  %v7331_v16 = vpop.f32.mrf.mxu0  ;;  %v7349_v34 = vpop.f32.mrf.mxu1  ;;  %v8208_v60 = vsel %vm3345_vm6, %v8173_v44, 0  ;;  %v8159_v46 = vsel %vm8127_vm15, %v8112_v4, 0.0  ;;  %vm19273_vm15 = vmmov %vm19270_vm1 }
 0xaf0   :  { %v17650_v22 = vadd.f32 %v7331_v16, %v17447_v29  ;;  %v17653_v40 = vadd.f32 %v7349_v34, %v17450_v8  ;;  %v8152_v16 = vsel %vm8128_vm8, %v8109_v37, 0.0  ;;  %v8160_v34 = vsel %vm8128_vm8, %v8110_v0, 0.0  ;;  %v11901_v4 = vpop.permute.xlu1 %11900 }
 0xaf1   :  { %10999 = vmatmul.msk.bf16.vlgmr.msrb.gmra.mxu2 %vm3338_vm0, %v17549_v3  ;;  %v8171_v48 = vpack.c.bf16 %v8159_v46, %v8151_v13  ;;  %vm19274_vm8 = vcmp.lt.s32.totalorder %v12115_v51, 120 }
 0xaf2   :  { %10988 = vmatmul.msk.bf16.gmra.mxu0 %vm3338_vm0, %v17610_v38  ;;  %10990 = vmatmul.msk.bf16.gmra.mxu1 %vm3338_vm0, %v17610_v38 }
 0xaf3   :  { %10994 = vmatmul.msk.bf16.gmra.mxu3 %vm3338_vm0, %v17610_v38  ;;  %8328 = vmatpush.bf16.msrb.mxu2 %v8208_v60  ;;  %v8202_v6 = vsel %vm3345_vm6, %v8171_v48, 0 }
 0xaf4   :  { %v7434_v8 = vpop.f32.mrf.mxu2 }
 0xaf5   :  { %v17677_v17 = vadd.f32 %v7434_v8, %v17473_v63  ;;  %v19261_v63 = vunpack.i.l.bf16 %v17541_v35 }
 0xaf6   :  { %v7385_v29 = vpop.f32.mrf.mxu3 }
 0xaf7   :  { %v17674_v62 = vadd.f32 %v7385_v29, %v17470_v42  ;;  %v7333_v26 = vpop.f32.mrf.mxu0  ;;  %v7351_v30 = vpop.f32.mrf.mxu1  ;;  %v8122_v42 = vsel %vm8106_vm7, %v11893_v1, %v19260_v56  ;;  %v8121_v47 = vsel %vm8106_vm7, %v11892_v15, %v19261_v63  ;;  %v8172_v1 = vpack.c.bf16 %v8160_v34, %v8152_v16  ;;  %vm19268_vm7 = vmmov %vm19266_vm3 }
 0xaf8   :  { %v8154_v44 = vsel %vm8130_vm12, %v8121_v47, 0.0  ;;  %v8162_v18 = vsel %vm8130_vm12, %v8122_v42, 0.0  ;;  %v17705_v26 = vpop.permute.xlu0 %11905  ;;  %v11902_v30 = vunpack.i.l.bf16 %v11901_v4  ;;  %vm19275_vm12 = vmmov %vm19274_vm8 }
 0xaf9   :  { %v8174_v8 = vpack.c.bf16 %v8162_v18, %v8154_v44  ;;  %v11908_v0 = vunpack.i.h.bf16 %v17705_v26  ;;  %v11907_v37 = vunpack.i.l.bf16 %v17705_v26 }
 0xafb   :  { %v8421_v44 = vsel %vm19263_vm14, %v11902_v30, %v11907_v37 }
 0xafc   :  { %v7436_v60 = vpop.f32.mrf.mxu2 }
 0xafd   :  { %v17694_v36 = vadd.f32 %v7436_v60, %v17500_v7  ;;  %v8205_v7 = vsel %vm3345_vm6, %v8172_v1, 0  ;;  %v17743_v60 = vld [vmem:[%s18892_s3 + $0x54] sm:$0xff] }
 0xafe   :  { %v7387_v11 = vpop.f32.mrf.mxu3 }
 0xaff   :  { %v7398_v32 = vpop.f32.mrf.mxu0  ;;  %v7416_v29 = vpop.f32.mrf.mxu1 }
 0xb00   :  { %v17697_v35 = vadd.f32 %v7398_v32, %v17503_v61  ;;  %v17700_v15 = vadd.f32 %v7416_v29, %v17506_v10  ;;  %v8211_v61 = vsel %vm3345_vm6, %v8174_v8, 0  ;;  %v11903_v10 = vunpack.i.h.bf16 %v11901_v4  ;;  %v11916_v29 = vpop.permute.xlu1 %11915 }
 0xb01   :  { %11000 = vmatmul.msk.bf16.gmra.mxu2 %vm3338_vm0, %v17610_v38  ;;  %v11918_v4 = vunpack.i.h.bf16 %v11916_v29  ;;  %v11917_v26 = vunpack.i.l.bf16 %v11916_v29 }
 0xb02   :  { %10995 = vmatmul.msk.bf16.vlgmr.msrb.gmra.mxu0 %vm3338_vm0, %v17549_v3  ;;  %10997 = vmatmul.msk.bf16.vlgmr.msrb.gmra.mxu1 %vm3338_vm0, %v17549_v3  ;;  %v8422_v34 = vsel %vm19262_vm13, %v11903_v10, %v11908_v0  ;;  %vm19276_vm13 = vcmp.lt.s32.totalorder %v12121_v55, 120 }
 0xb03   :  { %8292 = vmatpush.bf16.msrb.mxu0 %v8202_v6  ;;  %11001 = vmatmul.msk.bf16.vlgmr.msrb.gmra.mxu3 %vm3338_vm0, %v17549_v3  ;;  %v17755_v6 = vpop.permute.xlu0 %11920  ;;  %vm19277_vm14 = vmmov %vm19276_vm13 }
 0xb04   :  { %8310 = vmatpush.bf16.msrb.mxu1 %v8205_v7  ;;  %8346 = vmatpush.bf16.msrb.mxu3 %v8211_v61  ;;  %v7439_v56 = vpop.f32.mrf.mxu2  ;;  %v11923_v61 = vunpack.i.h.bf16 %v17755_v6 }
 0xb05   :  { %v17718_v63 = vadd.f32 %v7439_v56, %v17524_v58  ;;  %v8431_v58 = vsel %vm19264_vm11, %v8421_v44, 0.0  ;;  %v11922_v56 = vunpack.i.l.bf16 %v17755_v6  ;;  %vm19278_vm11 = vmmov %vm19270_vm1 }
 0xb06   :  { %v7452_v42 = vpop.f32.mrf.mxu3 }
 0xb07   :  { %v17721_v47 = vadd.f32 %v7452_v42, %v17527_v41  ;;  %v7400_v3 = vpop.f32.mrf.mxu0  ;;  %v7418_v13 = vpop.f32.mrf.mxu1  ;;  %v8439_v41 = vsel %vm19265_vm10, %v8422_v34, 0.0  ;;  %vm19279_vm10 = vmmov %vm19270_vm1 }
 0xb08   :  { %v17724_v46 = vadd.f32 %v7400_v3, %v17531_v23  ;;  %v17727_v16 = vadd.f32 %v7418_v13, %v17534_v12  ;;  %v8451_v32 = vpack.c.bf16 %v8439_v41, %v8431_v58 }
 0xb0c   :  { %v7441_v18 = vpop.f32.mrf.mxu2 }
 0xb0d   :  { %v11005_v18 = vld [vmem:[%s18892_s3 + $0x5c] sm:$0x3] }
 0xb0e   :  { %v7454_v48 = vpop.f32.mrf.mxu3 }
 0xb0f   :  { %v17738_v23 = vadd.f32 %v7454_v48, %v17544_v43  ;;  %v7403_v11 = vpop.f32.mrf.mxu0  ;;  %v7421_v12 = vpop.f32.mrf.mxu1  ;;  %v8423_v48 = vsel %vm19268_vm7, %v11917_v26, %v11902_v30  ;;  %v8180_v30 = vunpack.c.l.b16 %v11005_v18  ;;  %vm19282_vm7 = vmmov %vm19270_vm1 }
 0xb10   :  { %v17746_v1 = vadd.f32 %v7403_v11, %v17552_v14  ;;  %v17749_v8 = vadd.f32 %v7421_v12, %v17555_v27  ;;  %v17753_v43 = vpop.permute.xlu2 %11910  ;;  %v8478_v14 = vsel %vm3345_vm6, %v8451_v32, 0  ;;  %v8424_v11 = vsel %vm19269_vm9, %v11918_v4, %v11903_v10  ;;  %vm19283_vm9 = vmmov %vm19270_vm1 }
 0xb11   :  { %11014 = vmatmul.msk.bf16.vlgmr.msra.gmra.mxu2 %vm3338_vm0, %v17743_v60  ;;  %v11913_v27 = vunpack.i.h.bf16 %v17753_v43  ;;  %v11912_v7 = vunpack.i.l.bf16 %v17753_v43  ;;  %v8430_v10 = vsel %vm19274_vm8, %v8423_v48, 0.0  ;;  %v8438_v29 = vsel %vm19275_vm12, %v8424_v11, 0.0 }
 0xb12   :  { %10996 = vmatmul.msk.bf16.gmra.mxu0 %vm3338_vm0, %v17610_v38  ;;  %10998 = vmatmul.msk.bf16.gmra.mxu1 %vm3338_vm0, %v17610_v38  ;;  %vm19287_vm8 = vcmp.lt.s32.totalorder %v19018_v57, 120 }
 0xb13   :  { %11002 = vmatmul.msk.bf16.gmra.mxu3 %vm3338_vm0, %v17610_v38  ;;  %8538 = vmatpush.bf16.msra.mxu2 %v8478_v14  ;;  %v8426_v38 = vsel %vm19266_vm3, %v11913_v27, %v11918_v4  ;;  %v8425_v13 = vsel %vm19267_vm4, %v11912_v7, %v11917_v26  ;;  %vm19280_vm3 = vcmp.lt.s32.totalorder %v12117_v52, 120  ;;  %vm19288_vm12 = vmmov %vm19287_vm8 }
 0xb14   :  { %v7669_v3 = vpop.f32.mrf.mxu2  ;;  %v8429_v12 = vsel %vm19272_vm5, %v8425_v13, 0.0  ;;  %v8437_v32 = vsel %vm19273_vm15, %v8426_v38, 0.0  ;;  %v17812_v13 = vpack.c.b16 %v8180_v30, %v8180_v30  ;;  %vm19281_vm4 = vmmov %vm19280_vm3 }
 0xb15   :  { %v17780_v44 = vadd.f32 %v7669_v3, %v17584_v31  ;;  %v8420_v31 = vsel %vm19271_vm2, %v11908_v0, %v11923_v61  ;;  %v8449_v0 = vpack.c.bf16 %v8437_v32, %v8429_v12  ;;  %vm19284_vm2 = vmmov %vm19270_vm1 }
 0xb16   :  { %v7457_v42 = vpop.f32.mrf.mxu3  ;;  %v8440_v4 = vsel %vm19277_vm14, %v8420_v31, 0.0  ;;  %vm19285_vm5 = vmmov %vm19270_vm1 }
 0xb17   :  { %v17777_v34 = vadd.f32 %v7457_v42, %v17581_v25  ;;  %v7405_v58 = vpop.f32.mrf.mxu0  ;;  %v7423_v41 = vpop.f32.mrf.mxu1  ;;  %v8419_v25 = vsel %vm19270_vm1, %v11907_v37, %v11922_v56  ;;  %v8472_v11 = vsel %vm3345_vm6, %v8449_v0, 0  ;;  %vm19286_vm15 = vmmov %vm19270_vm1 }
 0xb18   :  { %v8432_v37 = vsel %vm19276_vm13, %v8419_v25, 0.0  ;;  %v8450_v58 = vpack.c.bf16 %v8438_v29, %v8430_v10  ;;  %v11931_v25 = vpop.permute.xlu1 %11930  ;;  %vm19289_vm13 = vcmp.lt.s32.totalorder %v12148_v19, 120 }
 0xb19   :  { %v8452_v41 = vpack.c.bf16 %v8440_v4, %v8432_v37  ;;  %v11933_v31 = vunpack.i.h.bf16 %v11931_v25  ;;  %v11932_v12 = vunpack.i.l.bf16 %v11931_v25  ;;  %vm19290_vm14 = vmmov %vm19289_vm13 }
 0xb1b   :  { %v8427_v6 = vsel %vm19284_vm2, %v11932_v12, %v11912_v7 }
 0xb1c   :  { %v7671_v14 = vpop.f32.mrf.mxu2 }
 0xb1d   :  { %v17810_v42 = vadd.f32 %v7671_v14, %v17608_v9  ;;  %v8481_v9 = vsel %vm3345_vm6, %v8452_v41, 0 }
 0xb1e   :  { %v7459_v26 = vpop.f32.mrf.mxu3 }
 0xb1f   :  { %v7633_v3 = vpop.f32.mrf.mxu0  ;;  %v7651_v38 = vpop.f32.mrf.mxu1 }
 0xb20   :  { %v17815_v18 = vadd.f32 %v7633_v3, %v17613_v21  ;;  %v17818_v48 = vadd.f32 %v7651_v38, %v17616_v53  ;;  %v8475_v21 = vsel %vm3345_vm6, %v8450_v58, 0  ;;  %v11926_v53 = vpop.permute.xlu2 %11925 }
 0xb21   :  { %11015 = vmatmul.msk.bf16.gmra.mxu2 %vm3338_vm0, %v17812_v13  ;;  %v11928_v10 = vunpack.i.h.bf16 %v11926_v53  ;;  %v11927_v29 = vunpack.i.l.bf16 %v11926_v53 }
 0xb22   :  { %11010 = vmatmul.msk.bf16.vlgmr.msra.gmra.mxu0 %vm3338_vm0, %v17743_v60  ;;  %11012 = vmatmul.msk.bf16.vlgmr.msra.gmra.mxu1 %vm3338_vm0, %v17743_v60 }
 0xb23   :  { %8502 = vmatpush.bf16.msra.mxu0 %v8472_v11  ;;  %11016 = vmatmul.msk.bf16.vlgmr.msra.gmra.mxu3 %vm3338_vm0, %v17743_v60  ;;  %v8414_v38 = vsel %vm19278_vm11, %v11928_v10, %v11933_v31  ;;  %v8413_v58 = vsel %vm19279_vm10, %v11927_v29, %v11932_v12  ;;  %vm19291_vm11 = vcmp.lt.s32.totalorder %v12107_v45, 120 }
 0xb24   :  { %8520 = vmatpush.bf16.msra.mxu1 %v8475_v21  ;;  %8556 = vmatpush.bf16.msra.mxu3 %v8481_v9  ;;  %v7674_v32 = vpop.f32.mrf.mxu2  ;;  %v11936_v9 = vpop.permute.xlu0 %11935  ;;  %v8436_v7 = vsel %vm19291_vm11, %v8427_v6, 0.0  ;;  %vm19292_vm10 = vmmov %vm19291_vm11 }
 0xb25   :  { %v17832_v37 = vadd.f32 %v7674_v32, %v17630_v50  ;;  %v8435_v50 = vsel %vm19280_vm3, %v8413_v58, 0.0 }
 0xb26   :  { %v7687_v30 = vpop.f32.mrf.mxu3 }
 0xb27   :  { %v17835_v4 = vadd.f32 %v7687_v30, %v17633_v49  ;;  %v7635_v0 = vpop.f32.mrf.mxu0  ;;  %v7653_v26 = vpop.f32.mrf.mxu1  ;;  %v8443_v49 = vsel %vm19281_vm4, %v8414_v38, 0.0  ;;  %v11938_v30 = vunpack.i.h.bf16 %v11936_v9 }
 0xb28   :  { %v17838_v14 = vadd.f32 %v7635_v0, %v17636_v5  ;;  %v17841_v3 = vadd.f32 %v7653_v26, %v17639_v28  ;;  %v8455_v21 = vpack.c.bf16 %v8443_v49, %v8435_v50  ;;  %v11937_v0 = vunpack.i.l.bf16 %v11936_v9 }
 0xb29   :  { %v8418_v38 = vsel %vm19283_vm9, %v11923_v61, %v11938_v30  ;;  %v8416_v61 = vsel %vm19285_vm5, %v11938_v30, %v11928_v10  ;;  %vm19337_vm5 = vcmask 1043456  }
 0xb2a   :  { %v8417_v26 = vsel %vm19282_vm7, %v11922_v56, %v11937_v0  ;;  %v8441_v56 = vsel %vm19288_vm12, %v8418_v38, 0.0  ;;  %v8442_v43 = vsel %vm19290_vm14, %v8416_v61, 0.0  ;;  %vm19341_vm12 = vmmov %vm19337_vm5 }
 0xb2b   :  { %vm19343_vm14 = vmmov %vm19337_vm5 }
 0xb2c   :  { %v7676_v41 = vpop.f32.mrf.mxu2 }
 0xb2e   :  { %v7689_v11 = vpop.f32.mrf.mxu3 }
 0xb2f   :  { %v17852_v5 = vadd.f32 %v7689_v11, %v17647_v20  ;;  %v7638_v25 = vpop.f32.mrf.mxu0  ;;  %v7656_v28 = vpop.f32.mrf.mxu1  ;;  %v8490_v20 = vsel %vm3345_vm6, %v8455_v21, 0  ;;  %v8428_v11 = vsel %vm19270_vm1, %v11933_v31, %v11913_v27 }
 0xb30   :  { %v17855_v53 = vadd.f32 %v7638_v25, %v17650_v22  ;;  %v17858_v32 = vadd.f32 %v7656_v28, %v17653_v40  ;;  %v8444_v31 = vsel %vm19292_vm10, %v8428_v11, 0.0  ;;  %vm19346_vm10 = vmmov %vm19337_vm5 }
 0xb31   :  { %11022 = vmatmul.msk.bf16.vlgmr.msrb.gmra.mxu2 %vm3338_vm0, %v17743_v60  ;;  %v8456_v30 = vpack.c.bf16 %v8444_v31, %v8436_v7 }
 0xb32   :  { %11011 = vmatmul.msk.bf16.gmra.mxu0 %vm3338_vm0, %v17812_v13  ;;  %11013 = vmatmul.msk.bf16.gmra.mxu1 %vm3338_vm0, %v17812_v13 }
 0xb33   :  { %11017 = vmatmul.msk.bf16.gmra.mxu3 %vm3338_vm0, %v17812_v13  ;;  %8610 = vmatpush.bf16.msrb.mxu2 %v8490_v20 }
 0xb34   :  { %v7741_v40 = vpop.f32.mrf.mxu2 }
 0xb35   :  { %v17881_v50 = vadd.f32 %v7741_v40, %v17677_v17  ;;  %v8433_v17 = vsel %vm19287_vm8, %v8417_v26, 0.0  ;;  %vm19340_vm8 = vmmov %vm19337_vm5 }
 0xb36   :  { %v7692_v22 = vpop.f32.mrf.mxu3  ;;  %v8453_v12 = vpack.c.bf16 %v8441_v56, %v8433_v17 }
 0xb37   :  { %v17878_v58 = vadd.f32 %v7692_v22, %v17674_v62  ;;  %v7640_v49 = vpop.f32.mrf.mxu0  ;;  %v7658_v41 = vpop.f32.mrf.mxu1  ;;  %v8415_v62 = vsel %vm19286_vm15, %v11937_v0, %v11927_v29  ;;  %vm19338_vm15 = vmmov %vm19337_vm5 }
 0xb38   :  { %v8434_v27 = vsel %vm19289_vm13, %v8415_v62, 0.0  ;;  %v8484_v22 = vsel %vm3345_vm6, %v8453_v12, 0  ;;  %vm19342_vm13 = vmmov %vm19337_vm5 }
 0xb39   :  { %v8454_v9 = vpack.c.bf16 %v8442_v43, %v8434_v27  ;;  %v11028_v43 = vld [vmem:[%s18892_s3 + $0x68] sm:$0x3] }
 0xb3a   :  { %v8462_v7 = vunpack.c.l.b16 %v11028_v43 }
 0xb3c   :  { %v7743_v29 = vpop.f32.mrf.mxu2 }
 0xb3d   :  { %v17908_v25 = vadd.f32 %v7743_v29, %v17694_v36  ;;  %v8487_v36 = vsel %vm3345_vm6, %v8454_v9, 0  ;;  %v8464_v29 = vpack.c.b16 %v8462_v7, %v8462_v7 }
 0xb3e   :  { %v7694_v10 = vpop.f32.mrf.mxu3 }
 0xb3f   :  { %v7705_v28 = vpop.f32.mrf.mxu0  ;;  %v7723_v21 = vpop.f32.mrf.mxu1 }
 0xb40   :  { %v17911_v0 = vadd.f32 %v7705_v28, %v17697_v35  ;;  %v17914_v20 = vadd.f32 %v7723_v21, %v17700_v15  ;;  %v8493_v35 = vsel %vm3345_vm6, %v8456_v30, 0 }
 0xb41   :  { %11023 = vmatmul.msk.bf16.gmra.mxu2 %vm3338_vm0, %v17812_v13 }
 0xb42   :  { %11018 = vmatmul.msk.bf16.vlgmr.msrb.gmra.mxu0 %vm3338_vm0, %v17743_v60  ;;  %11020 = vmatmul.msk.bf16.vlgmr.msrb.gmra.mxu1 %vm3338_vm0, %v17743_v60 }
 0xb43   :  { %8574 = vmatpush.bf16.msrb.mxu0 %v8484_v22  ;;  %11024 = vmatmul.msk.bf16.vlgmr.msrb.gmra.mxu3 %vm3338_vm0, %v17743_v60 }
 0xb44   :  { %8592 = vmatpush.bf16.msrb.mxu1 %v8487_v36  ;;  %8628 = vmatpush.bf16.msrb.mxu3 %v8493_v35  ;;  %v7746_v15 = vpop.f32.mrf.mxu2 }
 0xb45   :  { %v17928_v26 = vadd.f32 %v7746_v15, %v17718_v63  ;;  %v11075_v63 = vld [vmem:[%s18892_s3 + $0x60] sm:$0xff]  ;;  %s12001_s3 = smov 1  }
 0xb46   :  { %v7759_v40 = vpop.f32.mrf.mxu3 }
 0xb47   :  { %v17931_v38 = vadd.f32 %v7759_v40, %v17721_v47  ;;  %v7707_v49 = vpop.f32.mrf.mxu0  ;;  %v7725_v41 = vpop.f32.mrf.mxu1 }
 0xb48   :  { %v17934_v11 = vadd.f32 %v7707_v49, %v17724_v46  ;;  %v17937_v60 = vadd.f32 %v7725_v41, %v17727_v16 }
 0xb4c   :  { %v7748_v6 = vpop.f32.mrf.mxu2 }
 0xb4e   :  { %v7761_v61 = vpop.f32.mrf.mxu3 }
 0xb4f   :  { %v17940_v62 = vadd.f32 %v7761_v61, %v17738_v23  ;;  %v7710_v17 = vpop.f32.mrf.mxu0  ;;  %v7728_v56 = vpop.f32.mrf.mxu1 }
 0xb50   :  { %v17946_v47 = vadd.f32 %v7710_v17, %v17746_v1  ;;  %v17949_v46 = vadd.f32 %v7728_v56, %v17749_v8 }
 0xb51   :  { %11037 = vmatmul.msk.bf16.vlgmr.msra.gmra.mxu2 %vm3338_vm0, %v11075_v63 }
 0xb52   :  { %11019 = vmatmul.msk.bf16.gmra.mxu0 %vm3338_vm0, %v17812_v13  ;;  %11021 = vmatmul.msk.bf16.gmra.mxu1 %vm3338_vm0, %v17812_v13 }
 0xb53   :  { %11025 = vmatmul.msk.bf16.gmra.mxu3 %vm3338_vm0, %v17812_v13 }
 0xb54   :  { %v17958_v23 = vpop.f32.mrf.mxu2 }
 0xb56   :  { %v7764_v16 = vpop.f32.mrf.mxu3 }
 0xb57   :  { %v17961_v1 = vadd.f32 %v7764_v16, %v17777_v34  ;;  %v7712_v27 = vpop.f32.mrf.mxu0  ;;  %v7730_v8 = vpop.f32.mrf.mxu1 }
 0xb59   :  { %19293 = vst [vmem:[#allocation18_spill] sm:$0xff] %v17961_v1 }
 0xb5c   :  { %v17966_v12 = vpop.f32.mrf.mxu2 }
 0xb5e   :  { %v7766_v31 = vpop.f32.mrf.mxu3 }
 0xb5f   :  { %v17968_v10 = vpop.f32.mrf.mxu0  ;;  %v17970_v13 = vpop.f32.mrf.mxu1 }
 0xb61   :  { %11038 = vmatmul.msk.bf16.gmra.mxu2 %vm3338_vm0, %v8464_v29 }
 0xb62   :  { %11033 = vmatmul.msk.bf16.vlgmr.msra.gmra.mxu0 %vm3338_vm0, %v11075_v63  ;;  %11035 = vmatmul.msk.bf16.vlgmr.msra.gmra.mxu1 %vm3338_vm0, %v11075_v63 }
 0xb63   :  { %11039 = vmatmul.msk.bf16.vlgmr.msra.gmra.mxu3 %vm3338_vm0, %v11075_v63 }
 0xb64   :  { %v17976_v34 = vpop.f32.mrf.mxu2 }
 0xb66   :  { %v17978_v28 = vpop.f32.mrf.mxu3 }
 0xb67   :  { %v17980_v21 = vpop.f32.mrf.mxu0  ;;  %v17982_v9 = vpop.f32.mrf.mxu1 }
 0xb6c   :  { %v7958_v30 = vpop.f32.mrf.mxu2 }
 0xb6e   :  { %v17984_v22 = vpop.f32.mrf.mxu3 }
 0xb6f   :  { %v17986_v36 = vpop.f32.mrf.mxu0  ;;  %v17988_v35 = vpop.f32.mrf.mxu1 }
 0xb71   :  { %11045 = vmatmul.msk.bf16.vlgmr.msrb.gmra.mxu2 %vm3338_vm0, %v11075_v63 }
 0xb72   :  { %11034 = vmatmul.msk.bf16.gmra.mxu0 %vm3338_vm0, %v8464_v29  ;;  %11036 = vmatmul.msk.bf16.gmra.mxu1 %vm3338_vm0, %v8464_v29 }
 0xb73   :  { %11040 = vmatmul.msk.bf16.gmra.mxu3 %vm3338_vm0, %v8464_v29 }
 0xb74   :  { %v8023_v40 = vpop.f32.mrf.mxu2 }
 0xb76   :  { %v17994_v15 = vpop.f32.mrf.mxu3 }
 0xb77   :  { %v7922_v49 = vpop.f32.mrf.mxu0  ;;  %v7940_v41 = vpop.f32.mrf.mxu1 }
 0xb7c   :  { %v8025_v61 = vpop.f32.mrf.mxu2 }
 0xb7e   :  { %v7976_v6 = vpop.f32.mrf.mxu3 }
 0xb7f   :  { %v7987_v17 = vpop.f32.mrf.mxu0  ;;  %v8005_v56 = vpop.f32.mrf.mxu1 }
 0xb81   :  { %11046 = vmatmul.msk.bf16.gmra.mxu2 %vm3338_vm0, %v8464_v29 }
 0xb82   :  { %11041 = vmatmul.msk.bf16.vlgmr.msrb.gmra.mxu0 %vm3338_vm0, %v11075_v63  ;;  %11043 = vmatmul.msk.bf16.vlgmr.msrb.gmra.mxu1 %vm3338_vm0, %v11075_v63 }
 0xb83   :  { %11047 = vmatmul.msk.bf16.vlgmr.msrb.gmra.mxu3 %vm3338_vm0, %v11075_v63 }
 0xb84   :  { %v8028_v16 = vpop.f32.mrf.mxu2 }
 0xb86   :  { %v8041_v27 = vpop.f32.mrf.mxu3 }
 0xb87   :  { %v18000_v8 = vpop.f32.mrf.mxu0  ;;  %v8007_v43 = vpop.f32.mrf.mxu1 }
 0xb8c   :  { %v8030_v7 = vpop.f32.mrf.mxu2 }
 0xb8e   :  { %v18002_v31 = vpop.f32.mrf.mxu3 }
 0xb8f   :  { %v18004_v30 = vpop.f32.mrf.mxu0  ;;  %v8010_v49 = vpop.f32.mrf.mxu1 }
 0xb92   :  { %11042 = vmatmul.msk.bf16.gmra.mxu0 %vm3338_vm0, %v8464_v29  ;;  %11044 = vmatmul.msk.bf16.gmra.mxu1 %vm3338_vm0, %v8464_v29 }
 0xb93   :  { %11048 = vmatmul.msk.bf16.gmra.mxu3 %vm3338_vm0, %v8464_v29 }
 0xb94   :  { %v18011_v63 = vpop.f32.mrf.mxu2 }
 0xb95   :  { %19295 = vst [vmem:[#allocation20_spill] sm:$0xff] %v18011_v63 }
 0xb96   :  { %v18009_v41 = vpop.f32.mrf.mxu3 }
 0xb97   :  { %19294 = vst [vmem:[#allocation19_spill] sm:$0xff] %v18009_v41  ;;  %v7994_v6 = vpop.f32.mrf.mxu0  ;;  %v8012_v59 = vpop.f32.mrf.mxu1 }
 0xb98   :  { %v8056_v59 = vadd.f32 %v8023_v40, %v17881_v50 }
 0xb9c   :  { %v18013_v54 = vpop.f32.mrf.mxu2 }
 0xb9d   :  { %19296 = vst [vmem:[#allocation21_spill] sm:$0xff] %v18013_v54 }
 0xb9e   :  { %v8048_v24 = vpop.f32.mrf.mxu3 }
 0xb9f   :  { %v18015_v7 = vpop.f32.mrf.mxu0  ;;  %v18017_v2 = vpop.f32.mrf.mxu1 }
 0xba4   :  { %v18019_v45 = vpop.f32.mrf.mxu2 }
 0xba5   :  { %19297 = vst [vmem:[#allocation22_spill] sm:$0xff] %v18019_v45 }
 0xba6   :  { %v18021_v19 = vpop.f32.mrf.mxu3 }
 0xba7   :  { %19298 = vst [vmem:[#allocation23_spill] sm:$0xff] %v18021_v19  ;;  %v18023_v57 = vpop.f32.mrf.mxu0  ;;  %v18025_v29 = vpop.f32.mrf.mxu1 }
 0xba8   :  { %19299 = vst [vmem:[#allocation24_spill] sm:$0xff] %v18023_v57  ;;  %v8064_v57 = vadd.f32 %v8025_v61, %v17908_v25 }
 0xba9   :  { %19300 = vst [vmem:[#allocation25_spill] sm:$0xff] %v18025_v29  ;;  %v8054_v29 = vadd.f32 %v7987_v17, %v17911_v0 }
 0xbac   :  { %v8265_v52 = vpop.f32.mrf.mxu2 }
 0xbad   :  { %v8055_v52 = vadd.f32 %v8005_v56, %v17914_v20 }
 0xbae   :  { %v18027_v55 = vpop.f32.mrf.mxu3 }
 0xbaf   :  { %19301 = vst [vmem:[#allocation26_spill] sm:$0xff] %v18027_v55  ;;  %v18029_v6 = vpop.f32.mrf.mxu0  ;;  %v18031_v24 = vpop.f32.mrf.mxu1 }
 0xbb0   :  { %19302 = vst [vmem:[#allocation27_spill] sm:$0xff] %v18029_v6 }
 0xbb1   :  { %19303 = vst [vmem:[#allocation28_spill] sm:$0xff] %v18031_v24 }
 0xbb4   :  { %v8330_v63 = vpop.f32.mrf.mxu2 }
 0xbb5   :  { %v18036_v39 = vadd.f32 %v8330_v63, %v8056_v59  ;;  %v8072_v63 = vadd.f32 %v8028_v16, %v17928_v26 }
 0xbb6   :  { %v18034_v54 = vpop.f32.mrf.mxu3 }
 0xbb7   :  { %v8229_v45 = vpop.f32.mrf.mxu0  ;;  %v8247_v19 = vpop.f32.mrf.mxu1 }
 0xbb8   :  { %v8057_v45 = vadd.f32 %v8041_v27, %v17931_v38  ;;  %v8063_v19 = vadd.f32 %v8007_v43, %v17937_v60 }
 0xbbc   :  { %v8332_v41 = vpop.f32.mrf.mxu2 }
 0xbbd   :  { %v18041_v6 = vadd.f32 %v8332_v41, %v8064_v57 }
 0xbbe   :  { %v8283_v55 = vpop.f32.mrf.mxu3 }
 0xbbf   :  { %v8294_v24 = vpop.f32.mrf.mxu0  ;;  %v8312_v1 = vpop.f32.mrf.mxu1 }
 0xbc0   :  { %v18043_v50 = vadd.f32 %v8294_v24, %v8054_v29  ;;  %v18045_v40 = vadd.f32 %v8312_v1, %v8055_v52  ;;  %v8071_v1 = vadd.f32 %v8010_v49, %v17949_v46 }
 0xbc4   :  { %v8335_v25 = vpop.f32.mrf.mxu2 }
 0xbc5   :  { %v18050_v61 = vadd.f32 %v8335_v25, %v8072_v63 }
 0xbc6   :  { %v8348_v0 = vpop.f32.mrf.mxu3 }
 0xbc7   :  { %v18052_v55 = vadd.f32 %v8348_v0, %v8057_v45  ;;  %v18054_v57 = vpop.f32.mrf.mxu0  ;;  %v8314_v20 = vpop.f32.mrf.mxu1 }
 0xbc8   :  { %v18056_v17 = vadd.f32 %v8314_v20, %v8063_v19 }
 0xbc9   :  { %19304 = vst [vmem:[#allocation29_spill] sm:$0xff] %v18052_v55  ;;  %v8068_v55 = vadd.f32 %v17976_v34, %v17832_v37  ;;  %v8067_v37 = vadd.f32 %v17988_v35, %v17858_v32 }
 0xbcc   :  { %v8337_v56 = vpop.f32.mrf.mxu2 }
 0xbcd   :  { %v8050_v56 = vadd.f32 %v17968_v10, %v17815_v18  ;;  %v8065_v10 = vadd.f32 %v18002_v31, %v17940_v62 }
 0xbce   :  { %v18059_v41 = vpop.f32.mrf.mxu3 }
 0xbcf   :  { %v18061_v26 = vpop.f32.mrf.mxu0  ;;  %v8317_v38 = vpop.f32.mrf.mxu1 }
 0xbd0   :  { %v18063_v60 = vadd.f32 %v8317_v38, %v8071_v1  ;;  %v8051_v38 = vadd.f32 %v17970_v13, %v17818_v48  ;;  %v8053_v48 = vadd.f32 %v17978_v28, %v17835_v4  ;;  %v8069_v4 = vadd.f32 %v17994_v15, %v17878_v58  ;;  %v19310_v13 = vld [vmem:[#allocation18_spill] sm:$0xff]  ;;  %v19314_v15 = vld [vmem:[#allocation21_spill] sm:$0xff] }
 0xbd1   :  { %v8070_v58 = vadd.f32 %v18004_v30, %v17946_v47  ;;  %v19312_v28 = vld [vmem:[#allocation6_spill] sm:$0xff]  ;;  %v19318_v30 = vld [vmem:[#allocation9_spill] sm:$0xff] }
 0xbd2   :  { %19305 = vst [vmem:[#allocation30_spill] sm:$0xff] %v18063_v60  ;;  %v8357_v60 = vadd.f32 %v18015_v7, %v8050_v56  ;;  %v8358_v18 = vadd.f32 %v18017_v2, %v8051_v38  ;;  %v19315_v7 = vld [vmem:[#allocation22_spill] sm:$0xff]  ;;  %v19317_v56 = vld [vmem:[#allocation24_spill] sm:$0xff]  ;;  %v91_v38 = vand.u32 1, %v19318_v30 }
 0xbd4   :  { %v8540_v27 = vpop.f32.mrf.mxu2  ;;  %vm18158_vm7 = vcmp.eq.s32.totalorder %v91_v38, 0 }
 0xbd6   :  { %v18065_v16 = vpop.f32.mrf.mxu3 }
 0xbd7   :  { %v8301_v43 = vpop.f32.mrf.mxu0  ;;  %v8319_v29 = vpop.f32.mrf.mxu1 }
 0xbd8   :  { %v8052_v43 = vadd.f32 %v17958_v23, %v17780_v44  ;;  %v88_v29 = vand.u32 1, %v12094_v33  ;;  %v8058_v44 = vadd.f32 %v17980_v21, %v17838_v14  ;;  %v8059_v23 = vadd.f32 %v17982_v9, %v17841_v3 }
 0xbd9   :  { %v8062_v14 = vadd.f32 %v18000_v8, %v17934_v11  ;;  %v19311_v11 = vld [vmem:[#allocation19_spill] sm:$0xff]  ;;  %v90_v21 = vand.u32 1, %v19312_v28  ;;  %v19323_v28 = vmov 0 }
 0xbda   :  { %vm18107_vm6 = vcmp.eq.s32.totalorder %v88_v29, 0  ;;  %v8073_v34 = vadd.f32 %v19311_v11, %v19310_v13  ;;  %v8365_v62 = vadd.f32 %v19317_v56, %v8058_v44  ;;  %v19319_v29 = vld [vmem:[#allocation25_spill] sm:$0xff]  ;;  %v8376_v11 = vadd.f32 %v18034_v54, %v8069_v4 }
 0xbdb   :  { %vm18145_vm4 = vcmp.eq.s32.totalorder %v90_v21, 0  ;;  %v18170_v4 = vadd.f32 %v18061_v26, %v8070_v58  ;;  %v19328_v21 = vld [vmem:[#allocation8_spill] sm:$0xff] }
 0xbdc   :  { %v8542_v59 = vpop.f32.mrf.mxu2  ;;  %v19324_v28 = vsel %vm18145_vm4, 4294967295, %v19323_v28 }
 0xbdd   :  { %19325 = vst [vmem:[#allocation18_spill] sm:$0xff] %v19324_v28 }
 0xbde   :  { %v8355_v24 = vpop.f32.mrf.mxu3 }
 0xbdf   :  { %v8504_v52 = vpop.f32.mrf.mxu0  ;;  %v8522_v63 = vpop.f32.mrf.mxu1  ;;  %v89_v24 = vand.u32 1, %v12115_v51  ;;  %v8061_v51 = vadd.f32 %v17984_v22, %v17852_v5 }
 0xbe0   :  { %v18101_v2 = vadd.f32 %v8522_v63, %v8358_v18  ;;  %v19321_v18 = vld [vmem:[#allocation27_spill] sm:$0xff] }
 0xbe1   :  { %vm18111_vm3 = vcmp.eq.s32.totalorder %v89_v24, 0  ;;  %v19320_v24 = vld [vmem:[#allocation26_spill] sm:$0xff] }
 0xbe2   :  { %v8680_v31 = vsel %vm18111_vm3, %v18101_v2, 0.0 }
 0xbe4   :  { %v18067_v45 = vpop.f32.mrf.mxu2 }
 0xbe6   :  { %v18069_v46 = vpop.f32.mrf.mxu3 }
 0xbe7   :  { %v8506_v49 = vpop.f32.mrf.mxu0  ;;  %v8524_v19 = vpop.f32.mrf.mxu1 }
 0xbec   :  { %v8547_v25 = vpop.f32.mrf.mxu2 }
 0xbed   :  { %v8060_v25 = vadd.f32 %v17966_v12, %v17810_v42  ;;  %v8066_v42 = vadd.f32 %v17986_v36, %v17855_v53  ;;  %v18099_v12 = vadd.f32 %v8504_v52, %v8357_v60  ;;  %v19313_v36 = vld [vmem:[#allocation20_spill] sm:$0xff]  ;;  %v8375_v60 = vadd.f32 %v19315_v7, %v8068_v55  ;;  %v19316_v52 = vld [vmem:[#allocation23_spill] sm:$0xff] }
 0xbee   :  { %v18071_v0 = vpop.f32.mrf.mxu3  ;;  %v8359_v35 = vadd.f32 %v19313_v36, %v8052_v43  ;;  %v8360_v63 = vadd.f32 %v19316_v52, %v8053_v48  ;;  %v8366_v43 = vadd.f32 %v19319_v29, %v8059_v23  ;;  %v19322_v48 = vld [vmem:[#allocation28_spill] sm:$0xff]  ;;  %v8742_v23 = vmul.f32 %v8680_v31, %v18101_v2 }
 0xbef   :  { %v8509_v20 = vpop.f32.mrf.mxu0  ;;  %v8527_v1 = vpop.f32.mrf.mxu1  ;;  %v8367_v8 = vadd.f32 %v19314_v15, %v8060_v25  ;;  %v8679_v47 = vsel %vm18107_vm6, %v18099_v12, 0.0  ;;  %v8368_v25 = vadd.f32 %v19320_v24, %v8061_v51  ;;  %v8373_v55 = vadd.f32 %v19321_v18, %v8066_v42 }
 0xbf0   :  { %v18141_v13 = vadd.f32 %v8540_v27, %v8359_v35  ;;  %v8374_v44 = vadd.f32 %v19322_v48, %v8067_v37  ;;  %v18153_v36 = vadd.f32 %v8506_v49, %v8365_v62  ;;  %v18155_v51 = vadd.f32 %v8524_v19, %v8366_v43 }
 0xbf1   :  { %v8369_v27 = vadd.f32 %v18054_v57, %v8062_v14  ;;  %v18162_v54 = vadd.f32 %v8509_v20, %v8373_v55  ;;  %v18176_v57 = vadd.f32 %v18067_v45, %v8375_v60  ;;  %v18193_v60 = vadd.f32 %v18071_v0, %v8368_v25 }
 0xbf2   :  { %v18164_v37 = vadd.f32 %v8527_v1, %v8374_v44  ;;  %v8681_v49 = vsel %vm18145_vm4, %v18141_v13, 0.0  ;;  %v8703_v1 = vadd.f32 %v8680_v31, %v8679_v47  ;;  %v8687_v45 = vsel %vm18107_vm6, %v18153_v36, 0.0 }
 0xbf3   :  { %v8688_v7 = vsel %vm18111_vm3, %v18155_v51, 0.0  ;;  %v8695_v52 = vsel %vm18107_vm6, %v18162_v54, 0.0  ;;  %v18203_v62 = vadd.f32 %v18065_v16, %v8073_v34  ;;  %v8697_v0 = vsel %vm18145_vm4, %v18176_v57, 0.0 }
 0xbf4   :  { %v18117_v32 = vpop.f32.mrf.mxu2  ;;  %v8749_v30 = vmul.f32 %v8687_v45, %v18153_v36  ;;  %v8712_v38 = vadd.f32 %v8688_v7, %v8687_v45  ;;  %v8750_v29 = vmul.f32 %v8688_v7, %v18155_v51  ;;  %v8704_v34 = vadd.f32 %v8703_v1, %v8681_v49  ;;  %v19339_v45 = vld [vmem:[#allocation7_spill] sm:$0xff] }
 0xbf5   :  { %v8757_v24 = vmul.f32 %v8695_v52, %v18162_v54  ;;  %v8759_v18 = vmul.f32 %v8697_v0, %v18176_v57  ;;  %v8690_v48 = vsel %vm18158_vm7, %v18193_v60, 0.0  ;;  %v95_v7 = vand.u32 1, %v19339_v45 }
 0xbf6   :  { %v18115_v53 = vpop.f32.mrf.mxu3  ;;  %v18285_v45 = vadd.f32 %v18117_v32, %v18036_v39 }
 0xbf7   :  { %v8511_v9 = vpop.f32.mrf.mxu0  ;;  %v8529_v22 = vpop.f32.mrf.mxu1  ;;  %vm18267_vm11 = vcmp.eq.s32.totalorder %v95_v7, 0 }
 0xbf8   :  { %v18149_v9 = vadd.f32 %v8542_v59, %v8367_v8  ;;  %v8741_v22 = vmul.f32 %v8679_v47, %v18099_v12  ;;  %v18167_v59 = vadd.f32 %v18059_v41, %v8065_v10  ;;  %v94_v41 = vand.u32 1, %v19328_v21  ;;  %v19329_v10 = vld [vmem:[#allocation10_spill] sm:$0xff] }
 0xbf9   :  { %v92_v35 = vand.u32 1, %v19329_v10  ;;  %v18184_v8 = vadd.f32 %v18069_v46, %v8360_v63  ;;  %v8696_v46 = vsel %vm18111_vm3, %v18164_v37, 0.0  ;;  %v19330_v63 = vld [vmem:[#allocation11_spill] sm:$0xff]  ;;  %v8743_v47 = vmul.f32 %v8681_v49, %v18141_v13 }
 0xbfa   :  { %v8689_v20 = vsel %vm18145_vm4, %v18149_v9, 0.0  ;;  %v8765_v15 = vadd.f32 %v8742_v23, %v8741_v22  ;;  %v93_v56 = vand.u32 1, %v19330_v63  ;;  %v8758_v25 = vmul.f32 %v8696_v46, %v18164_v37 }
 0xbfb   :  { %v8751_v31 = vmul.f32 %v8689_v20, %v18149_v9  ;;  %vm18212_vm9 = vcmp.eq.s32.totalorder %v92_v35, 0  ;;  %v8682_v16 = vsel %vm18158_vm7, %v18184_v8, 0.0  ;;  %vm18225_vm1 = vcmp.eq.s32.totalorder %v94_v41, 0 }
 0xbfc   :  { %v8614_v14 = vpop.f32.mrf.mxu2  ;;  %v8766_v55 = vadd.f32 %v8765_v15, %v8743_v47  ;;  %vm18229_vm2 = vcmp.eq.s32.totalorder %v93_v56, 0  ;;  %v8721_v23 = vsel %vm19337_vm5, %v8695_v52, 0.0  ;;  %v8722_v49 = vsel %vm19338_vm15, %v8696_v46, 0.0  ;;  %vm19349_vm15 = vmmov %vm19337_vm5 }
 0xbfd   :  { %v8744_v41 = vmul.f32 %v8682_v16, %v18184_v8  ;;  %v8774_v35 = vadd.f32 %v8750_v29, %v8749_v30  ;;  %v8713_v15 = vadd.f32 %v8712_v38, %v8689_v20  ;;  %v8783_v52 = vsel %vm19340_vm8, %v8757_v24, 0.0  ;;  %vm19350_vm8 = vmmov %vm19337_vm5 }
 0xbfe   :  { %v8565_v19 = vpop.f32.mrf.mxu3  ;;  %v8784_v46 = vsel %vm19341_vm12, %v8758_v25, 0.0  ;;  %v8723_v28 = vadd.f32 %v8722_v49, %v8721_v23  ;;  %v18255_v30 = vadd.f32 %v8614_v14, %v18041_v6  ;;  %v8752_v49 = vmul.f32 %v8690_v48, %v18193_v60  ;;  %vm19351_vm12 = vmmov %vm19337_vm5 }
 0xbff   :  { %v8576_v26 = vpop.f32.mrf.mxu0  ;;  %v8594_v58 = vpop.f32.mrf.mxu1  ;;  %v18236_v19 = vadd.f32 %v18115_v53, %v8376_v11  ;;  %v8705_v11 = vadd.f32 %v8704_v34, %v8682_v16  ;;  %v8767_v38 = vadd.f32 %v8766_v55, %v8744_v41  ;;  %v8785_v29 = vadd.f32 %v8784_v46, %v8783_v52 }
 0xc00   :  { %v18239_v1 = vadd.f32 %v8576_v26, %v18043_v50  ;;  %v8724_v50 = vsel %vm19342_vm13, %v8697_v0, 0.0  ;;  %v8714_v26 = vadd.f32 %v8713_v15, %v8690_v48  ;;  %v8786_v0 = vsel %vm19343_vm14, %v8759_v18, 0.0  ;;  %vm19352_vm13 = vmmov %vm19337_vm5 }
 0xc01   :  { %v8698_v20 = vsel %vm18158_vm7, %v18236_v19, 0.0  ;;  %v8775_v34 = vadd.f32 %v8774_v35, %v8751_v31  ;;  %v18265_v24 = vadd.f32 %v8594_v58, %v18045_v40  ;;  %v8725_v31 = vadd.f32 %v8724_v50, %v8723_v28  ;;  %v19348_v50 = vld [vmem:[#allocation29_spill] sm:$0xff]  ;;  %vm19353_vm14 = vmmov %vm19337_vm5 }
 0xc02   :  { %v8726_v25 = vsel %vm19346_vm10, %v8698_v20, 0.0  ;;  %v8760_v23 = vmul.f32 %v8698_v20, %v18236_v19  ;;  %v8693_v40 = vsel %vm18225_vm1, %v18255_v30, 0.0  ;;  %v8787_v15 = vadd.f32 %v8786_v0, %v8785_v29  ;;  %vm19354_vm10 = vmmov %vm19337_vm5 }
 0xc03   :  { %v8684_v52 = vsel %vm18229_vm2, %v18265_v24, 0.0 }
 0xc04   :  { %v8617_v21 = vpop.f32.mrf.mxu2  ;;  %v8788_v39 = vsel %vm19337_vm5, %v8760_v23, 0.0  ;;  %v8776_v23 = vadd.f32 %v8775_v34, %v8752_v49 }
 0xc05   :  { %v18281_v58 = vadd.f32 %v8617_v21, %v18050_v61  ;;  %v19347_v21 = vld [vmem:[#allocation30_spill] sm:$0xff] }
 0xc06   :  { %v8630_v10 = vpop.f32.mrf.mxu3 }
 0xc07   :  { %v8578_v63 = vpop.f32.mrf.mxu0  ;;  %v8596_v56 = vpop.f32.mrf.mxu1 }
 0xc08   :  { %v18245_v47 = vadd.f32 %v8578_v63, %v8369_v27  ;;  %v18248_v53 = vadd.f32 %v8596_v56, %v18056_v17  ;;  %v8683_v27 = vsel %vm18212_vm9, %v18239_v1, 0.0  ;;  %v8727_v56 = vadd.f32 %v8726_v25, %v8725_v31 }
 0xc09   :  { %v8706_v18 = vadd.f32 %v8705_v11, %v8683_v27 }
 0xc0a   :  { %v8691_v17 = vsel %vm18212_vm9, %v18245_v47, 0.0  ;;  %v8692_v14 = vsel %vm18229_vm2, %v18248_v53, 0.0 }
 0xc0b   :  { %v8715_v16 = vadd.f32 %v8714_v26, %v8691_v17  ;;  %v8707_v32 = vadd.f32 %v8706_v18, %v8684_v52  ;;  %v8701_v26 = vsel %vm18225_vm1, %v18281_v58, 0.0  ;;  %v8789_v18 = vadd.f32 %v8788_v39, %v8787_v15 }
 0xc0c   :  { %v8619_v35 = vpop.f32.mrf.mxu2 }
 0xc0d   :  { %v8716_v55 = vadd.f32 %v8715_v16, %v8692_v14  ;;  %v8763_v35 = vmul.f32 %v8701_v26, %v18281_v58 }
 0xc0e   :  { %v8632_v41 = vpop.f32.mrf.mxu3 }
 0xc0f   :  { %v18288_v7 = vadd.f32 %v8632_v41, %v18167_v59  ;;  %v8581_v63 = vpop.f32.mrf.mxu0  ;;  %v8599_v48 = vpop.f32.mrf.mxu1  ;;  %v8717_v28 = vadd.f32 %v8716_v55, %v8693_v40  ;;  %v18301_v59 = vadd.f32 %v8630_v10, %v19348_v50  ;;  %v8753_v10 = vmul.f32 %v8691_v17, %v18245_v47 }
 0xc10   :  { %v18294_v61 = vadd.f32 %v8581_v63, %v18170_v4  ;;  %v18297_v46 = vadd.f32 %v8599_v48, %v19347_v21  ;;  %v8685_v55 = vsel %vm18225_vm1, %v18285_v45, 0.0  ;;  %v8745_v41 = vmul.f32 %v8683_v27, %v18239_v1 }
 0xc11   :  { %v8694_v11 = vsel %vm18267_vm11, %v18288_v7, 0.0  ;;  %v8686_v48 = vsel %vm18267_vm11, %v18301_v59, 0.0  ;;  %v8732_v21 = vsel %vm19352_vm13, %v8701_v26, 0.0 }
 0xc12   :  { %v8699_v4 = vsel %vm18212_vm9, %v18294_v61, 0.0  ;;  %v8700_v20 = vsel %vm18229_vm2, %v18297_v46, 0.0  ;;  %v8718_v0 = vadd.f32 %v8717_v28, %v8694_v11  ;;  %v8708_v28 = vadd.f32 %v8707_v32, %v8685_v55 }
 0xc13   :  { %v8728_v29 = vsel %vm19349_vm15, %v8699_v4, 0.0  ;;  %v8761_v16 = vmul.f32 %v8699_v4, %v18294_v61  ;;  %v8762_v25 = vmul.f32 %v8700_v20, %v18297_v46  ;;  %v8730_v63 = vsel %vm19351_vm12, %v8700_v20, 0.0  ;;  %vm19355_vm15 = vmmov %vm19337_vm5 }
 0xc14   :  { %v8729_v31 = vadd.f32 %v8728_v29, %v8727_v56  ;;  %8719 = vadd.xlane.f32.xlu1 %v8718_v0  ;;  %v8777_v56 = vadd.f32 %v8776_v23, %v8753_v10  ;;  %v8768_v29 = vadd.f32 %v8767_v38, %v8745_v41  ;;  %v8794_v32 = vsel %vm19354_vm10, %v8763_v35, 0.0 }
 0xc15   :  { %v8790_v17 = vsel %vm19350_vm8, %v8761_v16, 0.0  ;;  %v8792_v39 = vsel %vm19353_vm14, %v8762_v25, 0.0  ;;  %v8754_v16 = vmul.f32 %v8692_v14, %v18248_v53  ;;  %v8709_v10 = vadd.f32 %v8708_v28, %v8686_v48 }
 0xc16   :  { %v8791_v34 = vadd.f32 %v8790_v17, %v8789_v18  ;;  %v8731_v49 = vadd.f32 %v8730_v63, %v8729_v31  ;;  %v8635_v15 = vpop.f32.mrf.mxu3  ;;  %v8746_v23 = vmul.f32 %v8684_v52, %v18265_v24  ;;  %v8755_v14 = vmul.f32 %v8693_v40, %v18255_v30 }
 0xc17   :  { %v18332_v27 = vadd.f32 %v8635_v15, %v18203_v62  ;;  %v8583_v50 = vpop.f32.mrf.mxu0  ;;  %v8601_v4 = vpop.f32.mrf.mxu1  ;;  %v8778_v31 = vadd.f32 %v8777_v56, %v8754_v16  ;;  %v8747_v35 = vmul.f32 %v8685_v55, %v18285_v45  ;;  %v8748_v28 = vmul.f32 %v8686_v48, %v18301_v59 }
 0xc18   :  { %v8733_v0 = vadd.f32 %v8732_v21, %v8731_v49  ;;  %v8793_v20 = vadd.f32 %v8792_v39, %v8791_v34  ;;  %v8769_v41 = vadd.f32 %v8768_v29, %v8746_v23  ;;  %v8756_v49 = vmul.f32 %v8694_v11, %v18288_v7 }
 0xc19   :  { %v8702_v18 = vsel %vm18267_vm11, %v18332_v27, 0.0  ;;  %v8779_v15 = vadd.f32 %v8778_v31, %v8755_v14 }
 0xc1a   :  { %v8764_v26 = vmul.f32 %v8702_v18, %v18332_v27  ;;  %v8734_v25 = vsel %vm19337_vm5, %v8702_v18, 0.0  ;;  %v8795_v62 = vadd.f32 %v8794_v32, %v8793_v20  ;;  %v8770_v52 = vadd.f32 %v8769_v41, %v8747_v35 }
 0xc1b   :  { %v8735_v17 = vadd.f32 %v8734_v25, %v8733_v0  ;;  %v8780_v21 = vadd.f32 %v8779_v15, %v8756_v49 }
 0xc1c   :  { %8710 = vadd.xlane.f32.xlu1 %v8709_v10  ;;  %v8796_v38 = vsel %vm19355_vm15, %v8764_v26, 0.0  ;;  %v8771_v56 = vadd.f32 %v8770_v52, %v8748_v28  ;;  %vm19360_vm15 = vcmask 1045504  }
 0xc1d   :  { %8736 = vadd.xlane.f32.xlu2 %v8735_v17  ;;  %v8797_v63 = vadd.f32 %v8796_v38, %v8795_v62 }
 0xc1e   :  { %v8637_v34 = vpop.f32.mrf.mxu3 }
 0xc1f   :  { %8798 = vadd.xlane.f32.xlu0 %v8797_v63 }
 0xc25   :  { %8781 = vadd.xlane.f32.xlu2 %v8780_v21 }
 0xc27   :  { %8772 = vadd.xlane.f32.xlu0 %v8771_v56 }
 0xc87   :  { %v8720_v39 = vpop.xlane.xlu1 %8719 }
 0xc88   :  { %v18351_v11 = vmul.f32 0.001953125, %v8720_v39 }
 0xc8a   :  { %v8804_v10 = vmul.f32 %v18351_v11, %v18351_v11 }
 0xc8f   :  { %v8711_v20 = vpop.xlane.xlu1 %8710 }
 0xc90   :  { %v8737_v50 = vpop.xlane.xlu2 %8736  ;;  %v18353_v16 = vmul.f32 0.001953125, %v8711_v20 }
 0xc91   :  { %v18347_v40 = vmul.f32 0.001953125, %v8737_v50 }
 0xc92   :  { %v8799_v4 = vpop.xlane.xlu0 %8798  ;;  %v8803_v31 = vmul.f32 %v18353_v16, %v18353_v16 }
 0xc93   :  { %v8802_v0 = vmul.f32 0.001953125, %v8799_v4  ;;  %v8805_v55 = vmul.f32 %v18347_v40, %v18347_v40  ;;  %v8828_v4 = vsub.f32 %v18162_v54, %v18347_v40 }
 0xc95   :  { %v8808_v29 = vsub.f32 %v8802_v0, %v8805_v55  ;;  %v8835_v0 = vsub.f32 %v18332_v27, %v18347_v40  ;;  %v8829_v55 = vsub.f32 %v18164_v37, %v18347_v40  ;;  %v8820_v37 = vsub.f32 %v18153_v36, %v18351_v11 }
 0xc97   :  { %v8811_v48 = vmax.f32 %v8808_v29, 0.0 }
 0xc98   :  { %v8782_v18 = vpop.xlane.xlu2 %8781 }
 0xc99   :  { %v8838_v32 = vadd.f32 1e-05, %v8811_v48  ;;  %v8801_v26 = vmul.f32 0.001953125, %v8782_v18 }
 0xc9a   :  { %v8773_v25 = vpop.xlane.xlu0 %8772 }
 0xc9b   :  { %11951 = vrsqrt.f32 %v8838_v32  ;;  %v8807_v62 = vsub.f32 %v8801_v26, %v8804_v10  ;;  %v8800_v23 = vmul.f32 0.001953125, %v8773_v25  ;;  %vm8865_vm12 = vweird.f32 %v8838_v32  ;;  %v19356_v10 = vld [vmem:[#allocation15_spill] sm:$0xff] }
 0xc9d   :  { %v8810_v17 = vmax.f32 %v8807_v62, 0.0  ;;  %v8806_v38 = vsub.f32 %v8800_v23, %v8803_v31  ;;  %v8821_v31 = vsub.f32 %v18155_v51, %v18351_v11  ;;  %v8831_v51 = vsub.f32 %v18236_v19, %v18347_v40 }
 0xc9f   :  { %v8837_v14 = vadd.f32 1e-05, %v8810_v17  ;;  %v8809_v41 = vmax.f32 %v8806_v38, 0.0  ;;  %v19357_v17 = vld [vmem:[#allocation14_spill] sm:$0xff] }
 0xca1   :  { %v11952_v63 = vpop.eup %11951  ;;  %11953 = vrsqrt.f32 %v8837_v14  ;;  %v18359_v34 = vadd.f32 1e-05, %v8809_v41  ;;  %vm8855_vm10 = vweird.f32 %v8837_v14 }
 0xca2   :  { %v8860_v35 = vmul.f32 %v11952_v63, %v8838_v32  ;;  %vm8866_vm8 = vweird.f32 %v11952_v63 }
 0xca3   :  { %11955 = vrsqrt.f32 %v18359_v34  ;;  %vm8867_vm13 = vmor %vm8865_vm12, %vm8866_vm8 }
 0xca4   :  { %v8861_v49 = vmul.f32 %v11952_v63, %v8860_v35  ;;  %v8830_v35 = vsub.f32 %v18176_v57, %v18347_v40  ;;  %vm19361_vm8 = vmmov %vm19360_vm15 }
 0xca6   :  { %v8862_v15 = vmul.f32 0.5, %v8861_v49 }
 0xca7   :  { %v11954_v28 = vpop.eup %11953 }
 0xca8   :  { %v8863_v52 = vsub.f32 1.5, %v8862_v15  ;;  %v8850_v21 = vmul.f32 %v11954_v28, %v8837_v14  ;;  %vm8856_vm14 = vweird.f32 %v11954_v28  ;;  %v8822_v14 = vsub.f32 %v18149_v9, %v18351_v11  ;;  %v19358_v9 = vld [vmem:[#allocation12_spill] sm:$0xff] }
 0xca9   :  { %v18362_v50 = vpop.eup %11955  ;;  %vm8857_vm5 = vmor %vm8855_vm10, %vm8856_vm14 }
 0xcaa   :  { %v8864_v56 = vmul.f32 %v11952_v63, %v8863_v52  ;;  %v8851_v39 = vmul.f32 %v11954_v28, %v8850_v21  ;;  %v8840_v54 = vmul.f32 %v18362_v50, %v18359_v34  ;;  %vm8846_vm12 = vweird.f32 %v18362_v50  ;;  %vm19362_vm10 = vmmov %vm19361_vm8 }
 0xcac   :  { %v18370_v20 = vsel %vm8867_vm13, %v11952_v63, %v8864_v56  ;;  %v8852_v29 = vmul.f32 0.5, %v8851_v39  ;;  %v8827_v63 = vsub.f32 %v18288_v7, %v18351_v11  ;;  %v8841_v36 = vmul.f32 %v18362_v50, %v8840_v54 }
 0xcad   :  { %v8885_v48 = vmul.f32 %v18370_v20, %v8828_v4  ;;  %v8892_v18 = vmul.f32 %v18370_v20, %v8835_v0  ;;  %v8886_v32 = vmul.f32 %v18370_v20, %v8829_v55  ;;  %v8887_v56 = vmul.f32 %v18370_v20, %v8830_v35 }
 0xcae   :  { %v8853_v26 = vsub.f32 1.5, %v8852_v29  ;;  %v8888_v19 = vmul.f32 %v18370_v20, %v8831_v51  ;;  %v8824_v54 = vsub.f32 %v18245_v47, %v18351_v11  ;;  %vm8845_vm13 = vweird.f32 %v18359_v34 }
 0xcaf   :  { %v8909_v25 = vmul.f32 %v8885_v48, %v19356_v10  ;;  %v8916_v27 = vmul.f32 %v8892_v18, %v19356_v10  ;;  %v8910_v23 = vmul.f32 %v8886_v32, %v19356_v10  ;;  %v19359_v32 = vld [vmem:[#allocation13_spill] sm:$0xff]  ;;  %vm8847_vm14 = vmor %vm8845_vm13, %vm8846_vm12 }
 0xcb0   :  { %v8854_v62 = vmul.f32 %v11954_v28, %v8853_v26 }
 0xcb1   :  { %v8933_v38 = vadd.f32 %v8909_v25, %v19357_v17  ;;  %v8940_v41 = vadd.f32 %v8916_v27, %v19357_v17  ;;  %v8934_v7 = vadd.f32 %v8910_v23, %v19357_v17  ;;  %v8842_v25 = vmul.f32 0.5, %v8841_v36 }
 0xcb2   :  { %v18390_v49 = vsel %vm8857_vm5, %v11954_v28, %v8854_v62  ;;  %v8911_v62 = vmul.f32 %v8887_v56, %v19356_v10  ;;  %vm19363_vm5 = vmmov %vm19361_vm8 }
 0xcb3   :  { %v8957_v15 = vmax.f32 %v8933_v38, 0.0  ;;  %v8964_v52 = vmax.f32 %v8940_v41, 0.0  ;;  %v8877_v21 = vmul.f32 %v18390_v49, %v8820_v37  ;;  %v8878_v57 = vmul.f32 %v18390_v49, %v8821_v31  ;;  %vm19366_vm12 = vmmov %vm19363_vm5 }
 0xcb4   :  { %v8884_v28 = vmul.f32 %v18390_v49, %v8827_v63  ;;  %v8879_v39 = vmul.f32 %v18390_v49, %v8822_v14  ;;  %v8958_v27 = vmax.f32 %v8934_v7, 0.0  ;;  %v8912_v38 = vmul.f32 %v8888_v19, %v19356_v10  ;;  %vm19367_vm13 = vmmov %vm19363_vm5 }
 0xcb5   :  { %v8982_v4 = vrot.slane %v8957_v15, 2  ;;  %v9003_v0 = vrot.slane %v8964_v52, 2  ;;  %v8901_v55 = vmul.f32 %v8877_v21, %v19358_v9  ;;  %v8902_v29 = vmul.f32 %v8878_v57, %v19358_v9 }
 0xcb6   :  { %v8908_v48 = vmul.f32 %v8884_v28, %v19358_v9  ;;  %v8903_v18 = vmul.f32 %v8879_v39, %v19358_v9  ;;  %v8832_v41 = vsub.f32 %v18294_v61, %v18347_v40  ;;  %v8881_v35 = vmul.f32 %v18390_v49, %v8824_v54 }
 0xcb7   :  { %9023 = vrot.lane.b32.xlu2 %v8982_v4, %s12001_s3  ;;  %9051 = vrot.lane.b32.xlu1 %v9003_v0, %s12001_s3  ;;  %v18411_v26 = vadd.f32 %v8901_v55, %v19359_v32  ;;  %v18416_v37 = vadd.f32 %v8902_v29, %v19359_v32  ;;  %v8843_v51 = vsub.f32 1.5, %v8842_v25  ;;  %v8985_v15 = vrot.slane %v8958_v27, 2 }
 0xcb8   :  { %v18421_v31 = vadd.f32 %v8908_v48, %v19359_v32  ;;  %v18428_v47 = vadd.f32 %v8903_v18, %v19359_v32  ;;  %v8889_v14 = vmul.f32 %v18370_v20, %v8832_v41  ;;  %v8935_v21 = vadd.f32 %v8911_v62, %v19357_v17 }
 0xcb9   :  { %v8949_v23 = vmax.f32 %v18411_v26, 0.0  ;;  %v8950_v63 = vmax.f32 %v18416_v37, 0.0  ;;  %v8936_v7 = vadd.f32 %v8912_v38, %v19357_v17  ;;  %v8905_v39 = vmul.f32 %v8881_v35, %v19358_v9 }
 0xcba   :  { %v8956_v56 = vmax.f32 %v18421_v31, 0.0  ;;  %v8951_v28 = vmax.f32 %v18428_v47, 0.0  ;;  %v8823_v55 = vsub.f32 %v18193_v60, %v18351_v11  ;;  %v8844_v19 = vmul.f32 %v18362_v50, %v8843_v51 }
 0xcbb   :  { %v8981_v36 = vrot.slane %v8949_v23, 2  ;;  %v8984_v52 = vrot.slane %v8950_v63, 2  ;;  %v8959_v29 = vmax.f32 %v8935_v21, 0.0  ;;  %v8913_v48 = vmul.f32 %v8889_v14, %v19356_v10 }
 0xcbc   :  { %v9002_v18 = vrot.slane %v8956_v56, 2  ;;  %v8960_v54 = vmax.f32 %v8936_v7, 0.0  ;;  %v8880_v25 = vmul.f32 %v18390_v49, %v8823_v55  ;;  %v8833_v27 = vsub.f32 %v18297_v46, %v18347_v40 }
 0xcbd   :  { %v8983_v61 = vsel %vm19360_vm15, %v8981_v36, %v8982_v4  ;;  %v8986_v57 = vsel %vm19361_vm8, %v8984_v52, %v8985_v15  ;;  %v8825_v4 = vsub.f32 %v18248_v53, %v18351_v11  ;;  %v8987_v60 = vrot.slane %v8951_v28, 2  ;;  %vm19364_vm15 = vmmov %vm19363_vm5 }
 0xcbe   :  { %9021 = vrot.lane.b32.xlu0 %v8983_v61, %s12001_s3  ;;  %v18462_v53 = vadd.f32 %v8905_v39, %v19359_v32  ;;  %v8834_v38 = vsub.f32 %v18281_v58, %v18347_v40  ;;  %v8818_v41 = vsub.f32 %v18285_v45, %v18353_v16  ;;  %v18470_v35 = vsel %vm8847_vm14, %v18362_v50, %v8844_v19  ;;  %vm19365_vm8 = vmmov %vm19363_vm5 }
 0xcbf   :  { %9027 = vrot.lane.b32.xlu2 %v8985_v15, %s12001_s3  ;;  %9025 = vrot.lane.b32.xlu1 %v8986_v57, %s12001_s3  ;;  %v8882_v62 = vmul.f32 %v18390_v49, %v8825_v4  ;;  %v8988_v46 = vrot.slane %v8959_v29, 2  ;;  %v8937_v34 = vadd.f32 %v8913_v48, %v19357_v17  ;;  %v8890_v36 = vmul.f32 %v18370_v20, %v8833_v27 }
 0xcc0   :  { %v9004_v14 = vsel %vm19362_vm10, %v9002_v18, %v9003_v0  ;;  %v8991_v51 = vrot.slane %v8960_v54, 2  ;;  %v8904_v15 = vmul.f32 %v8880_v25, %v19358_v9  ;;  %v8891_v52 = vmul.f32 %v18370_v20, %v8834_v38 }
 0xcc1   :  { %v8989_v58 = vsel %vm19363_vm5, %v8987_v60, %v8988_v46  ;;  %v8953_v45 = vmax.f32 %v18462_v53, 0.0  ;;  %v8906_v40 = vmul.f32 %v8882_v62, %v19358_v9  ;;  %v8819_v50 = vsub.f32 %v18301_v59, %v18353_v16 }
 0xcc2   :  { %v8961_v0 = vmax.f32 %v8937_v34, 0.0  ;;  %v8914_v21 = vmul.f32 %v8890_v36, %v19356_v10  ;;  %v18487_v20 = vmul.f32 %v18470_v35, %v8818_v41  ;;  %v18493_v7 = vadd.f32 %v8904_v15, %v19359_v32 }
 0xcc3   :  { %v18490_v61 = vmul.f32 %v18470_v35, %v8819_v50  ;;  %v8915_v57 = vmul.f32 %v8891_v52, %v19356_v10  ;;  %v8993_v59 = vrot.slane %v8953_v45, 2  ;;  %v18499_v39 = vadd.f32 %v8906_v40, %v19359_v32  ;;  %v9086_v52 = vld [vmem:[%s18897_s8] sm:$0x1]  ;;  %s12002_s8 = smov [#allocation3]  }
 0xcc4   :  { %v8994_v55 = vrot.slane %v8961_v0, 2  ;;  %v8938_v4 = vadd.f32 %v8914_v21, %v19357_v17  ;;  %v8952_v19 = vmax.f32 %v18493_v7, 0.0  ;;  %v8826_v10 = vsub.f32 %v18255_v30, %v18351_v11  ;;  %s10426_s12 = sshll.u32 %s12002_s8, 4  ;;  %s10427_s12 = int_to_ptr.vmem [resolvable:$true] %s10426_s12 }
 0xcc5   :  { %v8939_v29 = vadd.f32 %v8915_v57, %v19357_v17  ;;  %v8954_v18 = vmax.f32 %v18499_v39, 0.0  ;;  %vm9053_vm14 = vcmp.lt.s32.totalorder %v12094_v33, 1  ;;  %v9095_v50 = vsel %vm3338_vm0, %v9086_v52, 0 }
 0xcc6   :  { %9049 = vrot.lane.b32.xlu0 %v9004_v14, %s12001_s3  ;;  %v8995_v48 = vsel %vm19364_vm15, %v8993_v59, %v8994_v55  ;;  %v8962_v54 = vmax.f32 %v8938_v4, 0.0  ;;  %v8990_v25 = vrot.slane %v8952_v19, 2  ;;  %v8883_v17 = vmul.f32 %v18390_v49, %v8826_v10  ;;  %v9087_v49 = vld [vmem:[#allocation2] sm:$0x1] }
 0xcc7   :  { %9029 = vrot.lane.b32.xlu2 %v8989_v58, %s12001_s3  ;;  %9035 = vrot.lane.b32.xlu1 %v8991_v51, %s12001_s3  ;;  %v8963_v27 = vmax.f32 %v8939_v29, 0.0  ;;  %v8996_v60 = vrot.slane %v8954_v18, 2  ;;  %vm19369_vm10 = vcmask 1041408   ;;  %v18557_v4 = vand.u32 4294901760, %v9095_v50 }
 0xcc8   :  { %v8997_v62 = vrot.slane %v8962_v54, 2  ;;  %v8992_v38 = vsel %vm19365_vm8, %v8990_v25, %v8991_v51  ;;  %vm19370_vm0 = vmmov %vm19369_vm10  ;;  %v19371_v54 = vld [vmem:[#allocation17_spill] sm:$0xff]  ;;  %vm10412_vm5 = vcmask 1044484   ;;  %vm10414_vm15 = vcmask 1046534  }
 0xcc9   :  { %v9000_v41 = vrot.slane %v8963_v27, 2  ;;  %v18573_v27 = vsub.f32 %v9095_v50, %v18557_v4  ;;  %vm10416_vm8 = vcmask 1045508  }
 0xcca   :  { %v8998_v30 = vsel %vm19366_vm12, %v8996_v60, %v8997_v62  ;;  %vm19380_vm12 = vmmov %vm19370_vm0 }
 0xcce   :  { %9031 = vrot.lane.b32.xlu0 %v8988_v46, %s12001_s3  ;;  %v8907_v46 = vmul.f32 %v8883_v17, %v19358_v9 }
 0xccf   :  { %9039 = vrot.lane.b32.xlu2 %v8994_v55, %s12001_s3  ;;  %9037 = vrot.lane.b32.xlu1 %v8995_v48, %s12001_s3  ;;  %v8812_v55 = vsub.f32 %v18099_v12, %v18353_v16  ;;  %v8814_v12 = vsub.f32 %v18141_v13, %v18353_v16 }
 0xcd0   :  { %v18523_v11 = vadd.f32 %v8907_v46, %v19359_v32  ;;  %v8813_v32 = vsub.f32 %v18101_v2, %v18353_v16  ;;  %v19368_v2 = vld [vmem:[#allocation16_spill] sm:$0xff] }
 0xcd1   :  { %v8869_v29 = vmul.f32 %v18470_v35, %v8812_v55  ;;  %v8871_v17 = vmul.f32 %v18470_v35, %v8814_v12  ;;  %v8815_v12 = vsub.f32 %v18184_v8, %v18353_v16 }
 0xcd2   :  { %v8955_v34 = vmax.f32 %v18523_v11, 0.0  ;;  %v8870_v58 = vmul.f32 %v18470_v35, %v8813_v32 }
 0xcd3   :  { %v8893_v60 = vmul.f32 %v8869_v29, %v19368_v2 }
 0xcd4   :  { %v8999_v9 = vrot.slane %v8955_v34, 2  ;;  %v8894_v21 = vmul.f32 %v8870_v58, %v19368_v2 }
 0xcd5   :  { %v8917_v32 = vadd.f32 %v8893_v60, %v19371_v54 }
 0xcd6   :  { %9033 = vrot.lane.b32.xlu0 %v8992_v38, %s12001_s3  ;;  %v9001_v36 = vsel %vm19367_vm13, %v8999_v9, %v9000_v41  ;;  %v8918_v25 = vadd.f32 %v8894_v21, %v19371_v54  ;;  %vm19381_vm13 = vcmask 1043456  }
 0xcd7   :  { %9041 = vrot.lane.b32.xlu2 %v8998_v30, %s12001_s3  ;;  %9047 = vrot.lane.b32.xlu1 %v9000_v41, %s12001_s3  ;;  %v18586_v30 = vand.u32 4294901760, %v18573_v27  ;;  %v8941_v21 = vmax.f32 %v8917_v32, 0.0 }
 0xcd8   :  { %v8942_v38 = vmax.f32 %v8918_v25, 0.0 }
 0xcde   :  { %9043 = vrot.lane.b32.xlu0 %v8997_v62, %s12001_s3 }
 0xcdf   :  { %9090 = vperm.xlu2 %11217, %v9087_v49  }
 0xce6   :  { %9045 = vrot.lane.b32.xlu0 %v9001_v36, %s12001_s3  ;;  %v8895_v36 = vmul.f32 %v8871_v17, %v19368_v2 }
 0xce8   :  { %v8919_v50 = vadd.f32 %v8895_v36, %v19371_v54 }
 0xcea   :  { %v8943_v60 = vmax.f32 %v8919_v50, 0.0 }
 0xd11   :  { %v9024_v14 = vpop.permute.xlu2 %9023 }
 0xd19   :  { %v18532_v51 = vpop.permute.xlu2 %9027 }
 0xd1a   :  { %v9067_v15 = vsel %vm9053_vm14, %v9024_v14, %v18532_v51 }
 0xd1b   :  { %v9079_v40 = vsel %vm18111_vm3, %v8950_v63, %v9067_v15 }
 0xd1c   :  { %v9101_v57 = vsel %vm19369_vm10, %v9079_v40, 0  ;;  %v9142_v40 = vsub.f32 %v18573_v27, %v18586_v30 }
 0xd1d   :  { %v18565_v48 = vand.u32 4294901760, %v9101_v57 }
 0xd1e   :  { %v18611_v25 = vand.u32 4294901760, %v9142_v40 }
 0xd1f   :  { %v18581_v62 = vsub.f32 %v9101_v57, %v18565_v48 }
 0xd21   :  { %v9323_v52 = vand.u32 4294901760, %v18581_v62 }
 0xd29   :  { %v18548_v0 = vpop.permute.xlu1 %9051 }
 0xd2a   :  { %v9069_v59 = vsel %vm9053_vm14, %v18548_v0, %v9024_v14 }
 0xd2b   :  { %v9078_v37 = vsel %vm18107_vm6, %v8949_v23, %v9069_v59 }
 0xd2c   :  { %v9098_v63 = vsel %vm19370_vm0, %v9078_v37, 0  ;;  %v9324_v37 = vsub.f32 %v18581_v62, %v9323_v52 }
 0xd2d   :  { %v18567_v10 = vand.u32 4294901760, %v9098_v63 }
 0xd2e   :  { %v9325_v3 = vand.u32 4294901760, %v9324_v37 }
 0xd2f   :  { %v9163_v26 = vsub.f32 %v9098_v63, %v18567_v10  ;;  %9136 = vmatpush.msra.mxu0 %v18567_v10  ;;  %9220 = vmatpush.msra.mxu3 %v18567_v10  ;;  %v18607_v63 = vpop.permute.xlu2 %9029 }
 0xd30   :  { %v9022_v23 = vpop.permute.xlu0 %9021 }
 0xd31   :  { %9195 = vmatpush.msra.mxu2 %v9163_v26  ;;  %v9026_v13 = vpop.permute.xlu1 %9025  ;;  %v9164_v41 = vand.u32 4294901760, %v9163_v26 }
 0xd32   :  { %v9066_v46 = vsel %vm9053_vm14, %v9022_v23, %v9026_v13 }
 0xd33   :  { %v9071_v49 = vsel %vm18111_vm3, %v8942_v38, %v9066_v46  ;;  %v9165_v9 = vsub.f32 %v9163_v26, %v9164_v41  ;;  %v9064_v26 = vsel %vm9053_vm14, %v9026_v13, %v18607_v63  ;;  %v8872_v38 = vmul.f32 %v18470_v35, %v8815_v12  ;;  %vm19374_vm3 = vmmov %vm19370_vm0 }
 0xd34   :  { %v18591_v14 = vand.u32 4294901760, %v9071_v49  ;;  %v9072_v8 = vsel %vm18145_vm4, %v8943_v60, %v9064_v26  ;;  %v8817_v60 = vsub.f32 %v18265_v24, %v18353_v16 }
 0xd35   :  { %v9166_v15 = vand.u32 4294901760, %v9165_v9  ;;  %v8896_v32 = vmul.f32 %v8872_v38, %v19368_v2 }
 0xd36   :  { %v9328_v58 = vsub.f32 %v9071_v49, %v18591_v14 }
 0xd37   :  { %9167 = vmatpush.msra.mxu1 %v9166_v15  ;;  %v18629_v15 = vand.u32 4294901760, %v9072_v8  ;;  %v8920_v7 = vadd.f32 %v8896_v32, %v19371_v54 }
 0xd38   :  { %v18599_v5 = vpop.permute.xlu0 %9049  ;;  %v9329_v57 = vand.u32 4294901760, %v9328_v58 }
 0xd39   :  { %v9068_v59 = vsel %vm9053_vm14, %v18599_v5, %v9022_v23  ;;  %v18604_v55 = vpop.permute.xlu1 %9035 }
 0xd3a   :  { %v9070_v29 = vsel %vm18107_vm6, %v8941_v21, %v9068_v59  ;;  %v9330_v23 = vsub.f32 %v9328_v58, %v9329_v57  ;;  %vm19373_vm6 = vmmov %vm19370_vm0 }
 0xd3b   :  { %v18618_v17 = vand.u32 4294901760, %v9070_v29 }
 0xd3c   :  { %v9331_v13 = vand.u32 4294901760, %v9330_v23 }
 0xd3d   :  { %9138 = vmatpush.msra.mxu0 %v18618_v17  ;;  %9222 = vmatpush.msra.mxu3 %v18618_v17  ;;  %v9169_v46 = vsub.f32 %v9070_v29, %v18618_v17 }
 0xd3e   :  { %9144 = vmatmul.f32.vlgmr.msra.gmra.mxu0 %v18611_v25  ;;  %9226 = vmatmul.f32.vlgmr.msra.gmra.mxu3 %v18586_v30 }
 0xd3f   :  { %9247 = vmatpush.msrb.mxu0 %v9164_v41  ;;  %9326 = vmatpush.msrb.mxu3 %v9325_v3  ;;  %v9170_v9 = vand.u32 4294901760, %v9169_v46  ;;  %v8944_v3 = vmax.f32 %v8920_v7, 0.0 }
 0xd40   :  { %9198 = vmatpush.msra.mxu2 %v9169_v46  ;;  %v9032_v36 = vpop.permute.xlu0 %9031 }
 0xd41   :  { %v9063_v40 = vsel %vm9053_vm14, %v9032_v36, %v18604_v55  ;;  %v9065_v50 = vsel %vm9053_vm14, %v18532_v51, %v9032_v36  ;;  %9201 = vmatmul.f32.vlgmr.msra.gmra.mxu2 %v18573_v27  ;;  %9332 = vmatpush.msrb.mxu3 %v9331_v13  ;;  %v18638_v41 = vpop.permute.xlu1 %9037  ;;  %v9171_v21 = vsub.f32 %v9169_v46, %v9170_v9 }
 0xd42   :  { %v9080_v59 = vsel %vm18145_vm4, %v8951_v28, %v9065_v50  ;;  %v9081_v37 = vsel %vm18158_vm7, %v8952_v19, %v9063_v40  ;;  %9295 = vmatpush.msrb.mxu2 %v18565_v48  ;;  %9251 = vmatpush.msrb.mxu0 %v9170_v9  ;;  %v18661_v19 = vsub.f32 %v9072_v8, %v18629_v15  ;;  %vm19375_vm4 = vmmov %vm19370_vm0 }
 0xd43   :  { %v9104_v51 = vsel %vm19373_vm6, %v9080_v59, 0  ;;  %v9107_v29 = vsel %vm19374_vm3, %v9081_v37, 0  ;;  %9431 = vmatpush.msra.mxu3 %v18565_v48  ;;  %v9172_v47 = vand.u32 4294901760, %v9171_v21  ;;  %v8900_v59 = vmul.f32 %v18490_v61, %v19368_v2 }
 0xd44   :  { %9354 = vmatpush.msra.mxu0 %v18581_v62  ;;  %v18653_v12 = vand.u32 4294901760, %v9104_v51  ;;  %v18655_v28 = vand.u32 4294901760, %v9107_v29  ;;  %9297 = vmatpush.msrb.mxu2 %v18591_v14  ;;  %v8816_v62 = vsub.f32 %v18239_v1, %v18353_v16  ;;  %v9488_v16 = vand.u32 4294901760, %v18661_v19 }
 0xd45   :  { %9433 = vmatpush.msra.mxu3 %v18591_v14  ;;  %9173 = vmatpush.msra.mxu1 %v9172_v47 }
 0xd46   :  { %9406 = vmatpush.msra.mxu2 %v9323_v52  ;;  %v9481_v26 = vsub.f32 %v9104_v51, %v18653_v12  ;;  %v18665_v23 = vsub.f32 %v9107_v29, %v18655_v28  ;;  %9357 = vmatpush.msra.mxu0 %v9328_v58  ;;  %v8873_v38 = vmul.f32 %v18470_v35, %v8816_v62 }
 0xd47   :  { %9175 = vmatmul.f32.vlgmr.msra.gmra.mxu1 %v18557_v4  ;;  %9253 = vmatmul.f32.vlgmr.msrb.gmra.mxu0 %v18557_v4  ;;  %v9489_v9 = vsub.f32 %v18661_v19, %v9488_v16 }
 0xd48   :  { %9410 = vmatpush.msra.mxu2 %v9329_v57  ;;  %9272 = vmatpush.msrb.mxu1 %v18567_v10  ;;  %v9034_v52 = vpop.permute.xlu0 %9033  ;;  %v9482_v46 = vand.u32 4294901760, %v9481_v26  ;;  %v9641_v58 = vand.u32 4294901760, %v18665_v23  ;;  %v9040_v10 = vpop.permute.xlu2 %9039  ;;  %v8874_v57 = vmul.f32 %v18470_v35, %v8817_v60  ;;  %v8897_v13 = vmul.f32 %v8873_v38, %v19368_v2 }
 0xd49   :  { %9334 = vmatmul.f32.vlgmr.msrb.gmra.mxu3 %v18557_v4  ;;  %9454 = vmatpush.msrb.mxu0 %v18653_v12  ;;  %v9062_v1 = vsel %vm9053_vm14, %v18607_v63, %v9034_v52  ;;  %v18681_v24 = vpop.permute.xlu1 %9047  ;;  %v9061_v36 = vsel %vm9053_vm14, %v18604_v55, %v9040_v10  ;;  %v8899_v55 = vmul.f32 %v18487_v20, %v19368_v2  ;;  %v9490_v51 = vand.u32 4294901760, %v9489_v9 }
 0xd4a   :  { %9538 = vmatpush.msrb.mxu3 %v18653_v12  ;;  %v9073_v49 = vsel %vm18158_vm7, %v8944_v3, %v9062_v1  ;;  %9274 = vmatpush.msrb.mxu1 %v18618_v17  ;;  %v18693_v8 = vsel %vm9053_vm14, %v18681_v24, %v18548_v0  ;;  %v9483_v35 = vsub.f32 %v9481_v26, %v9482_v46  ;;  %vm19376_vm7 = vmmov %vm19370_vm0 }
 0xd4b   :  { %v18695_v63 = vand.u32 4294901760, %v9073_v49  ;;  %9303 = vmatmul.f32.vlgmr.msrb.gmra.mxu2 %v18611_v25  ;;  %9456 = vmatpush.msrb.mxu0 %v18629_v15  ;;  %v9642_v42 = vsub.f32 %v18665_v23, %v9641_v58  ;;  %v8898_v32 = vmul.f32 %v8874_v57, %v19368_v2  ;;  %v8921_v21 = vadd.f32 %v8897_v13, %v19371_v54 }
 0xd4c   :  { %9513 = vmatpush.msrb.mxu2 %v9481_v26  ;;  %9540 = vmatpush.msrb.mxu3 %v18629_v15  ;;  %v9484_v0 = vand.u32 4294901760, %v9483_v35  ;;  %v8923_v39 = vadd.f32 %v8899_v55, %v19371_v54  ;;  %v9085_v33 = vsel %vm18267_vm11, %v8956_v56, %v18693_v8 }
 0xd4d   :  { %v18705_v17 = vsub.f32 %v9073_v49, %v18695_v63  ;;  %9379 = vmatpush.msra.mxu1 %v18565_v48  ;;  %v9643_v40 = vand.u32 4294901760, %v9642_v42  ;;  %v8922_v20 = vadd.f32 %v8898_v32, %v19371_v54  ;;  %v8945_v7 = vmax.f32 %v8921_v21, 0.0 }
 0xd4e   :  { %9516 = vmatpush.msrb.mxu2 %v18661_v19  ;;  %v8924_v19 = vadd.f32 %v8900_v59, %v19371_v54 }
 0xd4f   :  { %9381 = vmatpush.msra.mxu1 %v18591_v14  ;;  %v9647_v50 = vand.u32 4294901760, %v18705_v17  ;;  %9360 = vmatmul.f32.vlgmr.msra.gmra.mxu0 %v18573_v27  ;;  %v9082_v14 = vsel %vm18212_vm9, %v8953_v45, %v9061_v36  ;;  %v9060_v45 = vsel %vm9053_vm14, %v9034_v52, %v18638_v41  ;;  %v8946_v62 = vmax.f32 %v8922_v20, 0.0 }
 0xd50   :  { %9276 = vmatmul.f32.vlgmr.msrb.gmra.mxu1 %v18557_v4  ;;  %v18719_v48 = vpop.permute.xlu0 %9043  ;;  %9565 = vmatpush.msra.mxu0 %v9482_v46  ;;  %v9042_v2 = vpop.permute.xlu2 %9041  ;;  %v9110_v47 = vsel %vm19375_vm4, %v9082_v14, 0  ;;  %v9074_v60 = vsel %vm18212_vm9, %v8945_v7, %v9060_v45  ;;  %v8948_v46 = vmax.f32 %v8924_v19, 0.0  ;;  %vm19377_vm9 = vmmov %vm19370_vm0 }
 0xd51   :  { %9435 = vmatmul.f32.vlgmr.msra.gmra.mxu3 %v18557_v4  ;;  %9485 = vmatpush.msrb.mxu1 %v9484_v0  ;;  %v9059_v37 = vsel %vm9053_vm14, %v9040_v10, %v18719_v48  ;;  %v9648_v29 = vsub.f32 %v18705_v17, %v9647_v50  ;;  %v18754_v52 = vand.u32 4294901760, %v9110_v47  ;;  %v18762_v1 = vand.u32 4294901760, %v9074_v60 }
 0xd52   :  { %9644 = vmatpush.msra.mxu3 %v9643_v40  ;;  %v9083_v53 = vsel %vm18229_vm2, %v8954_v18, %v9059_v37  ;;  %9569 = vmatpush.msra.mxu0 %v9488_v16  ;;  %v9058_v18 = vsel %vm9053_vm14, %v18638_v41, %v9042_v2  ;;  %v8947_v41 = vmax.f32 %v8923_v39, 0.0 }
 0xd53   :  { %9412 = vmatmul.f32.vlgmr.msra.gmra.mxu2 %v18557_v4  ;;  %9491 = vmatpush.msrb.mxu1 %v9490_v51  ;;  %v9649_v61 = vand.u32 4294901760, %v9648_v29  ;;  %v9113_v26 = vsel %vm19376_vm7, %v9083_v53, 0  ;;  %v9075_v38 = vsel %vm18229_vm2, %v8946_v62, %v9058_v18  ;;  %v9805_v49 = vsub.f32 %v9074_v60, %v18762_v1 }
 0xd54   :  { %9613 = vmatpush.msra.mxu2 %v18655_v28  ;;  %v18758_v3 = vand.u32 4294901760, %v9113_v26  ;;  %v18782_v57 = vand.u32 4294901760, %v9075_v38  ;;  %vm19379_vm2 = vcmask 1040384  }
 0xd55   :  { %9650 = vmatpush.msra.mxu3 %v9649_v61 }
 0xd56   :  { %9615 = vmatpush.msra.mxu2 %v18695_v63  ;;  %v9964_v35 = vsub.f32 %v9075_v38, %v18782_v57 }
 0xd57   :  { %9462 = vmatmul.f32.vlgmr.msrb.gmra.mxu0 %v18611_v25 }
 0xd58   :  { %9385 = vmatmul.f32.vlgmr.msra.gmra.mxu1 %v18586_v30  ;;  %v9046_v54 = vpop.permute.xlu0 %9045  ;;  %9672 = vmatpush.msrb.mxu0 %v18665_v23  ;;  %v9806_v23 = vand.u32 4294901760, %v9805_v49  ;;  %v9965_v42 = vand.u32 4294901760, %v9964_v35  ;;  %v9091_v39 = vpop.permute.xlu2 %9090 }
 0xd59   :  { %9544 = vmatmul.f32.vlgmr.msrb.gmra.mxu3 %v18586_v30  ;;  %9590 = vmatpush.msra.mxu1 %v18653_v12  ;;  %v9054_v43 = vsel %vm9053_vm14, %v9046_v54, %v18599_v5  ;;  %v9056_v22 = vsel %vm9053_vm14, %v9042_v2, %v9046_v54  ;;  %v9799_v12 = vsub.f32 %v9110_v47, %v18754_v52  ;;  %v18870_v19 = vperm.slane %v9091_v39, 0 }
 0xd5a   :  { %9749 = vmatpush.msrb.mxu3 %v18655_v28  ;;  %v18775_v16 = vsel %vm18225_vm1, %v8947_v41, %v9056_v22  ;;  %v18779_v10 = vsel %vm18267_vm11, %v8948_v46, %v9054_v43  ;;  %v18787_v5 = vsub.f32 %v9113_v26, %v18758_v3  ;;  %9675 = vmatpush.msrb.mxu0 %v18705_v17  ;;  %vm10409_vm11 = vcmask 1042434  }
 0xd5b   :  { %9519 = vmatmul.f32.vlgmr.msrb.gmra.mxu2 %v18573_v27  ;;  %9592 = vmatpush.msra.mxu1 %v18629_v15  ;;  %v9800_v13 = vand.u32 4294901760, %v9799_v12  ;;  %v9807_v0 = vsub.f32 %v9805_v49, %v9806_v23  ;;  %v9966_v36 = vsub.f32 %v9964_v35, %v9965_v42  ;;  %v10091_v6 = vand.u32 4294901760, %v18775_v16 }
 0xd5c   :  { %9724 = vmatpush.msrb.mxu2 %v9641_v58  ;;  %9751 = vmatpush.msrb.mxu3 %v18695_v63  ;;  %v9959_v15 = vand.u32 4294901760, %v18787_v5  ;;  %v10250_v8 = vand.u32 4294901760, %v18779_v10 }
 0xd5d   :  { %v9801_v58 = vsub.f32 %v9799_v12, %v9800_v13  ;;  %v9808_v40 = vand.u32 4294901760, %v9807_v0  ;;  %v10123_v21 = vsub.f32 %v18775_v16, %v10091_v6 }
 0xd5e   :  { %9728 = vmatpush.msrb.mxu2 %v9647_v50  ;;  %v9960_v17 = vsub.f32 %v18787_v5, %v9959_v15 }
 0xd5f   :  { %9571 = vmatmul.f32.vlgmr.msra.gmra.mxu0 %v18557_v4  ;;  %v9802_v9 = vand.u32 4294901760, %v9801_v58  ;;  %v10124_v14 = vand.u32 4294901760, %v10123_v21 }
 0xd60   :  { %9493 = vmatmul.f32.vlgmr.msrb.gmra.mxu1 %v18557_v4  ;;  %9772 = vmatpush.msra.mxu0 %v18754_v52 }
 0xd61   :  { %9652 = vmatmul.f32.vlgmr.msra.gmra.mxu3 %v18557_v4  ;;  %9697 = vmatpush.msrb.mxu1 %v18655_v28  ;;  %v9057_v28 = vsel %vm9053_vm14, %v18719_v48, %v18681_v24  ;;  %v9967_v24 = vand.u32 4294901760, %v9966_v36  ;;  %v10282_v48 = vsub.f32 %v18779_v10, %v10250_v8  ;;  %v10125_v20 = vsub.f32 %v10123_v21, %v10124_v14 }
 0xd62   :  { %9856 = vmatpush.msra.mxu3 %v18754_v52  ;;  %9774 = vmatpush.msra.mxu0 %v18762_v1  ;;  %v9084_v32 = vsel %vm18225_vm1, %v8955_v34, %v9057_v28  ;;  %vm19378_vm1 = vmmov %vm19370_vm0 }
 0xd63   :  { %9621 = vmatmul.f32.vlgmr.msra.gmra.mxu2 %v18611_v25  ;;  %9699 = vmatpush.msrb.mxu1 %v18695_v63  ;;  %v9961_v63 = vand.u32 4294901760, %v9960_v17  ;;  %v9116_v11 = vsel %vm19377_vm9, %v9084_v32, 0  ;;  %v9119_v44 = vsel %vm19378_vm1, %v9085_v33, 0  ;;  %v10283_v51 = vand.u32 4294901760, %v10282_v48 }
 0xd64   :  { %9831 = vmatpush.msra.mxu2 %v9799_v12  ;;  %9858 = vmatpush.msra.mxu3 %v18762_v1  ;;  %v10089_v31 = vand.u32 4294901760, %v9116_v11  ;;  %v18828_v34 = vand.u32 4294901760, %v9119_v44  ;;  %v10126_v2 = vand.u32 4294901760, %v10125_v20 }
 0xd65   :  { %v10284_v45 = vsub.f32 %v10282_v48, %v10283_v51 }
 0xd66   :  { %9834 = vmatpush.msra.mxu2 %v9805_v49  ;;  %v10117_v56 = vsub.f32 %v9116_v11, %v10089_v31  ;;  %v10276_v50 = vsub.f32 %v9119_v44, %v18828_v34 }
 0xd67   :  { %9678 = vmatmul.f32.vlgmr.msrb.gmra.mxu0 %v18573_v27  ;;  %v10285_v47 = vand.u32 4294901760, %v10284_v45 }
 0xd68   :  { %9594 = vmatmul.f32.vlgmr.msra.gmra.mxu1 %v18557_v4  ;;  %9883 = vmatpush.msrb.mxu0 %v9800_v13  ;;  %v10118_v55 = vand.u32 4294901760, %v10117_v56  ;;  %v10277_v59 = vand.u32 4294901760, %v10276_v50 }
 0xd69   :  { %9753 = vmatmul.f32.vlgmr.msrb.gmra.mxu3 %v18557_v4  ;;  %9803 = vmatpush.msra.mxu1 %v9802_v9 }
 0xd6a   :  { %9962 = vmatpush.msrb.mxu3 %v9961_v63  ;;  %9887 = vmatpush.msrb.mxu0 %v9806_v23  ;;  %v10119_v37 = vsub.f32 %v10117_v56, %v10118_v55  ;;  %v10278_v29 = vsub.f32 %v10276_v50, %v10277_v59 }
 0xd6b   :  { %9730 = vmatmul.f32.vlgmr.msrb.gmra.mxu2 %v18557_v4  ;;  %9809 = vmatpush.msra.mxu1 %v9808_v40 }
 0xd6c   :  { %9931 = vmatpush.msrb.mxu2 %v18758_v3  ;;  %9968 = vmatpush.msrb.mxu3 %v9967_v24  ;;  %v10120_v53 = vand.u32 4294901760, %v10119_v37  ;;  %v10279_v61 = vand.u32 4294901760, %v10278_v29 }
 0xd6e   :  { %9933 = vmatpush.msrb.mxu2 %v18782_v57 }
 0xd6f   :  { %9780 = vmatmul.f32.vlgmr.msra.gmra.mxu0 %v18611_v25 }
 0xd70   :  { %9703 = vmatmul.f32.vlgmr.msrb.gmra.mxu1 %v18586_v30  ;;  %9990 = vmatpush.msra.mxu0 %v18787_v5 }
 0xd71   :  { %9862 = vmatmul.f32.vlgmr.msra.gmra.mxu3 %v18586_v30  ;;  %9908 = vmatpush.msrb.mxu1 %v18754_v52 }
 0xd72   :  { %10067 = vmatpush.msra.mxu3 %v18758_v3  ;;  %9993 = vmatpush.msra.mxu0 %v9964_v35 }
 0xd73   :  { %9837 = vmatmul.f32.vlgmr.msra.gmra.mxu2 %v18573_v27  ;;  %9910 = vmatpush.msrb.mxu1 %v18762_v1 }
 0xd74   :  { %10042 = vmatpush.msra.mxu2 %v9959_v15  ;;  %10069 = vmatpush.msra.mxu3 %v18782_v57 }
 0xd76   :  { %10046 = vmatpush.msra.mxu2 %v9965_v42 }
 0xd77   :  { %9889 = vmatmul.f32.vlgmr.msrb.gmra.mxu0 %v18557_v4 }
 0xd78   :  { %9811 = vmatmul.f32.vlgmr.msra.gmra.mxu1 %v18557_v4  ;;  %10090 = vmatpush.msrb.mxu0 %v10089_v31 }
 0xd79   :  { %9970 = vmatmul.f32.vlgmr.msrb.gmra.mxu3 %v18557_v4  ;;  %10015 = vmatpush.msra.mxu1 %v18758_v3 }
 0xd7a   :  { %10174 = vmatpush.msrb.mxu3 %v10089_v31  ;;  %10092 = vmatpush.msrb.mxu0 %v10091_v6 }
 0xd7b   :  { %9939 = vmatmul.f32.vlgmr.msrb.gmra.mxu2 %v18611_v25  ;;  %10017 = vmatpush.msra.mxu1 %v18782_v57 }
 0xd7c   :  { %10149 = vmatpush.msrb.mxu2 %v10117_v56  ;;  %10176 = vmatpush.msrb.mxu3 %v10091_v6 }
 0xd7e   :  { %10152 = vmatpush.msrb.mxu2 %v10123_v21 }
 0xd7f   :  { %9996 = vmatmul.f32.vlgmr.msra.gmra.mxu0 %v18573_v27 }
 0xd80   :  { %9912 = vmatmul.f32.vlgmr.msrb.gmra.mxu1 %v18557_v4  ;;  %10201 = vmatpush.msra.mxu0 %v10118_v55 }
 0xd81   :  { %10071 = vmatmul.f32.vlgmr.msra.gmra.mxu3 %v18557_v4  ;;  %10121 = vmatpush.msrb.mxu1 %v10120_v53 }
 0xd82   :  { %10280 = vmatpush.msra.mxu3 %v10279_v61  ;;  %10205 = vmatpush.msra.mxu0 %v10124_v14 }
 0xd83   :  { %10048 = vmatmul.f32.vlgmr.msra.gmra.mxu2 %v18557_v4  ;;  %10127 = vmatpush.msrb.mxu1 %v10126_v2 }
 0xd84   :  { %10249 = vmatpush.msra.mxu2 %v18828_v34  ;;  %10286 = vmatpush.msra.mxu3 %v10285_v47 }
 0xd86   :  { %10251 = vmatpush.msra.mxu2 %v10250_v8 }
 0xd87   :  { %10098 = vmatmul.f32.vlgmr.msrb.gmra.mxu0 %v18611_v25 }
 0xd88   :  { %10021 = vmatmul.f32.vlgmr.msra.gmra.mxu1 %v18586_v30  ;;  %10308 = vmatpush.msrb.mxu0 %v10276_v50 }
 0xd89   :  { %10180 = vmatmul.f32.vlgmr.msrb.gmra.mxu3 %v18586_v30  ;;  %10226 = vmatpush.msra.mxu1 %v10089_v31 }
 0xd8a   :  { %10385 = vmatpush.msrb.mxu3 %v18828_v34  ;;  %10311 = vmatpush.msrb.mxu0 %v10282_v48 }
 0xd8b   :  { %10155 = vmatmul.f32.vlgmr.msrb.gmra.mxu2 %v18573_v27  ;;  %10228 = vmatpush.msra.mxu1 %v10091_v6 }
 0xd8c   :  { %10360 = vmatpush.msrb.mxu2 %v10277_v59  ;;  %10387 = vmatpush.msrb.mxu3 %v10250_v8 }
 0xd8e   :  { %10364 = vmatpush.msrb.mxu2 %v10283_v51 }
 0xd8f   :  { %10207 = vmatmul.f32.vlgmr.msra.gmra.mxu0 %v18557_v4 }
 0xd90   :  { %10129 = vmatmul.f32.vlgmr.msrb.gmra.mxu1 %v18557_v4 }
 0xd91   :  { %10333 = vmatpush.msrb.mxu1 %v18828_v34  ;;  %10288 = vmatmul.f32.vlgmr.msra.gmra.mxu3 %v18557_v4 }
 0xd93   :  { %10257 = vmatmul.f32.vlgmr.msra.gmra.mxu2 %v18611_v25  ;;  %10335 = vmatpush.msrb.mxu1 %v10250_v8 }
 0xd97   :  { %10314 = vmatmul.f32.vlgmr.msrb.gmra.mxu0 %v18573_v27 }
 0xd98   :  { %10230 = vmatmul.f32.vlgmr.msra.gmra.mxu1 %v18557_v4 }
 0xd99   :  { %10389 = vmatmul.f32.vlgmr.msrb.gmra.mxu3 %v18557_v4 }
 0xd9b   :  { %10366 = vmatmul.f32.vlgmr.msrb.gmra.mxu2 %v18557_v4 }
 0xda0   :  { %10339 = vmatmul.f32.vlgmr.msrb.gmra.mxu1 %v18586_v30 }
 0xdbb   :  { %v9145_v7 = vpop.f32.mrf.mxu0 }
 0xdbc   :  { %v9146_v26 = vadd.f32 %v9145_v7, %v18870_v19 }
 0xdc1   :  { %v9227_v18 = vpop.f32.mrf.mxu3 }
 0xdc4   :  { %v9176_v62 = vpop.f32.mrf.mxu1  ;;  %v9202_v25 = vpop.f32.mrf.mxu2 }
 0xdc5   :  { %v9177_v60 = vadd.f32 %v9176_v62, %v9146_v26  ;;  %v9254_v52 = vpop.f32.mrf.mxu0 }
 0xdc7   :  { %v9203_v38 = vadd.f32 %v9202_v25, %v9177_v60 }
 0xdc9   :  { %v9228_v3 = vadd.f32 %v9227_v18, %v9203_v38 }
 0xdcb   :  { %v9255_v27 = vadd.f32 %v9254_v52, %v9228_v3 }
 0xdcc   :  { %v9335_v54 = vpop.f32.mrf.mxu3 }
 0xdcd   :  { %v9277_v41 = vpop.f32.mrf.mxu1  ;;  %v9361_v46 = vpop.f32.mrf.mxu0 }
 0xdce   :  { %v9278_v4 = vadd.f32 %v9277_v41, %v9255_v27  ;;  %v9304_v1 = vpop.f32.mrf.mxu2 }
 0xdcf   :  { %v9305_v30 = vadd.f32 %v9304_v1, %v18870_v19 }
 0xdd1   :  { %v9336_v43 = vadd.f32 %v9335_v54, %v9305_v30 }
 0xdd3   :  { %v9362_v22 = vadd.f32 %v9361_v46, %v9336_v43 }
 0xdd4   :  { %v9436_v16 = vpop.f32.mrf.mxu3 }
 0xdd5   :  { %v9386_v10 = vpop.f32.mrf.mxu1  ;;  %v9463_v12 = vpop.f32.mrf.mxu0 }
 0xdd6   :  { %v9387_v57 = vadd.f32 %v9386_v10, %v9362_v22  ;;  %v9413_v5 = vpop.f32.mrf.mxu2  ;;  %v9464_v14 = vadd.f32 %v9463_v12, %v18870_v19 }
 0xdd8   :  { %v9414_v49 = vadd.f32 %v9413_v5, %v9387_v57 }
 0xdda   :  { %v9437_v35 = vadd.f32 %v9436_v16, %v9414_v49 }
 0xddc   :  { %v10401_v13 = vrot.slane %v9437_v35, 7  ;;  %v9545_v15 = vpop.f32.mrf.mxu3 }
 0xddd   :  { %v9494_v23 = vpop.f32.mrf.mxu1  ;;  %v9572_v58 = vpop.f32.mrf.mxu0 }
 0xdde   :  { %v18875_v42 = vsel %vm19379_vm2, %v9278_v4, %v10401_v13  ;;  %v9520_v17 = vpop.f32.mrf.mxu2  ;;  %v9495_v29 = vadd.f32 %v9494_v23, %v9464_v14 }
 0xde0   :  { %v9521_v26 = vadd.f32 %v9520_v17, %v9495_v29 }
 0xde2   :  { %v9546_v3 = vadd.f32 %v9545_v15, %v9521_v26 }
 0xde4   :  { %v9653_v0 = vpop.f32.mrf.mxu3  ;;  %v9573_v22 = vadd.f32 %v9572_v58, %v9546_v3 }
 0xde5   :  { %v9595_v28 = vpop.f32.mrf.mxu1  ;;  %v9679_v9 = vpop.f32.mrf.mxu0 }
 0xde6   :  { %v9622_v36 = vpop.f32.mrf.mxu2  ;;  %v9596_v13 = vadd.f32 %v9595_v28, %v9573_v22 }
 0xde7   :  { %v9623_v59 = vadd.f32 %v9622_v36, %v18870_v19 }
 0xde9   :  { %v9654_v20 = vadd.f32 %v9653_v0, %v9623_v59 }
 0xdeb   :  { %v9680_v62 = vadd.f32 %v9679_v9, %v9654_v20 }
 0xdec   :  { %v9754_v63 = vpop.f32.mrf.mxu3 }
 0xded   :  { %v9704_v32 = vpop.f32.mrf.mxu1  ;;  %v9781_v40 = vpop.f32.mrf.mxu0 }
 0xdee   :  { %v9731_v33 = vpop.f32.mrf.mxu2  ;;  %v9782_v45 = vadd.f32 %v9781_v40, %v18870_v19  ;;  %v9705_v25 = vadd.f32 %v9704_v32, %v9680_v62 }
 0xdf0   :  { %v9732_v4 = vadd.f32 %v9731_v33, %v9705_v25  ;;  %v10402_v33 = vrot.slane %v9596_v13, 6 }
 0xdf2   :  { %v9755_v57 = vadd.f32 %v9754_v63, %v9732_v4 }
 0xdf4   :  { %v9863_v24 = vpop.f32.mrf.mxu3  ;;  %v10403_v9 = vrot.slane %v9755_v57, 5 }
 0xdf5   :  { %v9812_v11 = vpop.f32.mrf.mxu1  ;;  %v9890_v44 = vpop.f32.mrf.mxu0 }
 0xdf6   :  { %v9838_v31 = vpop.f32.mrf.mxu2  ;;  %v9813_v7 = vadd.f32 %v9812_v11, %v9782_v45  ;;  %v10410_v11 = vsel %vm10409_vm11, %v10402_v33, %v10403_v9 }
 0xdf8   :  { %v9839_v60 = vadd.f32 %v9838_v31, %v9813_v7 }
 0xdfa   :  { %v9864_v30 = vadd.f32 %v9863_v24, %v9839_v60 }
 0xdfc   :  { %v9971_v34 = vpop.f32.mrf.mxu3  ;;  %v9891_v5 = vadd.f32 %v9890_v44, %v9864_v30 }
 0xdfd   :  { %v9913_v6 = vpop.f32.mrf.mxu1  ;;  %v9997_v56 = vpop.f32.mrf.mxu0 }
 0xdfe   :  { %v9940_v8 = vpop.f32.mrf.mxu2  ;;  %v9914_v32 = vadd.f32 %v9913_v6, %v9891_v5  ;;  %v10411_v6 = vsel %vm19380_vm12, %v18875_v42, %v10410_v11 }
 0xdff   :  { %v9941_v37 = vadd.f32 %v9940_v8, %v18870_v19 }
 0xe00   :  { %v10404_v63 = vrot.slane %v9914_v32, 4 }
 0xe01   :  { %v9972_v39 = vadd.f32 %v9971_v34, %v9941_v37 }
 0xe03   :  { %v9998_v52 = vadd.f32 %v9997_v56, %v9972_v39 }
 0xe04   :  { %v10072_v50 = vpop.f32.mrf.mxu3 }
 0xe05   :  { %v10022_v21 = vpop.f32.mrf.mxu1  ;;  %v10099_v55 = vpop.f32.mrf.mxu0 }
 0xe06   :  { %v10049_v48 = vpop.f32.mrf.mxu2  ;;  %v10100_v61 = vadd.f32 %v10099_v55, %v18870_v19  ;;  %v10023_v54 = vadd.f32 %v10022_v21, %v9998_v52 }
 0xe08   :  { %v10050_v12 = vadd.f32 %v10049_v48, %v10023_v54 }
 0xe0a   :  { %v10073_v15 = vadd.f32 %v10072_v50, %v10050_v12 }
 0xe0c   :  { %v10181_v51 = vpop.f32.mrf.mxu3  ;;  %v10405_v58 = vrot.slane %v10073_v15, 3 }
 0xe0d   :  { %v10130_v53 = vpop.f32.mrf.mxu1  ;;  %v10208_v47 = vpop.f32.mrf.mxu0 }
 0xe0e   :  { %v10156_v2 = vpop.f32.mrf.mxu2  ;;  %v10131_v18 = vadd.f32 %v10130_v53, %v10100_v61  ;;  %v10413_v28 = vsel %vm10412_vm5, %v10404_v63, %v10405_v58 }
 0xe10   :  { %v10157_v38 = vadd.f32 %v10156_v2, %v10131_v18 }
 0xe12   :  { %v10182_v43 = vadd.f32 %v10181_v51, %v10157_v38 }
 0xe14   :  { %v10289_v46 = vpop.f32.mrf.mxu3  ;;  %v10209_v49 = vadd.f32 %v10208_v47, %v10182_v43 }
 0xe15   :  { %v10231_v27 = vpop.f32.mrf.mxu1  ;;  %v10315_v10 = vpop.f32.mrf.mxu0 }
 0xe16   :  { %v10258_v41 = vpop.f32.mrf.mxu2 }
 0xe17   :  { %v10259_v1 = vadd.f32 %v10258_v41, %v18870_v19  ;;  %v10232_v19 = vadd.f32 %v10231_v27, %v10209_v49 }
 0xe19   :  { %v10290_v16 = vadd.f32 %v10289_v46, %v10259_v1  ;;  %v10406_v44 = vrot.slane %v10232_v19, 2 }
 0xe1b   :  { %v10316_v35 = vadd.f32 %v10315_v10, %v10290_v16 }
 0xe1c   :  { %v10390_v36 = vpop.f32.mrf.mxu3 }
 0xe1d   :  { %v10340_v23 = vpop.f32.mrf.mxu1 }
 0xe1e   :  { %v10341_v17 = vadd.f32 %v10340_v23, %v10316_v35  ;;  %v10367_v0 = vpop.f32.mrf.mxu2 }
 0xe20   :  { %v10368_v40 = vadd.f32 %v10367_v0, %v10341_v17 }
 0xe22   :  { %v10391_v24 = vadd.f32 %v10390_v36, %v10368_v40 }
 0xe24   :  { %v10407_v31 = vrot.slane %v10391_v24, 1 }
 0xe26   :  { %v10415_v34 = vsel %vm10414_vm15, %v10406_v44, %v10407_v31 }
 0xe27   :  { %v10417_v56 = vsel %vm10416_vm8, %v10413_v28, %v10415_v34 }
 0xe28   :  { %v10418_v8 = vsel %vm19381_vm13, %v10411_v6, %v10417_v56 }
 0xe29   :  { %10420 = vst [vmem:[#allocation3] sm:$0xff] %v10418_v8 }
 0xe2a   :  { %10431 = dma.vmem_to_hbm [thread:$0]  %s10427_s12, 128, %s10429_s15, [#allocation4]  }
 0xe2b   :  { %11981 = dma.done.wait [#allocation4], 128  }
 0xe2c   :  { %11982 = vsyncadd [#allocation4], 4294967168 }
 0xe2d   :  { %10436 = vsyncpa [#allocation4], 1 }

</bundles_post_ra>
